<compile_context>
chip_gen: v7x
topology: tpu7x:2x2x1
jax: 0.10.0
libtpu: 0.0.40
codegen_flags: <defaults>
</compile_context>

<pallas_src>
import jax
import jax.numpy as jnp
from jax import lax
from jax.experimental import pallas as pl
from jax.experimental.pallas import tpu as pltpu

HID = 256        # hidden channel width of the module
CP = 128         # lane-dense padded predictor width (num_classes <= CP)


# ------------------------------ fused kernel --------------------------------

def fused_sseg_head_kernel(x_ref,
                           w1_ref, b1_ref, w2_ref, b2_ref,
                           w3_ref, b3_ref, w4_ref, b4_ref,
                           wd_ref, bd_ref, wp_ref, bp_ref,
                           o_ref,
                           padA, padB, col):
    # x_ref : (NB, H, W, Cin)        f32 input tile
    # w*_ref: (9*C, Ch) bf16         im2col conv weights (BN scale folded)
    # b*_ref: (1, Ch)  f32           folded BN bias
    # wd_ref: (Ch, 4*Ch) bf16        deconv weight, col block k = kh*2+kw
    # wp_ref: (Ch, CP)  bf16         predictor weight (zero-padded to CP lanes)
    # o_ref : (NB, 4, H, W, CP) f32  block-layout output (quadrant axis = 1)
    # padA  : (NB, H+2, W+2, Cmax) f32 scratch (padded activations, ping)
    # padB  : (NB, H+2, W+2, Ch)   f32 scratch (padded activations, pong)
    # col   : (NB*H*W, 9*Cmax) bf16 scratch (im2col patches)
    NB, H, W, Cin = x_ref.shape
    Ch = padB.shape[-1]
    Cp = o_ref.shape[-1]
    M = NB * H * W

    # zero the padded buffers (only the halo really needs it; cheap at this size)
    padA[...] = jnp.zeros_like(padA)
    padB[...] = jnp.zeros_like(padB)

    # stage the input image into the padded interior
    padA[:, 1:H + 1, 1:W + 1, :Cin] = x_ref[...].astype(padA.dtype)

    def conv3x3_bn_relu(src, C, w_ref, b_ref, dst):
        # im2col into VMEM scratch (taps at 128-aligned lane offsets), then one
        # big-K bf16 MXU dot with f32 accumulation.
        for kh in range(3):
            for kw in range(3):
                k = kh * 3 + kw
                tap = src[:, kh:kh + H, kw:kw + W, :C].reshape(M, C)
                col[:, k * C:(k + 1) * C] = tap.astype(jnp.bfloat16)
        y = jnp.dot(col[:, :9 * C], w_ref[...],
                    preferred_element_type=jnp.float32)          # (M, Ch)
        y = jnp.maximum(y + b_ref[...], 0.0)                     # bias + ReLU
        if dst is not None:
            dst[:, 1:H + 1, 1:W + 1, :Ch] = y.reshape(NB, H, W, Ch)
        return y

    conv3x3_bn_relu(padA, Cin, w1_ref, b1_ref, padB)
    conv3x3_bn_relu(padB, Ch, w2_ref, b2_ref, padA)
    conv3x3_bn_relu(padA, Ch, w3_ref, b3_ref, padB)
    act4 = conv3x3_bn_relu(padB, Ch, w4_ref, b4_ref, None)       # (M, Ch) f32
    act4_bf16 = act4.astype(jnp.bfloat16)

    # ConvTranspose2d(k=2, s=2) + BN + ReLU fused with the 1x1 predictor.
    # One 2x2 quadrant (kh, kw) per iteration; no in-kernel pixel shuffle —
    # output is stored in (NB, 4, H, W, CP) block layout with dense 128-lane
    # stores and un-shuffled by cheap XLA reshapes outside.
    for k in range(4):
        wd_k = wd_ref[:, k * Ch:(k + 1) * Ch]                    # (Ch, Ch) bf16
        yk = jnp.dot(act4_bf16, wd_k, preferred_element_type=jnp.float32)
        yk = jnp.maximum(yk + bd_ref[...], 0.0)                  # (M, Ch)
        zk = jnp.dot(yk.astype(jnp.bfloat16), wp_ref[...],
                     preferred_element_type=jnp.float32) + bp_ref[...]
        o_ref[:, k:k + 1] = zk.reshape(NB, 1, H, W, Cp)


# --------------------------------- wrapper -----------------------------------

def sseg_head_forward(x_nhwc, params, num_classes):
    N, H, W, Cin = x_nhwc.shape
    Ch = HID
    assert Cin % 128 == 0, "input channels must be lane aligned (multiple of 128)"

    w1, b1 = params["conv1"]
    w2, b2 = params["conv2"]
    w3, b3 = params["conv3"]
    w4, b4 = params["conv4"]
    wd, bd = params["deconv"]
    wp, bp = params["predictor"]
    Cp = wp.shape[-1]
    Cmax = max(Cin, Ch)
    NB = 1  # images per grid step (grid=(N,), "parallel" for megacore)

    w1f = w1.reshape(9 * Cin, Ch)
    w2f = w2.reshape(9 * Ch, Ch)
    w3f = w3.reshape(9 * Ch, Ch)
    w4f = w4.reshape(9 * Ch, Ch)
    wdf = wd.reshape(Ch, 4 * Ch)

    def _full(shape):
        nd = len(shape)
        return pl.BlockSpec(shape, lambda n, _nd=nd: (0,) * _nd)

    out_blk = pl.pallas_call(
        fused_sseg_head_kernel,
        out_shape=jax.ShapeDtypeStruct((N, 4, H, W, Cp), jnp.float32),
        grid=(N // NB,),
        in_specs=[
            pl.BlockSpec((NB, H, W, Cin), lambda n: (n, 0, 0, 0)),
            _full((9 * Cin, Ch)), _full((1, Ch)),
            _full((9 * Ch, Ch)), _full((1, Ch)),
            _full((9 * Ch, Ch)), _full((1, Ch)),
            _full((9 * Ch, Ch)), _full((1, Ch)),
            _full((Ch, 4 * Ch)), _full((1, Ch)),
            _full((Ch, Cp)), _full((1, Cp)),
        ],
        out_specs=pl.BlockSpec((NB, 4, H, W, Cp),
                               lambda n: (n, 0, 0, 0, 0)),
        scratch_shapes=[
            pltpu.VMEM((NB, H + 2, W + 2, Cmax), jnp.float32),   # padA
            pltpu.VMEM((NB, H + 2, W + 2, Ch), jnp.float32),     # padB
            pltpu.VMEM((NB * H * W, 9 * Cmax), jnp.bfloat16),    # im2col
        ],
        compiler_params=pltpu.CompilerParams(
            dimension_semantics=("parallel",)),
    )(x_nhwc,
      w1f, b1.reshape(1, -1), w2f, b2.reshape(1, -1),
      w3f, b3.reshape(1, -1), w4f, b4.reshape(1, -1),
      wdf, bd.reshape(1, -1), wp, bp.reshape(1, -1))

    # un-shuffle the 2x2 deconv quadrants (cheap XLA) and slice real classes
    out = out_blk.reshape(N, 2, 2, H, W, Cp)
    out = out.transpose(0, 3, 1, 4, 2, 5).reshape(N, 2 * H, 2 * W, Cp)
    return out[..., :num_classes]


# ------------------------- parameter construction ---------------------------

def make_params(key, num_classes=8, input_dim=128, hidden=256):
    """Random weights with eval-mode BN folded into weight scale + bias."""
    eps = 1e-5
    params = {}
    dims = [(input_dim, hidden)] + [(hidden, hidden)] * 3
    for i, (cin, cout) in enumerate(dims, start=1):
        key, k1, k2, k3, k4, k5, k6 = jax.random.split(key, 7)
        std = 1.0 / jnp.sqrt(9.0 * cin)
        w = jax.random.normal(k1, (3, 3, cin, cout), jnp.float32) * std  # HWIO
        cb = jax.random.normal(k2, (cout,), jnp.float32) * 0.05
        gamma = 1.0 + 0.1 * jax.random.normal(k3, (cout,), jnp.float32)
        beta = 0.1 * jax.random.normal(k4, (cout,), jnp.float32)
        mean = 0.1 * jax.random.normal(k5, (cout,), jnp.float32)
        var = jnp.abs(jax.random.normal(k6, (cout,), jnp.float32)) + 0.5
        scale = gamma / jnp.sqrt(var + eps)
        params[f"conv{i}"] = ((w * scale).astype(jnp.bfloat16),
                              (cb - mean) * scale + beta)

    # deconv weight stored as (Cin, kh, kw, Cout)
    key, k1, k2, k3, k4, k5, k6 = jax.random.split(key, 7)
    std = 1.0 / jnp.sqrt(4.0 * hidden)
    wd = jax.random.normal(k1, (hidden, 2, 2, hidden), jnp.float32) * std
    cb = jax.random.normal(k2, (hidden,), jnp.float32) * 0.05
    gamma = 1.0 + 0.1 * jax.random.normal(k3, (hidden,), jnp.float32)
    beta = 0.1 * jax.random.normal(k4, (hidden,), jnp.float32)
    mean = 0.1 * jax.random.normal(k5, (hidden,), jnp.float32)
    var = jnp.abs(jax.random.normal(k6, (hidden,), jnp.float32)) + 0.5
    scale = gamma / jnp.sqrt(var + eps)
    params["deconv"] = ((wd * scale).astype(jnp.bfloat16),
                        (cb - mean) * scale + beta)

    # predictor, zero-padded to a lane-dense CP=128 output width
    key, k1, k2 = jax.random.split(key, 3)
    wp = jax.random.normal(k1, (hidden, num_classes), jnp.float32) / jnp.sqrt(float(hidden))
    bp = jax.random.normal(k2, (num_classes,), jnp.float32) * 0.05
    wp_pad = jnp.zeros((hidden, CP), jnp.float32).at[:, :num_classes].set(wp)
    bp_pad = jnp.zeros((CP,), jnp.float32).at[:num_classes].set(bp)
    params["predictor"] = (wp_pad.astype(jnp.bfloat16), bp_pad)
    return params


# --------------------------- reference (plain JAX) ---------------------------

def sseg_head_reference(x_nhwc, params, num_classes):
    """Same math (bf16 operands, f32 accumulation, folded BN) via XLA ops."""
    dn = ("NHWC", "HWIO", "NHWC")
    y = x_nhwc
    for i in range(1, 5):
        w, b = params[f"conv{i}"]
        y = lax.conv_general_dilated(y.astype(jnp.bfloat16), w, (1, 1), "SAME",
                                     dimension_numbers=dn,
                                     preferred_element_type=jnp.float32)
        y = jnp.maximum(y + b, 0.0)
    wd, bd = params["deconv"]
    N, H, W, _ = y.shape
    Ch = wd.shape[-1]
    t = jnp.einsum("nhwi,iklo->nhkwlo", y.astype(jnp.bfloat16), wd,
                   preferred_element_type=jnp.float32)
    z = jnp.maximum(t.reshape(N, 2 * H, 2 * W, Ch) + bd, 0.0)
    wp, bp = params["predictor"]
    o = jnp.einsum("nhwi,io->nhwo", z.astype(jnp.bfloat16), wp,
                   preferred_element_type=jnp.float32) + bp
    return o[..., :num_classes]


# ------------------------------------ main -----------------------------------

if __name__ == "__main__":
    N, C_IN, H, W = 2, 128, 8, 8     # small shapes; hidden width stays 256
    NUM_CLASSES = 8

    key = jax.random.PRNGKey(0)
    key, kx, kp = jax.random.split(key, 3)
    x_nchw = jax.random.normal(kx, (N, C_IN, H, W), jnp.float32)  # PyTorch-style
    x_nhwc = jnp.transpose(x_nchw, (0, 2, 3, 1))                  # kernel layout

    params = make_params(kp, num_classes=NUM_CLASSES, input_dim=C_IN, hidden=HID)

    out = jax.block_until_ready(sseg_head_forward(x_nhwc, params, NUM_CLASSES))
    assert out.shape == (N, 2 * H, 2 * W, NUM_CLASSES), out.shape

    ref = jax.block_until_ready(sseg_head_reference(x_nhwc, params, NUM_CLASSES))
    err = float(jnp.max(jnp.abs(out - ref)))
    assert err < 2e-2, f"max abs err {err}"

    print("KERNEL_OK")
</pallas_src>

<mosaic_0001>
module attributes {stable_mosaic.version = 11 : i64} {
  func.func @fused_sseg_head_kernel(%arg0: i32, %arg1: memref<1x8x8x128xf32, #tpu.memory_space<vmem>>, %arg2: memref<1152x256xbf16, #tpu.memory_space<vmem>>, %arg3: memref<1x256xf32, #tpu.memory_space<vmem>>, %arg4: memref<2304x256xbf16, #tpu.memory_space<vmem>>, %arg5: memref<1x256xf32, #tpu.memory_space<vmem>>, %arg6: memref<2304x256xbf16, #tpu.memory_space<vmem>>, %arg7: memref<1x256xf32, #tpu.memory_space<vmem>>, %arg8: memref<2304x256xbf16, #tpu.memory_space<vmem>>, %arg9: memref<1x256xf32, #tpu.memory_space<vmem>>, %arg10: memref<256x1024xbf16, #tpu.memory_space<vmem>>, %arg11: memref<1x256xf32, #tpu.memory_space<vmem>>, %arg12: memref<256x128xbf16, #tpu.memory_space<vmem>>, %arg13: memref<1x128xf32, #tpu.memory_space<vmem>>, %arg14: memref<1x4x8x8x128xf32, #tpu.memory_space<vmem>>, %arg15: memref<1x10x10x256xf32, #tpu.memory_space<vmem>>, %arg16: memref<1x10x10x256xf32, #tpu.memory_space<vmem>>, %arg17: memref<64x2304xbf16, #tpu.memory_space<vmem>>) attributes {dimension_semantics = [#tpu.dimension_semantics<parallel>], iteration_bounds = array<i64: 2>, scalar_prefetch = 0 : i64, scratch_operands = 3 : i64, tpu.core_type = #tpu.core_type<tc>, window_params = [{transform_indices = @transform_0, window_bounds = array<i64: 1, 8, 8, 128>}, {pipeline_mode = #tpu.pipeline_mode<synchronous>, transform_indices = @transform_1, window_bounds = array<i64: 1152, 256>}, {pipeline_mode = #tpu.pipeline_mode<synchronous>, transform_indices = @transform_2, window_bounds = array<i64: 1, 256>}, {pipeline_mode = #tpu.pipeline_mode<synchronous>, transform_indices = @transform_3, window_bounds = array<i64: 2304, 256>}, {pipeline_mode = #tpu.pipeline_mode<synchronous>, transform_indices = @transform_4, window_bounds = array<i64: 1, 256>}, {pipeline_mode = #tpu.pipeline_mode<synchronous>, transform_indices = @transform_5, window_bounds = array<i64: 2304, 256>}, {pipeline_mode = #tpu.pipeline_mode<synchronous>, transform_indices = @transform_6, window_bounds = array<i64: 1, 256>}, {pipeline_mode = #tpu.pipeline_mode<synchronous>, transform_indices = @transform_7, window_bounds = array<i64: 2304, 256>}, {pipeline_mode = #tpu.pipeline_mode<synchronous>, transform_indices = @transform_8, window_bounds = array<i64: 1, 256>}, {pipeline_mode = #tpu.pipeline_mode<synchronous>, transform_indices = @transform_9, window_bounds = array<i64: 256, 1024>}, {pipeline_mode = #tpu.pipeline_mode<synchronous>, transform_indices = @transform_10, window_bounds = array<i64: 1, 256>}, {pipeline_mode = #tpu.pipeline_mode<synchronous>, transform_indices = @transform_11, window_bounds = array<i64: 256, 128>}, {pipeline_mode = #tpu.pipeline_mode<synchronous>, transform_indices = @transform_12, window_bounds = array<i64: 1, 128>}, {transform_indices = @transform_13, window_bounds = array<i64: 1, 4, 8, 8, 128>}]} {
    %cst = arith.constant 0.000000e+00 : f32
    %0 = vector.broadcast %cst : f32 to vector<1x10x10x256xf32>
    %c0 = arith.constant 0 : index
    %c0_0 = arith.constant 0 : index
    %c0_1 = arith.constant 0 : index
    %c0_2 = arith.constant 0 : index
    %1 = vector.load %arg15[%c0, %c0_0, %c0_1, %c0_2] : memref<1x10x10x256xf32, #tpu.memory_space<vmem>>, vector<1x10x10x256xf32>
    tpu.vector_store %arg15[%c0, %c0_0, %c0_1, %c0_2], %0 {strides = array<i32>} : memref<1x10x10x256xf32, #tpu.memory_space<vmem>>, vector<1x10x10x256xf32>,
    %cst_3 = arith.constant 0.000000e+00 : f32
    %2 = vector.broadcast %cst_3 : f32 to vector<1x10x10x256xf32>
    %c0_4 = arith.constant 0 : index
    %c0_5 = arith.constant 0 : index
    %c0_6 = arith.constant 0 : index
    %c0_7 = arith.constant 0 : index
    %3 = vector.load %arg16[%c0_4, %c0_5, %c0_6, %c0_7] : memref<1x10x10x256xf32, #tpu.memory_space<vmem>>, vector<1x10x10x256xf32>
    tpu.vector_store %arg16[%c0_4, %c0_5, %c0_6, %c0_7], %2 {strides = array<i32>} : memref<1x10x10x256xf32, #tpu.memory_space<vmem>>, vector<1x10x10x256xf32>,
    %c0_8 = arith.constant 0 : index
    %c0_9 = arith.constant 0 : index
    %c0_10 = arith.constant 0 : index
    %c0_11 = arith.constant 0 : index
    %4 = vector.load %arg1[%c0_8, %c0_9, %c0_10, %c0_11] : memref<1x8x8x128xf32, #tpu.memory_space<vmem>>, vector<1x8x8x128xf32>
    %c0_12 = arith.constant 0 : index
    %c1 = arith.constant 1 : index
    %c1_13 = arith.constant 1 : index
    %c0_14 = arith.constant 0 : index
    %5 = vector.load %arg15[%c0_12, %c1, %c1_13, %c0_14] : memref<1x10x10x256xf32, #tpu.memory_space<vmem>>, vector<1x8x8x128xf32>
    tpu.vector_store %arg15[%c0_12, %c1, %c1_13, %c0_14], %4 {strides = array<i32>} : memref<1x10x10x256xf32, #tpu.memory_space<vmem>>, vector<1x8x8x128xf32>,
    %c0_15 = arith.constant 0 : index
    %c0_16 = arith.constant 0 : index
    %c0_17 = arith.constant 0 : index
    %c0_18 = arith.constant 0 : index
    %6 = vector.load %arg15[%c0_15, %c0_16, %c0_17, %c0_18] : memref<1x10x10x256xf32, #tpu.memory_space<vmem>>, vector<1x8x8x128xf32>
    %7 = vector.shape_cast %6 : vector<1x8x8x128xf32> to vector<64x128xf32>
    %8 = arith.truncf %7 : vector<64x128xf32> to vector<64x128xbf16>
    %c0_19 = arith.constant 0 : index
    %c0_20 = arith.constant 0 : index
    %9 = vector.load %arg17[%c0_19, %c0_20] : memref<64x2304xbf16, #tpu.memory_space<vmem>>, vector<64x128xbf16>
    tpu.vector_store %arg17[%c0_19, %c0_20], %8 {strides = array<i32>} : memref<64x2304xbf16, #tpu.memory_space<vmem>>, vector<64x128xbf16>,
    %c0_21 = arith.constant 0 : index
    %c0_22 = arith.constant 0 : index
    %c1_23 = arith.constant 1 : index
    %c0_24 = arith.constant 0 : index
    %10 = vector.load %arg15[%c0_21, %c0_22, %c1_23, %c0_24] : memref<1x10x10x256xf32, #tpu.memory_space<vmem>>, vector<1x8x8x128xf32>
    %11 = vector.shape_cast %10 : vector<1x8x8x128xf32> to vector<64x128xf32>
    %12 = arith.truncf %11 : vector<64x128xf32> to vector<64x128xbf16>
    %c0_25 = arith.constant 0 : index
    %c128 = arith.constant 128 : index
    %13 = vector.load %arg17[%c0_25, %c128] : memref<64x2304xbf16, #tpu.memory_space<vmem>>, vector<64x128xbf16>
    tpu.vector_store %arg17[%c0_25, %c128], %12 {strides = array<i32>} : memref<64x2304xbf16, #tpu.memory_space<vmem>>, vector<64x128xbf16>,
    %c0_26 = arith.constant 0 : index
    %c0_27 = arith.constant 0 : index
    %c2 = arith.constant 2 : index
    %c0_28 = arith.constant 0 : index
    %14 = vector.load %arg15[%c0_26, %c0_27, %c2, %c0_28] : memref<1x10x10x256xf32, #tpu.memory_space<vmem>>, vector<1x8x8x128xf32>
    %15 = vector.shape_cast %14 : vector<1x8x8x128xf32> to vector<64x128xf32>
    %16 = arith.truncf %15 : vector<64x128xf32> to vector<64x128xbf16>
    %c0_29 = arith.constant 0 : index
    %c256 = arith.constant 256 : index
    %17 = vector.load %arg17[%c0_29, %c256] : memref<64x2304xbf16, #tpu.memory_space<vmem>>, vector<64x128xbf16>
    tpu.vector_store %arg17[%c0_29, %c256], %16 {strides = array<i32>} : memref<64x2304xbf16, #tpu.memory_space<vmem>>, vector<64x128xbf16>,
    %c0_30 = arith.constant 0 : index
    %c1_31 = arith.constant 1 : index
    %c0_32 = arith.constant 0 : index
    %c0_33 = arith.constant 0 : index
    %18 = vector.load %arg15[%c0_30, %c1_31, %c0_32, %c0_33] : memref<1x10x10x256xf32, #tpu.memory_space<vmem>>, vector<1x8x8x128xf32>
    %19 = vector.shape_cast %18 : vector<1x8x8x128xf32> to vector<64x128xf32>
    %20 = arith.truncf %19 : vector<64x128xf32> to vector<64x128xbf16>
    %c0_34 = arith.constant 0 : index
    %c384 = arith.constant 384 : index
    %21 = vector.load %arg17[%c0_34, %c384] : memref<64x2304xbf16, #tpu.memory_space<vmem>>, vector<64x128xbf16>
    tpu.vector_store %arg17[%c0_34, %c384], %20 {strides = array<i32>} : memref<64x2304xbf16, #tpu.memory_space<vmem>>, vector<64x128xbf16>,
    %c0_35 = arith.constant 0 : index
    %c1_36 = arith.constant 1 : index
    %c1_37 = arith.constant 1 : index
    %c0_38 = arith.constant 0 : index
    %22 = vector.load %arg15[%c0_35, %c1_36, %c1_37, %c0_38] : memref<1x10x10x256xf32, #tpu.memory_space<vmem>>, vector<1x8x8x128xf32>
    %23 = vector.shape_cast %22 : vector<1x8x8x128xf32> to vector<64x128xf32>
    %24 = arith.truncf %23 : vector<64x128xf32> to vector<64x128xbf16>
    %c0_39 = arith.constant 0 : index
    %c512 = arith.constant 512 : index
    %25 = vector.load %arg17[%c0_39, %c512] : memref<64x2304xbf16, #tpu.memory_space<vmem>>, vector<64x128xbf16>
    tpu.vector_store %arg17[%c0_39, %c512], %24 {strides = array<i32>} : memref<64x2304xbf16, #tpu.memory_space<vmem>>, vector<64x128xbf16>,
    %c0_40 = arith.constant 0 : index
    %c1_41 = arith.constant 1 : index
    %c2_42 = arith.constant 2 : index
    %c0_43 = arith.constant 0 : index
    %26 = vector.load %arg15[%c0_40, %c1_41, %c2_42, %c0_43] : memref<1x10x10x256xf32, #tpu.memory_space<vmem>>, vector<1x8x8x128xf32>
    %27 = vector.shape_cast %26 : vector<1x8x8x128xf32> to vector<64x128xf32>
    %28 = arith.truncf %27 : vector<64x128xf32> to vector<64x128xbf16>
    %c0_44 = arith.constant 0 : index
    %c640 = arith.constant 640 : index
    %29 = vector.load %arg17[%c0_44, %c640] : memref<64x2304xbf16, #tpu.memory_space<vmem>>, vector<64x128xbf16>
    tpu.vector_store %arg17[%c0_44, %c640], %28 {strides = array<i32>} : memref<64x2304xbf16, #tpu.memory_space<vmem>>, vector<64x128xbf16>,
    %c0_45 = arith.constant 0 : index
    %c2_46 = arith.constant 2 : index
    %c0_47 = arith.constant 0 : index
    %c0_48 = arith.constant 0 : index
    %30 = vector.load %arg15[%c0_45, %c2_46, %c0_47, %c0_48] : memref<1x10x10x256xf32, #tpu.memory_space<vmem>>, vector<1x8x8x128xf32>
    %31 = vector.shape_cast %30 : vector<1x8x8x128xf32> to vector<64x128xf32>
    %32 = arith.truncf %31 : vector<64x128xf32> to vector<64x128xbf16>
    %c0_49 = arith.constant 0 : index
    %c768 = arith.constant 768 : index
    %33 = vector.load %arg17[%c0_49, %c768] : memref<64x2304xbf16, #tpu.memory_space<vmem>>, vector<64x128xbf16>
    tpu.vector_store %arg17[%c0_49, %c768], %32 {strides = array<i32>} : memref<64x2304xbf16, #tpu.memory_space<vmem>>, vector<64x128xbf16>,
    %c0_50 = arith.constant 0 : index
    %c2_51 = arith.constant 2 : index
    %c1_52 = arith.constant 1 : index
    %c0_53 = arith.constant 0 : index
    %34 = vector.load %arg15[%c0_50, %c2_51, %c1_52, %c0_53] : memref<1x10x10x256xf32, #tpu.memory_space<vmem>>, vector<1x8x8x128xf32>
    %35 = vector.shape_cast %34 : vector<1x8x8x128xf32> to vector<64x128xf32>
    %36 = arith.truncf %35 : vector<64x128xf32> to vector<64x128xbf16>
    %c0_54 = arith.constant 0 : index
    %c896 = arith.constant 896 : index
    %37 = vector.load %arg17[%c0_54, %c896] : memref<64x2304xbf16, #tpu.memory_space<vmem>>, vector<64x128xbf16>
    tpu.vector_store %arg17[%c0_54, %c896], %36 {strides = array<i32>} : memref<64x2304xbf16, #tpu.memory_space<vmem>>, vector<64x128xbf16>,
    %c0_55 = arith.constant 0 : index
    %c2_56 = arith.constant 2 : index
    %c2_57 = arith.constant 2 : index
    %c0_58 = arith.constant 0 : index
    %38 = vector.load %arg15[%c0_55, %c2_56, %c2_57, %c0_58] : memref<1x10x10x256xf32, #tpu.memory_space<vmem>>, vector<1x8x8x128xf32>
    %39 = vector.shape_cast %38 : vector<1x8x8x128xf32> to vector<64x128xf32>
    %40 = arith.truncf %39 : vector<64x128xf32> to vector<64x128xbf16>
    %c0_59 = arith.constant 0 : index
    %c1024 = arith.constant 1024 : index
    %41 = vector.load %arg17[%c0_59, %c1024] : memref<64x2304xbf16, #tpu.memory_space<vmem>>, vector<64x128xbf16>
    tpu.vector_store %arg17[%c0_59, %c1024], %40 {strides = array<i32>} : memref<64x2304xbf16, #tpu.memory_space<vmem>>, vector<64x128xbf16>,
    %c0_60 = arith.constant 0 : index
    %c0_61 = arith.constant 0 : index
    %42 = vector.load %arg17[%c0_60, %c0_61] : memref<64x2304xbf16, #tpu.memory_space<vmem>>, vector<64x1152xbf16>
    %c0_62 = arith.constant 0 : index
    %c0_63 = arith.constant 0 : index
    %43 = vector.load %arg2[%c0_62, %c0_63] : memref<1152x256xbf16, #tpu.memory_space<vmem>>, vector<1152x256xbf16>
    %cst_64 = arith.constant dense<0.000000e+00> : vector<64x256xf32>
    %44 = tpu.matmul %42, %43, %cst_64 {dimension_numbers = #tpu.dot_dimension_numbers<[1], [0], [0], [1], [0, 0, 1, 1], [], []>} : vector<64x1152xbf16>, vector<1152x256xbf16>, vector<64x256xf32> -> vector<64x256xf32>
    %c0_65 = arith.constant 0 : index
    %c0_66 = arith.constant 0 : index
    %45 = vector.load %arg3[%c0_65, %c0_66] : memref<1x256xf32, #tpu.memory_space<vmem>>, vector<1x256xf32>
    %46 = vector.broadcast %45 : vector<1x256xf32> to vector<64x256xf32>
    %47 = arith.addf %44, %46 : vector<64x256xf32>
    %cst_67 = arith.constant 0.000000e+00 : f32
    %48 = vector.broadcast %cst_67 : f32 to vector<64x256xf32>
    %49 = arith.maximumf %47, %48 : vector<64x256xf32>
    %50 = vector.shape_cast %49 : vector<64x256xf32> to vector<1x8x8x256xf32>
    %c0_68 = arith.constant 0 : index
    %c1_69 = arith.constant 1 : index
    %c1_70 = arith.constant 1 : index
    %c0_71 = arith.constant 0 : index
    %51 = vector.load %arg16[%c0_68, %c1_69, %c1_70, %c0_71] : memref<1x10x10x256xf32, #tpu.memory_space<vmem>>, vector<1x8x8x256xf32>
    tpu.vector_store %arg16[%c0_68, %c1_69, %c1_70, %c0_71], %50 {strides = array<i32>} : memref<1x10x10x256xf32, #tpu.memory_space<vmem>>, vector<1x8x8x256xf32>,
    %c0_72 = arith.constant 0 : index
    %c0_73 = arith.constant 0 : index
    %c0_74 = arith.constant 0 : index
    %c0_75 = arith.constant 0 : index
    %52 = vector.load %arg16[%c0_72, %c0_73, %c0_74, %c0_75] : memref<1x10x10x256xf32, #tpu.memory_space<vmem>>, vector<1x8x8x256xf32>
    %53 = vector.shape_cast %52 : vector<1x8x8x256xf32> to vector<64x256xf32>
    %54 = arith.truncf %53 : vector<64x256xf32> to vector<64x256xbf16>
    %c0_76 = arith.constant 0 : index
    %c0_77 = arith.constant 0 : index
    %55 = vector.load %arg17[%c0_76, %c0_77] : memref<64x2304xbf16, #tpu.memory_space<vmem>>, vector<64x256xbf16>
    tpu.vector_store %arg17[%c0_76, %c0_77], %54 {strides = array<i32>} : memref<64x2304xbf16, #tpu.memory_space<vmem>>, vector<64x256xbf16>,
    %c0_78 = arith.constant 0 : index
    %c0_79 = arith.constant 0 : index
    %c1_80 = arith.constant 1 : index
    %c0_81 = arith.constant 0 : index
    %56 = vector.load %arg16[%c0_78, %c0_79, %c1_80, %c0_81] : memref<1x10x10x256xf32, #tpu.memory_space<vmem>>, vector<1x8x8x256xf32>
    %57 = vector.shape_cast %56 : vector<1x8x8x256xf32> to vector<64x256xf32>
    %58 = arith.truncf %57 : vector<64x256xf32> to vector<64x256xbf16>
    %c0_82 = arith.constant 0 : index
    %c256_83 = arith.constant 256 : index
    %59 = vector.load %arg17[%c0_82, %c256_83] : memref<64x2304xbf16, #tpu.memory_space<vmem>>, vector<64x256xbf16>
    tpu.vector_store %arg17[%c0_82, %c256_83], %58 {strides = array<i32>} : memref<64x2304xbf16, #tpu.memory_space<vmem>>, vector<64x256xbf16>,
    %c0_84 = arith.constant 0 : index
    %c0_85 = arith.constant 0 : index
    %c2_86 = arith.constant 2 : index
    %c0_87 = arith.constant 0 : index
    %60 = vector.load %arg16[%c0_84, %c0_85, %c2_86, %c0_87] : memref<1x10x10x256xf32, #tpu.memory_space<vmem>>, vector<1x8x8x256xf32>
    %61 = vector.shape_cast %60 : vector<1x8x8x256xf32> to vector<64x256xf32>
    %62 = arith.truncf %61 : vector<64x256xf32> to vector<64x256xbf16>
    %c0_88 = arith.constant 0 : index
    %c512_89 = arith.constant 512 : index
    %63 = vector.load %arg17[%c0_88, %c512_89] : memref<64x2304xbf16, #tpu.memory_space<vmem>>, vector<64x256xbf16>
    tpu.vector_store %arg17[%c0_88, %c512_89], %62 {strides = array<i32>} : memref<64x2304xbf16, #tpu.memory_space<vmem>>, vector<64x256xbf16>,
    %c0_90 = arith.constant 0 : index
    %c1_91 = arith.constant 1 : index
    %c0_92 = arith.constant 0 : index
    %c0_93 = arith.constant 0 : index
    %64 = vector.load %arg16[%c0_90, %c1_91, %c0_92, %c0_93] : memref<1x10x10x256xf32, #tpu.memory_space<vmem>>, vector<1x8x8x256xf32>
    %65 = vector.shape_cast %64 : vector<1x8x8x256xf32> to vector<64x256xf32>
    %66 = arith.truncf %65 : vector<64x256xf32> to vector<64x256xbf16>
    %c0_94 = arith.constant 0 : index
    %c768_95 = arith.constant 768 : index
    %67 = vector.load %arg17[%c0_94, %c768_95] : memref<64x2304xbf16, #tpu.memory_space<vmem>>, vector<64x256xbf16>
    tpu.vector_store %arg17[%c0_94, %c768_95], %66 {strides = array<i32>} : memref<64x2304xbf16, #tpu.memory_space<vmem>>, vector<64x256xbf16>,
    %c0_96 = arith.constant 0 : index
    %c1_97 = arith.constant 1 : index
    %c1_98 = arith.constant 1 : index
    %c0_99 = arith.constant 0 : index
    %68 = vector.load %arg16[%c0_96, %c1_97, %c1_98, %c0_99] : memref<1x10x10x256xf32, #tpu.memory_space<vmem>>, vector<1x8x8x256xf32>
    %69 = vector.shape_cast %68 : vector<1x8x8x256xf32> to vector<64x256xf32>
    %70 = arith.truncf %69 : vector<64x256xf32> to vector<64x256xbf16>
    %c0_100 = arith.constant 0 : index
    %c1024_101 = arith.constant 1024 : index
    %71 = vector.load %arg17[%c0_100, %c1024_101] : memref<64x2304xbf16, #tpu.memory_space<vmem>>, vector<64x256xbf16>
    tpu.vector_store %arg17[%c0_100, %c1024_101], %70 {strides = array<i32>} : memref<64x2304xbf16, #tpu.memory_space<vmem>>, vector<64x256xbf16>,
    %c0_102 = arith.constant 0 : index
    %c1_103 = arith.constant 1 : index
    %c2_104 = arith.constant 2 : index
    %c0_105 = arith.constant 0 : index
    %72 = vector.load %arg16[%c0_102, %c1_103, %c2_104, %c0_105] : memref<1x10x10x256xf32, #tpu.memory_space<vmem>>, vector<1x8x8x256xf32>
    %73 = vector.shape_cast %72 : vector<1x8x8x256xf32> to vector<64x256xf32>
    %74 = arith.truncf %73 : vector<64x256xf32> to vector<64x256xbf16>
    %c0_106 = arith.constant 0 : index
    %c1280 = arith.constant 1280 : index
    %75 = vector.load %arg17[%c0_106, %c1280] : memref<64x2304xbf16, #tpu.memory_space<vmem>>, vector<64x256xbf16>
    tpu.vector_store %arg17[%c0_106, %c1280], %74 {strides = array<i32>} : memref<64x2304xbf16, #tpu.memory_space<vmem>>, vector<64x256xbf16>,
    %c0_107 = arith.constant 0 : index
    %c2_108 = arith.constant 2 : index
    %c0_109 = arith.constant 0 : index
    %c0_110 = arith.constant 0 : index
    %76 = vector.load %arg16[%c0_107, %c2_108, %c0_109, %c0_110] : memref<1x10x10x256xf32, #tpu.memory_space<vmem>>, vector<1x8x8x256xf32>
    %77 = vector.shape_cast %76 : vector<1x8x8x256xf32> to vector<64x256xf32>
    %78 = arith.truncf %77 : vector<64x256xf32> to vector<64x256xbf16>
    %c0_111 = arith.constant 0 : index
    %c1536 = arith.constant 1536 : index
    %79 = vector.load %arg17[%c0_111, %c1536] : memref<64x2304xbf16, #tpu.memory_space<vmem>>, vector<64x256xbf16>
    tpu.vector_store %arg17[%c0_111, %c1536], %78 {strides = array<i32>} : memref<64x2304xbf16, #tpu.memory_space<vmem>>, vector<64x256xbf16>,
    %c0_112 = arith.constant 0 : index
    %c2_113 = arith.constant 2 : index
    %c1_114 = arith.constant 1 : index
    %c0_115 = arith.constant 0 : index
    %80 = vector.load %arg16[%c0_112, %c2_113, %c1_114, %c0_115] : memref<1x10x10x256xf32, #tpu.memory_space<vmem>>, vector<1x8x8x256xf32>
    %81 = vector.shape_cast %80 : vector<1x8x8x256xf32> to vector<64x256xf32>
    %82 = arith.truncf %81 : vector<64x256xf32> to vector<64x256xbf16>
    %c0_116 = arith.constant 0 : index
    %c1792 = arith.constant 1792 : index
    %83 = vector.load %arg17[%c0_116, %c1792] : memref<64x2304xbf16, #tpu.memory_space<vmem>>, vector<64x256xbf16>
    tpu.vector_store %arg17[%c0_116, %c1792], %82 {strides = array<i32>} : memref<64x2304xbf16, #tpu.memory_space<vmem>>, vector<64x256xbf16>,
    %c0_117 = arith.constant 0 : index
    %c2_118 = arith.constant 2 : index
    %c2_119 = arith.constant 2 : index
    %c0_120 = arith.constant 0 : index
    %84 = vector.load %arg16[%c0_117, %c2_118, %c2_119, %c0_120] : memref<1x10x10x256xf32, #tpu.memory_space<vmem>>, vector<1x8x8x256xf32>
    %85 = vector.shape_cast %84 : vector<1x8x8x256xf32> to vector<64x256xf32>
    %86 = arith.truncf %85 : vector<64x256xf32> to vector<64x256xbf16>
    %c0_121 = arith.constant 0 : index
    %c2048 = arith.constant 2048 : index
    %87 = vector.load %arg17[%c0_121, %c2048] : memref<64x2304xbf16, #tpu.memory_space<vmem>>, vector<64x256xbf16>
    tpu.vector_store %arg17[%c0_121, %c2048], %86 {strides = array<i32>} : memref<64x2304xbf16, #tpu.memory_space<vmem>>, vector<64x256xbf16>,
    %c0_122 = arith.constant 0 : index
    %c0_123 = arith.constant 0 : index
    %88 = vector.load %arg17[%c0_122, %c0_123] : memref<64x2304xbf16, #tpu.memory_space<vmem>>, vector<64x2304xbf16>
    %c0_124 = arith.constant 0 : index
    %c0_125 = arith.constant 0 : index
    %89 = vector.load %arg4[%c0_124, %c0_125] : memref<2304x256xbf16, #tpu.memory_space<vmem>>, vector<2304x256xbf16>
    %cst_126 = arith.constant dense<0.000000e+00> : vector<64x256xf32>
    %90 = tpu.matmul %88, %89, %cst_126 {dimension_numbers = #tpu.dot_dimension_numbers<[1], [0], [0], [1], [0, 0, 1, 1], [], []>} : vector<64x2304xbf16>, vector<2304x256xbf16>, vector<64x256xf32> -> vector<64x256xf32>
    %c0_127 = arith.constant 0 : index
    %c0_128 = arith.constant 0 : index
    %91 = vector.load %arg5[%c0_127, %c0_128] : memref<1x256xf32, #tpu.memory_space<vmem>>, vector<1x256xf32>
    %92 = vector.broadcast %91 : vector<1x256xf32> to vector<64x256xf32>
    %93 = arith.addf %90, %92 : vector<64x256xf32>
    %cst_129 = arith.constant 0.000000e+00 : f32
    %94 = vector.broadcast %cst_129 : f32 to vector<64x256xf32>
    %95 = arith.maximumf %93, %94 : vector<64x256xf32>
    %96 = vector.shape_cast %95 : vector<64x256xf32> to vector<1x8x8x256xf32>
    %c0_130 = arith.constant 0 : index
    %c1_131 = arith.constant 1 : index
    %c1_132 = arith.constant 1 : index
    %c0_133 = arith.constant 0 : index
    %97 = vector.load %arg15[%c0_130, %c1_131, %c1_132, %c0_133] : memref<1x10x10x256xf32, #tpu.memory_space<vmem>>, vector<1x8x8x256xf32>
    tpu.vector_store %arg15[%c0_130, %c1_131, %c1_132, %c0_133], %96 {strides = array<i32>} : memref<1x10x10x256xf32, #tpu.memory_space<vmem>>, vector<1x8x8x256xf32>,
    %c0_134 = arith.constant 0 : index
    %c0_135 = arith.constant 0 : index
    %c0_136 = arith.constant 0 : index
    %c0_137 = arith.constant 0 : index
    %98 = vector.load %arg15[%c0_134, %c0_135, %c0_136, %c0_137] : memref<1x10x10x256xf32, #tpu.memory_space<vmem>>, vector<1x8x8x256xf32>
    %99 = vector.shape_cast %98 : vector<1x8x8x256xf32> to vector<64x256xf32>
    %100 = arith.truncf %99 : vector<64x256xf32> to vector<64x256xbf16>
    %c0_138 = arith.constant 0 : index
    %c0_139 = arith.constant 0 : index
    %101 = vector.load %arg17[%c0_138, %c0_139] : memref<64x2304xbf16, #tpu.memory_space<vmem>>, vector<64x256xbf16>
    tpu.vector_store %arg17[%c0_138, %c0_139], %100 {strides = array<i32>} : memref<64x2304xbf16, #tpu.memory_space<vmem>>, vector<64x256xbf16>,
    %c0_140 = arith.constant 0 : index
    %c0_141 = arith.constant 0 : index
    %c1_142 = arith.constant 1 : index
    %c0_143 = arith.constant 0 : index
    %102 = vector.load %arg15[%c0_140, %c0_141, %c1_142, %c0_143] : memref<1x10x10x256xf32, #tpu.memory_space<vmem>>, vector<1x8x8x256xf32>
    %103 = vector.shape_cast %102 : vector<1x8x8x256xf32> to vector<64x256xf32>
    %104 = arith.truncf %103 : vector<64x256xf32> to vector<64x256xbf16>
    %c0_144 = arith.constant 0 : index
    %c256_145 = arith.constant 256 : index
    %105 = vector.load %arg17[%c0_144, %c256_145] : memref<64x2304xbf16, #tpu.memory_space<vmem>>, vector<64x256xbf16>
    tpu.vector_store %arg17[%c0_144, %c256_145], %104 {strides = array<i32>} : memref<64x2304xbf16, #tpu.memory_space<vmem>>, vector<64x256xbf16>,
    %c0_146 = arith.constant 0 : index
    %c0_147 = arith.constant 0 : index
    %c2_148 = arith.constant 2 : index
    %c0_149 = arith.constant 0 : index
    %106 = vector.load %arg15[%c0_146, %c0_147, %c2_148, %c0_149] : memref<1x10x10x256xf32, #tpu.memory_space<vmem>>, vector<1x8x8x256xf32>
    %107 = vector.shape_cast %106 : vector<1x8x8x256xf32> to vector<64x256xf32>
    %108 = arith.truncf %107 : vector<64x256xf32> to vector<64x256xbf16>
    %c0_150 = arith.constant 0 : index
    %c512_151 = arith.constant 512 : index
    %109 = vector.load %arg17[%c0_150, %c512_151] : memref<64x2304xbf16, #tpu.memory_space<vmem>>, vector<64x256xbf16>
    tpu.vector_store %arg17[%c0_150, %c512_151], %108 {strides = array<i32>} : memref<64x2304xbf16, #tpu.memory_space<vmem>>, vector<64x256xbf16>,
    %c0_152 = arith.constant 0 : index
    %c1_153 = arith.constant 1 : index
    %c0_154 = arith.constant 0 : index
    %c0_155 = arith.constant 0 : index
    %110 = vector.load %arg15[%c0_152, %c1_153, %c0_154, %c0_155] : memref<1x10x10x256xf32, #tpu.memory_space<vmem>>, vector<1x8x8x256xf32>
    %111 = vector.shape_cast %110 : vector<1x8x8x256xf32> to vector<64x256xf32>
    %112 = arith.truncf %111 : vector<64x256xf32> to vector<64x256xbf16>
    %c0_156 = arith.constant 0 : index
    %c768_157 = arith.constant 768 : index
    %113 = vector.load %arg17[%c0_156, %c768_157] : memref<64x2304xbf16, #tpu.memory_space<vmem>>, vector<64x256xbf16>
    tpu.vector_store %arg17[%c0_156, %c768_157], %112 {strides = array<i32>} : memref<64x2304xbf16, #tpu.memory_space<vmem>>, vector<64x256xbf16>,
    %c0_158 = arith.constant 0 : index
    %c1_159 = arith.constant 1 : index
    %c1_160 = arith.constant 1 : index
    %c0_161 = arith.constant 0 : index
    %114 = vector.load %arg15[%c0_158, %c1_159, %c1_160, %c0_161] : memref<1x10x10x256xf32, #tpu.memory_space<vmem>>, vector<1x8x8x256xf32>
    %115 = vector.shape_cast %114 : vector<1x8x8x256xf32> to vector<64x256xf32>
    %116 = arith.truncf %115 : vector<64x256xf32> to vector<64x256xbf16>
    %c0_162 = arith.constant 0 : index
    %c1024_163 = arith.constant 1024 : index
    %117 = vector.load %arg17[%c0_162, %c1024_163] : memref<64x2304xbf16, #tpu.memory_space<vmem>>, vector<64x256xbf16>
    tpu.vector_store %arg17[%c0_162, %c1024_163], %116 {strides = array<i32>} : memref<64x2304xbf16, #tpu.memory_space<vmem>>, vector<64x256xbf16>,
    %c0_164 = arith.constant 0 : index
    %c1_165 = arith.constant 1 : index
    %c2_166 = arith.constant 2 : index
    %c0_167 = arith.constant 0 : index
    %118 = vector.load %arg15[%c0_164, %c1_165, %c2_166, %c0_167] : memref<1x10x10x256xf32, #tpu.memory_space<vmem>>, vector<1x8x8x256xf32>
    %119 = vector.shape_cast %118 : vector<1x8x8x256xf32> to vector<64x256xf32>
    %120 = arith.truncf %119 : vector<64x256xf32> to vector<64x256xbf16>
    %c0_168 = arith.constant 0 : index
    %c1280_169 = arith.constant 1280 : index
    %121 = vector.load %arg17[%c0_168, %c1280_169] : memref<64x2304xbf16, #tpu.memory_space<vmem>>, vector<64x256xbf16>
    tpu.vector_store %arg17[%c0_168, %c1280_169], %120 {strides = array<i32>} : memref<64x2304xbf16, #tpu.memory_space<vmem>>, vector<64x256xbf16>,
    %c0_170 = arith.constant 0 : index
    %c2_171 = arith.constant 2 : index
    %c0_172 = arith.constant 0 : index
    %c0_173 = arith.constant 0 : index
    %122 = vector.load %arg15[%c0_170, %c2_171, %c0_172, %c0_173] : memref<1x10x10x256xf32, #tpu.memory_space<vmem>>, vector<1x8x8x256xf32>
    %123 = vector.shape_cast %122 : vector<1x8x8x256xf32> to vector<64x256xf32>
    %124 = arith.truncf %123 : vector<64x256xf32> to vector<64x256xbf16>
    %c0_174 = arith.constant 0 : index
    %c1536_175 = arith.constant 1536 : index
    %125 = vector.load %arg17[%c0_174, %c1536_175] : memref<64x2304xbf16, #tpu.memory_space<vmem>>, vector<64x256xbf16>
    tpu.vector_store %arg17[%c0_174, %c1536_175], %124 {strides = array<i32>} : memref<64x2304xbf16, #tpu.memory_space<vmem>>, vector<64x256xbf16>,
    %c0_176 = arith.constant 0 : index
    %c2_177 = arith.constant 2 : index
    %c1_178 = arith.constant 1 : index
    %c0_179 = arith.constant 0 : index
    %126 = vector.load %arg15[%c0_176, %c2_177, %c1_178, %c0_179] : memref<1x10x10x256xf32, #tpu.memory_space<vmem>>, vector<1x8x8x256xf32>
    %127 = vector.shape_cast %126 : vector<1x8x8x256xf32> to vector<64x256xf32>
    %128 = arith.truncf %127 : vector<64x256xf32> to vector<64x256xbf16>
    %c0_180 = arith.constant 0 : index
    %c1792_181 = arith.constant 1792 : index
    %129 = vector.load %arg17[%c0_180, %c1792_181] : memref<64x2304xbf16, #tpu.memory_space<vmem>>, vector<64x256xbf16>
    tpu.vector_store %arg17[%c0_180, %c1792_181], %128 {strides = array<i32>} : memref<64x2304xbf16, #tpu.memory_space<vmem>>, vector<64x256xbf16>,
    %c0_182 = arith.constant 0 : index
    %c2_183 = arith.constant 2 : index
    %c2_184 = arith.constant 2 : index
    %c0_185 = arith.constant 0 : index
    %130 = vector.load %arg15[%c0_182, %c2_183, %c2_184, %c0_185] : memref<1x10x10x256xf32, #tpu.memory_space<vmem>>, vector<1x8x8x256xf32>
    %131 = vector.shape_cast %130 : vector<1x8x8x256xf32> to vector<64x256xf32>
    %132 = arith.truncf %131 : vector<64x256xf32> to vector<64x256xbf16>
    %c0_186 = arith.constant 0 : index
    %c2048_187 = arith.constant 2048 : index
    %133 = vector.load %arg17[%c0_186, %c2048_187] : memref<64x2304xbf16, #tpu.memory_space<vmem>>, vector<64x256xbf16>
    tpu.vector_store %arg17[%c0_186, %c2048_187], %132 {strides = array<i32>} : memref<64x2304xbf16, #tpu.memory_space<vmem>>, vector<64x256xbf16>,
    %c0_188 = arith.constant 0 : index
    %c0_189 = arith.constant 0 : index
    %134 = vector.load %arg17[%c0_188, %c0_189] : memref<64x2304xbf16, #tpu.memory_space<vmem>>, vector<64x2304xbf16>
    %c0_190 = arith.constant 0 : index
    %c0_191 = arith.constant 0 : index
    %135 = vector.load %arg6[%c0_190, %c0_191] : memref<2304x256xbf16, #tpu.memory_space<vmem>>, vector<2304x256xbf16>
    %cst_192 = arith.constant dense<0.000000e+00> : vector<64x256xf32>
    %136 = tpu.matmul %134, %135, %cst_192 {dimension_numbers = #tpu.dot_dimension_numbers<[1], [0], [0], [1], [0, 0, 1, 1], [], []>} : vector<64x2304xbf16>, vector<2304x256xbf16>, vector<64x256xf32> -> vector<64x256xf32>
    %c0_193 = arith.constant 0 : index
    %c0_194 = arith.constant 0 : index
    %137 = vector.load %arg7[%c0_193, %c0_194] : memref<1x256xf32, #tpu.memory_space<vmem>>, vector<1x256xf32>
    %138 = vector.broadcast %137 : vector<1x256xf32> to vector<64x256xf32>
    %139 = arith.addf %136, %138 : vector<64x256xf32>
    %cst_195 = arith.constant 0.000000e+00 : f32
    %140 = vector.broadcast %cst_195 : f32 to vector<64x256xf32>
    %141 = arith.maximumf %139, %140 : vector<64x256xf32>
    %142 = vector.shape_cast %141 : vector<64x256xf32> to vector<1x8x8x256xf32>
    %c0_196 = arith.constant 0 : index
    %c1_197 = arith.constant 1 : index
    %c1_198 = arith.constant 1 : index
    %c0_199 = arith.constant 0 : index
    %143 = vector.load %arg16[%c0_196, %c1_197, %c1_198, %c0_199] : memref<1x10x10x256xf32, #tpu.memory_space<vmem>>, vector<1x8x8x256xf32>
    tpu.vector_store %arg16[%c0_196, %c1_197, %c1_198, %c0_199], %142 {strides = array<i32>} : memref<1x10x10x256xf32, #tpu.memory_space<vmem>>, vector<1x8x8x256xf32>,
    %c0_200 = arith.constant 0 : index
    %c0_201 = arith.constant 0 : index
    %c0_202 = arith.constant 0 : index
    %c0_203 = arith.constant 0 : index
    %144 = vector.load %arg16[%c0_200, %c0_201, %c0_202, %c0_203] : memref<1x10x10x256xf32, #tpu.memory_space<vmem>>, vector<1x8x8x256xf32>
    %145 = vector.shape_cast %144 : vector<1x8x8x256xf32> to vector<64x256xf32>
    %146 = arith.truncf %145 : vector<64x256xf32> to vector<64x256xbf16>
    %c0_204 = arith.constant 0 : index
    %c0_205 = arith.constant 0 : index
    %147 = vector.load %arg17[%c0_204, %c0_205] : memref<64x2304xbf16, #tpu.memory_space<vmem>>, vector<64x256xbf16>
    tpu.vector_store %arg17[%c0_204, %c0_205], %146 {strides = array<i32>} : memref<64x2304xbf16, #tpu.memory_space<vmem>>, vector<64x256xbf16>,
    %c0_206 = arith.constant 0 : index
    %c0_207 = arith.constant 0 : index
    %c1_208 = arith.constant 1 : index
    %c0_209 = arith.constant 0 : index
    %148 = vector.load %arg16[%c0_206, %c0_207, %c1_208, %c0_209] : memref<1x10x10x256xf32, #tpu.memory_space<vmem>>, vector<1x8x8x256xf32>
    %149 = vector.shape_cast %148 : vector<1x8x8x256xf32> to vector<64x256xf32>
    %150 = arith.truncf %149 : vector<64x256xf32> to vector<64x256xbf16>
    %c0_210 = arith.constant 0 : index
    %c256_211 = arith.constant 256 : index
    %151 = vector.load %arg17[%c0_210, %c256_211] : memref<64x2304xbf16, #tpu.memory_space<vmem>>, vector<64x256xbf16>
    tpu.vector_store %arg17[%c0_210, %c256_211], %150 {strides = array<i32>} : memref<64x2304xbf16, #tpu.memory_space<vmem>>, vector<64x256xbf16>,
    %c0_212 = arith.constant 0 : index
    %c0_213 = arith.constant 0 : index
    %c2_214 = arith.constant 2 : index
    %c0_215 = arith.constant 0 : index
    %152 = vector.load %arg16[%c0_212, %c0_213, %c2_214, %c0_215] : memref<1x10x10x256xf32, #tpu.memory_space<vmem>>, vector<1x8x8x256xf32>
    %153 = vector.shape_cast %152 : vector<1x8x8x256xf32> to vector<64x256xf32>
    %154 = arith.truncf %153 : vector<64x256xf32> to vector<64x256xbf16>
    %c0_216 = arith.constant 0 : index
    %c512_217 = arith.constant 512 : index
    %155 = vector.load %arg17[%c0_216, %c512_217] : memref<64x2304xbf16, #tpu.memory_space<vmem>>, vector<64x256xbf16>
    tpu.vector_store %arg17[%c0_216, %c512_217], %154 {strides = array<i32>} : memref<64x2304xbf16, #tpu.memory_space<vmem>>, vector<64x256xbf16>,
    %c0_218 = arith.constant 0 : index
    %c1_219 = arith.constant 1 : index
    %c0_220 = arith.constant 0 : index
    %c0_221 = arith.constant 0 : index
    %156 = vector.load %arg16[%c0_218, %c1_219, %c0_220, %c0_221] : memref<1x10x10x256xf32, #tpu.memory_space<vmem>>, vector<1x8x8x256xf32>
    %157 = vector.shape_cast %156 : vector<1x8x8x256xf32> to vector<64x256xf32>
    %158 = arith.truncf %157 : vector<64x256xf32> to vector<64x256xbf16>
    %c0_222 = arith.constant 0 : index
    %c768_223 = arith.constant 768 : index
    %159 = vector.load %arg17[%c0_222, %c768_223] : memref<64x2304xbf16, #tpu.memory_space<vmem>>, vector<64x256xbf16>
    tpu.vector_store %arg17[%c0_222, %c768_223], %158 {strides = array<i32>} : memref<64x2304xbf16, #tpu.memory_space<vmem>>, vector<64x256xbf16>,
    %c0_224 = arith.constant 0 : index
    %c1_225 = arith.constant 1 : index
    %c1_226 = arith.constant 1 : index
    %c0_227 = arith.constant 0 : index
    %160 = vector.load %arg16[%c0_224, %c1_225, %c1_226, %c0_227] : memref<1x10x10x256xf32, #tpu.memory_space<vmem>>, vector<1x8x8x256xf32>
    %161 = vector.shape_cast %160 : vector<1x8x8x256xf32> to vector<64x256xf32>
    %162 = arith.truncf %161 : vector<64x256xf32> to vector<64x256xbf16>
    %c0_228 = arith.constant 0 : index
    %c1024_229 = arith.constant 1024 : index
    %163 = vector.load %arg17[%c0_228, %c1024_229] : memref<64x2304xbf16, #tpu.memory_space<vmem>>, vector<64x256xbf16>
    tpu.vector_store %arg17[%c0_228, %c1024_229], %162 {strides = array<i32>} : memref<64x2304xbf16, #tpu.memory_space<vmem>>, vector<64x256xbf16>,
    %c0_230 = arith.constant 0 : index
    %c1_231 = arith.constant 1 : index
    %c2_232 = arith.constant 2 : index
    %c0_233 = arith.constant 0 : index
    %164 = vector.load %arg16[%c0_230, %c1_231, %c2_232, %c0_233] : memref<1x10x10x256xf32, #tpu.memory_space<vmem>>, vector<1x8x8x256xf32>
    %165 = vector.shape_cast %164 : vector<1x8x8x256xf32> to vector<64x256xf32>
    %166 = arith.truncf %165 : vector<64x256xf32> to vector<64x256xbf16>
    %c0_234 = arith.constant 0 : index
    %c1280_235 = arith.constant 1280 : index
    %167 = vector.load %arg17[%c0_234, %c1280_235] : memref<64x2304xbf16, #tpu.memory_space<vmem>>, vector<64x256xbf16>
    tpu.vector_store %arg17[%c0_234, %c1280_235], %166 {strides = array<i32>} : memref<64x2304xbf16, #tpu.memory_space<vmem>>, vector<64x256xbf16>,
    %c0_236 = arith.constant 0 : index
    %c2_237 = arith.constant 2 : index
    %c0_238 = arith.constant 0 : index
    %c0_239 = arith.constant 0 : index
    %168 = vector.load %arg16[%c0_236, %c2_237, %c0_238, %c0_239] : memref<1x10x10x256xf32, #tpu.memory_space<vmem>>, vector<1x8x8x256xf32>
    %169 = vector.shape_cast %168 : vector<1x8x8x256xf32> to vector<64x256xf32>
    %170 = arith.truncf %169 : vector<64x256xf32> to vector<64x256xbf16>
    %c0_240 = arith.constant 0 : index
    %c1536_241 = arith.constant 1536 : index
    %171 = vector.load %arg17[%c0_240, %c1536_241] : memref<64x2304xbf16, #tpu.memory_space<vmem>>, vector<64x256xbf16>
    tpu.vector_store %arg17[%c0_240, %c1536_241], %170 {strides = array<i32>} : memref<64x2304xbf16, #tpu.memory_space<vmem>>, vector<64x256xbf16>,
    %c0_242 = arith.constant 0 : index
    %c2_243 = arith.constant 2 : index
    %c1_244 = arith.constant 1 : index
    %c0_245 = arith.constant 0 : index
    %172 = vector.load %arg16[%c0_242, %c2_243, %c1_244, %c0_245] : memref<1x10x10x256xf32, #tpu.memory_space<vmem>>, vector<1x8x8x256xf32>
    %173 = vector.shape_cast %172 : vector<1x8x8x256xf32> to vector<64x256xf32>
    %174 = arith.truncf %173 : vector<64x256xf32> to vector<64x256xbf16>
    %c0_246 = arith.constant 0 : index
    %c1792_247 = arith.constant 1792 : index
    %175 = vector.load %arg17[%c0_246, %c1792_247] : memref<64x2304xbf16, #tpu.memory_space<vmem>>, vector<64x256xbf16>
    tpu.vector_store %arg17[%c0_246, %c1792_247], %174 {strides = array<i32>} : memref<64x2304xbf16, #tpu.memory_space<vmem>>, vector<64x256xbf16>,
    %c0_248 = arith.constant 0 : index
    %c2_249 = arith.constant 2 : index
    %c2_250 = arith.constant 2 : index
    %c0_251 = arith.constant 0 : index
    %176 = vector.load %arg16[%c0_248, %c2_249, %c2_250, %c0_251] : memref<1x10x10x256xf32, #tpu.memory_space<vmem>>, vector<1x8x8x256xf32>
    %177 = vector.shape_cast %176 : vector<1x8x8x256xf32> to vector<64x256xf32>
    %178 = arith.truncf %177 : vector<64x256xf32> to vector<64x256xbf16>
    %c0_252 = arith.constant 0 : index
    %c2048_253 = arith.constant 2048 : index
    %179 = vector.load %arg17[%c0_252, %c2048_253] : memref<64x2304xbf16, #tpu.memory_space<vmem>>, vector<64x256xbf16>
    tpu.vector_store %arg17[%c0_252, %c2048_253], %178 {strides = array<i32>} : memref<64x2304xbf16, #tpu.memory_space<vmem>>, vector<64x256xbf16>,
    %c0_254 = arith.constant 0 : index
    %c0_255 = arith.constant 0 : index
    %180 = vector.load %arg17[%c0_254, %c0_255] : memref<64x2304xbf16, #tpu.memory_space<vmem>>, vector<64x2304xbf16>
    %c0_256 = arith.constant 0 : index
    %c0_257 = arith.constant 0 : index
    %181 = vector.load %arg8[%c0_256, %c0_257] : memref<2304x256xbf16, #tpu.memory_space<vmem>>, vector<2304x256xbf16>
    %cst_258 = arith.constant dense<0.000000e+00> : vector<64x256xf32>
    %182 = tpu.matmul %180, %181, %cst_258 {dimension_numbers = #tpu.dot_dimension_numbers<[1], [0], [0], [1], [0, 0, 1, 1], [], []>} : vector<64x2304xbf16>, vector<2304x256xbf16>, vector<64x256xf32> -> vector<64x256xf32>
    %c0_259 = arith.constant 0 : index
    %c0_260 = arith.constant 0 : index
    %183 = vector.load %arg9[%c0_259, %c0_260] : memref<1x256xf32, #tpu.memory_space<vmem>>, vector<1x256xf32>
    %184 = vector.broadcast %183 : vector<1x256xf32> to vector<64x256xf32>
    %185 = arith.addf %182, %184 : vector<64x256xf32>
    %cst_261 = arith.constant 0.000000e+00 : f32
    %186 = vector.broadcast %cst_261 : f32 to vector<64x256xf32>
    %187 = arith.maximumf %185, %186 : vector<64x256xf32>
    %188 = arith.truncf %187 : vector<64x256xf32> to vector<64x256xbf16>
    %c0_262 = arith.constant 0 : index
    %c0_263 = arith.constant 0 : index
    %189 = vector.load %arg10[%c0_262, %c0_263] : memref<256x1024xbf16, #tpu.memory_space<vmem>>, vector<256x256xbf16>
    %cst_264 = arith.constant dense<0.000000e+00> : vector<64x256xf32>
    %190 = tpu.matmul %188, %189, %cst_264 {dimension_numbers = #tpu.dot_dimension_numbers<[1], [0], [0], [1], [0, 0, 1, 1], [], []>} : vector<64x256xbf16>, vector<256x256xbf16>, vector<64x256xf32> -> vector<64x256xf32>
    %c0_265 = arith.constant 0 : index
    %c0_266 = arith.constant 0 : index
    %191 = vector.load %arg11[%c0_265, %c0_266] : memref<1x256xf32, #tpu.memory_space<vmem>>, vector<1x256xf32>
    %192 = vector.broadcast %191 : vector<1x256xf32> to vector<64x256xf32>
    %193 = arith.addf %190, %192 : vector<64x256xf32>
    %cst_267 = arith.constant 0.000000e+00 : f32
    %194 = vector.broadcast %cst_267 : f32 to vector<64x256xf32>
    %195 = arith.maximumf %193, %194 : vector<64x256xf32>
    %196 = arith.truncf %195 : vector<64x256xf32> to vector<64x256xbf16>
    %c0_268 = arith.constant 0 : index
    %c0_269 = arith.constant 0 : index
    %197 = vector.load %arg12[%c0_268, %c0_269] : memref<256x128xbf16, #tpu.memory_space<vmem>>, vector<256x128xbf16>
    %cst_270 = arith.constant dense<0.000000e+00> : vector<64x128xf32>
    %198 = tpu.matmul %196, %197, %cst_270 {dimension_numbers = #tpu.dot_dimension_numbers<[1], [0], [0], [1], [0, 0, 1, 1], [], []>} : vector<64x256xbf16>, vector<256x128xbf16>, vector<64x128xf32> -> vector<64x128xf32>
    %c0_271 = arith.constant 0 : index
    %c0_272 = arith.constant 0 : index
    %199 = vector.load %arg13[%c0_271, %c0_272] : memref<1x128xf32, #tpu.memory_space<vmem>>, vector<1x128xf32>
    %200 = vector.broadcast %199 : vector<1x128xf32> to vector<64x128xf32>
    %201 = arith.addf %198, %200 : vector<64x128xf32>
    %202 = vector.shape_cast %201 : vector<64x128xf32> to vector<1x1x8x8x128xf32>
    %c0_273 = arith.constant 0 : index
    %c0_274 = arith.constant 0 : index
    %c0_275 = arith.constant 0 : index
    %c0_276 = arith.constant 0 : index
    %c0_277 = arith.constant 0 : index
    %203 = vector.load %arg14[%c0_273, %c0_274, %c0_275, %c0_276, %c0_277] : memref<1x4x8x8x128xf32, #tpu.memory_space<vmem>>, vector<1x1x8x8x128xf32>
    tpu.vector_store %arg14[%c0_273, %c0_274, %c0_275, %c0_276, %c0_277], %202 {strides = array<i32>} : memref<1x4x8x8x128xf32, #tpu.memory_space<vmem>>, vector<1x1x8x8x128xf32>,
    %c0_278 = arith.constant 0 : index
    %c256_279 = arith.constant 256 : index
    %204 = vector.load %arg10[%c0_278, %c256_279] : memref<256x1024xbf16, #tpu.memory_space<vmem>>, vector<256x256xbf16>
    %cst_280 = arith.constant dense<0.000000e+00> : vector<64x256xf32>
    %205 = tpu.matmul %188, %204, %cst_280 {dimension_numbers = #tpu.dot_dimension_numbers<[1], [0], [0], [1], [0, 0, 1, 1], [], []>} : vector<64x256xbf16>, vector<256x256xbf16>, vector<64x256xf32> -> vector<64x256xf32>
    %c0_281 = arith.constant 0 : index
    %c0_282 = arith.constant 0 : index
    %206 = vector.load %arg11[%c0_281, %c0_282] : memref<1x256xf32, #tpu.memory_space<vmem>>, vector<1x256xf32>
    %207 = vector.broadcast %206 : vector<1x256xf32> to vector<64x256xf32>
    %208 = arith.addf %205, %207 : vector<64x256xf32>
    %cst_283 = arith.constant 0.000000e+00 : f32
    %209 = vector.broadcast %cst_283 : f32 to vector<64x256xf32>
    %210 = arith.maximumf %208, %209 : vector<64x256xf32>
    %211 = arith.truncf %210 : vector<64x256xf32> to vector<64x256xbf16>
    %c0_284 = arith.constant 0 : index
    %c0_285 = arith.constant 0 : index
    %212 = vector.load %arg12[%c0_284, %c0_285] : memref<256x128xbf16, #tpu.memory_space<vmem>>, vector<256x128xbf16>
    %cst_286 = arith.constant dense<0.000000e+00> : vector<64x128xf32>
    %213 = tpu.matmul %211, %212, %cst_286 {dimension_numbers = #tpu.dot_dimension_numbers<[1], [0], [0], [1], [0, 0, 1, 1], [], []>} : vector<64x256xbf16>, vector<256x128xbf16>, vector<64x128xf32> -> vector<64x128xf32>
    %c0_287 = arith.constant 0 : index
    %c0_288 = arith.constant 0 : index
    %214 = vector.load %arg13[%c0_287, %c0_288] : memref<1x128xf32, #tpu.memory_space<vmem>>, vector<1x128xf32>
    %215 = vector.broadcast %214 : vector<1x128xf32> to vector<64x128xf32>
    %216 = arith.addf %213, %215 : vector<64x128xf32>
    %217 = vector.shape_cast %216 : vector<64x128xf32> to vector<1x1x8x8x128xf32>
    %c0_289 = arith.constant 0 : index
    %c1_290 = arith.constant 1 : index
    %c0_291 = arith.constant 0 : index
    %c0_292 = arith.constant 0 : index
    %c0_293 = arith.constant 0 : index
    %218 = vector.load %arg14[%c0_289, %c1_290, %c0_291, %c0_292, %c0_293] : memref<1x4x8x8x128xf32, #tpu.memory_space<vmem>>, vector<1x1x8x8x128xf32>
    tpu.vector_store %arg14[%c0_289, %c1_290, %c0_291, %c0_292, %c0_293], %217 {strides = array<i32>} : memref<1x4x8x8x128xf32, #tpu.memory_space<vmem>>, vector<1x1x8x8x128xf32>,
    %c0_294 = arith.constant 0 : index
    %c512_295 = arith.constant 512 : index
    %219 = vector.load %arg10[%c0_294, %c512_295] : memref<256x1024xbf16, #tpu.memory_space<vmem>>, vector<256x256xbf16>
    %cst_296 = arith.constant dense<0.000000e+00> : vector<64x256xf32>
    %220 = tpu.matmul %188, %219, %cst_296 {dimension_numbers = #tpu.dot_dimension_numbers<[1], [0], [0], [1], [0, 0, 1, 1], [], []>} : vector<64x256xbf16>, vector<256x256xbf16>, vector<64x256xf32> -> vector<64x256xf32>
    %c0_297 = arith.constant 0 : index
    %c0_298 = arith.constant 0 : index
    %221 = vector.load %arg11[%c0_297, %c0_298] : memref<1x256xf32, #tpu.memory_space<vmem>>, vector<1x256xf32>
    %222 = vector.broadcast %221 : vector<1x256xf32> to vector<64x256xf32>
    %223 = arith.addf %220, %222 : vector<64x256xf32>
    %cst_299 = arith.constant 0.000000e+00 : f32
    %224 = vector.broadcast %cst_299 : f32 to vector<64x256xf32>
    %225 = arith.maximumf %223, %224 : vector<64x256xf32>
    %226 = arith.truncf %225 : vector<64x256xf32> to vector<64x256xbf16>
    %c0_300 = arith.constant 0 : index
    %c0_301 = arith.constant 0 : index
    %227 = vector.load %arg12[%c0_300, %c0_301] : memref<256x128xbf16, #tpu.memory_space<vmem>>, vector<256x128xbf16>
    %cst_302 = arith.constant dense<0.000000e+00> : vector<64x128xf32>
    %228 = tpu.matmul %226, %227, %cst_302 {dimension_numbers = #tpu.dot_dimension_numbers<[1], [0], [0], [1], [0, 0, 1, 1], [], []>} : vector<64x256xbf16>, vector<256x128xbf16>, vector<64x128xf32> -> vector<64x128xf32>
    %c0_303 = arith.constant 0 : index
    %c0_304 = arith.constant 0 : index
    %229 = vector.load %arg13[%c0_303, %c0_304] : memref<1x128xf32, #tpu.memory_space<vmem>>, vector<1x128xf32>
    %230 = vector.broadcast %229 : vector<1x128xf32> to vector<64x128xf32>
    %231 = arith.addf %228, %230 : vector<64x128xf32>
    %232 = vector.shape_cast %231 : vector<64x128xf32> to vector<1x1x8x8x128xf32>
    %c0_305 = arith.constant 0 : index
    %c2_306 = arith.constant 2 : index
    %c0_307 = arith.constant 0 : index
    %c0_308 = arith.constant 0 : index
    %c0_309 = arith.constant 0 : index
    %233 = vector.load %arg14[%c0_305, %c2_306, %c0_307, %c0_308, %c0_309] : memref<1x4x8x8x128xf32, #tpu.memory_space<vmem>>, vector<1x1x8x8x128xf32>
    tpu.vector_store %arg14[%c0_305, %c2_306, %c0_307, %c0_308, %c0_309], %232 {strides = array<i32>} : memref<1x4x8x8x128xf32, #tpu.memory_space<vmem>>, vector<1x1x8x8x128xf32>,
    %c0_310 = arith.constant 0 : index
    %c768_311 = arith.constant 768 : index
    %234 = vector.load %arg10[%c0_310, %c768_311] : memref<256x1024xbf16, #tpu.memory_space<vmem>>, vector<256x256xbf16>
    %cst_312 = arith.constant dense<0.000000e+00> : vector<64x256xf32>
    %235 = tpu.matmul %188, %234, %cst_312 {dimension_numbers = #tpu.dot_dimension_numbers<[1], [0], [0], [1], [0, 0, 1, 1], [], []>} : vector<64x256xbf16>, vector<256x256xbf16>, vector<64x256xf32> -> vector<64x256xf32>
    %c0_313 = arith.constant 0 : index
    %c0_314 = arith.constant 0 : index
    %236 = vector.load %arg11[%c0_313, %c0_314] : memref<1x256xf32, #tpu.memory_space<vmem>>, vector<1x256xf32>
    %237 = vector.broadcast %236 : vector<1x256xf32> to vector<64x256xf32>
    %238 = arith.addf %235, %237 : vector<64x256xf32>
    %cst_315 = arith.constant 0.000000e+00 : f32
    %239 = vector.broadcast %cst_315 : f32 to vector<64x256xf32>
    %240 = arith.maximumf %238, %239 : vector<64x256xf32>
    %241 = arith.truncf %240 : vector<64x256xf32> to vector<64x256xbf16>
    %c0_316 = arith.constant 0 : index
    %c0_317 = arith.constant 0 : index
    %242 = vector.load %arg12[%c0_316, %c0_317] : memref<256x128xbf16, #tpu.memory_space<vmem>>, vector<256x128xbf16>
    %cst_318 = arith.constant dense<0.000000e+00> : vector<64x128xf32>
    %243 = tpu.matmul %241, %242, %cst_318 {dimension_numbers = #tpu.dot_dimension_numbers<[1], [0], [0], [1], [0, 0, 1, 1], [], []>} : vector<64x256xbf16>, vector<256x128xbf16>, vector<64x128xf32> -> vector<64x128xf32>
    %c0_319 = arith.constant 0 : index
    %c0_320 = arith.constant 0 : index
    %244 = vector.load %arg13[%c0_319, %c0_320] : memref<1x128xf32, #tpu.memory_space<vmem>>, vector<1x128xf32>
    %245 = vector.broadcast %244 : vector<1x128xf32> to vector<64x128xf32>
    %246 = arith.addf %243, %245 : vector<64x128xf32>
    %247 = vector.shape_cast %246 : vector<64x128xf32> to vector<1x1x8x8x128xf32>
    %c0_321 = arith.constant 0 : index
    %c3 = arith.constant 3 : index
    %c0_322 = arith.constant 0 : index
    %c0_323 = arith.constant 0 : index
    %c0_324 = arith.constant 0 : index
    %248 = vector.load %arg14[%c0_321, %c3, %c0_322, %c0_323, %c0_324] : memref<1x4x8x8x128xf32, #tpu.memory_space<vmem>>, vector<1x1x8x8x128xf32>
    tpu.vector_store %arg14[%c0_321, %c3, %c0_322, %c0_323, %c0_324], %247 {strides = array<i32>} : memref<1x4x8x8x128xf32, #tpu.memory_space<vmem>>, vector<1x1x8x8x128xf32>,
    return
  }
  func.func @transform_0(%arg0: i32) -> (i32, i32, i32, i32) {
    %c0_i32 = arith.constant 0 : i32
    %c0_i32_0 = arith.constant 0 : i32
    %c0_i32_1 = arith.constant 0 : i32
    %c0_i32_2 = arith.constant 0 : i32
    return %arg0, %c0_i32, %c0_i32_0, %c0_i32_1 : i32, i32, i32, i32
  }
  func.func @transform_1(%arg0: i32) -> (i32, i32) {
    %c0_i32 = arith.constant 0 : i32
    %c0_i32_0 = arith.constant 0 : i32
    %c0_i32_1 = arith.constant 0 : i32
    return %c0_i32, %c0_i32_0 : i32, i32
  }
  func.func @transform_2(%arg0: i32) -> (i32, i32) {
    %c0_i32 = arith.constant 0 : i32
    %c0_i32_0 = arith.constant 0 : i32
    %c0_i32_1 = arith.constant 0 : i32
    return %c0_i32, %c0_i32_0 : i32, i32
  }
  func.func @transform_3(%arg0: i32) -> (i32, i32) {
    %c0_i32 = arith.constant 0 : i32
    %c0_i32_0 = arith.constant 0 : i32
    %c0_i32_1 = arith.constant 0 : i32
    return %c0_i32, %c0_i32_0 : i32, i32
  }
  func.func @transform_4(%arg0: i32) -> (i32, i32) {
    %c0_i32 = arith.constant 0 : i32
    %c0_i32_0 = arith.constant 0 : i32
    %c0_i32_1 = arith.constant 0 : i32
    return %c0_i32, %c0_i32_0 : i32, i32
  }
  func.func @transform_5(%arg0: i32) -> (i32, i32) {
    %c0_i32 = arith.constant 0 : i32
    %c0_i32_0 = arith.constant 0 : i32
    %c0_i32_1 = arith.constant 0 : i32
    return %c0_i32, %c0_i32_0 : i32, i32
  }
  func.func @transform_6(%arg0: i32) -> (i32, i32) {
    %c0_i32 = arith.constant 0 : i32
    %c0_i32_0 = arith.constant 0 : i32
    %c0_i32_1 = arith.constant 0 : i32
    return %c0_i32, %c0_i32_0 : i32, i32
  }
  func.func @transform_7(%arg0: i32) -> (i32, i32) {
    %c0_i32 = arith.constant 0 : i32
    %c0_i32_0 = arith.constant 0 : i32
    %c0_i32_1 = arith.constant 0 : i32
    return %c0_i32, %c0_i32_0 : i32, i32
  }
  func.func @transform_8(%arg0: i32) -> (i32, i32) {
    %c0_i32 = arith.constant 0 : i32
    %c0_i32_0 = arith.constant 0 : i32
    %c0_i32_1 = arith.constant 0 : i32
    return %c0_i32, %c0_i32_0 : i32, i32
  }
  func.func @transform_9(%arg0: i32) -> (i32, i32) {
    %c0_i32 = arith.constant 0 : i32
    %c0_i32_0 = arith.constant 0 : i32
    %c0_i32_1 = arith.constant 0 : i32
    return %c0_i32, %c0_i32_0 : i32, i32
  }
  func.func @transform_10(%arg0: i32) -> (i32, i32) {
    %c0_i32 = arith.constant 0 : i32
    %c0_i32_0 = arith.constant 0 : i32
    %c0_i32_1 = arith.constant 0 : i32
    return %c0_i32, %c0_i32_0 : i32, i32
  }
  func.func @transform_11(%arg0: i32) -> (i32, i32) {
    %c0_i32 = arith.constant 0 : i32
    %c0_i32_0 = arith.constant 0 : i32
    %c0_i32_1 = arith.constant 0 : i32
    return %c0_i32, %c0_i32_0 : i32, i32
  }
  func.func @transform_12(%arg0: i32) -> (i32, i32) {
    %c0_i32 = arith.constant 0 : i32
    %c0_i32_0 = arith.constant 0 : i32
    %c0_i32_1 = arith.constant 0 : i32
    return %c0_i32, %c0_i32_0 : i32, i32
  }
  func.func @transform_13(%arg0: i32) -> (i32, i32, i32, i32, i32) {
    %c0_i32 = arith.constant 0 : i32
    %c0_i32_0 = arith.constant 0 : i32
    %c0_i32_1 = arith.constant 0 : i32
    %c0_i32_2 = arith.constant 0 : i32
    %c0_i32_3 = arith.constant 0 : i32
    return %arg0, %c0_i32, %c0_i32_0, %c0_i32_1, %c0_i32_2 : i32, i32, i32, i32, i32
  }
}

</mosaic_0001>

<bundles_post_ra>
// kernel: tpu_custom_call.1
= control target key start
LH: loop header
LB: loop body
LE: loop exit
PB: predicated region body
PF: predicated region fallthrough
CT: control target
= control target key end

     0   :  { %s21072_s0 = inlined_call_operand.hbm [shape: f32[2,8,8,128], index: 0, kind: input, shape index: {}]   ;;  %s21073_s1 = inlined_call_operand.hbm [shape: bf16[1152,256], index: 1, kind: input, shape index: {}]   ;;  %s21074_s2 = inlined_call_operand.hbm [shape: f32[1,256], index: 2, kind: input, shape index: {}]   ;;  %s21075_s3 = inlined_call_operand.hbm [shape: bf16[2304,256], index: 3, kind: input, shape index: {}]   ;;  %s21076_s4 = inlined_call_operand.hbm [shape: f32[1,256], index: 4, kind: input, shape index: {}]   ;;  %s21077_s5 = inlined_call_operand.hbm [shape: bf16[2304,256], index: 5, kind: input, shape index: {}]   ;;  %s21078_s6 = inlined_call_operand.hbm [shape: f32[1,256], index: 6, kind: input, shape index: {}]   ;;  %s21079_s7 = inlined_call_operand.hbm [shape: bf16[2304,256], index: 7, kind: input, shape index: {}]   ;;  %s21080_s8 = inlined_call_operand.hbm [shape: f32[1,256], index: 8, kind: input, shape index: {}]   ;;  %s21081_s9 = inlined_call_operand.hbm [shape: bf16[256,1024], index: 9, kind: input, shape index: {}]   ;;  %s21082_s10 = inlined_call_operand.hbm [shape: f32[1,256], index: 10, kind: input, shape index: {}]   ;;  %s21083_s11 = inlined_call_operand.hbm [shape: bf16[256,128], index: 11, kind: input, shape index: {}]   ;;  %s21084_s12 = inlined_call_operand.hbm [shape: f32[1,128], index: 12, kind: input, shape index: {}]   ;;  %s21085_s13 = inlined_call_operand.hbm [shape: f32[2,4,8,8,128], index: 13, kind: output, shape index: {}]  }
   0x1   :  { %21097 = sst [smem:[#allocation38_spill]] %s21072_s0 }
   0x2   :  { %21098 = sst [smem:[#allocation39_spill]] %s21073_s1 }
   0x3   :  { %21099 = sst [smem:[#allocation40_spill]] %s21074_s2 }
   0x4   :  { %21100 = sst [smem:[#allocation41_spill]] %s21085_s13 }
   0x5   :  { %18 = vsyncpa [#allocation6], 0 }
   0x6   :  { %20 = vsyncpa [#allocation6 + $0x1], 0 }
   0x7   :  { %21 = vsyncpa [#allocation9], 0 }
   0x8   :  { %22 = vsyncpa [#allocation12], 0 }
   0x9   :  { %23 = vsyncpa [#allocation15], 0 }
   0xa   :  { %24 = vsyncpa [#allocation18], 0 }
   0xb   :  { %25 = vsyncpa [#allocation21], 0 }
   0xc   :  { %26 = vsyncpa [#allocation24], 0 }
   0xd   :  { %27 = vsyncpa [#allocation7], 0 }
   0xe   :  { %29 = vsyncpa [#allocation7 + $0x1], 0  ;;  %s19603_s25 = smov 0   ;;  %s19605_s26 = smov 0  }
   0xf   :  { %s19607_s27 = smov 0   ;;  %s19609_s28 = smov 0  }
  0x10 LB: > { %21101 = sst [smem:[#allocation35_spill]] %s19495_s25  ;;  %s19509_s29 = smov [#allocation8]   ;;  %s19507_s28 = sphi %s19609_s28, %s21144_s28   ;;  %s19503_s27 = sphi %s19607_s27, %s21143_s27   ;;  %s19499_s26 = sphi %s19605_s26, %s21142_s26   ;;  %s19495_s25 = sphi %s19603_s25, %s21141_s25  }
  0x11   : > { %s356_s30 = sshll.u32 %s19509_s29, 4  ;;  %s19624_s14 = sadd.s32 4294967295, %s19507_s28   ;;  %s19629_s30 = int_to_ptr.vmem [resolvable:$true] %s356_s30 }
  0x12   : > { %21102 = sst [smem:[#allocation36_spill]] %s19624_s14  ;;  %p15353_p0 = scmp.ge.s32.totalorder %s19507_s28, 1 }
  0x13   : > { %p21092_p1 = scmp.eq.s32.totalorder %s19624_s14, 0  ;;  %p344_p2 = scmp.lt.s32.totalorder %s19507_s28, 3 }
  0x14   : > { %s19510_s16 = smov [#allocation11]   ;;  %s19511_s19 = smov [#allocation14]  }
  0x15   : > { %p19631_p3 = pnand %p15353_p0, %p344_p2  ;;  %s380_s17 = sshll.u32 %s19510_s16, 4  ;;  %s19644_s17 = int_to_ptr.vmem [resolvable:$true] %s380_s17 }
  0x16   : > { %s404_s20 = sshll.u32 %s19511_s19, 4  ;;  %s21106_s1 = sld [smem:[#allocation39_spill]]  ;;  %s19646_s20 = int_to_ptr.vmem [resolvable:$true] %s404_s20 }
  0x17   : > { %s21103_s15 = scalar_select %p19631_p3, 1, 0 }
  0x18   : > { %p17344_p5 = pneg %p19631_p3 }
  0x19   : > { %21104 = sst [smem:[#allocation37_spill]] %s21103_s15 }
  0x1a   : > { %p19640_p6 = pnand %p17344_p5, %p21092_p1 }
  0x1c   : > { %s19051_s23 = scalar_lea.hbm %s21106_s1, 18432  ;;  %p19656_p8 = pneg %p19640_p6 }
  0x1d   : > { %p19052_p7 = scmp.ne.s32.totalorder %s21106_s1, %s19051_s23  ;;  %p19058_p11 = scmp.lt.u32.totalorder %s19051_s23, %s21106_s1 }
  0x1f   : > { %p19054_p9 = pnand %p19656_p8, %p19052_p7 }
  0x21   : > { %p19055_p10 = pneg %p19054_p9 }
  0x23   : > { %p19060_p12 = pnand %p19058_p11, %p19055_p10 }
  0x25   : > { %19063 = shalt.err (!%p19060_p12)
}
  0x26   : > { %s19064_s21 = scalar_lea.vmem %s19629_s30, 18432  ;;  %p19072_p5 = scmp.lt.s32.totalorder %s19629_s30, %s19629_s30 }
  0x27   : > { %p19065_p13 = scmp.ne.s32.totalorder %s19629_s30, %s19064_s21  ;;  %p19073_p4 = scmp.lt.s32.totalorder %s19064_s21, %s19064_s21 }
  0x29   : > { %p19067_p0 = pnand %p19065_p13, %p19656_p8  ;;  %p19074_p7 = por %p19073_p4, %p19072_p5 }
  0x2b   : > { %p19068_p2 = pneg %p19067_p0 }
  0x2d   : > { %p19075_p9 = pnand %p19074_p7, %p19068_p2 }
  0x2f   : > { %19078 = shalt.err (!%p19075_p9)
}
  0x30   : > { %s21094_s22 = smov 128   ;;  %s21095_s13 = smov 8  }
  0x31   : > { %17347 = dma.hbm_to_vmem [thread:$0]  (!%p19640_p6), %s21106_s1, 18432, %s19629_s30, [#allocation9], %s21094_s22, %s21094_s22, %s21095_s13  }
  0x32   : > { %s19079_s21 = scalar_lea.hbm %s21075_s3, 36864 }
  0x33   : > { %p19080_p4 = scmp.ne.s32.totalorder %s21075_s3, %s19079_s21  ;;  %p19086_p12 = scmp.lt.u32.totalorder %s19079_s21, %s21075_s3 }
  0x35   : > { %p19082_p10 = pnand %p19080_p4, %p19656_p8 }
  0x37   : > { %p19083_p11 = pneg %p19082_p10 }
  0x39   : > { %p19088_p13 = pnand %p19086_p12, %p19083_p11 }
  0x3b   : > { %19091 = shalt.err (!%p19088_p13)
}
  0x3c   : > { %s19092_s30 = scalar_lea.vmem %s19644_s17, 36864  ;;  %p19100_p7 = scmp.lt.s32.totalorder %s19644_s17, %s19644_s17 }
  0x3d   : > { %p19093_p0 = scmp.ne.s32.totalorder %s19644_s17, %s19092_s30  ;;  %p19101_p9 = scmp.lt.s32.totalorder %s19092_s30, %s19092_s30 }
  0x3f   : > { %p19095_p2 = pnand %p19093_p0, %p19656_p8  ;;  %p19102_p4 = por %p19101_p9, %p19100_p7 }
  0x41   : > { %p19096_p5 = pneg %p19095_p2 }
  0x43   : > { %p19103_p10 = pnand %p19102_p4, %p19096_p5 }
  0x45   : > { %19106 = shalt.err (!%p19103_p10)
}
  0x46   : > { %17353 = dma.hbm_to_vmem [thread:$0]  (!%p19640_p6), %s21075_s3, 36864, %s19644_s17, [#allocation12], %s21094_s22, %s21094_s22, %s21095_s13  }
  0x47   : > { %s19107_s23 = scalar_lea.hbm %s21077_s5, 36864 }
  0x48   : > { %p19108_p11 = scmp.ne.s32.totalorder %s21077_s5, %s19107_s23  ;;  %p19114_p0 = scmp.lt.u32.totalorder %s19107_s23, %s21077_s5 }
  0x4a   : > { %p19110_p12 = pnand %p19108_p11, %p19656_p8 }
  0x4c   : > { %p19111_p13 = pneg %p19110_p12 }
  0x4e   : > { %p19116_p2 = pnand %p19114_p0, %p19111_p13 }
  0x50   : > { %19119 = shalt.err (!%p19116_p2)
}
  0x51   : > { %s19120_s17 = scalar_lea.vmem %s19646_s20, 36864  ;;  %p19128_p4 = scmp.lt.s32.totalorder %s19646_s20, %s19646_s20 }
  0x52   : > { %p19121_p5 = scmp.ne.s32.totalorder %s19646_s20, %s19120_s17  ;;  %p19129_p10 = scmp.lt.s32.totalorder %s19120_s17, %s19120_s17 }
  0x54   : > { %p19123_p7 = pnand %p19121_p5, %p19656_p8  ;;  %p19130_p11 = por %p19129_p10, %p19128_p4 }
  0x56   : > { %p19124_p9 = pneg %p19123_p7 }
  0x58   : > { %p19131_p12 = pnand %p19130_p11, %p19124_p9 }
  0x5a   : > { %19134 = shalt.err (!%p19131_p12)
}
  0x5b   : > { %17359 = dma.hbm_to_vmem [thread:$0]  (!%p19640_p6), %s21077_s5, 36864, %s19646_s20, [#allocation15], %s21094_s22, %s21094_s22, %s21095_s13  }
  0x5c   : > { %s19514_s25 = smov [#allocation17]   ;;  %s19515_s15 = smov [#allocation20]  }
  0x5d   : > { %s428_s14 = sshll.u32 %s19514_s25, 4  ;;  %s452_s23 = sshll.u32 %s19515_s15, 4  ;;  %s429_s14 = int_to_ptr.vmem [resolvable:$true] %s428_s14  ;;  %s453_s23 = int_to_ptr.vmem [resolvable:$true] %s452_s23 }
  0x5e   : > { %s19135_s19 = scalar_lea.hbm %s21079_s7, 36864 }
  0x5f   : > { %p19136_p13 = scmp.ne.s32.totalorder %s21079_s7, %s19135_s19  ;;  %p19142_p5 = scmp.lt.u32.totalorder %s19135_s19, %s21079_s7 }
  0x61   : > { %p19138_p0 = pnand %p19136_p13, %p19656_p8 }
  0x63   : > { %p19139_p2 = pneg %p19138_p0 }
  0x65   : > { %p19144_p7 = pnand %p19142_p5, %p19139_p2 }
  0x67   : > { %19147 = shalt.err (!%p19144_p7)
}
  0x68   : > { %s19148_s20 = scalar_lea.vmem %s429_s14, 36864  ;;  %p19156_p11 = scmp.lt.s32.totalorder %s429_s14, %s429_s14 }
  0x69   : > { %p19149_p9 = scmp.ne.s32.totalorder %s429_s14, %s19148_s20  ;;  %p19157_p12 = scmp.lt.s32.totalorder %s19148_s20, %s19148_s20 }
  0x6b   : > { %p19151_p4 = pnand %p19149_p9, %p19656_p8  ;;  %p19158_p1 = por %p19157_p12, %p19156_p11 }
  0x6d   : > { %p19152_p10 = pneg %p19151_p4 }
  0x6f   : > { %p19159_p3 = pnand %p19158_p1, %p19152_p10 }
  0x71   : > { %19162 = shalt.err (!%p19159_p3)
}
  0x72   : > { %17365 = dma.hbm_to_vmem [thread:$0]  (!%p19640_p6), %s21079_s7, 36864, %s429_s14, [#allocation18], %s21094_s22, %s21094_s22, %s21095_s13  }
  0x73   : > { %s19163_s24 = scalar_lea.hbm %s21081_s9, 16384 }
  0x74   : > { %p19164_p1 = scmp.ne.s32.totalorder %s21081_s9, %s19163_s24  ;;  %p19170_p0 = scmp.lt.u32.totalorder %s19163_s24, %s21081_s9 }
  0x76   : > { %p19166_p3 = pnand %p19164_p1, %p19656_p8 }
  0x78   : > { %p19167_p13 = pneg %p19166_p3 }
  0x7a   : > { %p19172_p2 = pnand %p19170_p0, %p19167_p13 }
  0x7c   : > { %19175 = shalt.err (!%p19172_p2)
}
  0x7d   : > { %s19176_s30 = scalar_lea.vmem %s453_s23, 16384  ;;  %p19184_p4 = scmp.lt.s32.totalorder %s453_s23, %s453_s23 }
  0x7e   : > { %p19177_p5 = scmp.ne.s32.totalorder %s453_s23, %s19176_s30  ;;  %p19185_p10 = scmp.lt.s32.totalorder %s19176_s30, %s19176_s30 }
  0x80   : > { %p19179_p7 = pnand %p19177_p5, %p19656_p8  ;;  %p19186_p11 = por %p19185_p10, %p19184_p4 }
  0x82   : > { %p19180_p9 = pneg %p19179_p7 }
  0x84   : > { %p19187_p12 = pnand %p19186_p11, %p19180_p9 }
  0x86   : > { %19190 = shalt.err (!%p19187_p12)
}
  0x87   : > { %s19516_s14 = smov 512   ;;  %s19517_s20 = smov 32  }
  0x88   : > { %17371 = dma.hbm_to_vmem [thread:$0]  (!%p19640_p6), %s21081_s9, 16384, %s453_s23, [#allocation21], %s19516_s14, %s19516_s14, %s19517_s20  }
  0x89   : > { %s19518_s25 = smov [#allocation23]   ;;  %s19191_s19 = scalar_lea.hbm %s21083_s11, 2048 }
  0x8a   : > { %s476_s15 = sshll.u32 %s19518_s25, 4  ;;  %p19192_p1 = scmp.ne.s32.totalorder %s21083_s11, %s19191_s19  ;;  %s477_s15 = int_to_ptr.vmem [resolvable:$true] %s476_s15 }
  0x8b   : > { %p19198_p0 = scmp.lt.u32.totalorder %s19191_s19, %s21083_s11 }
  0x8c   : > { %p19194_p3 = pnand %p19192_p1, %p19656_p8 }
  0x8e   : > { %p19195_p13 = pneg %p19194_p3 }
  0x90   : > { %p19200_p2 = pnand %p19198_p0, %p19195_p13 }
  0x92   : > { %19203 = shalt.err (!%p19200_p2)
}
  0x93   : > { %s19204_s23 = scalar_lea.vmem %s477_s15, 2048  ;;  %p19212_p4 = scmp.lt.s32.totalorder %s477_s15, %s477_s15 }
  0x94   : > { %p19205_p5 = scmp.ne.s32.totalorder %s477_s15, %s19204_s23  ;;  %p19213_p10 = scmp.lt.s32.totalorder %s19204_s23, %s19204_s23 }
  0x96   : > { %p19207_p7 = pnand %p19205_p5, %p19656_p8  ;;  %p19214_p11 = por %p19213_p10, %p19212_p4 }
  0x98   : > { %p19208_p9 = pneg %p19207_p7 }
  0x9a   : > { %p19215_p12 = pnand %p19214_p11, %p19208_p9 }
  0x9c   : > { %19218 = shalt.err (!%p19215_p12)
}
  0x9d   : > { %s19519_s14 = smov 64   ;;  %s19520_s20 = smov 4  }
  0x9e   : > { %17377 = dma.hbm_to_vmem [thread:$0]  (!%p19640_p6), %s21083_s11, 2048, %s477_s15, [#allocation24], %s19519_s14, %s19519_s14, %s19520_s20  }
  0x9f   : > { %s19521_s0 = smov [#allocation10]   ;;  %s19522_s24 = smov [#allocation13]  }
  0xa0   : > { %s370_s25 = sshll.u32 %s19521_s0, 4  ;;  %s394_s29 = sshll.u32 %s19522_s24, 4  ;;  %s371_s25 = int_to_ptr.vmem [resolvable:$true] %s370_s25  ;;  %s19789_s29 = int_to_ptr.vmem [resolvable:$true] %s394_s29 }
  0xa1   : > { %s21108_s2 = sld [smem:[#allocation40_spill]] }
  0xa7   : > { %s19219_s17 = scalar_lea.hbm %s21108_s2, 32 }
  0xa8   : > { %p19220_p1 = scmp.ne.s32.totalorder %s21108_s2, %s19219_s17  ;;  %p19226_p0 = scmp.lt.u32.totalorder %s19219_s17, %s21108_s2 }
  0xaa   : > { %p19222_p3 = pnand %p19220_p1, %p19656_p8 }
  0xac   : > { %p19223_p13 = pneg %p19222_p3 }
  0xae   : > { %p19228_p2 = pnand %p19226_p0, %p19223_p13 }
  0xb0   : > { %19231 = shalt.err (!%p19228_p2)
}
  0xb1   : > { %s19232_s14 = scalar_lea.vmem %s371_s25, 32  ;;  %p19240_p4 = scmp.lt.s32.totalorder %s371_s25, %s371_s25 }
  0xb2   : > { %p19233_p5 = scmp.ne.s32.totalorder %s371_s25, %s19232_s14  ;;  %p19241_p10 = scmp.lt.s32.totalorder %s19232_s14, %s19232_s14 }
  0xb4   : > { %p19235_p7 = pnand %p19233_p5, %p19656_p8  ;;  %p19242_p11 = por %p19241_p10, %p19240_p4 }
  0xb6   : > { %p19236_p9 = pneg %p19235_p7 }
  0xb8   : > { %p19243_p12 = pnand %p19242_p11, %p19236_p9 }
  0xba   : > { %19246 = shalt.err (!%p19243_p12)
}
  0xbb   : > { %17350 = dma.hbm_to_vmem [thread:$0]  (!%p19640_p6), %s21108_s2, 32, %s371_s25, [#allocation9]  }
  0xbc   : > { %s19247_s19 = scalar_lea.hbm %s21076_s4, 32 }
  0xbd   : > { %p19248_p1 = scmp.ne.s32.totalorder %s21076_s4, %s19247_s19  ;;  %p19254_p0 = scmp.lt.u32.totalorder %s19247_s19, %s21076_s4 }
  0xbf   : > { %p19250_p3 = pnand %p19248_p1, %p19656_p8 }
  0xc1   : > { %p19251_p13 = pneg %p19250_p3 }
  0xc3   : > { %p19256_p2 = pnand %p19254_p0, %p19251_p13 }
  0xc5   : > { %19259 = shalt.err (!%p19256_p2)
}
  0xc6   : > { %s19260_s25 = scalar_lea.vmem %s19789_s29, 32  ;;  %p19268_p4 = scmp.lt.s32.totalorder %s19789_s29, %s19789_s29 }
  0xc7   : > { %p19261_p5 = scmp.ne.s32.totalorder %s19789_s29, %s19260_s25  ;;  %p19269_p10 = scmp.lt.s32.totalorder %s19260_s25, %s19260_s25 }
  0xc9   : > { %p19263_p7 = pnand %p19261_p5, %p19656_p8  ;;  %p19270_p11 = por %p19269_p10, %p19268_p4 }
  0xcb   : > { %p19264_p9 = pneg %p19263_p7 }
  0xcd   : > { %p19271_p12 = pnand %p19270_p11, %p19264_p9 }
  0xcf   : > { %19274 = shalt.err (!%p19271_p12)
}
  0xd0   : > { %17356 = dma.hbm_to_vmem [thread:$0]  (!%p19640_p6), %s21076_s4, 32, %s19789_s29, [#allocation12]  }
  0xd1   : > { %s19523_s14 = smov [#allocation16]   ;;  %s19524_s1 = smov [#allocation19]  }
  0xd2   : > { %s418_s20 = sshll.u32 %s19523_s14, 4  ;;  %s442_s0 = sshll.u32 %s19524_s1, 4  ;;  %s419_s20 = int_to_ptr.vmem [resolvable:$true] %s418_s20  ;;  %s19832_s0 = int_to_ptr.vmem [resolvable:$true] %s442_s0 }
  0xd3   : > { %s19275_s21 = scalar_lea.hbm %s21078_s6, 32 }
  0xd4   : > { %p19276_p1 = scmp.ne.s32.totalorder %s21078_s6, %s19275_s21  ;;  %p19282_p0 = scmp.lt.u32.totalorder %s19275_s21, %s21078_s6 }
  0xd6   : > { %p19278_p3 = pnand %p19276_p1, %p19656_p8 }
  0xd8   : > { %p19279_p13 = pneg %p19278_p3 }
  0xda   : > { %p19284_p2 = pnand %p19282_p0, %p19279_p13 }
  0xdc   : > { %19287 = shalt.err (!%p19284_p2)
}
  0xdd   : > { %s19288_s25 = scalar_lea.vmem %s419_s20, 32  ;;  %p19296_p4 = scmp.lt.s32.totalorder %s419_s20, %s419_s20 }
  0xde   : > { %p19289_p5 = scmp.ne.s32.totalorder %s419_s20, %s19288_s25  ;;  %p19297_p10 = scmp.lt.s32.totalorder %s19288_s25, %s19288_s25 }
  0xe0   : > { %p19291_p7 = pnand %p19289_p5, %p19656_p8  ;;  %p19298_p11 = por %p19297_p10, %p19296_p4 }
  0xe2   : > { %p19292_p9 = pneg %p19291_p7 }
  0xe4   : > { %p19299_p12 = pnand %p19298_p11, %p19292_p9 }
  0xe6   : > { %19302 = shalt.err (!%p19299_p12)
}
  0xe7   : > { %17362 = dma.hbm_to_vmem [thread:$0]  (!%p19640_p6), %s21078_s6, 32, %s419_s20, [#allocation15]  }
  0xe8   : > { %s19303_s24 = scalar_lea.hbm %s21080_s8, 32 }
  0xe9   : > { %p19304_p1 = scmp.ne.s32.totalorder %s21080_s8, %s19303_s24  ;;  %p19310_p0 = scmp.lt.u32.totalorder %s19303_s24, %s21080_s8 }
  0xeb   : > { %p19306_p3 = pnand %p19304_p1, %p19656_p8 }
  0xed   : > { %p19307_p13 = pneg %p19306_p3 }
  0xef   : > { %p19312_p2 = pnand %p19310_p0, %p19307_p13 }
  0xf1   : > { %19315 = shalt.err (!%p19312_p2)
}
  0xf2   : > { %s19316_s20 = scalar_lea.vmem %s19832_s0, 32  ;;  %p19324_p4 = scmp.lt.s32.totalorder %s19832_s0, %s19832_s0 }
  0xf3   : > { %p19317_p5 = scmp.ne.s32.totalorder %s19832_s0, %s19316_s20  ;;  %p19325_p10 = scmp.lt.s32.totalorder %s19316_s20, %s19316_s20 }
  0xf5   : > { %p19319_p7 = pnand %p19317_p5, %p19656_p8  ;;  %p19326_p11 = por %p19325_p10, %p19324_p4 }
  0xf7   : > { %p19320_p9 = pneg %p19319_p7 }
  0xf9   : > { %p19327_p12 = pnand %p19326_p11, %p19320_p9 }
  0xfb   : > { %19330 = shalt.err (!%p19327_p12)
}
  0xfc   : > { %17368 = dma.hbm_to_vmem [thread:$0]  (!%p19640_p6), %s21080_s8, 32, %s19832_s0, [#allocation18]  }
  0xfd   : > { %s19525_s25 = smov [#allocation22]   ;;  %s19526_s15 = smov [#allocation25]  }
  0xfe   : > { %s466_s22 = sshll.u32 %s19525_s25, 4  ;;  %s490_s14 = sshll.u32 %s19526_s15, 4  ;;  %s467_s22 = int_to_ptr.vmem [resolvable:$true] %s466_s22  ;;  %s19875_s14 = int_to_ptr.vmem [resolvable:$true] %s490_s14 }
  0xff   : > { %s19331_s19 = scalar_lea.hbm %s21082_s10, 32 }
 0x100   : > { %p19332_p1 = scmp.ne.s32.totalorder %s21082_s10, %s19331_s19  ;;  %p19338_p0 = scmp.lt.u32.totalorder %s19331_s19, %s21082_s10 }
 0x102   : > { %p19334_p3 = pnand %p19332_p1, %p19656_p8 }
 0x104   : > { %p19335_p13 = pneg %p19334_p3 }
 0x106   : > { %p19340_p2 = pnand %p19338_p0, %p19335_p13 }
 0x108   : > { %19343 = shalt.err (!%p19340_p2)
}
 0x109   : > { %s19344_s20 = scalar_lea.vmem %s467_s22, 32  ;;  %p19352_p4 = scmp.lt.s32.totalorder %s467_s22, %s467_s22 }
 0x10a   : > { %p19345_p5 = scmp.ne.s32.totalorder %s467_s22, %s19344_s20  ;;  %p19353_p10 = scmp.lt.s32.totalorder %s19344_s20, %s19344_s20 }
 0x10c   : > { %p19347_p7 = pnand %p19345_p5, %p19656_p8  ;;  %p19354_p11 = por %p19353_p10, %p19352_p4 }
 0x10e   : > { %p19348_p9 = pneg %p19347_p7 }
 0x110   : > { %p19355_p12 = pnand %p19354_p11, %p19348_p9 }
 0x112   : > { %19358 = shalt.err (!%p19355_p12)
}
 0x113   : > { %17374 = dma.hbm_to_vmem [thread:$0]  (!%p19640_p6), %s21082_s10, 32, %s467_s22, [#allocation21]  }
 0x114   : > { %s19359_s1 = scalar_lea.hbm %s21084_s12, 16 }
 0x115   : > { %p19360_p1 = scmp.ne.s32.totalorder %s21084_s12, %s19359_s1  ;;  %p19366_p0 = scmp.lt.u32.totalorder %s19359_s1, %s21084_s12 }
 0x117   : > { %p19362_p3 = pnand %p19360_p1, %p19656_p8 }
 0x119   : > { %p19363_p13 = pneg %p19362_p3 }
 0x11b   : > { %p19368_p2 = pnand %p19366_p0, %p19363_p13 }
 0x11d   : > { %19371 = shalt.err (!%p19368_p2)
}
 0x11e   : > { %s19372_s22 = scalar_lea.vmem %s19875_s14, 16  ;;  %s19379_s30 = scalar_lea.vmem %s19875_s14, 32 }
 0x11f   : > { %p19373_p5 = scmp.ne.s32.totalorder %s19875_s14, %s19372_s22  ;;  %p19380_p4 = scmp.lt.s32.totalorder %s19875_s14, %s19875_s14 }
 0x120   : > { %p19381_p10 = scmp.lt.s32.totalorder %s19379_s30, %s19372_s22 }
 0x121   : > { %p19375_p7 = pnand %p19373_p5, %p19656_p8 }
 0x122   : > { %p19382_p11 = por %p19381_p10, %p19380_p4 }
 0x123   : > { %p19376_p9 = pneg %p19375_p7 }
 0x125   : > { %p19383_p12 = pnand %p19382_p11, %p19376_p9 }
 0x127   : > { %19386 = shalt.err (!%p19383_p12)
}
 0x128   : > { %s21109_s16 = sld [smem:[#allocation35_spill]]  ;;  %s21110_s23 = sld [smem:[#allocation36_spill]] }
 0x129   : > { %17380 = dma.hbm_to_vmem [thread:$0]  (!%p19640_p6), %s21084_s12, 16, %s19875_s14, [#allocation24]  }
 0x12a   : > { %s15352_s18 = sadd.s32 4294967294, %s19507_s28   ;;  %s19921_s29 = sadd.s32 1, %s19507_s28  }
 0x12b   : > { %s39_s25 = ssub.s32 %s19507_s28, %s19921_s29  ;;  %s42_s15 = sadd.s32 1, %s19503_s27 }
 0x12c   : > { %p40_p8 = scmp.eq.s32.totalorder %s39_s25, 0  ;;  %p49_p1 = scmp.ne.s32.totalorder %s19503_s27, %s19499_s26 }
 0x12d   : > { %p50_p3 = scmp.eq.s32.totalorder %s19507_s28, 0  ;;  %p337_p7 = scmp.eq.s32.totalorder %s15352_s18, 1 }
 0x12e   : > { %p55_p13 = scmp.ne.s32.totalorder %s19499_s26, %s21109_s16  ;;  %p21112_p2 = scmp.eq.s32.totalorder %s21110_s23, 0 }
 0x12f   : > { %s19932_s1 = scalar_select %p40_p8, %s19503_s27, %s42_s15  }
 0x130   : > { %p19934_p0 = por %p50_p3, %p49_p1  ;;  %p19940_p6 = por %p21112_p2, %p55_p13 }
 0x131   : > { %p331_p5 = scmp.eq.s32.totalorder %s21110_s23, 1  ;;  %p17401_p9 = scmp.lt.s32.totalorder %s19507_s28, 2 }
 0x132   : > { %s501_s19 = sand.u32 1, %s19503_s27   ;;  %p19951_p10 = por %p337_p7, %p55_p13 }
 0x133   : > { %p19947_p4 = por %p331_p5, %p49_p1  ;;  %s15367_s22 = sshll.u32 %s501_s19, 6 }
 0x134   : > { %s21115_s17 = scalar_select %p19951_p10, 1, 0 }
 0x135   : > { %s21114_s21 = scalar_select %p19947_p4, 1, 0 }
 0x136   : > { %s16618_s30 = sshll.u32 %s19507_s28, 10  ;;  %s21116_s16 = sld [smem:[#allocation38_spill]] }
 0x137   : > { %s505_s23 = scalar_lea.vmem [#allocation5], %s15367_s22  ;;  %p19965_p11 = pnand %p17401_p9, %p19934_p0 }
 0x138   : > { %s512_s18 = sshll.u32 %s505_s23, 4  ;;  %s19969_s13 = scalar_lea.sflag [#allocation6], %s501_s19  ;;  %s19961_s18 = int_to_ptr.vmem [resolvable:$true] %s512_s18 }
 0x139   : > { %p19389_p8 = pneg %p19965_p11 }
 0x13c   : > { %s19959_s25 = scalar_lea.hbm %s21116_s16, %s16618_s30  ;;  %s19392_s24 = scalar_lea.hbm %s21116_s16, 2048 }
 0x13d   : > { %s19387_s0 = scalar_lea.hbm %s19959_s25, 1024  ;;  %p19393_p13 = scmp.lt.u32.totalorder %s19959_s25, %s21116_s16 }
 0x13e   : > { %p19388_p12 = scmp.ne.s32.totalorder %s19959_s25, %s19387_s0  ;;  %p19394_p0 = scmp.lt.u32.totalorder %s19392_s24, %s19387_s0 }
 0x13f   : > { %p19396_p5 = scmp.lt.u32.totalorder %s19387_s0, %s19959_s25 }
 0x140   : > { %p19390_p1 = pnand %p19389_p8, %p19388_p12  ;;  %p19395_p2 = por %p19394_p0, %p19393_p13 }
 0x142   : > { %p19391_p3 = pneg %p19390_p1  ;;  %p19397_p7 = por %p19396_p5, %p19395_p2 }
 0x144   : > { %p19398_p9 = pnand %p19397_p7, %p19391_p3 }
 0x146   : > { %19401 = shalt.err (!%p19398_p9)
}
 0x147   : > { %s19402_s19 = scalar_lea.vmem %s19961_s18, 1024  ;;  %s19527_s22 = smov [#allocation5]  }
 0x148   : > { %p19403_p12 = scmp.ne.s32.totalorder %s19961_s18, %s19402_s19  ;;  %s19407_s30 = sshll.u32 %s19527_s22, 4  ;;  %s19408_s30 = int_to_ptr.vmem [resolvable:$false] %s19407_s30 }
 0x149   : > { %s19409_s20 = scalar_lea.vmem %s19408_s30, 2048  ;;  %p19410_p4 = scmp.lt.s32.totalorder %s19961_s18, %s19408_s30 }
 0x14a   : > { %p19405_p1 = pnand %p19403_p12, %p19389_p8  ;;  %p19411_p13 = scmp.lt.s32.totalorder %s19409_s20, %s19402_s19 }
 0x14c   : > { %p19406_p10 = pneg %p19405_p1  ;;  %p19412_p0 = por %p19411_p13, %p19410_p4 }
 0x14e   : > { %p19413_p2 = pnand %p19412_p0, %p19406_p10 }
 0x150   : > { %19416 = shalt.err (!%p19413_p2)
}
 0x151   : > { %s21118_s0 = smov 8   ;;  %s21119_s24 = smov 128  }
 0x152   : > { %17384 = dma.hbm_to_vmem [thread:$0]  (!%p19965_p11), %s19959_s25, 1024, %s19961_s18, %s19969_s13, %s21119_s24, %s21119_s24, %s21118_s0  }
 0x153   : > { %s21120_s23 = sld [smem:[#allocation37_spill]] }
 0x159   : > { %p21121_p8 = scmp.ne.s32.totalorder %s21120_s23, 0 }
 0x15a   : > { %s20003_s22 = sand.u32 (!%p21121_p8), 1, %s19499_s26  }
 0x15b   : > { %524 = sbr.rel (%p21121_p8) target bundleno = 4456 (0x1168), region = 72  ;;  %s15371_s19 = sshll.u32 (!%p21121_p8), %s20003_s22, 6 }
 0x15c   : > { %s527_s30 = scalar_lea.sflag (!%p21121_p8), [#allocation6], %s20003_s22  ;;  %s20007_s20 = scalar_lea.vmem (!%p21121_p8), [#allocation5], %s15371_s19 }
 0x162   : > { %19462 = dma.done.wait (%p19940_p6), %s527_s30, 1024  }
 0x163   : > { %19464 = vsyncadd (%p19940_p6), %s527_s30, 4294966272  ;;  %s21122_s15 = sld [smem:[#allocation36_spill]] }
 0x169   : > { %p21123_p4 = scmp.eq.s32.totalorder %s21122_s15, 0 }
 0x16b   : > { %19466 = dma.done.wait (%p21123_p4), [#allocation9], 18464   ;;  %p21124_p10 = pmov %p21123_p4 }
 0x16c   : > { %p21125_p11 = pmov %p21123_p4 }
 0x16d   : > { %19468 = vsyncadd (%p21124_p10), [#allocation9], 4294948832 }
 0x16e   : > { %19470 = dma.done.wait (%p21125_p11), [#allocation12], 36896   ;;  %p21126_p3 = pmov %p21123_p4 }
 0x170   : > { %19472 = vsyncadd (%p21126_p3), [#allocation12], 4294930400  ;;  %p21127_p5 = pmov %p21126_p3 }
 0x171   : > { %p21128_p7 = pmov %p21126_p3 }
 0x172   : > { %19474 = dma.done.wait (%p21127_p5), [#allocation15], 36896  }
 0x173   : > { %19476 = vsyncadd (%p21128_p7), [#allocation15], 4294930400  ;;  %p21129_p6 = pmov %p21126_p3 }
 0x174   : > { %p21130_p9 = pmov %p21126_p3 }
 0x175   : > { %19478 = dma.done.wait (%p21129_p6), [#allocation18], 36896  }
 0x176   : > { %19480 = vsyncadd (%p21130_p9), [#allocation18], 4294930400  ;;  %p21131_p12 = pmov %p21126_p3 }
 0x177   : > { %p21132_p1 = pmov %p21126_p3 }
 0x178   : > { %19482 = dma.done.wait (%p21131_p12), [#allocation21], 16416  }
 0x179   : > { %19484 = vsyncadd (%p21132_p1), [#allocation21], 4294950880  ;;  %p21133_p13 = pmov %p21132_p1 }
 0x17a   : > { %p21134_p0 = pmov %p21132_p1 }
 0x17b   : > { %19486 = dma.done.wait (%p21133_p13), [#allocation24], 2064  }
 0x17c   : > { %19488 = vsyncadd (%p21134_p0), [#allocation24], 4294965232  ;;  %v19528_v0 = vmov 0.0   ;;  %v17469_v1 = vld [vmem:[#allocation8 + $0x4] ss:$8 sps:$4 sm:$0xff]   ;;  %vm799_vm0 = vcmask 1046528  }
 0x17d   : > { %622 = vst [vmem:[#allocation2] sm:$0xff] %v19528_v0  ;;  %624 = vst [vmem:[#allocation2 + $0x10] sm:$0x3] %v19528_v0  ;;  %v17471_v2 = vld [vmem:[#allocation8] ss:$8 sps:$4 sm:$0xff]   ;;  %2146 = vmatprep.subr.bf16.mxu0 %v17469_v1  ;;  %v704_v36 = vld [vmem:[%s20007_s20 + $0x10] sm:$0xff] }
 0x17e   : > { %626 = vst [vmem:[#allocation2 + $0x20] sm:$0xff] %v19528_v0  ;;  %628 = vst [vmem:[#allocation2 + $0x30] sm:$0x3] %v19528_v0  ;;  %v17472_v3 = vld [vmem:[#allocation8 + $0x14] ss:$8 sps:$4 sm:$0xff]   ;;  %2147 = vmatpush1.bf16.msra.mxu0 %v17471_v2  ;;  %v702_v14 = vld [vmem:[%s20007_s20] sm:$0xff] }
 0x17f   : > { %623 = vst [vmem:[#allocation2 + $0x8] sm:$0xff] %v19528_v0  ;;  %625 = vst [vmem:[#allocation2 + $0x18] sm:$0x3] %v19528_v0  ;;  %v17474_v4 = vld [vmem:[#allocation8 + $0x10] ss:$8 sps:$4 sm:$0xff]   ;;  %2148 = vmatprep.subr.bf16.mxu0 %v17472_v3  ;;  %v718_v15 = vrot.slane %v702_v14, 7 }
 0x180   : > { %627 = vst [vmem:[#allocation2 + $0x28] sm:$0xff] %v19528_v0  ;;  %629 = vst [vmem:[#allocation2 + $0x38] sm:$0x3] %v19528_v0  ;;  %v17475_v5 = vld [vmem:[#allocation8 + $0x24] ss:$8 sps:$4 sm:$0xff]   ;;  %v720_v38 = vrot.slane %v704_v36, 7 }
 0x181   : > { %630 = vst [vmem:[#allocation2 + $0x40] sm:$0xff] %v19528_v0  ;;  %631 = vst [vmem:[#allocation2 + $0x48] sm:$0xff] %v19528_v0  ;;  %v17477_v6 = vld [vmem:[#allocation8 + $0x20] ss:$8 sps:$4 sm:$0xff]   ;;  %v17478_v7 = vld [vmem:[#allocation8 + $0x34] ss:$8 sps:$4 sm:$0xff]  }
 0x182   : > { %632 = vst [vmem:[#allocation2 + $0x50] sm:$0x3] %v19528_v0  ;;  %633 = vst [vmem:[#allocation2 + $0x58] sm:$0x3] %v19528_v0  ;;  %2149 = vmatpush1.bf16.msra.mxu0 %v17474_v4  ;;  %v17480_v8 = vld [vmem:[#allocation8 + $0x30] ss:$8 sps:$4 sm:$0xff]  }
 0x183   : > { %634 = vst [vmem:[#allocation2 + $0x60] sm:$0xff] %v19528_v0  ;;  %635 = vst [vmem:[#allocation2 + $0x68] sm:$0xff] %v19528_v0  ;;  %2150 = vmatprep.subr.bf16.mxu0 %v17475_v5  ;;  %v17481_v9 = vld [vmem:[#allocation8 + $0x44] ss:$8 sps:$4 sm:$0xff]   ;;  %v17483_v10 = vld [vmem:[#allocation8 + $0x40] ss:$8 sps:$4 sm:$0xff]  }
 0x184   : > { %636 = vst [vmem:[#allocation2 + $0x70] sm:$0x3] %v19528_v0  ;;  %637 = vst [vmem:[#allocation2 + $0x78] sm:$0x3] %v19528_v0  ;;  %v17484_v11 = vld [vmem:[#allocation8 + $0x54] ss:$8 sps:$4 sm:$0xff]  }
 0x185   : > { %638 = vst [vmem:[#allocation2 + $0x80] sm:$0xff] %v19528_v0  ;;  %639 = vst [vmem:[#allocation2 + $0x88] sm:$0xff] %v19528_v0  ;;  %v17486_v12 = vld [vmem:[#allocation8 + $0x50] ss:$8 sps:$4 sm:$0xff]   ;;  %v17487_v13 = vld [vmem:[#allocation8 + $0x64] ss:$8 sps:$4 sm:$0xff]  }
 0x186   : > { %640 = vst [vmem:[#allocation2 + $0x90] sm:$0x3] %v19528_v0  ;;  %641 = vst [vmem:[#allocation2 + $0x98] sm:$0x3] %v19528_v0  ;;  %2151 = vmatpush1.bf16.msra.mxu0 %v17477_v6  ;;  %v17489_v16 = vld [vmem:[#allocation8 + $0x60] ss:$8 sps:$4 sm:$0xff]  }
 0x187   : > { %642 = vst [vmem:[#allocation2 + $0xa0] sm:$0xff] %v19528_v0  ;;  %643 = vst [vmem:[#allocation2 + $0xa8] sm:$0xff] %v19528_v0  ;;  %2152 = vmatprep.subr.bf16.mxu0 %v17478_v7  ;;  %v17490_v17 = vld [vmem:[#allocation8 + $0x74] ss:$8 sps:$4 sm:$0xff]   ;;  %v767_v18 = vld [vmem:[#allocation2] sm:$0xfe] }
 0x188   : > { %644 = vst [vmem:[#allocation2 + $0xb0] sm:$0x3] %v19528_v0  ;;  %645 = vst [vmem:[#allocation2 + $0xb8] sm:$0x3] %v19528_v0  ;;  %v768_v19 = vld [vmem:[#allocation2 + $0x10] sm:$0x1] }
 0x189   : > { %646 = vst [vmem:[#allocation2 + $0xc0] sm:$0xff] %v19528_v0  ;;  %647 = vst [vmem:[#allocation2 + $0xc8] sm:$0xff] %v19528_v0  ;;  %v17492_v20 = vld [vmem:[#allocation8 + $0x70] ss:$8 sps:$4 sm:$0xff]   ;;  %v17493_v21 = vld [vmem:[#allocation8 + $0x84] ss:$8 sps:$4 sm:$0xff]  }
 0x18a   : > { %648 = vst [vmem:[#allocation2 + $0xd0] sm:$0x3] %v19528_v0  ;;  %649 = vst [vmem:[#allocation2 + $0xd8] sm:$0x3] %v19528_v0  ;;  %2153 = vmatpush1.bf16.msra.mxu0 %v17480_v8  ;;  %v800_v22 = vrot.slane %v767_v18, 1  ;;  %v801_v23 = vrot.slane %v768_v19, 1 }
 0x18b   : > { %650 = vst [vmem:[#allocation2 + $0xe0] sm:$0xff] %v19528_v0  ;;  %651 = vst [vmem:[#allocation2 + $0xe8] sm:$0xff] %v19528_v0  ;;  %2154 = vmatprep.subr.bf16.mxu0 %v17481_v9  ;;  %v17495_v24 = vld [vmem:[#allocation8 + $0x80] ss:$8 sps:$4 sm:$0xff]   ;;  %v17496_v27 = vld [vmem:[#allocation8 + $0x94] ss:$8 sps:$4 sm:$0xff]  }
 0x18c   : > { %652 = vst [vmem:[#allocation2 + $0xf0] sm:$0x3] %v19528_v0  ;;  %653 = vst [vmem:[#allocation2 + $0xf8] sm:$0x3] %v19528_v0  ;;  %v802_v28 = vsel %vm799_vm0, %v800_v22, %v801_v23  ;;  %v17498_v32 = vld [vmem:[#allocation8 + $0x90] ss:$8 sps:$4 sm:$0xff]  }
 0x18d   : > { %654 = vst [vmem:[#allocation2 + $0x100] sm:$0xff] %v19528_v0  ;;  %655 = vst [vmem:[#allocation2 + $0x108] sm:$0xff] %v19528_v0  ;;  %v17499_v34 = vld [vmem:[#allocation8 + $0xa4] ss:$8 sps:$4 sm:$0xff]   ;;  %v17501_v39 = vld [vmem:[#allocation8 + $0xa0] ss:$8 sps:$4 sm:$0xff]  }
 0x18e   : > { %656 = vst [vmem:[#allocation2 + $0x110] sm:$0x3] %v19528_v0  ;;  %657 = vst [vmem:[#allocation2 + $0x118] sm:$0x3] %v19528_v0  ;;  %2155 = vmatpush1.bf16.msra.mxu0 %v17483_v10  ;;  %v703_v35 = vld [vmem:[%s20007_s20 + $0x8] sm:$0xff]  ;;  %v705_v41 = vld [vmem:[%s20007_s20 + $0x18] sm:$0xff] }
 0x18f   : > { %658 = vst [vmem:[#allocation2 + $0x120] sm:$0xff] %v19528_v0  ;;  %659 = vst [vmem:[#allocation2 + $0x128] sm:$0xff] %v19528_v0  ;;  %2156 = vmatprep.subr.bf16.mxu0 %v17484_v11  ;;  %v719_v37 = vrot.slane %v703_v35, 7  ;;  %v17502_v40 = vld [vmem:[#allocation8 + $0xb4] ss:$8 sps:$4 sm:$0xff]   ;;  %v706_v42 = vld [vmem:[%s20007_s20 + $0x20] sm:$0xff] }
 0x190   : > { %660 = vst [vmem:[#allocation2 + $0x130] sm:$0x3] %v19528_v0  ;;  %661 = vst [vmem:[#allocation2 + $0x138] sm:$0x3] %v19528_v0  ;;  %v721_v43 = vrot.slane %v705_v41, 7  ;;  %v722_v44 = vrot.slane %v706_v42, 7 }
 0x191   : > { %662 = vst [vmem:[#allocation3] sm:$0xff] %v19528_v0  ;;  %663 = vst [vmem:[#allocation3 + $0x8] sm:$0xff] %v19528_v0  ;;  %v17504_v45 = vld [vmem:[#allocation8 + $0xb0] ss:$8 sps:$4 sm:$0xff]   ;;  %v17505_v46 = vld [vmem:[#allocation8 + $0xc4] ss:$8 sps:$4 sm:$0xff]  }
 0x192   : > { %664 = vst [vmem:[#allocation3 + $0x10] sm:$0x3] %v19528_v0  ;;  %665 = vst [vmem:[#allocation3 + $0x18] sm:$0x3] %v19528_v0  ;;  %2157 = vmatpush1.bf16.msra.mxu0 %v17486_v12  ;;  %v707_v47 = vld [vmem:[%s20007_s20 + $0x28] sm:$0xff]  ;;  %v708_v48 = vld [vmem:[%s20007_s20 + $0x30] sm:$0xff] }
 0x193   : > { %666 = vst [vmem:[#allocation3 + $0x20] sm:$0xff] %v19528_v0  ;;  %667 = vst [vmem:[#allocation3 + $0x28] sm:$0xff] %v19528_v0  ;;  %2158 = vmatprep.subr.bf16.mxu0 %v17487_v13  ;;  %v723_v49 = vrot.slane %v707_v47, 7  ;;  %v724_v50 = vrot.slane %v708_v48, 7  ;;  %v17507_v51 = vld [vmem:[#allocation8 + $0xc0] ss:$8 sps:$4 sm:$0xff]  }
 0x194   : > { %668 = vst [vmem:[#allocation3 + $0x30] sm:$0x3] %v19528_v0  ;;  %669 = vst [vmem:[#allocation3 + $0x38] sm:$0x3] %v19528_v0  ;;  %v17508_v52 = vld [vmem:[#allocation8 + $0xd4] ss:$8 sps:$4 sm:$0xff]  }
 0x195   : > { %670 = vst [vmem:[#allocation3 + $0x40] sm:$0xff] %v19528_v0  ;;  %671 = vst [vmem:[#allocation3 + $0x48] sm:$0xff] %v19528_v0  ;;  %v17510_v53 = vld [vmem:[#allocation8 + $0xd0] ss:$8 sps:$4 sm:$0xff]   ;;  %v17511_v54 = vld [vmem:[#allocation8 + $0xe4] ss:$8 sps:$4 sm:$0xff]  }
 0x196   : > { %672 = vst [vmem:[#allocation3 + $0x50] sm:$0x3] %v19528_v0  ;;  %673 = vst [vmem:[#allocation3 + $0x58] sm:$0x3] %v19528_v0  ;;  %2159 = vmatpush1.bf16.msra.mxu0 %v17489_v16  ;;  %v17513_v59 = vld [vmem:[#allocation8 + $0xe0] ss:$8 sps:$4 sm:$0xff]  }
 0x197   : > { %674 = vst [vmem:[#allocation3 + $0x60] sm:$0xff] %v19528_v0  ;;  %675 = vst [vmem:[#allocation3 + $0x68] sm:$0xff] %v19528_v0  ;;  %2160 = vmatprep.subr.bf16.mxu0 %v17490_v17  ;;  %v17514_v60 = vld [vmem:[#allocation8 + $0xf4] ss:$8 sps:$4 sm:$0xff]   ;;  %v17516_v2 = vld [vmem:[#allocation8 + $0xf0] ss:$8 sps:$4 sm:$0xff]  }
 0x198   : > { %676 = vst [vmem:[#allocation3 + $0x70] sm:$0x3] %v19528_v0  ;;  %677 = vst [vmem:[#allocation3 + $0x78] sm:$0x3] %v19528_v0  ;;  %v17519_v3 = vld [vmem:[#allocation8 + $0x104] ss:$8 sps:$4 sm:$0xff]  }
 0x199   : > { %678 = vst [vmem:[#allocation3 + $0x80] sm:$0xff] %v19528_v0  ;;  %679 = vst [vmem:[#allocation3 + $0x88] sm:$0xff] %v19528_v0  ;;  %v17517_v12 = vld [vmem:[#allocation8 + $0x100] ss:$8 sps:$4 sm:$0xff]   ;;  %v17522_v13 = vld [vmem:[#allocation8 + $0x114] ss:$8 sps:$4 sm:$0xff]  }
 0x19a   : > { %680 = vst [vmem:[#allocation3 + $0x90] sm:$0x3] %v19528_v0  ;;  %681 = vst [vmem:[#allocation3 + $0x98] sm:$0x3] %v19528_v0  ;;  %2161 = vmatpush1.bf16.msra.mxu0 %v17492_v20  ;;  %v17520_v19 = vld [vmem:[#allocation8 + $0x110] ss:$8 sps:$4 sm:$0xff]  }
 0x19b   : > { %682 = vst [vmem:[#allocation3 + $0xa0] sm:$0xff] %v19528_v0  ;;  %683 = vst [vmem:[#allocation3 + $0xa8] sm:$0xff] %v19528_v0  ;;  %2162 = vmatprep.subr.bf16.mxu0 %v17493_v21  ;;  %v17525_v20 = vld [vmem:[#allocation8 + $0x124] ss:$8 sps:$4 sm:$0xff]   ;;  %v17526_v36 = vld [vmem:[#allocation8 + $0x130] ss:$8 sps:$4 sm:$0xff]  }
 0x19c   : > { %684 = vst [vmem:[#allocation3 + $0xb0] sm:$0x3] %v19528_v0  ;;  %685 = vst [vmem:[#allocation3 + $0xb8] sm:$0x3] %v19528_v0  ;;  %v709_v42 = vld [vmem:[%s20007_s20 + $0x38] sm:$0xff]  ;;  %vm872_vm1 = vcmask 1045504  }
 0x19d   : > { %686 = vst [vmem:[#allocation3 + $0xc0] sm:$0xff] %v19528_v0  ;;  %687 = vst [vmem:[#allocation3 + $0xc8] sm:$0xff] %v19528_v0  ;;  %v17534_v47 = vld [vmem:[#allocation8 + $0x154] ss:$8 sps:$4 sm:$0xff]   ;;  %v17532_v48 = vld [vmem:[#allocation8 + $0x150] ss:$8 sps:$4 sm:$0xff]  }
 0x19e   : > { %688 = vst [vmem:[#allocation3 + $0xd0] sm:$0x3] %v19528_v0  ;;  %689 = vst [vmem:[#allocation3 + $0xd8] sm:$0x3] %v19528_v0  ;;  %2163 = vmatpush1.bf16.msra.mxu0 %v17495_v24  ;;  %s15384_s13 = sshll.u32 %s20003_s22, 8  ;;  %s16619_s25 = sshll.u32 %s21122_s15, 12 }
 0x19f   : > { %690 = vst [vmem:[#allocation3 + $0xe0] sm:$0xff] %v19528_v0  ;;  %691 = vst [vmem:[#allocation3 + $0xe8] sm:$0xff] %v19528_v0  ;;  %2164 = vmatprep.subr.bf16.mxu0 %v17496_v27  ;;  %s20878_s14 = scalar_lea.vmem [#allocation26], %s15384_s13  ;;  %s21135_s23 = sld [smem:[#allocation41_spill]] }
 0x1a0   : > { %692 = vst [vmem:[#allocation3 + $0xf0] sm:$0x3] %v19528_v0  ;;  %693 = vst [vmem:[#allocation3 + $0xf8] sm:$0x3] %v19528_v0  ;;  %s15165_s18 = sshll.u32 %s20878_s14, 4  ;;  %p21136_p8 = scmp.ne.s32.totalorder %s21114_s21, 0  ;;  %s21025_s18 = int_to_ptr.vmem [resolvable:$true] %s15165_s18 }
 0x1a1   : > { %694 = vst [vmem:[#allocation3 + $0x100] sm:$0xff] %v19528_v0  ;;  %695 = vst [vmem:[#allocation3 + $0x108] sm:$0xff] %v19528_v0  ;;  %s19417_s20 = scalar_lea.vmem %s21025_s18, 4096  ;;  %s19530_s15 = smov [#allocation26]  }
 0x1a2   : > { %696 = vst [vmem:[#allocation3 + $0x110] sm:$0x3] %v19528_v0  ;;  %697 = vst [vmem:[#allocation3 + $0x118] sm:$0x3] %v19528_v0  ;;  %2165 = vmatpush1.bf16.msra.mxu0 %v17498_v32  ;;  %p19418_p2 = scmp.ne.s32.totalorder %s21025_s18, %s19417_s20  ;;  %s19421_s13 = sshll.u32 %s19530_s15, 4  ;;  %s19422_s13 = int_to_ptr.vmem [resolvable:$false] %s19421_s13 }
 0x1a3   : > { %698 = vst [vmem:[#allocation3 + $0x120] sm:$0xff] %v19528_v0  ;;  %699 = vst [vmem:[#allocation3 + $0x128] sm:$0xff] %v19528_v0  ;;  %2166 = vmatprep.subr.bf16.mxu0 %v17499_v34  ;;  %p19424_p11 = scmp.lt.s32.totalorder %s21025_s18, %s19422_s13 }
 0x1a4   : > { %700 = vst [vmem:[#allocation3 + $0x130] sm:$0x3] %v19528_v0  ;;  %701 = vst [vmem:[#allocation3 + $0x138] sm:$0x3] %v19528_v0  ;;  %p19419_p4 = pnand %p19418_p2, %p21136_p8 }
 0x1a5   : > { %735 = vst [vmem:[#allocation2 + $0x20] sm:$0xfe] %v718_v15  ;;  %736 = vst [vmem:[#allocation2 + $0x30] sm:$0x1] %v718_v15  ;;  %s21023_s19 = scalar_lea.hbm %s21135_s23, %s16619_s25  ;;  %s19423_s25 = scalar_lea.vmem %s19422_s13, 8192 }
 0x1a6   : > { %737 = vst [vmem:[#allocation2 + $0x40] sm:$0xfe] %v719_v37  ;;  %738 = vst [vmem:[#allocation2 + $0x50] sm:$0x1] %v719_v37  ;;  %2167 = vmatpush1.bf16.msra.mxu0 %v17501_v39  ;;  %v17531_v39 = vld [vmem:[#allocation8 + $0x144] ss:$8 sps:$4 sm:$0xff]   ;;  %p19420_p10 = pneg %p19419_p4  ;;  %p19425_p3 = scmp.lt.s32.totalorder %s19423_s25, %s19417_s20 }
 0x1a7   : > { %739 = vst [vmem:[#allocation2 + $0x60] sm:$0xfe] %v720_v38  ;;  %740 = vst [vmem:[#allocation2 + $0x70] sm:$0x1] %v720_v38  ;;  %2168 = vmatprep.subr.bf16.mxu0 %v17502_v40 }
 0x1a8   : > { %741 = vst [vmem:[#allocation2 + $0x80] sm:$0xfe] %v721_v43  ;;  %742 = vst [vmem:[#allocation2 + $0x90] sm:$0x1] %v721_v43  ;;  %p19426_p5 = por %p19425_p3, %p19424_p11 }
 0x1a9   : > { %743 = vst [vmem:[#allocation2 + $0xa0] sm:$0xfe] %v722_v44  ;;  %744 = vst [vmem:[#allocation2 + $0xb0] sm:$0x1] %v722_v44  ;;  %v725_v44 = vrot.slane %v709_v42, 7 }
 0x1aa   : > { %745 = vst [vmem:[#allocation2 + $0xc0] sm:$0xfe] %v723_v49  ;;  %746 = vst [vmem:[#allocation2 + $0xd0] sm:$0x1] %v723_v49  ;;  %2169 = vmatpush1.bf16.msra.mxu0 %v17504_v45  ;;  %v17529_v45 = vld [vmem:[#allocation8 + $0x140] ss:$8 sps:$4 sm:$0xff]   ;;  %p19427_p7 = pnand %p19426_p5, %p19420_p10 }
 0x1ab   : > { %747 = vst [vmem:[#allocation2 + $0xe0] sm:$0xfe] %v724_v50  ;;  %748 = vst [vmem:[#allocation2 + $0xf0] sm:$0x1] %v724_v50  ;;  %2170 = vmatprep.subr.bf16.mxu0 %v17505_v46 }
 0x1ac   : > { %v769_v25 = vld [vmem:[#allocation2 + $0x20] sm:$0xfe]  ;;  %v770_v26 = vld [vmem:[#allocation2 + $0x30] sm:$0x1]  ;;  %749 = vst [vmem:[#allocation2 + $0x100] sm:$0xfe] %v725_v44 }
 0x1ad   : > { %v803_v29 = vrot.slane %v769_v25, 1  ;;  %v804_v30 = vrot.slane %v770_v26, 1  ;;  %v771_v55 = vld [vmem:[#allocation2 + $0x40] sm:$0xfe]  ;;  %v772_v56 = vld [vmem:[#allocation2 + $0x50] sm:$0x1] }
 0x1ae   : > { %2171 = vmatpush1.bf16.msra.mxu0 %v17507_v51  ;;  %v773_v57 = vld [vmem:[#allocation2 + $0x60] sm:$0xfe]  ;;  %v774_v58 = vld [vmem:[#allocation2 + $0x70] sm:$0x1]  ;;  %v806_v61 = vrot.slane %v771_v55, 1  ;;  %v807_v62 = vrot.slane %v772_v56, 1 }
 0x1af   : > { %v805_v31 = vsel %vm799_vm0, %v803_v29, %v804_v30  ;;  %2172 = vmatprep.subr.bf16.mxu0 %v17508_v52  ;;  %v809_v63 = vrot.slane %v773_v57, 1  ;;  %v810_v1 = vrot.slane %v774_v58, 1  ;;  %v20126_v4 = vld [vmem:[#allocation2 + $0x20] sm:$0xff]  ;;  %v776_v8 = vld [vmem:[#allocation2 + $0x90] sm:$0x1] }
 0x1b0   : > { %v832_v33 = vpack.c.bf16 %v805_v31, %v802_v28  ;;  %v775_v5 = vld [vmem:[#allocation2 + $0x80] sm:$0xfe]  ;;  %v808_v6 = vsel %vm799_vm0, %v806_v61, %v807_v62  ;;  %v778_v10 = vld [vmem:[#allocation2 + $0xb0] sm:$0x1]  ;;  %v759_v11 = vpack.c.bf16 %v20126_v4, %v19528_v0  ;;  %v813_v16 = vrot.slane %v776_v8, 1 }
 0x1b1   : > { %v811_v7 = vsel %vm799_vm0, %v809_v63, %v810_v1  ;;  %v777_v9 = vld [vmem:[#allocation2 + $0xa0] sm:$0xfe]  ;;  %v812_v15 = vrot.slane %v775_v5, 1  ;;  %v816_v18 = vrot.slane %v778_v10, 1  ;;  %v780_v25 = vld [vmem:[#allocation2 + $0xd0] sm:$0x1] }
 0x1b2   : > { %2178 = vmatprep.mubr.bf16.mxu0 %v832_v33  ;;  %2173 = vmatpush1.bf16.msra.mxu0 %v17510_v53  ;;  %v833_v14 = vpack.c.bf16 %v811_v7, %v808_v6  ;;  %v815_v17 = vrot.slane %v777_v9, 1  ;;  %v753_v21 = vld [vmem:[#allocation2 + $0x40] sm:$0xff]  ;;  %v782_v27 = vld [vmem:[#allocation2 + $0xf0] sm:$0x1]  ;;  %v17528_v30 = vld [vmem:[#allocation8 + $0x134] ss:$8 sps:$4 sm:$0xff]  }
 0x1b3   : > { %2174 = vmatprep.subr.bf16.mxu0 %v17511_v54  ;;  %v20132_v22 = vld [vmem:[#allocation2 + $0x60] sm:$0xff]  ;;  %v814_v0 = vsel %vm799_vm0, %v812_v15, %v813_v16  ;;  %v819_v33 = vrot.slane %v780_v25, 1  ;;  %v822_v35 = vrot.slane %v782_v27, 1  ;;  %750 = vst [vmem:[#allocation2 + $0x110] sm:$0x1] %v725_v44  ;;  %v921_v54 = vpack.c.bf16 %v753_v21, %v20126_v4 }
 0x1b4   : > { %v779_v23 = vld [vmem:[#allocation2 + $0xc0] sm:$0xfe]  ;;  %v817_v24 = vsel %vm799_vm0, %v815_v17, %v816_v18  ;;  %v20137_v28 = vpack.c.bf16 %v20132_v22, %v753_v21  ;;  %v17540_v55 = vld [vmem:[#allocation8 + $0x174] ss:$8 sps:$4 sm:$0xff]   ;;  %v17538_v56 = vld [vmem:[#allocation8 + $0x170] ss:$8 sps:$4 sm:$0xff]  }
 0x1b5   : > { %v781_v26 = vld [vmem:[#allocation2 + $0xe0] sm:$0xfe]  ;;  %v834_v31 = vpack.c.bf16 %v817_v24, %v814_v0  ;;  %v818_v32 = vrot.slane %v779_v23, 1  ;;  %v17552_v63 = vld [vmem:[#allocation8 + $0x1b4] ss:$8 sps:$4 sm:$0xff]  }
 0x1b6   : > { %2175 = vmatpush1.bf16.msra.mxu0 %v17513_v59  ;;  %v17523_v29 = vld [vmem:[#allocation8 + $0x120] ss:$8 sps:$4 sm:$0xff]   ;;  %v821_v34 = vrot.slane %v781_v26, 1  ;;  %v17537_v51 = vld [vmem:[#allocation8 + $0x164] ss:$8 sps:$4 sm:$0xff]  }
 0x1b7   : > { %2176 = vmatprep.subr.bf16.mxu0 %v17514_v60  ;;  %v20140_v37 = vld [vmem:[#allocation2 + $0x80] sm:$0xff]  ;;  %v820_v40 = vsel %vm799_vm0, %v818_v32, %v819_v33  ;;  %v17546_v59 = vld [vmem:[#allocation8 + $0x194] ss:$8 sps:$4 sm:$0xff]   ;;  %v17544_v60 = vld [vmem:[#allocation8 + $0x190] ss:$8 sps:$4 sm:$0xff]  }
 0x1b8   : > { %v20142_v38 = vld [vmem:[#allocation2 + $0xa0] sm:$0xff]  ;;  %v823_v41 = vsel %vm799_vm0, %v821_v34, %v822_v35  ;;  %v17550_v1 = vld [vmem:[#allocation8 + $0x1b0] ss:$8 sps:$4 sm:$0xff]   ;;  %v17558_v4 = vld [vmem:[#allocation8 + $0x1d4] ss:$8 sps:$4 sm:$0xff]  }
 0x1b9   : > { %v20149_v43 = vpack.c.bf16 %v20142_v38, %v20140_v37  ;;  %v835_v46 = vpack.c.bf16 %v823_v41, %v820_v40  ;;  %v20152_v49 = vld [vmem:[#allocation2 + $0xc0] sm:$0xff]  ;;  %v17556_v5 = vld [vmem:[#allocation8 + $0x1d0] ss:$8 sps:$4 sm:$0xff]   ;;  %v17570_v33 = vld [vmem:[#allocation8 + $0x214] ss:$8 sps:$4 sm:$0xff]  }
 0x1ba   : > { %2177 = vmatpush1.bf16.msra.mxu0 %v17516_v2  ;;  %v20154_v50 = vld [vmem:[#allocation2 + $0xe0] sm:$0xff]  ;;  %v841_v8 = vld [vmem:[#allocation2 + $0x10] sm:$0x3] }
 0x1bb   : > { %2219 = vmatprep.subr.bf16.mxu0 %v17519_v3  ;;  %v20158_v52 = vpack.c.bf16 %v20154_v50, %v20152_v49  ;;  %v17535_v53 = vld [vmem:[#allocation8 + $0x160] ss:$8 sps:$4 sm:$0xff]   ;;  %v17543_v57 = vld [vmem:[#allocation8 + $0x184] ss:$8 sps:$4 sm:$0xff]   ;;  %v843_v10 = vld [vmem:[#allocation2 + $0x30] sm:$0x3] }
 0x1bc   : > { %v17541_v58 = vld [vmem:[#allocation8 + $0x180] ss:$8 sps:$4 sm:$0xff]   ;;  %v17549_v61 = vld [vmem:[#allocation8 + $0x1a4] ss:$8 sps:$4 sm:$0xff]   ;;  %v877_v16 = vrot.slane %v843_v10, 2 }
 0x1bd   : > { %2179 = vmatmul.mubr.bf16.vlgmr.msra.gmra.mrb[0].mxu0 %v759_v11  ;;  %v17547_v62 = vld [vmem:[#allocation8 + $0x1a0] ss:$8 sps:$4 sm:$0xff]   ;;  %v17555_v2 = vld [vmem:[#allocation8 + $0x1c4] ss:$8 sps:$4 sm:$0xff]   ;;  %v17562_v17 = vld [vmem:[#allocation8 + $0x1f0] ss:$8 sps:$4 sm:$0xff]  }
 0x1be   : > { %2220 = vmatpush1.bf16.msra.mxu0 %v17517_v12  ;;  %2188 = vmatprep.mubr.bf16.mxu0 %v833_v14  ;;  %v17553_v3 = vld [vmem:[#allocation8 + $0x1c0] ss:$8 sps:$4 sm:$0xff]   ;;  %v17561_v6 = vld [vmem:[#allocation8 + $0x1e4] ss:$8 sps:$4 sm:$0xff]   ;;  %v17564_v12 = vld [vmem:[#allocation8 + $0x1f4] ss:$8 sps:$4 sm:$0xff]  }
 0x1bf   : > { %2221 = vmatprep.subr.bf16.mxu0 %v17522_v13  ;;  %v840_v7 = vld [vmem:[#allocation2] sm:$0xfc]  ;;  %v874_v14 = vrot.slane %v841_v8, 2  ;;  %v845_v23 = vld [vmem:[#allocation2 + $0x50] sm:$0x3] }
 0x1c0   : > { %v842_v9 = vld [vmem:[#allocation2 + $0x20] sm:$0xfc]  ;;  %v873_v13 = vrot.slane %v840_v7, 2  ;;  %v847_v24 = vld [vmem:[#allocation2 + $0x70] sm:$0x3] }
 0x1c1   : > { %v17559_v11 = vld [vmem:[#allocation8 + $0x1e0] ss:$8 sps:$4 sm:$0xff]   ;;  %v876_v15 = vrot.slane %v842_v9, 2  ;;  %v17567_v18 = vld [vmem:[#allocation8 + $0x204] ss:$8 sps:$4 sm:$0xff]   ;;  %v883_v32 = vrot.slane %v847_v24, 2 }
 0x1c2   : > { %2222 = vmatpush1.bf16.msra.mxu0 %v17520_v19  ;;  %v875_v19 = vsel %vm872_vm1, %v873_v13, %v874_v14  ;;  %v844_v21 = vld [vmem:[#allocation2 + $0x40] sm:$0xfc]  ;;  %v17568_v34 = vld [vmem:[#allocation8 + $0x210] ss:$8 sps:$4 sm:$0xff]  }
 0x1c3   : > { %2223 = vmatprep.subr.bf16.mxu0 %v17525_v20  ;;  %v878_v20 = vsel %vm872_vm1, %v876_v15, %v877_v16  ;;  %v846_v0 = vld [vmem:[#allocation2 + $0x60] sm:$0xfc]  ;;  %v879_v27 = vrot.slane %v844_v21, 2  ;;  %v849_v41 = vld [vmem:[#allocation2 + $0x90] sm:$0x3] }
 0x1c4   : > { %v17565_v25 = vld [vmem:[#allocation8 + $0x200] ss:$8 sps:$4 sm:$0xff]   ;;  %v905_v26 = vpack.c.bf16 %v878_v20, %v875_v19  ;;  %v17573_v35 = vld [vmem:[#allocation8 + $0x224] ss:$8 sps:$4 sm:$0xff]   ;;  %v851_v44 = vld [vmem:[#allocation2 + $0xb0] sm:$0x3] }
 0x1c5   : > { %2189 = vmatmul.mubr.bf16.gmra.mrb[4].mxu0 %v20137_v28  ;;  %v848_v40 = vld [vmem:[#allocation2 + $0x80] sm:$0xfc]  ;;  %v17580_v14 = vld [vmem:[#allocation8 + $0x250] ss:$8 sps:$4 sm:$0xff]  }
 0x1c6   : > { %2224 = vmatpush1.bf16.msra.mxu0 %v17523_v29  ;;  %2198 = vmatprep.mubr.bf16.mxu0 %v834_v31  ;;  %v922_v29 = vpack.c.bf16 %v20140_v37, %v20132_v22  ;;  %v882_v31 = vrot.slane %v846_v0, 2  ;;  %v850_v42 = vld [vmem:[#allocation2 + $0xa0] sm:$0xfc]  ;;  %v17586_v0 = vld [vmem:[#allocation8 + $0x270] ss:$8 sps:$4 sm:$0xff]  }
 0x1c7   : > { %2225 = vmatprep.subr.bf16.mxu0 %v17528_v30  ;;  %v880_v30 = vrot.slane %v845_v23, 2  ;;  %v17571_v22 = vld [vmem:[#allocation8 + $0x220] ss:$8 sps:$4 sm:$0xff]   ;;  %v17588_v23 = vld [vmem:[#allocation8 + $0x274] ss:$8 sps:$4 sm:$0xff]  }
 0x1c8   : > { %v17583_v19 = vld [vmem:[#allocation8 + $0x260] ss:$8 sps:$4 sm:$0xff]   ;;  %v17591_v24 = vld [vmem:[#allocation8 + $0x284] ss:$8 sps:$4 sm:$0xff]  }
 0x1ca   : > { %2226 = vmatpush1.bf16.msra.mxu0 %v17526_v36  ;;  %v881_v36 = vsel %vm872_vm1, %v879_v27, %v880_v30  ;;  %v17592_v27 = vld [vmem:[#allocation8 + $0x290] ss:$8 sps:$4 sm:$0xff]   ;;  %v17595_v30 = vld [vmem:[#allocation8 + $0x2a0] ss:$8 sps:$4 sm:$0xff]  }
 0x1cb   : > { %2227 = vmatprep.subr.bf16.mxu0 %v17531_v39  ;;  %v884_v39 = vsel %vm872_vm1, %v882_v31, %v883_v32  ;;  %v17600_v31 = vld [vmem:[#allocation8 + $0x2b4] ss:$8 sps:$4 sm:$0xff]   ;;  %v17598_v32 = vld [vmem:[#allocation8 + $0x2b0] ss:$8 sps:$4 sm:$0xff]  }
 0x1cc   : > { %v906_v37 = vpack.c.bf16 %v884_v39, %v881_v36  ;;  %v17604_v36 = vld [vmem:[#allocation8 + $0x2d0] ss:$8 sps:$4 sm:$0xff]   ;;  %v929_v39 = vld [vmem:[#allocation2 + $0x20] sm:$0xfe] }
 0x1cd   : > { %2199 = vmatmul.mubr.bf16.gmra.mrb[8].mxu0 %v20149_v43 }
 0x1ce   : > { %2228 = vmatpush1.bf16.msra.mxu0 %v17529_v45  ;;  %2208 = vmatprep.mubr.bf16.mxu0 %v835_v46  ;;  %v885_v45 = vrot.slane %v848_v40, 2  ;;  %v923_v46 = vpack.c.bf16 %v20152_v49, %v20142_v38  ;;  %v920_v38 = vld [vmem:[#allocation2 + $0x100] sm:$0xff]  ;;  %v1002_v49 = vld [vmem:[#allocation2 + $0x30] sm:$0x3] }
 0x1cf   : > { %2229 = vmatprep.subr.bf16.mxu0 %v17534_v47  ;;  %v886_v47 = vrot.slane %v849_v41, 2  ;;  %v930_v40 = vld [vmem:[#allocation2 + $0x30] sm:$0x1]  ;;  %v17609_v41 = vld [vmem:[#allocation8 + $0x2e4] ss:$8 sps:$4 sm:$0xff]  }
 0x1d2   : > { %2230 = vmatpush1.bf16.msra.mxu0 %v17532_v48  ;;  %v888_v48 = vrot.slane %v850_v42, 2  ;;  %v931_v42 = vld [vmem:[#allocation2 + $0x40] sm:$0xfe] }
 0x1d3   : > { %2231 = vmatprep.subr.bf16.mxu0 %v17537_v51  ;;  %v889_v51 = vrot.slane %v851_v44, 2  ;;  %v932_v44 = vld [vmem:[#allocation2 + $0x50] sm:$0x1] }
 0x1d5   : > { %2209 = vmatmul.mubr.bf16.gmra.mrb[12].mxu0 %v20158_v52 }
 0x1d6   : > { %2232 = vmatpush1.bf16.msra.mxu0 %v17535_v53  ;;  %2251 = vmatprep.mubr.bf16.mxu0 %v921_v54  ;;  %v17576_v53 = vld [vmem:[#allocation8 + $0x234] ss:$8 sps:$4 sm:$0xff]   ;;  %v17574_v54 = vld [vmem:[#allocation8 + $0x230] ss:$8 sps:$4 sm:$0xff]  }
 0x1d7   : > { %2233 = vmatprep.subr.bf16.mxu0 %v17540_v55  ;;  %v852_v55 = vld [vmem:[#allocation2 + $0xc0] sm:$0xfc] }
 0x1da   : > { %2234 = vmatpush1.bf16.msra.mxu0 %v17538_v56  ;;  %v17579_v56 = vld [vmem:[#allocation8 + $0x244] ss:$8 sps:$4 sm:$0xff]  }
 0x1db   : > { %2235 = vmatprep.subr.bf16.mxu0 %v17543_v57  ;;  %v853_v57 = vld [vmem:[#allocation2 + $0xd0] sm:$0x3] }
 0x1dc   : > { %v892_v7 = vrot.slane %v853_v57, 2 }
 0x1de   : > { %2236 = vmatpush1.bf16.msra.mxu0 %v17541_v58  ;;  %v887_v58 = vsel %vm872_vm1, %v885_v45, %v886_v47  ;;  %v1007_v45 = vld [vmem:[#allocation2 + $0x80] sm:$0xfc] }
 0x1df   : > { %2237 = vmatprep.subr.bf16.mxu0 %v17546_v59  ;;  %v890_v59 = vsel %vm872_vm1, %v888_v48, %v889_v51  ;;  %v17607_v47 = vld [vmem:[#allocation8 + $0x2e0] ss:$8 sps:$4 sm:$0xff]   ;;  %v17612_v48 = vld [vmem:[#allocation8 + $0x2f4] ss:$8 sps:$4 sm:$0xff]   ;;  %v961_v51 = vrot.slane %v929_v39, 1 }
 0x1e0   : > { %v1014_v39 = vld [vmem:[#allocation2 + $0xf0] sm:$0x3] }
 0x1e2   : > { %2238 = vmatpush1.bf16.msra.mxu0 %v17544_v60  ;;  %v854_v60 = vld [vmem:[#allocation2 + $0xe0] sm:$0xfc] }
 0x1e3   : > { %2239 = vmatprep.subr.bf16.mxu0 %v17549_v61  ;;  %v855_v61 = vld [vmem:[#allocation2 + $0xf0] sm:$0x3]  ;;  %v894_v8 = vrot.slane %v854_v60, 2 }
 0x1e4   : > { %v895_v9 = vrot.slane %v855_v61, 2  ;;  %v17610_v60 = vld [vmem:[#allocation8 + $0x2f0] ss:$8 sps:$4 sm:$0xff]   ;;  %v17615_v61 = vld [vmem:[#allocation8 + $0x304] ss:$8 sps:$4 sm:$0xff]  }
 0x1e6   : > { %2240 = vmatpush1.bf16.msra.mxu0 %v17547_v62  ;;  %v1001_v62 = vld [vmem:[#allocation2 + $0x20] sm:$0xfc]  ;;  %v896_v16 = vsel %vm872_vm1, %v894_v8, %v895_v9  ;;  %v1010_v9 = vld [vmem:[#allocation2 + $0xb0] sm:$0x3] }
 0x1e7   : > { %2241 = vmatprep.subr.bf16.mxu0 %v17552_v63  ;;  %v1003_v63 = vld [vmem:[#allocation2 + $0x40] sm:$0xfc]  ;;  %v1033_v10 = vrot.slane %v1001_v62, 2 }
 0x1e8   : > { %v17685_v62 = vld [vmem:[#allocation11 + $0x4] ss:$8 sps:$4 sm:$0xff]  }
 0x1e9   : > { %v1009_v8 = vld [vmem:[#allocation2 + $0xa0] sm:$0xfc]  ;;  %5381 = vmatprep.subr.bf16.mxu1 %v17685_v62  ;;  %v17622_v62 = vld [vmem:[#allocation8 + $0x330] ss:$8 sps:$4 sm:$0xff]  }
 0x1ea   : > { %2242 = vmatpush1.bf16.msra.mxu0 %v17550_v1  ;;  %v17577_v1 = vld [vmem:[#allocation8 + $0x240] ss:$8 sps:$4 sm:$0xff]  }
 0x1eb   : > { %2243 = vmatprep.subr.bf16.mxu0 %v17555_v2  ;;  %v1004_v2 = vld [vmem:[#allocation2 + $0x50] sm:$0x3] }
 0x1ec   : > { %v1037_v13 = vrot.slane %v1004_v2, 2  ;;  %v933_v2 = vld [vmem:[#allocation2 + $0x60] sm:$0xfe] }
 0x1ee   : > { %2244 = vmatpush1.bf16.msra.mxu0 %v17553_v3  ;;  %v17582_v3 = vld [vmem:[#allocation8 + $0x254] ss:$8 sps:$4 sm:$0xff]  }
 0x1ef   : > { %2245 = vmatprep.subr.bf16.mxu0 %v17558_v4  ;;  %v907_v4 = vpack.c.bf16 %v890_v59, %v887_v58  ;;  %v1042_v58 = vrot.slane %v1007_v45, 2  ;;  %v17619_v45 = vld [vmem:[#allocation8 + $0x320] ss:$8 sps:$4 sm:$0xff]  }
 0x1f2   : > { %2246 = vmatpush1.bf16.msra.mxu0 %v17556_v5  ;;  %v891_v5 = vrot.slane %v852_v55, 2  ;;  %v965_v55 = vrot.slane %v932_v44, 1 }
 0x1f3   : > { %2247 = vmatprep.subr.bf16.mxu0 %v17561_v6  ;;  %v924_v6 = vpack.c.bf16 %v920_v38, %v20154_v50  ;;  %v17687_v38 = vld [vmem:[#allocation11] ss:$8 sps:$4 sm:$0xff]  }
 0x1f4   : > { %v893_v15 = vsel %vm872_vm1, %v891_v5, %v892_v7  ;;  %v936_v7 = vld [vmem:[#allocation2 + $0x90] sm:$0x1]  ;;  %5382 = vmatpush1.bf16.msra.mxu1 %v17687_v38  ;;  %v941_v38 = vld [vmem:[#allocation2 + $0xe0] sm:$0xfe] }
 0x1f5   : > { %v908_v20 = vpack.c.bf16 %v896_v16, %v893_v15  ;;  %v17691_v15 = vld [vmem:[#allocation11 + $0x24] ss:$8 sps:$4 sm:$0xff]  }
 0x1f6   : > { %2248 = vmatpush1.bf16.msra.mxu0 %v17559_v11  ;;  %v1034_v11 = vrot.slane %v1002_v49, 2  ;;  %v17688_v49 = vld [vmem:[#allocation11 + $0x14] ss:$8 sps:$4 sm:$0xff]  }
 0x1f7   : > { %2249 = vmatprep.subr.bf16.mxu0 %v17564_v12  ;;  %v1036_v12 = vrot.slane %v1003_v63, 2  ;;  %5383 = vmatprep.subr.bf16.mxu1 %v17688_v49  ;;  %v17613_v16 = vld [vmem:[#allocation8 + $0x300] ss:$8 sps:$4 sm:$0xff]   ;;  %v942_v49 = vld [vmem:[#allocation2 + $0xf0] sm:$0x1] }
 0x1f8   : > { %v1035_v50 = vsel %vm872_vm1, %v1033_v10, %v1034_v11  ;;  %v1011_v10 = vld [vmem:[#allocation2 + $0xc0] sm:$0xfc]  ;;  %v1012_v11 = vld [vmem:[#allocation2 + $0xd0] sm:$0x3] }
 0x1fa   : > { %2250 = vmatpush1.bf16.msra.mxu0 %v17562_v17  ;;  %v17585_v17 = vld [vmem:[#allocation8 + $0x264] ss:$8 sps:$4 sm:$0xff]  }
 0x1fb   : > { %2292 = vmatprep.subr.bf16.mxu0 %v17567_v18  ;;  %v1038_v18 = vsel %vm872_vm1, %v1036_v12, %v1037_v13  ;;  %v17690_v12 = vld [vmem:[#allocation11 + $0x10] ss:$8 sps:$4 sm:$0xff]  }
 0x1fc   : > { %v1065_v21 = vpack.c.bf16 %v1038_v18, %v1035_v50  ;;  %5384 = vmatpush1.bf16.msra.mxu1 %v17690_v12  ;;  %v17703_v12 = vld [vmem:[#allocation11 + $0x64] ss:$8 sps:$4 sm:$0xff]  }
 0x1fd   : > { %2252 = vmatmul.mubr.bf16.vlgmr.msra.gmra.mrb[0].mxu0 %v905_v26  ;;  %v17594_v26 = vld [vmem:[#allocation8 + $0x294] ss:$8 sps:$4 sm:$0xff]   ;;  %5385 = vmatprep.subr.bf16.mxu1 %v17691_v15 }
 0x1fe   : > { %2293 = vmatpush1.bf16.msra.mxu0 %v17565_v25  ;;  %2261 = vmatprep.mubr.bf16.mxu0 %v922_v29  ;;  %v17589_v25 = vld [vmem:[#allocation8 + $0x280] ss:$8 sps:$4 sm:$0xff]   ;;  %v17597_v29 = vld [vmem:[#allocation8 + $0x2a4] ss:$8 sps:$4 sm:$0xff]  }
 0x1ff   : > { %2294 = vmatprep.subr.bf16.mxu0 %v17570_v33  ;;  %v17603_v33 = vld [vmem:[#allocation8 + $0x2c4] ss:$8 sps:$4 sm:$0xff]  }
 0x202   : > { %2295 = vmatpush1.bf16.msra.mxu0 %v17568_v34  ;;  %v17601_v34 = vld [vmem:[#allocation8 + $0x2c0] ss:$8 sps:$4 sm:$0xff]  }
 0x203   : > { %2296 = vmatprep.subr.bf16.mxu0 %v17573_v35  ;;  %v17606_v35 = vld [vmem:[#allocation8 + $0x2d4] ss:$8 sps:$4 sm:$0xff]  }
 0x205   : > { %2262 = vmatmul.mubr.bf16.gmra.mrb[4].mxu0 %v906_v37  ;;  %v1006_v37 = vld [vmem:[#allocation2 + $0x70] sm:$0x3] }
 0x206   : > { %2297 = vmatpush1.bf16.msra.mxu0 %v17571_v22  ;;  %2271 = vmatprep.mubr.bf16.mxu0 %v923_v46  ;;  %v1005_v22 = vld [vmem:[#allocation2 + $0x60] sm:$0xfc]  ;;  %v1008_v46 = vld [vmem:[#allocation2 + $0x90] sm:$0x3]  ;;  %v1040_v57 = vrot.slane %v1006_v37, 2 }
 0x207   : > { %2298 = vmatprep.subr.bf16.mxu0 %v17576_v53  ;;  %v962_v53 = vrot.slane %v930_v40, 1  ;;  %v1043_v59 = vrot.slane %v1008_v46, 2  ;;  %v1015_v40 = vld [vmem:[#allocation2 + $0x100] sm:$0xfc]  ;;  %v17624_v46 = vld [vmem:[#allocation8 + $0x334] ss:$8 sps:$4 sm:$0xff]  }
 0x208   : > { %v17697_v37 = vld [vmem:[#allocation11 + $0x44] ss:$8 sps:$4 sm:$0xff]  }
 0x209   : > { %v963_v63 = vsel %vm799_vm0, %v961_v51, %v962_v53 }
 0x20a   : > { %2299 = vmatpush1.bf16.msra.mxu0 %v17574_v54  ;;  %v964_v54 = vrot.slane %v931_v42, 1  ;;  %v17696_v42 = vld [vmem:[#allocation11 + $0x30] ss:$8 sps:$4 sm:$0xff]  }
 0x20b   : > { %2300 = vmatprep.subr.bf16.mxu0 %v17579_v56  ;;  %v1039_v56 = vrot.slane %v1005_v22, 2 }
 0x20d   : > { %2272 = vmatmul.mubr.bf16.gmra.mrb[8].mxu0 %v907_v4  ;;  %v935_v4 = vld [vmem:[#allocation2 + $0x80] sm:$0xfe]  ;;  %v1041_v5 = vsel %vm872_vm1, %v1039_v56, %v1040_v57 }
 0x20e   : > { %2301 = vmatpush1.bf16.msra.mxu0 %v17577_v1  ;;  %2281 = vmatprep.mubr.bf16.mxu0 %v924_v6  ;;  %v966_v1 = vsel %vm799_vm0, %v964_v54, %v965_v55  ;;  %v1044_v6 = vsel %vm872_vm1, %v1042_v58, %v1043_v59  ;;  %v970_v18 = vrot.slane %v935_v4, 1  ;;  %v17699_v57 = vld [vmem:[#allocation11 + $0x40] ss:$8 sps:$4 sm:$0xff]   ;;  %v1052_v58 = vrot.slane %v1014_v39, 2 }
 0x20f   : > { %2302 = vmatprep.subr.bf16.mxu0 %v17582_v3  ;;  %v934_v3 = vld [vmem:[#allocation2 + $0x70] sm:$0x1]  ;;  %v993_v13 = vpack.c.bf16 %v966_v1, %v963_v63  ;;  %v1054_v59 = vrot.slane %v1015_v40, 2  ;;  %v17627_v63 = vld [vmem:[#allocation8 + $0x344] ss:$8 sps:$4 sm:$0xff]  }
 0x210   : > { %v968_v50 = vrot.slane %v934_v3, 1  ;;  %v943_v1 = vld [vmem:[#allocation2 + $0x100] sm:$0xfe] }
 0x211   : > { %v1090_v3 = vld [vmem:[#allocation2 + $0x40] sm:$0xfe] }
 0x212   : > { %2303 = vmatpush1.bf16.msra.mxu0 %v17580_v14  ;;  %v967_v14 = vrot.slane %v933_v2, 1  ;;  %v944_v2 = vld [vmem:[#allocation2 + $0x110] sm:$0x1] }
 0x213   : > { %2304 = vmatprep.subr.bf16.mxu0 %v17585_v17  ;;  %v1066_v17 = vpack.c.bf16 %v1044_v6, %v1041_v5  ;;  %v1091_v6 = vld [vmem:[#allocation2 + $0x50] sm:$0x1] }
 0x215   : > { %2282 = vmatmul.mubr.bf16.gmra.mrb[12].mxu0 %v908_v20  ;;  %v17618_v20 = vld [vmem:[#allocation8 + $0x314] ss:$8 sps:$4 sm:$0xff]  }
 0x216   : > { %2305 = vmatpush1.bf16.msra.mxu0 %v17583_v19  ;;  %2324 = vmatprep.mubr.bf16.mxu0 %v1065_v21  ;;  %v971_v19 = vrot.slane %v936_v7, 1  ;;  %v1045_v21 = vrot.slane %v1009_v8, 2  ;;  %v1092_v7 = vld [vmem:[#allocation2 + $0x60] sm:$0xfe]  ;;  %v1093_v8 = vld [vmem:[#allocation2 + $0x70] sm:$0x1] }
 0x217   : > { %2306 = vmatprep.subr.bf16.mxu0 %v17588_v23  ;;  %v1046_v23 = vrot.slane %v1010_v9, 2  ;;  %v17702_v9 = vld [vmem:[#allocation11 + $0x50] ss:$8 sps:$4 sm:$0xff]  }
 0x219   : > { %v1047_v44 = vsel %vm872_vm1, %v1045_v21, %v1046_v23  ;;  %v17705_v21 = vld [vmem:[#allocation11 + $0x60] ss:$8 sps:$4 sm:$0xff]   ;;  %v1123_v23 = vrot.slane %v1091_v6, 1 }
 0x21a   : > { %2307 = vmatpush1.bf16.msra.mxu0 %v17586_v0  ;;  %v1048_v0 = vrot.slane %v1011_v10, 2 }
 0x21b   : > { %2308 = vmatprep.subr.bf16.mxu0 %v17591_v24  ;;  %v1049_v24 = vrot.slane %v1012_v11, 2 }
 0x21d   : > { %v1050_v22 = vsel %vm872_vm1, %v1048_v0, %v1049_v24  ;;  %v1125_v0 = vrot.slane %v1092_v7, 1  ;;  %v1126_v24 = vrot.slane %v1093_v8, 1 }
 0x21e   : > { %2309 = vmatpush1.bf16.msra.mxu0 %v17589_v25  ;;  %v17616_v25 = vld [vmem:[#allocation8 + $0x310] ss:$8 sps:$4 sm:$0xff]   ;;  %v1067_v53 = vpack.c.bf16 %v1050_v22, %v1047_v44  ;;  %v17639_v22 = vld [vmem:[#allocation8 + $0x384] ss:$8 sps:$4 sm:$0xff]  }
 0x21f   : > { %2310 = vmatprep.subr.bf16.mxu0 %v17594_v26  ;;  %v937_v26 = vld [vmem:[#allocation2 + $0xa0] sm:$0xfe]  ;;  %v17634_v44 = vld [vmem:[#allocation8 + $0x370] ss:$8 sps:$4 sm:$0xff]  }
 0x222   : > { %2311 = vmatpush1.bf16.msra.mxu0 %v17592_v27  ;;  %v938_v27 = vld [vmem:[#allocation2 + $0xb0] sm:$0x1] }
 0x223   : > { %2312 = vmatprep.subr.bf16.mxu0 %v17597_v29  ;;  %v17693_v29 = vld [vmem:[#allocation11 + $0x20] ss:$8 sps:$4 sm:$0xff]   ;;  %v974_v51 = vrot.slane %v938_v27, 1 }
 0x224   : > { %5386 = vmatpush1.bf16.msra.mxu1 %v17693_v29  ;;  %v17633_v27 = vld [vmem:[#allocation8 + $0x364] ss:$8 sps:$4 sm:$0xff]  }
 0x226   : > { %2313 = vmatpush1.bf16.msra.mxu0 %v17595_v30  ;;  %v17621_v30 = vld [vmem:[#allocation8 + $0x324] ss:$8 sps:$4 sm:$0xff]  }
 0x227   : > { %2314 = vmatprep.subr.bf16.mxu0 %v17600_v31  ;;  %v939_v31 = vld [vmem:[#allocation2 + $0xc0] sm:$0xfe] }
 0x228   : > { %v976_v54 = vrot.slane %v939_v31, 1  ;;  %v17708_v31 = vld [vmem:[#allocation11 + $0x70] ss:$8 sps:$4 sm:$0xff]  }
 0x22a   : > { %2315 = vmatpush1.bf16.msra.mxu0 %v17598_v32  ;;  %v940_v32 = vld [vmem:[#allocation2 + $0xd0] sm:$0x1] }
 0x22b   : > { %2316 = vmatprep.subr.bf16.mxu0 %v17603_v33  ;;  %v1013_v33 = vld [vmem:[#allocation2 + $0xe0] sm:$0xfc]  ;;  %v977_v55 = vrot.slane %v940_v32, 1 }
 0x22c   : > { %v1051_v56 = vrot.slane %v1013_v33, 2  ;;  %v1127_v33 = vsel %vm799_vm0, %v1125_v0, %v1126_v24  ;;  %v17664_v0 = vld [vmem:[#allocation8 + $0x410] ss:$8 sps:$4 sm:$0xff]   ;;  %v17669_v24 = vld [vmem:[#allocation8 + $0x424] ss:$8 sps:$4 sm:$0xff]  }
 0x22d   : > { %v978_v5 = vsel %vm799_vm0, %v976_v54, %v977_v55  ;;  %v17645_v54 = vld [vmem:[#allocation8 + $0x3a4] ss:$8 sps:$4 sm:$0xff]   ;;  %v17720_v55 = vld [vmem:[#allocation11 + $0xb0] ss:$8 sps:$4 sm:$0xff]  }
 0x22e   : > { %2317 = vmatpush1.bf16.msra.mxu0 %v17601_v34  ;;  %v17694_v34 = vld [vmem:[#allocation11 + $0x34] ss:$8 sps:$4 sm:$0xff]   ;;  %v1053_v10 = vsel %vm872_vm1, %v1051_v56, %v1052_v58 }
 0x22f   : > { %2318 = vmatprep.subr.bf16.mxu0 %v17606_v35  ;;  %v969_v35 = vsel %vm799_vm0, %v967_v14, %v968_v50  ;;  %5387 = vmatprep.subr.bf16.mxu1 %v17694_v34  ;;  %v17630_v14 = vld [vmem:[#allocation8 + $0x354] ss:$8 sps:$4 sm:$0xff]   ;;  %v17709_v34 = vld [vmem:[#allocation11 + $0x84] ss:$8 sps:$4 sm:$0xff]  }
 0x230   : > { %5388 = vmatpush1.bf16.msra.mxu1 %v17696_v42  ;;  %v17712_v42 = vld [vmem:[#allocation11 + $0x94] ss:$8 sps:$4 sm:$0xff]  }
 0x231   : > { %5389 = vmatprep.subr.bf16.mxu1 %v17697_v37  ;;  %v17714_v37 = vld [vmem:[#allocation11 + $0x90] ss:$8 sps:$4 sm:$0xff]   ;;  %v17643_v56 = vld [vmem:[#allocation8 + $0x3a0] ss:$8 sps:$4 sm:$0xff]  }
 0x232   : > { %2319 = vmatpush1.bf16.msra.mxu0 %v17604_v36  ;;  %v972_v36 = vsel %vm799_vm0, %v970_v18, %v971_v19  ;;  %v982_v18 = vrot.slane %v943_v1, 1  ;;  %v983_v19 = vrot.slane %v944_v2, 1  ;;  %v17646_v58 = vld [vmem:[#allocation8 + $0x3b0] ss:$8 sps:$4 sm:$0xff]   ;;  %v1096_v1 = vld [vmem:[#allocation2 + $0xa0] sm:$0xfe] }
 0x233   : > { %2320 = vmatprep.subr.bf16.mxu0 %v17609_v41  ;;  %v1016_v41 = vld [vmem:[#allocation2 + $0x110] sm:$0x3]  ;;  %v1131_v7 = vrot.slane %v1096_v1, 1 }
 0x234   : > { %5390 = vmatpush1.bf16.msra.mxu1 %v17699_v57  ;;  %v17648_v57 = vld [vmem:[#allocation8 + $0x3b4] ss:$8 sps:$4 sm:$0xff]   ;;  %v1097_v2 = vld [vmem:[#allocation2 + $0xb0] sm:$0x1] }
 0x235   : > { %v1132_v8 = vrot.slane %v1097_v2, 1  ;;  %v1169_v1 = vld [vmem:[#allocation2 + $0xb0] sm:$0x3]  ;;  %v19529_v2 = vmov 0  }
 0x236   : > { %2321 = vmatpush1.bf16.msra.mxu0 %v17607_v47  ;;  %v994_v47 = vpack.c.bf16 %v972_v36, %v969_v35  ;;  %v17631_v35 = vld [vmem:[#allocation8 + $0x360] ss:$8 sps:$4 sm:$0xff]   ;;  %v17636_v36 = vld [vmem:[#allocation8 + $0x374] ss:$8 sps:$4 sm:$0xff]  }
 0x237   : > { %2322 = vmatprep.subr.bf16.mxu0 %v17612_v48  ;;  %v973_v48 = vrot.slane %v937_v26, 1  ;;  %v17628_v26 = vld [vmem:[#allocation8 + $0x350] ss:$8 sps:$4 sm:$0xff]  }
 0x239   : > { %v975_v4 = vsel %vm799_vm0, %v973_v48, %v974_v51  ;;  %v17717_v48 = vld [vmem:[#allocation11 + $0xa0] ss:$8 sps:$4 sm:$0xff]   ;;  %v17718_v51 = vld [vmem:[#allocation11 + $0xb4] ss:$8 sps:$4 sm:$0xff]  }
 0x23a   : > { %2323 = vmatpush1.bf16.msra.mxu0 %v17610_v60  ;;  %v1055_v60 = vrot.slane %v1016_v41, 2  ;;  %v995_v15 = vpack.c.bf16 %v978_v5, %v975_v4  ;;  %v17711_v41 = vld [vmem:[#allocation11 + $0x80] ss:$8 sps:$4 sm:$0xff]   ;;  %v17660_v4 = vld [vmem:[#allocation8 + $0x3f4] ss:$8 sps:$4 sm:$0xff]  }
 0x23b   : > { %2365 = vmatprep.subr.bf16.mxu0 %v17615_v61  ;;  %v17700_v61 = vld [vmem:[#allocation11 + $0x54] ss:$8 sps:$4 sm:$0xff]  }
 0x23c   : > { %v1056_v11 = vsel %vm872_vm1, %v1054_v59, %v1055_v60  ;;  %5391 = vmatprep.subr.bf16.mxu1 %v17700_v61  ;;  %v17651_v59 = vld [vmem:[#allocation8 + $0x3c4] ss:$8 sps:$4 sm:$0xff]   ;;  %v17649_v60 = vld [vmem:[#allocation8 + $0x3c0] ss:$8 sps:$4 sm:$0xff]   ;;  %v17654_v61 = vld [vmem:[#allocation8 + $0x3d4] ss:$8 sps:$4 sm:$0xff]  }
 0x23d   : > { %2325 = vmatmul.mubr.bf16.vlgmr.msra.gmra.mrb[0].mxu0 %v993_v13  ;;  %v17625_v13 = vld [vmem:[#allocation8 + $0x340] ss:$8 sps:$4 sm:$0xff]   ;;  %v1068_v50 = vpack.c.bf16 %v1056_v11, %v1053_v10  ;;  %5392 = vmatpush1.bf16.msra.mxu1 %v17702_v9  ;;  %v17658_v9 = vld [vmem:[#allocation8 + $0x3f0] ss:$8 sps:$4 sm:$0xff]   ;;  %v17663_v10 = vld [vmem:[#allocation8 + $0x404] ss:$8 sps:$4 sm:$0xff]  }
 0x23e   : > { %2366 = vmatpush1.bf16.msra.mxu0 %v17613_v16  ;;  %2334 = vmatprep.mubr.bf16.mxu0 %v1066_v17  ;;  %v979_v16 = vrot.slane %v941_v38, 1  ;;  %v980_v17 = vrot.slane %v942_v49, 1  ;;  %v17657_v38 = vld [vmem:[#allocation8 + $0x3e4] ss:$8 sps:$4 sm:$0xff]  }
 0x23f   : > { %2367 = vmatprep.subr.bf16.mxu0 %v17618_v20  ;;  %v1122_v20 = vrot.slane %v1090_v3, 1  ;;  %5393 = vmatprep.subr.bf16.mxu1 %v17703_v12  ;;  %v1094_v49 = vld [vmem:[#allocation2 + $0x80] sm:$0xfe]  ;;  %v1099_v12 = vld [vmem:[#allocation2 + $0xd0] sm:$0x1] }
 0x240   : > { %v981_v29 = vsel %vm799_vm0, %v979_v16, %v980_v17  ;;  %v17655_v3 = vld [vmem:[#allocation8 + $0x3e0] ss:$8 sps:$4 sm:$0xff]   ;;  %v1128_v5 = vrot.slane %v1094_v49, 1  ;;  %v1133_v16 = vsel %vm799_vm0, %v1131_v7, %v1132_v8  ;;  %v1167_v49 = vld [vmem:[#allocation2 + $0x90] sm:$0x3] }
 0x241   : > { %v1124_v32 = vsel %vm799_vm0, %v1122_v20, %v1123_v23  ;;  %5394 = vmatpush1.bf16.msra.mxu1 %v17705_v21  ;;  %v1098_v11 = vld [vmem:[#allocation2 + $0xc0] sm:$0xfe]  ;;  %v1135_v20 = vrot.slane %v1099_v12, 1  ;;  %v1201_v7 = vrot.slane %v1167_v49, 2 }
 0x242   : > { %2368 = vmatpush1.bf16.msra.mxu0 %v17616_v25  ;;  %v17706_v25 = vld [vmem:[#allocation11 + $0x74] ss:$8 sps:$4 sm:$0xff]   ;;  %v1154_v40 = vpack.c.bf16 %v1127_v33, %v1124_v32  ;;  %v1172_v12 = vld [vmem:[#allocation2 + $0xe0] sm:$0xfc] }
 0x243   : > { %2369 = vmatprep.subr.bf16.mxu0 %v17621_v30  ;;  %v984_v30 = vsel %vm799_vm0, %v982_v18, %v983_v19  ;;  %5395 = vmatprep.subr.bf16.mxu1 %v17706_v25  ;;  %v17661_v17 = vld [vmem:[#allocation8 + $0x400] ss:$8 sps:$4 sm:$0xff]   ;;  %v1134_v19 = vrot.slane %v1098_v11, 1  ;;  %v17672_v33 = vld [vmem:[#allocation8 + $0x434] ss:$8 sps:$4 sm:$0xff]  }
 0x244   : > { %v996_v39 = vpack.c.bf16 %v984_v30, %v981_v29  ;;  %v1102_v25 = vld [vmem:[#allocation2 + $0x100] sm:$0xfe]  ;;  %v1105_v29 = vld [vmem:[#allocation2 + $0x130] sm:$0x1] }
 0x245   : > { %2335 = vmatmul.mubr.bf16.gmra.mrb[4].mxu0 %v994_v47  ;;  %5396 = vmatpush1.bf16.msra.mxu1 %v17708_v31  ;;  %v17642_v47 = vld [vmem:[#allocation8 + $0x394] ss:$8 sps:$4 sm:$0xff]   ;;  %v1136_v30 = vsel %vm799_vm0, %v1134_v19, %v1135_v20  ;;  %v17667_v32 = vld [vmem:[#allocation8 + $0x420] ss:$8 sps:$4 sm:$0xff]   ;;  %v1171_v11 = vld [vmem:[#allocation2 + $0xd0] sm:$0x3] }
 0x246   : > { %2370 = vmatpush1.bf16.msra.mxu0 %v17619_v45  ;;  %2344 = vmatprep.mubr.bf16.mxu0 %v1067_v53  ;;  %v17715_v45 = vld [vmem:[#allocation11 + $0xa4] ss:$8 sps:$4 sm:$0xff]  }
 0x247   : > { %2371 = vmatprep.subr.bf16.mxu0 %v17624_v46  ;;  %5397 = vmatprep.subr.bf16.mxu1 %v17709_v34  ;;  %v17637_v46 = vld [vmem:[#allocation8 + $0x380] ss:$8 sps:$4 sm:$0xff]   ;;  %v17640_v53 = vld [vmem:[#allocation8 + $0x390] ss:$8 sps:$4 sm:$0xff]  }
 0x248   : > { %v1174_v20 = vld [vmem:[#allocation2 + $0x100] sm:$0xfc] }
 0x249   : > { %5398 = vmatpush1.bf16.msra.mxu1 %v17711_v41  ;;  %v17675_v41 = vld [vmem:[#allocation8 + $0x444] ss:$8 sps:$4 sm:$0xff]  }
 0x24a   : > { %2372 = vmatpush1.bf16.msra.mxu0 %v17622_v62  ;;  %5399 = vmatprep.subr.bf16.mxu1 %v17712_v42  ;;  %v17652_v62 = vld [vmem:[#allocation8 + $0x3d0] ss:$8 sps:$4 sm:$0xff]  }
 0x24b   : > { %2373 = vmatprep.subr.bf16.mxu0 %v17627_v63  ;;  %v1095_v63 = vld [vmem:[#allocation2 + $0x90] sm:$0x1] }
 0x24c   : > { %v1129_v6 = vrot.slane %v1095_v63, 1  ;;  %v1168_v63 = vld [vmem:[#allocation2 + $0xa0] sm:$0xfc] }
 0x24d   : > { %2345 = vmatmul.mubr.bf16.gmra.mrb[8].mxu0 %v995_v15  ;;  %5400 = vmatpush1.bf16.msra.mxu1 %v17714_v37  ;;  %v17678_v37 = vld [vmem:[#allocation8 + $0x454] ss:$8 sps:$4 sm:$0xff]   ;;  %v1203_v8 = vrot.slane %v1168_v63, 2 }
 0x24e   : > { %2374 = vmatpush1.bf16.msra.mxu0 %v17625_v13  ;;  %2354 = vmatprep.mubr.bf16.mxu0 %v1068_v50  ;;  %v1100_v13 = vld [vmem:[#allocation2 + $0xe0] sm:$0xfe]  ;;  %v1130_v15 = vsel %vm799_vm0, %v1128_v5, %v1129_v6  ;;  %v17666_v50 = vld [vmem:[#allocation8 + $0x414] ss:$8 sps:$4 sm:$0xff]  }
 0x24f   : > { %2375 = vmatprep.subr.bf16.mxu0 %v17630_v14  ;;  %5401 = vmatprep.subr.bf16.mxu1 %v17715_v45  ;;  %v1101_v14 = vld [vmem:[#allocation2 + $0xf0] sm:$0x1]  ;;  %v1155_v18 = vpack.c.bf16 %v1133_v16, %v1130_v15  ;;  %v1137_v21 = vrot.slane %v1100_v13, 1 }
 0x250   : > { %v1138_v23 = vrot.slane %v1101_v14, 1  ;;  %v1173_v13 = vld [vmem:[#allocation2 + $0xf0] sm:$0x3] }
 0x251   : > { %5402 = vmatpush1.bf16.msra.mxu1 %v17717_v48  ;;  %v17681_v48 = vld [vmem:[#allocation8 + $0x464] ss:$8 sps:$4 sm:$0xff]   ;;  %v1210_v19 = vrot.slane %v1173_v13, 2 }
 0x252   : > { %2376 = vmatpush1.bf16.msra.mxu0 %v17628_v26  ;;  %5403 = vmatprep.subr.bf16.mxu1 %v17718_v51  ;;  %v1103_v26 = vld [vmem:[#allocation2 + $0x110] sm:$0x1]  ;;  %v1139_v31 = vsel %vm799_vm0, %v1137_v21, %v1138_v23  ;;  %v1176_v23 = vld [vmem:[#allocation2 + $0x120] sm:$0xfc] }
 0x253   : > { %2377 = vmatprep.subr.bf16.mxu0 %v17633_v27  ;;  %v1104_v27 = vld [vmem:[#allocation2 + $0x120] sm:$0xfe]  ;;  %v1156_v34 = vpack.c.bf16 %v1139_v31, %v1136_v30  ;;  %v1163_v51 = vld [vmem:[#allocation2 + $0x50] sm:$0x3]  ;;  %v1215_v30 = vrot.slane %v1176_v23, 2 }
 0x254   : > { %v1175_v21 = vld [vmem:[#allocation2 + $0x110] sm:$0x3] }
 0x255   : > { %2355 = vmatmul.mubr.bf16.gmra.mrb[12].mxu0 %v996_v39  ;;  %5404 = vmatpush1.bf16.msra.mxu1 %v17720_v55  ;;  %v1144_v39 = vrot.slane %v1105_v29, 1  ;;  %v19045_v55 = vld [vmem:[#allocation2] sm:$0xff]  ;;  %v1213_v29 = vrot.slane %v1175_v21, 2 }
 0x256   : > { %2378 = vmatpush1.bf16.msra.mxu0 %v17631_v35  ;;  %2397 = vmatprep.mubr.bf16.mxu0 %v1154_v40  ;;  %v1140_v35 = vrot.slane %v1102_v25, 1  ;;  %v17670_v40 = vld [vmem:[#allocation8 + $0x430] ss:$8 sps:$4 sm:$0xff]   ;;  %v19047_v21 = vld [vmem:[#allocation2] sm:$0xff] }
 0x257   : > { %2379 = vmatprep.subr.bf16.mxu0 %v17636_v36  ;;  %v1141_v36 = vrot.slane %v1103_v26, 1 }
 0x259   : > { %v1142_v42 = vsel %vm799_vm0, %v1140_v35, %v1141_v36  ;;  %v17721_v35 = vld [vmem:[#allocation11 + $0xc4] ss:$8 sps:$4 sm:$0xff]   ;;  %v17723_v36 = vld [vmem:[#allocation11 + $0xc0] ss:$8 sps:$4 sm:$0xff]  }
 0x25a   : > { %2380 = vmatpush1.bf16.msra.mxu0 %v17634_v44  ;;  %5405 = vmatprep.subr.bf16.mxu1 %v17721_v35 }
 0x25b   : > { %2381 = vmatprep.subr.bf16.mxu0 %v17639_v22  ;;  %v17673_v22 = vld [vmem:[#allocation8 + $0x440] ss:$8 sps:$4 sm:$0xff]   ;;  %5406 = vmatpush1.bf16.msra.mxu1 %v17723_v36  ;;  %v17736_v36 = vld [vmem:[#allocation11 + $0x110] ss:$8 sps:$4 sm:$0xff]  }
 0x25e   : > { %2382 = vmatpush1.bf16.msra.mxu0 %v17637_v46  ;;  %v17676_v46 = vld [vmem:[#allocation8 + $0x450] ss:$8 sps:$4 sm:$0xff]  }
 0x25f   : > { %2383 = vmatprep.subr.bf16.mxu0 %v17642_v47  ;;  %v1162_v47 = vld [vmem:[#allocation2 + $0x40] sm:$0xfc] }
 0x262   : > { %2384 = vmatpush1.bf16.msra.mxu0 %v17640_v53  ;;  %v1165_v53 = vld [vmem:[#allocation2 + $0x70] sm:$0x3] }
 0x263   : > { %2385 = vmatprep.subr.bf16.mxu0 %v17645_v54  ;;  %v17679_v54 = vld [vmem:[#allocation8 + $0x460] ss:$8 sps:$4 sm:$0xff]  }
 0x266   : > { %2386 = vmatpush1.bf16.msra.mxu0 %v17643_v56  ;;  %v19046_v56 = vld [vmem:[#allocation2 + $0x100] sm:$0xff] }
 0x267   : > { %2387 = vmatprep.subr.bf16.mxu0 %v17648_v57  ;;  %v1085_v57 = vpack.c.bf16 %v19045_v55, %v19046_v56 }
 0x26a   : > { %2388 = vmatpush1.bf16.msra.mxu0 %v17646_v58  ;;  %v17684_v58 = vld [vmem:[#allocation8 + $0x474] ss:$8 sps:$4 sm:$0xff]  }
 0x26b   : > { %2389 = vmatprep.subr.bf16.mxu0 %v17651_v59  ;;  %v1194_v59 = vrot.slane %v1162_v47, 2 }
 0x26e   : > { %2390 = vmatpush1.bf16.msra.mxu0 %v17649_v60  ;;  %v1195_v60 = vrot.slane %v1163_v51, 2 }
 0x26f   : > { %2391 = vmatprep.subr.bf16.mxu0 %v17654_v61 }
 0x272   : > { %2392 = vmatpush1.bf16.msra.mxu0 %v17652_v62  ;;  %v1198_v62 = vrot.slane %v1165_v53, 2 }
 0x273   : > { %2393 = vmatprep.subr.bf16.mxu0 %v17657_v38  ;;  %v17682_v38 = vld [vmem:[#allocation8 + $0x470] ss:$8 sps:$4 sm:$0xff]  }
 0x276   : > { %2394 = vmatpush1.bf16.msra.mxu0 %v17655_v3  ;;  %v1196_v3 = vsel %vm872_vm1, %v1194_v59, %v1195_v60 }
 0x277   : > { %2395 = vmatprep.subr.bf16.mxu0 %v17660_v4 }
 0x27a   : > { %2396 = vmatpush1.bf16.msra.mxu0 %v17658_v9  ;;  %v1204_v9 = vrot.slane %v1169_v1, 2 }
 0x27b   : > { %2438 = vmatprep.subr.bf16.mxu0 %v17663_v10  ;;  %v1170_v10 = vld [vmem:[#allocation2 + $0xc0] sm:$0xfc] }
 0x27c   : > { %v1205_v15 = vsel %vm872_vm1, %v1203_v8, %v1204_v9 }
 0x27d   : > { %2398 = vmatmul.mubr.bf16.vlgmr.msra.gmra.mrb[0].mxu0 %v20137_v28  ;;  %v1143_v28 = vrot.slane %v1104_v27, 1  ;;  %v1212_v27 = vrot.slane %v1174_v20, 2 }
 0x27e   : > { %2439 = vmatpush1.bf16.msra.mxu0 %v17661_v17  ;;  %2407 = vmatprep.mubr.bf16.mxu0 %v1155_v18  ;;  %v1206_v17 = vrot.slane %v1170_v10, 2  ;;  %v1209_v18 = vrot.slane %v1172_v12, 2 }
 0x27f   : > { %2440 = vmatprep.subr.bf16.mxu0 %v17666_v50  ;;  %v1145_v44 = vsel %vm799_vm0, %v1143_v28, %v1144_v39  ;;  %v1207_v50 = vrot.slane %v1171_v11, 2  ;;  %v17724_v28 = vld [vmem:[#allocation11 + $0xd4] ss:$8 sps:$4 sm:$0xff]   ;;  %v17726_v39 = vld [vmem:[#allocation11 + $0xd0] ss:$8 sps:$4 sm:$0xff]  }
 0x280   : > { %v1157_v45 = vpack.c.bf16 %v1145_v44, %v1142_v42  ;;  %v1211_v25 = vsel %vm872_vm1, %v1209_v18, %v1210_v19  ;;  %5407 = vmatprep.subr.bf16.mxu1 %v17724_v28  ;;  %v17730_v42 = vld [vmem:[#allocation11 + $0xf4] ss:$8 sps:$4 sm:$0xff]   ;;  %v17732_v44 = vld [vmem:[#allocation11 + $0xf0] ss:$8 sps:$4 sm:$0xff]  }
 0x281   : > { %5408 = vmatpush1.bf16.msra.mxu1 %v17726_v39 }
 0x282   : > { %2441 = vmatpush1.bf16.msra.mxu0 %v17664_v0  ;;  %v1177_v0 = vld [vmem:[#allocation2 + $0x130] sm:$0x3] }
 0x283   : > { %2442 = vmatprep.subr.bf16.mxu0 %v17669_v24  ;;  %v1208_v24 = vsel %vm872_vm1, %v1206_v17, %v1207_v50  ;;  %v1216_v31 = vrot.slane %v1177_v0, 2  ;;  %v17733_v0 = vld [vmem:[#allocation11 + $0x100] ss:$8 sps:$4 sm:$0xff]  }
 0x284   : > { %v1228_v26 = vpack.c.bf16 %v1211_v25, %v1208_v24 }
 0x285   : > { %2408 = vmatmul.mubr.bf16.gmra.mrb[4].mxu0 %v20149_v43  ;;  %v1164_v43 = vld [vmem:[#allocation2 + $0x60] sm:$0xfc] }
 0x286   : > { %2443 = vmatpush1.bf16.msra.mxu0 %v17667_v32  ;;  %2417 = vmatprep.mubr.bf16.mxu0 %v1156_v34  ;;  %v1197_v61 = vrot.slane %v1164_v43, 2  ;;  %v1214_v32 = vsel %vm872_vm1, %v1212_v27, %v1213_v29  ;;  %v17738_v27 = vld [vmem:[#allocation11 + $0x114] ss:$8 sps:$4 sm:$0xff]  }
 0x287   : > { %2444 = vmatprep.subr.bf16.mxu0 %v17672_v33  ;;  %v1217_v33 = vsel %vm872_vm1, %v1215_v30, %v1216_v31 }
 0x288   : > { %v1199_v4 = vsel %vm872_vm1, %v1197_v61, %v1198_v62  ;;  %v1229_v34 = vpack.c.bf16 %v1217_v33, %v1214_v32 }
 0x289   : > { %v1226_v5 = vpack.c.bf16 %v1199_v4, %v1196_v3 }
 0x28a   : > { %2445 = vmatpush1.bf16.msra.mxu0 %v17670_v40  ;;  %v17727_v40 = vld [vmem:[#allocation11 + $0xe4] ss:$8 sps:$4 sm:$0xff]  }
 0x28b   : > { %2446 = vmatprep.subr.bf16.mxu0 %v17675_v41  ;;  %v17729_v41 = vld [vmem:[#allocation11 + $0xe0] ss:$8 sps:$4 sm:$0xff]   ;;  %5409 = vmatprep.subr.bf16.mxu1 %v17727_v40  ;;  %v17741_v40 = vld [vmem:[#allocation11 + $0x124] ss:$8 sps:$4 sm:$0xff]  }
 0x28c   : > { %5410 = vmatpush1.bf16.msra.mxu1 %v17729_v41 }
 0x28d   : > { %2418 = vmatmul.mubr.bf16.gmra.mrb[8].mxu0 %v20158_v52  ;;  %v1166_v52 = vld [vmem:[#allocation2 + $0x80] sm:$0xfc]  ;;  %5411 = vmatprep.subr.bf16.mxu1 %v17730_v42 }
 0x28e   : > { %2447 = vmatpush1.bf16.msra.mxu0 %v17673_v22  ;;  %2427 = vmatprep.mubr.bf16.mxu0 %v1157_v45  ;;  %v1200_v6 = vrot.slane %v1166_v52, 2  ;;  %v17735_v22 = vld [vmem:[#allocation11 + $0x104] ss:$8 sps:$4 sm:$0xff]  }
 0x28f   : > { %2448 = vmatprep.subr.bf16.mxu0 %v17678_v37  ;;  %v1416_v37 = vlaneseq }
 0x290   : > { %v1202_v14 = vsel %vm872_vm1, %v1200_v6, %v1201_v7  ;;  %5412 = vmatpush1.bf16.msra.mxu1 %v17732_v44 }
 0x291   : > { %v1227_v16 = vpack.c.bf16 %v1205_v15, %v1202_v14  ;;  %5454 = vmatprep.subr.bf16.mxu1 %v17735_v22  ;;  %v1417_v45 = vshrl.u32 %v1416_v37, 7 }
 0x292   : > { %2449 = vmatpush1.bf16.msra.mxu0 %v17676_v46  ;;  %v1414_v46 = vld [vmem:[#allocation10] sm:$0x3] }
 0x293   : > { %2450 = vmatprep.subr.bf16.mxu0 %v17681_v48  ;;  %v20210_v47 = vsub.s32 0, %v1417_v45  ;;  %v20212_v48 = vsub.s32 1, %v1417_v45 }
 0x295   : > { %2428 = vmatmul.mubr.bf16.gmra.mrb[12].mxu0 %v1085_v57  ;;  %v20215_v51 = vrot.slane %v1414_v46, %v20210_v47  ;;  %v20218_v43 = vrot.slane %v1414_v46, %v20212_v48 }
 0x296   : > { %2451 = vmatpush1.bf16.msra.mxu0 %v17679_v54  ;;  %2470 = vmatprep.mubr.bf16.mxu0 %v19529_v2 }
 0x297   : > { %2452 = vmatprep.subr.bf16.mxu0 %v17684_v58 }
 0x29a   : > { %2453 = vmatpush1.bf16.msra.mxu0 %v17682_v38 }
 0x29d   : > { %2471 = vmatmul.mubr.bf16.vlgmr.msra.gmra.mrb[0].mxu0 %v1226_v5 }
 0x29e   : > { %2480 = vmatprep.mubr.bf16.mxu0 %v19529_v2 }
 0x2a5   : > { %2481 = vmatmul.mubr.bf16.gmra.mrb[4].mxu0 %v1227_v16 }
 0x2a6   : > { %2490 = vmatprep.mubr.bf16.mxu0 %v19529_v2 }
 0x2ad   : > { %2491 = vmatmul.mubr.bf16.gmra.mrb[8].mxu0 %v1228_v26 }
 0x2ae   : > { %2500 = vmatprep.mubr.bf16.mxu0 %v19529_v2 }
 0x2b5   : > { %2501 = vmatmul.mubr.bf16.gmra.mrb[12].mxu0 %v1229_v34 }
 0x370   : > { %v2472_v53 = vpop.f32.mrb[0].mxu0 }
 0x371   : > { %v16780_v54 = vadd.f32 %v2472_v53, %v20215_v51  ;;  %v2474_v55 = vpop.f32.mrb[1].mxu0 }
 0x372   : > { %v16781_v56 = vadd.f32 %v2474_v55, %v20218_v43  ;;  %v2476_v57 = vpop.f32.mrb[2].mxu0  ;;  %v17739_v55 = vld [vmem:[#allocation11 + $0x120] ss:$8 sps:$4 sm:$0xff]  }
 0x373   : > { %v2511_v58 = vmax.f32 %v16780_v54, 0.0  ;;  %v16782_v59 = vadd.f32 %v2476_v57, %v20215_v51  ;;  %v2478_v60 = vpop.f32.mrb[3].mxu0 }
 0x374   : > { %v2512_v61 = vmax.f32 %v16781_v56, 0.0  ;;  %v16783_v62 = vadd.f32 %v2478_v60, %v20218_v43  ;;  %v17744_v60 = vld [vmem:[#allocation11 + $0x134] ss:$8 sps:$4 sm:$0xff]  }
 0x375   : > { %v2543_v38 = vrot.slane %v2511_v58, 7  ;;  %v2513_v52 = vmax.f32 %v16782_v59, 0.0 }
 0x376   : > { %v2544_v49 = vrot.slane %v2512_v61, 7  ;;  %v2514_v63 = vmax.f32 %v16783_v62, 0.0 }
 0x377   : > { %2576 = vst [vmem:[#allocation3 + $0x20] sm:$0xfe] %v2543_v38  ;;  %2578 = vst [vmem:[#allocation3 + $0x30] sm:$0x1] %v2543_v38  ;;  %v2545_v1 = vrot.slane %v2513_v52, 7 }
 0x378   : > { %2577 = vst [vmem:[#allocation3 + $0x28] sm:$0xfe] %v2544_v49  ;;  %2579 = vst [vmem:[#allocation3 + $0x38] sm:$0x1] %v2544_v49  ;;  %v2546_v2 = vrot.slane %v2514_v63, 7  ;;  %v2482_v3 = vpop.f32.mrb[4].mxu0 }
 0x379   : > { %2580 = vst [vmem:[#allocation3 + $0x40] sm:$0xfe] %v2545_v1  ;;  %2582 = vst [vmem:[#allocation3 + $0x50] sm:$0x1] %v2545_v1  ;;  %v16784_v4 = vadd.f32 %v2482_v3, %v20215_v51  ;;  %v2484_v5 = vpop.f32.mrb[5].mxu0 }
 0x37a   : > { %2581 = vst [vmem:[#allocation3 + $0x48] sm:$0xfe] %v2546_v2  ;;  %2583 = vst [vmem:[#allocation3 + $0x58] sm:$0x1] %v2546_v2  ;;  %v16785_v6 = vadd.f32 %v2484_v5, %v20218_v43  ;;  %v2486_v7 = vpop.f32.mrb[6].mxu0 }
 0x37b   : > { %v2515_v8 = vmax.f32 %v16784_v4, 0.0  ;;  %v16786_v9 = vadd.f32 %v2486_v7, %v20215_v51  ;;  %v2488_v10 = vpop.f32.mrb[7].mxu0  ;;  %v17742_v2 = vld [vmem:[#allocation11 + $0x130] ss:$8 sps:$4 sm:$0xff]   ;;  %v17747_v5 = vld [vmem:[#allocation11 + $0x144] ss:$8 sps:$4 sm:$0xff]  }
 0x37c   : > { %v2516_v11 = vmax.f32 %v16785_v6, 0.0  ;;  %v16787_v12 = vadd.f32 %v2488_v10, %v20218_v43  ;;  %v2643_v10 = vld [vmem:[#allocation3 + $0x18] sm:$0x1] }
 0x37d   : > { %v2547_v13 = vrot.slane %v2515_v8, 7  ;;  %v2517_v14 = vmax.f32 %v16786_v9, 0.0  ;;  %v2641_v9 = vld [vmem:[#allocation3 + $0x8] sm:$0xfe] }
 0x37e   : > { %v2548_v15 = vrot.slane %v2516_v11, 7  ;;  %v2518_v16 = vmax.f32 %v16787_v12, 0.0  ;;  %v2610_v17 = vld [vmem:[#allocation3 + $0x20] sm:$0xff] }
 0x37f   : > { %2584 = vst [vmem:[#allocation3 + $0x60] sm:$0xfe] %v2547_v13  ;;  %2586 = vst [vmem:[#allocation3 + $0x70] sm:$0x1] %v2547_v13  ;;  %v2549_v50 = vrot.slane %v2517_v14, 7  ;;  %v20228_v18 = vld [vmem:[#allocation3 + $0x28] sm:$0xff]  ;;  %v2624_v26 = vpack.c.bf16 %v2610_v17, %v19047_v21 }
 0x380   : > { %2585 = vst [vmem:[#allocation3 + $0x68] sm:$0xfe] %v2548_v15  ;;  %2587 = vst [vmem:[#allocation3 + $0x78] sm:$0x1] %v2548_v15  ;;  %v2550_v19 = vrot.slane %v2518_v16, 7  ;;  %v2492_v20 = vpop.f32.mrb[8].mxu0  ;;  %v2625_v23 = vpack.c.bf16 %v20228_v18, %v19047_v21 }
 0x381   : > { %2588 = vst [vmem:[#allocation3 + $0x80] sm:$0xfe] %v2549_v50  ;;  %2590 = vst [vmem:[#allocation3 + $0x90] sm:$0x1] %v2549_v50  ;;  %v16788_v24 = vadd.f32 %v2492_v20, %v20215_v51  ;;  %v2494_v25 = vpop.f32.mrb[9].mxu0  ;;  %v20237_v37 = vld [vmem:[#allocation3 + $0x48] sm:$0xff] }
 0x382   : > { %2589 = vst [vmem:[#allocation3 + $0x88] sm:$0xfe] %v2550_v19  ;;  %2591 = vst [vmem:[#allocation3 + $0x98] sm:$0x1] %v2550_v19  ;;  %v16789_v29 = vadd.f32 %v2494_v25, %v20218_v43  ;;  %v2496_v30 = vpop.f32.mrb[10].mxu0  ;;  %5413 = vmatprep.mubr.bf16.mxu1 %v2625_v23  ;;  %v20243_v56 = vld [vmem:[#allocation3 + $0x40] sm:$0xff] }
 0x383   : > { %v2519_v31 = vmax.f32 %v16788_v24, 0.0  ;;  %v16790_v32 = vadd.f32 %v2496_v30, %v20215_v51  ;;  %v2498_v33 = vpop.f32.mrb[11].mxu0  ;;  %5414 = vmatmul.mubr.bf16.vlgmr.msra.gmra.mrb[0].mxu1 %v2624_v26  ;;  %v2645_v16 = vld [vmem:[#allocation3 + $0x28] sm:$0xfe]  ;;  %v2647_v17 = vld [vmem:[#allocation3 + $0x38] sm:$0x1] }
 0x384   : > { %v2520_v34 = vmax.f32 %v16789_v29, 0.0  ;;  %v16791_v35 = vadd.f32 %v2498_v33, %v20218_v43  ;;  %5455 = vmatpush1.bf16.msra.mxu1 %v17733_v0  ;;  %v17750_v19 = vld [vmem:[#allocation11 + $0x154] ss:$8 sps:$4 sm:$0xff]   ;;  %v2707_v20 = vrot.slane %v2641_v9, 1  ;;  %v2708_v21 = vrot.slane %v2643_v10, 1 }
 0x385   : > { %v2551_v28 = vrot.slane %v2519_v31, 7  ;;  %v2521_v39 = vmax.f32 %v16790_v32, 0.0  ;;  %5456 = vmatprep.subr.bf16.mxu1 %v17738_v27  ;;  %v2713_v23 = vrot.slane %v2645_v16, 1  ;;  %v2714_v0 = vrot.slane %v2647_v17, 1  ;;  %v17748_v24 = vld [vmem:[#allocation11 + $0x150] ss:$8 sps:$4 sm:$0xff]  }
 0x386   : > { %v2552_v41 = vrot.slane %v2520_v34, 7  ;;  %v2522_v42 = vmax.f32 %v16791_v35, 0.0  ;;  %v20235_v44 = vld [vmem:[#allocation3 + $0x60] sm:$0xff]  ;;  %v2709_v30 = vsel %vm799_vm0, %v2707_v20, %v2708_v21  ;;  %v2649_v9 = vld [vmem:[#allocation3 + $0x48] sm:$0xfe] }
 0x387   : > { %2592 = vst [vmem:[#allocation3 + $0xa0] sm:$0xfe] %v2551_v28  ;;  %2594 = vst [vmem:[#allocation3 + $0xb0] sm:$0x1] %v2551_v28  ;;  %v2553_v22 = vrot.slane %v2521_v39, 7  ;;  %v20239_v45 = vld [vmem:[#allocation3 + $0x68] sm:$0xff]  ;;  %v2626_v59 = vpack.c.bf16 %v20235_v44, %v20243_v56  ;;  %v2715_v31 = vsel %vm799_vm0, %v2713_v23, %v2714_v0 }
 0x388   : > { %2593 = vst [vmem:[#allocation3 + $0xa8] sm:$0xfe] %v2552_v41  ;;  %2595 = vst [vmem:[#allocation3 + $0xb8] sm:$0x1] %v2552_v41  ;;  %v2554_v46 = vrot.slane %v2522_v42, 7  ;;  %5457 = vmatpush1.bf16.msra.mxu1 %v17736_v36  ;;  %v2502_v53 = vpop.f32.mrb[12].mxu0  ;;  %v2627_v54 = vpack.c.bf16 %v20239_v45, %v20237_v37  ;;  %v2769_v28 = vpack.c.bf16 %v2715_v31, %v2709_v30 }
 0x389   : > { %2596 = vst [vmem:[#allocation3 + $0xc0] sm:$0xfe] %v2553_v22  ;;  %2598 = vst [vmem:[#allocation3 + $0xd0] sm:$0x1] %v2553_v22  ;;  %v16792_v57 = vadd.f32 %v2502_v53, %v20215_v51  ;;  %v2504_v58 = vpop.f32.mrb[13].mxu0  ;;  %5458 = vmatprep.subr.bf16.mxu1 %v17741_v40  ;;  %v20253_v11 = vld [vmem:[#allocation3 + $0x88] sm:$0xff] }
 0x38a   : > { %2597 = vst [vmem:[#allocation3 + $0xc8] sm:$0xfe] %v2554_v46  ;;  %2599 = vst [vmem:[#allocation3 + $0xd8] sm:$0x1] %v2554_v46  ;;  %v16793_v61 = vadd.f32 %v2504_v58, %v20218_v43  ;;  %v2506_v62 = vpop.f32.mrb[14].mxu0  ;;  %5423 = vmatprep.mubr.bf16.mxu1 %v2627_v54  ;;  %v20259_v15 = vld [vmem:[#allocation3 + $0x80] sm:$0xff] }
 0x38b   : > { %v2523_v38 = vmax.f32 %v16792_v57, 0.0  ;;  %v16794_v52 = vadd.f32 %v2506_v62, %v20215_v51  ;;  %v2508_v49 = vpop.f32.mrb[15].mxu0  ;;  %5424 = vmatmul.mubr.bf16.gmra.mrb[4].mxu1 %v2626_v59  ;;  %v17753_v25 = vld [vmem:[#allocation11 + $0x164] ss:$8 sps:$4 sm:$0xff]   ;;  %v17751_v33 = vld [vmem:[#allocation11 + $0x160] ss:$8 sps:$4 sm:$0xff]  }
 0x38c   : > { %v2524_v63 = vmax.f32 %v16793_v61, 0.0  ;;  %v16795_v1 = vadd.f32 %v2508_v49, %v20218_v43  ;;  %5459 = vmatpush1.bf16.msra.mxu1 %v17739_v55  ;;  %v17745_v43 = vld [vmem:[#allocation11 + $0x140] ss:$8 sps:$4 sm:$0xff]   ;;  %v17756_v36 = vld [vmem:[#allocation11 + $0x174] ss:$8 sps:$4 sm:$0xff]   ;;  %v2719_v16 = vrot.slane %v2649_v9, 1 }
 0x38d   : > { %v2555_v3 = vrot.slane %v2523_v38, 7  ;;  %v2525_v4 = vmax.f32 %v16794_v52, 0.0  ;;  %5460 = vmatprep.subr.bf16.mxu1 %v17744_v60  ;;  %v17754_v39 = vld [vmem:[#allocation11 + $0x170] ss:$8 sps:$4 sm:$0xff]   ;;  %v17759_v40 = vld [vmem:[#allocation11 + $0x184] ss:$8 sps:$4 sm:$0xff]  }
 0x38e   : > { %v2556_v6 = vrot.slane %v2524_v63, 7  ;;  %v2526_v7 = vmax.f32 %v16795_v1, 0.0  ;;  %v20251_v8 = vld [vmem:[#allocation3 + $0xa0] sm:$0xff]  ;;  %v17760_v22 = vld [vmem:[#allocation11 + $0x190] ss:$8 sps:$4 sm:$0xff]  }
 0x38f   : > { %2600 = vst [vmem:[#allocation3 + $0xe0] sm:$0xfe] %v2555_v3  ;;  %2602 = vst [vmem:[#allocation3 + $0xf0] sm:$0x1] %v2555_v3  ;;  %v2557_v51 = vrot.slane %v2525_v4, 7  ;;  %v20255_v12 = vld [vmem:[#allocation3 + $0xa8] sm:$0xff]  ;;  %v2628_v50 = vpack.c.bf16 %v20251_v8, %v20259_v15 }
 0x390   : > { %2601 = vst [vmem:[#allocation3 + $0xe8] sm:$0xfe] %v2556_v6  ;;  %2603 = vst [vmem:[#allocation3 + $0xf8] sm:$0x1] %v2556_v6  ;;  %v2558_v13 = vrot.slane %v2526_v7, 7  ;;  %5461 = vmatpush1.bf16.msra.mxu1 %v17742_v2  ;;  %v2629_v14 = vpack.c.bf16 %v20255_v12, %v20253_v11  ;;  %v20273_v34 = vld [vmem:[#allocation3 + $0xc0] sm:$0xff] }
 0x391   : > { %2604 = vst [vmem:[#allocation3 + $0x100] sm:$0xfe] %v2557_v51  ;;  %2606 = vst [vmem:[#allocation3 + $0x110] sm:$0x1] %v2557_v51  ;;  %5462 = vmatprep.subr.bf16.mxu1 %v17747_v5  ;;  %v20265_v27 = vld [vmem:[#allocation3 + $0xc8] sm:$0xff] }
 0x392   : > { %2605 = vst [vmem:[#allocation3 + $0x108] sm:$0xfe] %v2558_v13  ;;  %2607 = vst [vmem:[#allocation3 + $0x118] sm:$0x1] %v2558_v13  ;;  %5433 = vmatprep.mubr.bf16.mxu1 %v2629_v14  ;;  %v17757_v41 = vld [vmem:[#allocation11 + $0x180] ss:$8 sps:$4 sm:$0xff]  }
 0x393   : > { %5434 = vmatmul.mubr.bf16.gmra.mrb[8].mxu1 %v2628_v50  ;;  %v17762_v42 = vld [vmem:[#allocation11 + $0x194] ss:$8 sps:$4 sm:$0xff]   ;;  %v17765_v46 = vld [vmem:[#allocation11 + $0x1a4] ss:$8 sps:$4 sm:$0xff]   ;;  %v17763_v53 = vld [vmem:[#allocation11 + $0x1a0] ss:$8 sps:$4 sm:$0xff]  }
 0x394   : > { %5463 = vmatpush1.bf16.msra.mxu1 %v17745_v43  ;;  %v17768_v54 = vld [vmem:[#allocation11 + $0x1b4] ss:$8 sps:$4 sm:$0xff]   ;;  %v17766_v55 = vld [vmem:[#allocation11 + $0x1b0] ss:$8 sps:$4 sm:$0xff]   ;;  %v17771_v57 = vld [vmem:[#allocation11 + $0x1c4] ss:$8 sps:$4 sm:$0xff]  }
 0x395   : > { %5464 = vmatprep.subr.bf16.mxu1 %v17750_v19  ;;  %v17769_v58 = vld [vmem:[#allocation11 + $0x1c0] ss:$8 sps:$4 sm:$0xff]   ;;  %v17774_v59 = vld [vmem:[#allocation11 + $0x1d4] ss:$8 sps:$4 sm:$0xff]   ;;  %v17772_v60 = vld [vmem:[#allocation11 + $0x1d0] ss:$8 sps:$4 sm:$0xff]  }
 0x396   : > { %v20263_v26 = vld [vmem:[#allocation3 + $0xe0] sm:$0xff]  ;;  %v2642_v38 = vld [vmem:[#allocation3 + $0x10] sm:$0x1]  ;;  %v2653_v1 = vld [vmem:[#allocation3 + $0x68] sm:$0xfe] }
 0x397   : > { %v20267_v29 = vld [vmem:[#allocation3 + $0xe8] sm:$0xff]  ;;  %v2630_v35 = vpack.c.bf16 %v20263_v26, %v20273_v34  ;;  %v2640_v62 = vld [vmem:[#allocation3] sm:$0xfe]  ;;  %v2646_v49 = vld [vmem:[#allocation3 + $0x30] sm:$0x1]  ;;  %v2705_v5 = vrot.slane %v2642_v38, 1 }
 0x398   : > { %5465 = vmatpush1.bf16.msra.mxu1 %v17748_v24  ;;  %v2631_v32 = vpack.c.bf16 %v20267_v29, %v20265_v27  ;;  %v17777_v61 = vld [vmem:[#allocation11 + $0x1e4] ss:$8 sps:$4 sm:$0xff]   ;;  %v17775_v63 = vld [vmem:[#allocation11 + $0x1e0] ss:$8 sps:$4 sm:$0xff]   ;;  %v2655_v2 = vld [vmem:[#allocation3 + $0x78] sm:$0x1] }
 0x399   : > { %5466 = vmatprep.subr.bf16.mxu1 %v17753_v25  ;;  %v2644_v52 = vld [vmem:[#allocation3 + $0x20] sm:$0xfe]  ;;  %v2704_v4 = vrot.slane %v2640_v62, 1  ;;  %v2711_v7 = vrot.slane %v2646_v49, 1  ;;  %v2651_v10 = vld [vmem:[#allocation3 + $0x58] sm:$0x1] }
 0x39a   : > { %5443 = vmatprep.mubr.bf16.mxu1 %v2631_v32  ;;  %v17780_v3 = vld [vmem:[#allocation11 + $0x1f4] ss:$8 sps:$4 sm:$0xff]   ;;  %v2710_v6 = vrot.slane %v2644_v52, 1  ;;  %v2725_v51 = vrot.slane %v2653_v1, 1  ;;  %v2726_v43 = vrot.slane %v2655_v2, 1  ;;  %v2720_v17 = vrot.slane %v2651_v10, 1 }
 0x39b   : > { %5444 = vmatmul.mubr.bf16.gmra.mrb[12].mxu1 %v2630_v35  ;;  %v17778_v13 = vld [vmem:[#allocation11 + $0x1f0] ss:$8 sps:$4 sm:$0xff]   ;;  %v17783_v14 = vld [vmem:[#allocation11 + $0x204] ss:$8 sps:$4 sm:$0xff]   ;;  %v2706_v50 = vsel %vm799_vm0, %v2704_v4, %v2705_v5  ;;  %v17781_v0 = vld [vmem:[#allocation11 + $0x200] ss:$8 sps:$4 sm:$0xff]  }
 0x39c   : > { %5467 = vmatpush1.bf16.msra.mxu1 %v17751_v33  ;;  %5486 = vmatprep.mubr.bf16.mxu1 %v2769_v28  ;;  %v2712_v19 = vsel %vm799_vm0, %v2710_v6, %v2711_v7  ;;  %v2727_v20 = vsel %vm799_vm0, %v2725_v51, %v2726_v43  ;;  %v2652_v21 = vld [vmem:[#allocation3 + $0x60] sm:$0xfe]  ;;  %v2654_v23 = vld [vmem:[#allocation3 + $0x70] sm:$0x1]  ;;  %v2661_v24 = vld [vmem:[#allocation3 + $0xa8] sm:$0xfe]  ;;  %v2721_v31 = vsel %vm799_vm0, %v2719_v16, %v2720_v17 }
 0x39d   : > { %5468 = vmatprep.subr.bf16.mxu1 %v17756_v36  ;;  %v2663_v25 = vld [vmem:[#allocation3 + $0xb8] sm:$0x1]  ;;  %v2768_v30 = vpack.c.bf16 %v2712_v19, %v2706_v50  ;;  %v2648_v33 = vld [vmem:[#allocation3 + $0x40] sm:$0xfe]  ;;  %v2650_v35 = vld [vmem:[#allocation3 + $0x50] sm:$0x1]  ;;  %v2771_v36 = vpack.c.bf16 %v2727_v20, %v2721_v31 }
 0x39e   : > { %v17786_v32 = vld [vmem:[#allocation11 + $0x214] ss:$8 sps:$4 sm:$0xff]   ;;  %v2722_v28 = vrot.slane %v2652_v21, 1  ;;  %v2662_v62 = vld [vmem:[#allocation3 + $0xb0] sm:$0x1] }
 0x39f   : > { %v17787_v52 = vld [vmem:[#allocation11 + $0x220] ss:$8 sps:$4 sm:$0xff]   ;;  %v2658_v5 = vld [vmem:[#allocation3 + $0x90] sm:$0x1]  ;;  %v2735_v9 = vrot.slane %v2662_v62, 1 }
 0x3a0   : > { %5469 = vmatpush1.bf16.msra.mxu1 %v17754_v39  ;;  %v2723_v39 = vrot.slane %v2654_v23, 1  ;;  %v2669_v49 = vld [vmem:[#allocation3 + $0xe8] sm:$0xfe]  ;;  %v2656_v4 = vld [vmem:[#allocation3 + $0x80] sm:$0xfe]  ;;  %v2729_v17 = vrot.slane %v2658_v5, 1 }
 0x3a1   : > { %5470 = vmatprep.subr.bf16.mxu1 %v17759_v40  ;;  %v2657_v40 = vld [vmem:[#allocation3 + $0x88] sm:$0xfe]  ;;  %v2667_v51 = vld [vmem:[#allocation3 + $0xd8] sm:$0x1]  ;;  %v2749_v43 = vrot.slane %v2669_v49, 1  ;;  %v2728_v16 = vrot.slane %v2656_v4, 1 }
 0x3a2   : > { %v2665_v10 = vld [vmem:[#allocation3 + $0xc8] sm:$0xfe]  ;;  %v2744_v20 = vrot.slane %v2667_v51, 1  ;;  %v17802_v4 = vld [vmem:[#allocation11 + $0x270] ss:$8 sps:$4 sm:$0xff]  }
 0x3a3   : > { %v17795_v50 = vld [vmem:[#allocation11 + $0x244] ss:$8 sps:$4 sm:$0xff]   ;;  %v2743_v19 = vrot.slane %v2665_v10, 1  ;;  %v2730_v31 = vsel %vm799_vm0, %v2728_v16, %v2729_v17  ;;  %v17811_v51 = vld [vmem:[#allocation11 + $0x2a0] ss:$8 sps:$4 sm:$0xff]  }
 0x3a4   : > { %5471 = vmatpush1.bf16.msra.mxu1 %v17757_v41  ;;  %v2659_v41 = vld [vmem:[#allocation3 + $0x98] sm:$0x1]  ;;  %v2785_v23 = vld [vmem:[#allocation3 + $0x8] sm:$0xfc] }
 0x3a5   : > { %5472 = vmatprep.subr.bf16.mxu1 %v17762_v42  ;;  %v2737_v42 = vrot.slane %v2661_v24, 1  ;;  %v2668_v24 = vld [vmem:[#allocation3 + $0xe0] sm:$0xfe] }
 0x3a6   : > { %v17807_v5 = vld [vmem:[#allocation11 + $0x284] ss:$8 sps:$4 sm:$0xff]   ;;  %v17817_v16 = vld [vmem:[#allocation11 + $0x2c0] ss:$8 sps:$4 sm:$0xff]   ;;  %v17822_v17 = vld [vmem:[#allocation11 + $0x2d4] ss:$8 sps:$4 sm:$0xff]  }
 0x3a7   : > { %v17813_v10 = vld [vmem:[#allocation11 + $0x2a4] ss:$8 sps:$4 sm:$0xff]  }
 0x3a8   : > { %5473 = vmatpush1.bf16.msra.mxu1 %v17760_v22  ;;  %v2738_v22 = vrot.slane %v2663_v25, 1  ;;  %v2670_v25 = vld [vmem:[#allocation3 + $0xf0] sm:$0x1] }
 0x3a9   : > { %5474 = vmatprep.subr.bf16.mxu1 %v17765_v46  ;;  %v17784_v46 = vld [vmem:[#allocation11 + $0x210] ss:$8 sps:$4 sm:$0xff]  }
 0x3ac   : > { %5475 = vmatpush1.bf16.msra.mxu1 %v17763_v53  ;;  %v2716_v53 = vrot.slane %v2648_v33, 1  ;;  %v2789_v33 = vld [vmem:[#allocation3 + $0x28] sm:$0xfc] }
 0x3ad   : > { %5476 = vmatprep.subr.bf16.mxu1 %v17768_v54  ;;  %v2717_v54 = vrot.slane %v2650_v35, 1  ;;  %v2791_v35 = vld [vmem:[#allocation3 + $0x38] sm:$0x3] }
 0x3af   : > { %v2718_v38 = vsel %vm799_vm0, %v2716_v53, %v2717_v54  ;;  %v2851_v53 = vrot.slane %v2785_v23, 2  ;;  %v2788_v23 = vld [vmem:[#allocation3 + $0x20] sm:$0xfc] }
 0x3b0   : > { %5477 = vmatpush1.bf16.msra.mxu1 %v17766_v55  ;;  %v17789_v55 = vld [vmem:[#allocation11 + $0x224] ss:$8 sps:$4 sm:$0xff]  }
 0x3b1   : > { %5478 = vmatprep.subr.bf16.mxu1 %v17771_v57  ;;  %v2731_v57 = vrot.slane %v2657_v40, 1  ;;  %v2664_v40 = vld [vmem:[#allocation3 + $0xc0] sm:$0xfe] }
 0x3b4   : > { %5479 = vmatpush1.bf16.msra.mxu1 %v17769_v58  ;;  %v2732_v58 = vrot.slane %v2659_v41, 1  ;;  %v2666_v41 = vld [vmem:[#allocation3 + $0xd0] sm:$0x1] }
 0x3b5   : > { %5480 = vmatprep.subr.bf16.mxu1 %v17774_v59  ;;  %v2724_v59 = vsel %vm799_vm0, %v2722_v28, %v2723_v39  ;;  %v2745_v28 = vsel %vm799_vm0, %v2743_v19, %v2744_v20  ;;  %v17798_v39 = vld [vmem:[#allocation11 + $0x254] ss:$8 sps:$4 sm:$0xff]   ;;  %v17825_v19 = vld [vmem:[#allocation11 + $0x2e4] ss:$8 sps:$4 sm:$0xff]  }
 0x3b6   : > { %v2770_v1 = vpack.c.bf16 %v2724_v59, %v2718_v38  ;;  %v2733_v2 = vsel %vm799_vm0, %v2731_v57, %v2732_v58  ;;  %v2858_v57 = vrot.slane %v2791_v35, 2  ;;  %v17796_v58 = vld [vmem:[#allocation11 + $0x250] ss:$8 sps:$4 sm:$0xff]   ;;  %v2740_v59 = vrot.slane %v2664_v40, 1  ;;  %v2784_v20 = vld [vmem:[#allocation3] sm:$0xfc] }
 0x3b7   : > { %v2854_v35 = vrot.slane %v2788_v23, 2  ;;  %v17835_v23 = vld [vmem:[#allocation11 + $0x320] ss:$8 sps:$4 sm:$0xff]  }
 0x3b8   : > { %5481 = vmatpush1.bf16.msra.mxu1 %v17772_v60  ;;  %v2739_v60 = vsel %vm799_vm0, %v2737_v42, %v2738_v22  ;;  %v2746_v22 = vrot.slane %v2668_v24, 1  ;;  %v17823_v24 = vld [vmem:[#allocation11 + $0x2e0] ss:$8 sps:$4 sm:$0xff]  }
 0x3b9   : > { %5482 = vmatprep.subr.bf16.mxu1 %v17777_v61  ;;  %v2660_v61 = vld [vmem:[#allocation3 + $0xa0] sm:$0xfe]  ;;  %v2773_v6 = vpack.c.bf16 %v2739_v60, %v2733_v2  ;;  %v2741_v60 = vrot.slane %v2666_v41, 1 }
 0x3ba   : > { %v2734_v7 = vrot.slane %v2660_v61, 1  ;;  %v17801_v61 = vld [vmem:[#allocation11 + $0x264] ss:$8 sps:$4 sm:$0xff]   ;;  %v17804_v2 = vld [vmem:[#allocation11 + $0x274] ss:$8 sps:$4 sm:$0xff]  }
 0x3bb   : > { %v2742_v49 = vsel %vm799_vm0, %v2740_v59, %v2741_v60  ;;  %v2798_v59 = vld [vmem:[#allocation3 + $0x70] sm:$0x3]  ;;  %v17829_v60 = vld [vmem:[#allocation11 + $0x300] ss:$8 sps:$4 sm:$0xff]  }
 0x3bc   : > { %5483 = vmatpush1.bf16.msra.mxu1 %v17775_v63  ;;  %v2671_v63 = vld [vmem:[#allocation3 + $0xf8] sm:$0x1]  ;;  %v2736_v21 = vsel %vm799_vm0, %v2734_v7, %v2735_v9  ;;  %v17808_v9 = vld [vmem:[#allocation11 + $0x290] ss:$8 sps:$4 sm:$0xff]  }
 0x3bd   : > { %5484 = vmatprep.subr.bf16.mxu1 %v17780_v3  ;;  %v17792_v3 = vld [vmem:[#allocation11 + $0x234] ss:$8 sps:$4 sm:$0xff]  }
 0x3be   : > { %v17810_v7 = vld [vmem:[#allocation11 + $0x294] ss:$8 sps:$4 sm:$0xff]  }
 0x3c0   : > { %5485 = vmatpush1.bf16.msra.mxu1 %v17778_v13  ;;  %v2750_v13 = vrot.slane %v2671_v63, 1  ;;  %v17799_v63 = vld [vmem:[#allocation11 + $0x260] ss:$8 sps:$4 sm:$0xff]  }
 0x3c1   : > { %5527 = vmatprep.subr.bf16.mxu1 %v17783_v14  ;;  %v17790_v14 = vld [vmem:[#allocation11 + $0x230] ss:$8 sps:$4 sm:$0xff]  }
 0x3c3   : > { %5487 = vmatmul.mubr.bf16.vlgmr.msra.gmra.mrb[0].mxu1 %v2768_v30  ;;  %v2787_v30 = vld [vmem:[#allocation3 + $0x18] sm:$0x3] }
 0x3c4   : > { %5496 = vmatprep.mubr.bf16.mxu1 %v2771_v36  ;;  %5528 = vmatpush1.bf16.msra.mxu1 %v17781_v0  ;;  %v2751_v0 = vsel %vm799_vm0, %v2749_v43, %v2750_v13  ;;  %v2772_v36 = vpack.c.bf16 %v2736_v21, %v2730_v31  ;;  %v2852_v54 = vrot.slane %v2787_v30, 2  ;;  %v17816_v43 = vld [vmem:[#allocation11 + $0x2b4] ss:$8 sps:$4 sm:$0xff]   ;;  %v17814_v13 = vld [vmem:[#allocation11 + $0x2b0] ss:$8 sps:$4 sm:$0xff]  }
 0x3c5   : > { %5529 = vmatprep.subr.bf16.mxu1 %v17786_v32  ;;  %v17793_v32 = vld [vmem:[#allocation11 + $0x240] ss:$8 sps:$4 sm:$0xff]   ;;  %v2775_v42 = vpack.c.bf16 %v2751_v0, %v2745_v28  ;;  %v2786_v21 = vld [vmem:[#allocation3 + $0x10] sm:$0x3]  ;;  %v2799_v30 = vld [vmem:[#allocation3 + $0x78] sm:$0x3] }
 0x3c6   : > { %v2853_v38 = vsel %vm872_vm1, %v2851_v53, %v2852_v54  ;;  %v2790_v0 = vld [vmem:[#allocation3 + $0x30] sm:$0x3]  ;;  %v17828_v31 = vld [vmem:[#allocation11 + $0x2f4] ss:$8 sps:$4 sm:$0xff]   ;;  %v2793_v28 = vld [vmem:[#allocation3 + $0x48] sm:$0xfc] }
 0x3c7   : > { %v2870_v41 = vrot.slane %v2799_v30, 2 }
 0x3c8   : > { %5530 = vmatpush1.bf16.msra.mxu1 %v17784_v46  ;;  %v2747_v46 = vrot.slane %v2670_v25, 1  ;;  %v2797_v25 = vld [vmem:[#allocation3 + $0x68] sm:$0xfc] }
 0x3c9   : > { %5531 = vmatprep.subr.bf16.mxu1 %v17789_v55  ;;  %v2857_v55 = vrot.slane %v2789_v33, 2  ;;  %v2849_v33 = vrot.slane %v2786_v21, 2  ;;  %v2869_v40 = vrot.slane %v2797_v25, 2 }
 0x3ca   : > { %v2748_v62 = vsel %vm799_vm0, %v2746_v22, %v2747_v46  ;;  %v17831_v22 = vld [vmem:[#allocation11 + $0x304] ss:$8 sps:$4 sm:$0xff]   ;;  %v2863_v46 = vrot.slane %v2793_v28, 2 }
 0x3cb   : > { %5497 = vmatmul.mubr.bf16.gmra.mrb[4].mxu1 %v2770_v1  ;;  %v2774_v1 = vpack.c.bf16 %v2748_v62, %v2742_v49  ;;  %v2807_v62 = vld [vmem:[#allocation3 + $0xb8] sm:$0x3] }
 0x3cc   : > { %5506 = vmatprep.mubr.bf16.mxu1 %v2773_v6  ;;  %5532 = vmatpush1.bf16.msra.mxu1 %v17787_v52  ;;  %v2859_v52 = vsel %vm872_vm1, %v2857_v55, %v2858_v57  ;;  %v17805_v6 = vld [vmem:[#allocation11 + $0x280] ss:$8 sps:$4 sm:$0xff]   ;;  %v2871_v57 = vsel %vm872_vm1, %v2869_v40, %v2870_v41  ;;  %v17834_v49 = vld [vmem:[#allocation11 + $0x314] ss:$8 sps:$4 sm:$0xff]  }
 0x3cd   : > { %5533 = vmatprep.subr.bf16.mxu1 %v17792_v3  ;;  %v2913_v3 = vpack.c.bf16 %v2859_v52, %v2853_v38  ;;  %v2811_v40 = vld [vmem:[#allocation3 + $0xd8] sm:$0x3] }
 0x3d0   : > { %5534 = vmatpush1.bf16.msra.mxu1 %v17790_v14  ;;  %v17819_v14 = vld [vmem:[#allocation11 + $0x2c4] ss:$8 sps:$4 sm:$0xff]  }
 0x3d1   : > { %5535 = vmatprep.subr.bf16.mxu1 %v17795_v50  ;;  %v17820_v50 = vld [vmem:[#allocation11 + $0x2d0] ss:$8 sps:$4 sm:$0xff]  }
 0x3d3   : > { %5507 = vmatmul.mubr.bf16.gmra.mrb[8].mxu1 %v2772_v36  ;;  %v2855_v36 = vrot.slane %v2790_v0, 2  ;;  %v2813_v0 = vld [vmem:[#allocation3 + $0xe8] sm:$0xfc] }
 0x3d4   : > { %5516 = vmatprep.mubr.bf16.mxu1 %v2775_v42  ;;  %5536 = vmatpush1.bf16.msra.mxu1 %v17793_v32  ;;  %v2848_v32 = vrot.slane %v2784_v20, 2  ;;  %v17826_v42 = vld [vmem:[#allocation11 + $0x2f0] ss:$8 sps:$4 sm:$0xff]   ;;  %v2806_v20 = vld [vmem:[#allocation3 + $0xb0] sm:$0x3]  ;;  %v2893_v41 = vrot.slane %v2813_v0, 2 }
 0x3d5   : > { %5537 = vmatprep.subr.bf16.mxu1 %v17798_v39  ;;  %v2795_v39 = vld [vmem:[#allocation3 + $0x58] sm:$0x3]  ;;  %v2856_v55 = vsel %vm872_vm1, %v2854_v35, %v2855_v36  ;;  %v2879_v28 = vrot.slane %v2806_v20, 2  ;;  %v17853_v20 = vld [vmem:[#allocation11 + $0x380] ss:$8 sps:$4 sm:$0xff]  }
 0x3d6   : > { %v2864_v53 = vrot.slane %v2795_v39, 2  ;;  %v2850_v54 = vsel %vm872_vm1, %v2848_v32, %v2849_v33  ;;  %v2800_v32 = vld [vmem:[#allocation3 + $0x80] sm:$0xfc]  ;;  %v2802_v33 = vld [vmem:[#allocation3 + $0x90] sm:$0x3] }
 0x3d7   : > { %v2912_v38 = vpack.c.bf16 %v2856_v55, %v2850_v54  ;;  %v2809_v39 = vld [vmem:[#allocation3 + $0xc8] sm:$0xfc] }
 0x3d8   : > { %5538 = vmatpush1.bf16.msra.mxu1 %v17796_v58  ;;  %v2796_v58 = vld [vmem:[#allocation3 + $0x60] sm:$0xfc]  ;;  %v2865_v52 = vsel %vm872_vm1, %v2863_v46, %v2864_v53  ;;  %v2872_v46 = vrot.slane %v2800_v32, 2  ;;  %v2873_v53 = vrot.slane %v2802_v33, 2  ;;  %v2887_v55 = vrot.slane %v2809_v39, 2 }
 0x3d9   : > { %5539 = vmatprep.subr.bf16.mxu1 %v17801_v61  ;;  %v2805_v61 = vld [vmem:[#allocation3 + $0xa8] sm:$0xfc]  ;;  %v17868_v32 = vld [vmem:[#allocation11 + $0x3d0] ss:$8 sps:$4 sm:$0xff]  }
 0x3da   : > { %v17843_v54 = vld [vmem:[#allocation11 + $0x344] ss:$8 sps:$4 sm:$0xff]  }
 0x3db   : > { %5517 = vmatmul.mubr.bf16.gmra.mrb[12].mxu1 %v2774_v1  ;;  %v2794_v1 = vld [vmem:[#allocation3 + $0x50] sm:$0x3] }
 0x3dc   : > { %5540 = vmatpush1.bf16.msra.mxu1 %v17799_v63  ;;  %5559 = vmatprep.mubr.bf16.mxu1 %v2913_v3  ;;  %v2792_v63 = vld [vmem:[#allocation3 + $0x40] sm:$0xfc]  ;;  %v2866_v3 = vrot.slane %v2796_v58, 2 }
 0x3dd   : > { %5541 = vmatprep.subr.bf16.mxu1 %v17804_v2  ;;  %v2915_v2 = vpack.c.bf16 %v2871_v57, %v2865_v52  ;;  %v2888_v57 = vrot.slane %v2811_v40, 2  ;;  %v17861_v0 = vld [vmem:[#allocation11 + $0x3a4] ss:$8 sps:$4 sm:$0xff]  }
 0x3de   : > { %v17873_v33 = vld [vmem:[#allocation11 + $0x3e4] ss:$8 sps:$4 sm:$0xff]  }
 0x3df   : > { %v17879_v39 = vld [vmem:[#allocation11 + $0x404] ss:$8 sps:$4 sm:$0xff]  }
 0x3e0   : > { %5542 = vmatpush1.bf16.msra.mxu1 %v17802_v4  ;;  %v2867_v4 = vrot.slane %v2798_v59, 2  ;;  %v2928_v40 = vld [vmem:[#allocation3 + $0x20] sm:$0xff] }
 0x3e1   : > { %5543 = vmatprep.subr.bf16.mxu1 %v17807_v5  ;;  %v2801_v5 = vld [vmem:[#allocation3 + $0x88] sm:$0xfc] }
 0x3e4   : > { %5544 = vmatpush1.bf16.msra.mxu1 %v17805_v6  ;;  %v2803_v6 = vld [vmem:[#allocation3 + $0x98] sm:$0x3] }
 0x3e5   : > { %5545 = vmatprep.subr.bf16.mxu1 %v17810_v7  ;;  %v2881_v7 = vrot.slane %v2805_v61, 2  ;;  %v2814_v61 = vld [vmem:[#allocation3 + $0xf0] sm:$0x3] }
 0x3e8   : > { %5546 = vmatpush1.bf16.msra.mxu1 %v17808_v9  ;;  %v2882_v9 = vrot.slane %v2807_v62, 2  ;;  %v2874_v62 = vsel %vm872_vm1, %v2872_v46, %v2873_v53  ;;  %v2947_v46 = vpack.c.bf16 %v20253_v11, %v20239_v45  ;;  %v17880_v53 = vld [vmem:[#allocation11 + $0x410] ss:$8 sps:$4 sm:$0xff]   ;;  %v17891_v11 = vld [vmem:[#allocation11 + $0x444] ss:$8 sps:$4 sm:$0xff]  }
 0x3e9   : > { %5547 = vmatprep.subr.bf16.mxu1 %v17813_v10  ;;  %v17832_v10 = vld [vmem:[#allocation11 + $0x310] ss:$8 sps:$4 sm:$0xff]  }
 0x3ea   : > { %v17886_v45 = vld [vmem:[#allocation11 + $0x430] ss:$8 sps:$4 sm:$0xff]  }
 0x3ec   : > { %5548 = vmatpush1.bf16.msra.mxu1 %v17811_v51  ;;  %v2860_v51 = vrot.slane %v2792_v63, 2  ;;  %v17846_v63 = vld [vmem:[#allocation11 + $0x354] ss:$8 sps:$4 sm:$0xff]  }
 0x3ed   : > { %5549 = vmatprep.subr.bf16.mxu1 %v17816_v43  ;;  %v2861_v43 = vrot.slane %v2794_v1, 2  ;;  %v2808_v1 = vld [vmem:[#allocation3 + $0xc0] sm:$0xfc] }
 0x3ef   : > { %v2862_v21 = vsel %vm872_vm1, %v2860_v51, %v2861_v43 }
 0x3f0   : > { %5550 = vmatpush1.bf16.msra.mxu1 %v17814_v13  ;;  %v17837_v13 = vld [vmem:[#allocation11 + $0x324] ss:$8 sps:$4 sm:$0xff]  }
 0x3f1   : > { %5551 = vmatprep.subr.bf16.mxu1 %v17819_v14  ;;  %v2875_v14 = vrot.slane %v2801_v5, 2  ;;  %v2891_v5 = vrot.slane %v2814_v61, 2  ;;  %v2965_v61 = vld [vmem:[#allocation3 + $0x48] sm:$0xfe] }
 0x3f4   : > { %5552 = vmatpush1.bf16.msra.mxu1 %v17817_v16  ;;  %v2876_v16 = vrot.slane %v2803_v6, 2  ;;  %v17844_v6 = vld [vmem:[#allocation11 + $0x350] ss:$8 sps:$4 sm:$0xff]  }
 0x3f5   : > { %5553 = vmatprep.subr.bf16.mxu1 %v17822_v17  ;;  %v2868_v17 = vsel %vm872_vm1, %v2866_v3, %v2867_v4 }
 0x3f6   : > { %v2914_v25 = vpack.c.bf16 %v2868_v17, %v2862_v21  ;;  %v2877_v30 = vsel %vm872_vm1, %v2875_v14, %v2876_v16  ;;  %v17852_v16 = vld [vmem:[#allocation11 + $0x374] ss:$8 sps:$4 sm:$0xff]   ;;  %v2945_v17 = vpack.c.bf16 %v20237_v37, %v20228_v18  ;;  %v17862_v18 = vld [vmem:[#allocation11 + $0x3b0] ss:$8 sps:$4 sm:$0xff]   ;;  %v17867_v37 = vld [vmem:[#allocation11 + $0x3c4] ss:$8 sps:$4 sm:$0xff]  }
 0x3f7   : > { %v17858_v21 = vld [vmem:[#allocation11 + $0x394] ss:$8 sps:$4 sm:$0xff]  }
 0x3f8   : > { %5554 = vmatpush1.bf16.msra.mxu1 %v17820_v50  ;;  %v2883_v50 = vsel %vm872_vm1, %v2881_v7, %v2882_v9  ;;  %v2884_v7 = vrot.slane %v2808_v1, 2  ;;  %v17897_v1 = vld [vmem:[#allocation11 + $0x464] ss:$8 sps:$4 sm:$0xff]  }
 0x3f9   : > { %5555 = vmatprep.subr.bf16.mxu1 %v17825_v19  ;;  %v2804_v19 = vld [vmem:[#allocation3 + $0xa0] sm:$0xfc]  ;;  %v2917_v35 = vpack.c.bf16 %v2883_v50, %v2877_v30  ;;  %v17850_v50 = vld [vmem:[#allocation11 + $0x370] ss:$8 sps:$4 sm:$0xff]  }
 0x3fa   : > { %v2878_v36 = vrot.slane %v2804_v19, 2  ;;  %v17855_v19 = vld [vmem:[#allocation11 + $0x384] ss:$8 sps:$4 sm:$0xff]   ;;  %v17865_v30 = vld [vmem:[#allocation11 + $0x3c0] ss:$8 sps:$4 sm:$0xff]  }
 0x3fc   : > { %5556 = vmatpush1.bf16.msra.mxu1 %v17823_v24  ;;  %v2815_v24 = vld [vmem:[#allocation3 + $0xf8] sm:$0x3]  ;;  %v2880_v58 = vsel %vm872_vm1, %v2878_v36, %v2879_v28  ;;  %v17874_v28 = vld [vmem:[#allocation11 + $0x3f0] ss:$8 sps:$4 sm:$0xff]  }
 0x3fd   : > { %5557 = vmatprep.subr.bf16.mxu1 %v17828_v31  ;;  %v17840_v31 = vld [vmem:[#allocation11 + $0x334] ss:$8 sps:$4 sm:$0xff]   ;;  %v2916_v52 = vpack.c.bf16 %v2880_v58, %v2874_v62 }
 0x3fe   : > { %v17876_v36 = vld [vmem:[#allocation11 + $0x3f4] ss:$8 sps:$4 sm:$0xff]  }
 0x3ff   : > { %v17888_v58 = vld [vmem:[#allocation11 + $0x434] ss:$8 sps:$4 sm:$0xff]  }
 0x400   : > { %5558 = vmatpush1.bf16.msra.mxu1 %v17826_v42  ;;  %v2894_v42 = vrot.slane %v2815_v24, 2  ;;  %v17859_v24 = vld [vmem:[#allocation11 + $0x3a0] ss:$8 sps:$4 sm:$0xff]   ;;  %v2967_v62 = vld [vmem:[#allocation3 + $0x58] sm:$0x1] }
 0x401   : > { %5600 = vmatprep.subr.bf16.mxu1 %v17831_v22  ;;  %v17838_v22 = vld [vmem:[#allocation11 + $0x330] ss:$8 sps:$4 sm:$0xff]  }
 0x402   : > { %v2895_v59 = vsel %vm872_vm1, %v2893_v41, %v2894_v42  ;;  %v17877_v41 = vld [vmem:[#allocation11 + $0x400] ss:$8 sps:$4 sm:$0xff]   ;;  %v2944_v42 = vpack.c.bf16 %v20243_v56, %v2928_v40  ;;  %v2949_v56 = vpack.c.bf16 %v20265_v27, %v20255_v12 }
 0x403   : > { %5560 = vmatmul.mubr.bf16.vlgmr.msra.gmra.mrb[0].mxu1 %v2912_v38  ;;  %v17841_v38 = vld [vmem:[#allocation11 + $0x340] ss:$8 sps:$4 sm:$0xff]  }
 0x404   : > { %5569 = vmatprep.mubr.bf16.mxu1 %v2915_v2  ;;  %5601 = vmatpush1.bf16.msra.mxu1 %v17829_v60  ;;  %v2812_v60 = vld [vmem:[#allocation3 + $0xe0] sm:$0xfc]  ;;  %v2810_v2 = vld [vmem:[#allocation3 + $0xd0] sm:$0x3]  ;;  %v2961_v27 = vld [vmem:[#allocation3 + $0x28] sm:$0xfe] }
 0x405   : > { %5602 = vmatprep.subr.bf16.mxu1 %v17834_v49  ;;  %v2889_v49 = vsel %vm872_vm1, %v2887_v55, %v2888_v57  ;;  %v2890_v4 = vrot.slane %v2812_v60, 2  ;;  %v2885_v9 = vrot.slane %v2810_v2, 2  ;;  %v17883_v55 = vld [vmem:[#allocation11 + $0x420] ss:$8 sps:$4 sm:$0xff]   ;;  %v2946_v57 = vpack.c.bf16 %v20259_v15, %v20235_v44  ;;  %v17894_v15 = vld [vmem:[#allocation11 + $0x454] ss:$8 sps:$4 sm:$0xff]  }
 0x406   : > { %v2919_v3 = vpack.c.bf16 %v2895_v59, %v2889_v49  ;;  %v20316_v59 = vld [vmem:[#allocation3 + $0x108] sm:$0xff]  ;;  %v2948_v44 = vpack.c.bf16 %v20273_v34, %v20251_v8  ;;  %v3034_v49 = vrot.slane %v2967_v62, 1  ;;  %v3027_v2 = vrot.slane %v2961_v27, 1  ;;  %v2970_v27 = vld [vmem:[#allocation3 + $0x70] sm:$0x1] }
 0x407   : > { %v2892_v51 = vsel %vm872_vm1, %v2890_v4, %v2891_v5  ;;  %v2886_v43 = vsel %vm872_vm1, %v2884_v7, %v2885_v9  ;;  %v17889_v60 = vld [vmem:[#allocation11 + $0x440] ss:$8 sps:$4 sm:$0xff]   ;;  %v2951_v12 = vpack.c.bf16 %v20316_v59, %v20267_v29  ;;  %v17898_v9 = vld [vmem:[#allocation11 + $0x470] ss:$8 sps:$4 sm:$0xff]  }
 0x408   : > { %5603 = vmatpush1.bf16.msra.mxu1 %v17832_v10  ;;  %v17849_v10 = vld [vmem:[#allocation11 + $0x364] ss:$8 sps:$4 sm:$0xff]   ;;  %v2918_v14 = vpack.c.bf16 %v2892_v51, %v2886_v43  ;;  %v17895_v34 = vld [vmem:[#allocation11 + $0x460] ss:$8 sps:$4 sm:$0xff]   ;;  %v17906_v43 = vld [vmem:[#allocation11 + $0x494] ss:$8 sps:$4 sm:$0xff]  }
 0x409   : > { %5604 = vmatprep.subr.bf16.mxu1 %v17837_v13  ;;  %v17847_v13 = vld [vmem:[#allocation11 + $0x360] ss:$8 sps:$4 sm:$0xff]  }
 0x40a   : > { %v20322_v4 = vld [vmem:[#allocation3 + $0x100] sm:$0xff] }
 0x40b   : > { %5570 = vmatmul.mubr.bf16.gmra.mrb[4].mxu1 %v2914_v25  ;;  %v17864_v25 = vld [vmem:[#allocation11 + $0x3b4] ss:$8 sps:$4 sm:$0xff]   ;;  %v2950_v29 = vpack.c.bf16 %v20322_v4, %v20263_v26  ;;  %v17901_v51 = vld [vmem:[#allocation11 + $0x480] ss:$8 sps:$4 sm:$0xff]  }
 0x40c   : > { %5579 = vmatprep.mubr.bf16.mxu1 %v2917_v35  ;;  %5605 = vmatpush1.bf16.msra.mxu1 %v17835_v23  ;;  %v17856_v23 = vld [vmem:[#allocation11 + $0x390] ss:$8 sps:$4 sm:$0xff]   ;;  %v17871_v35 = vld [vmem:[#allocation11 + $0x3e0] ss:$8 sps:$4 sm:$0xff]  }
 0x40d   : > { %5606 = vmatprep.subr.bf16.mxu1 %v17840_v31  ;;  %v17870_v31 = vld [vmem:[#allocation11 + $0x3d4] ss:$8 sps:$4 sm:$0xff]   ;;  %v17907_v26 = vld [vmem:[#allocation11 + $0x4a0] ss:$8 sps:$4 sm:$0xff]  }
 0x410   : > { %5607 = vmatpush1.bf16.msra.mxu1 %v17838_v22  ;;  %v17882_v22 = vld [vmem:[#allocation11 + $0x414] ss:$8 sps:$4 sm:$0xff]  }
 0x411   : > { %5608 = vmatprep.subr.bf16.mxu1 %v17843_v54  ;;  %v17885_v54 = vld [vmem:[#allocation11 + $0x424] ss:$8 sps:$4 sm:$0xff]  }
 0x413   : > { %5580 = vmatmul.mubr.bf16.gmra.mrb[8].mxu1 %v2916_v52  ;;  %v3033_v52 = vrot.slane %v2965_v61, 1  ;;  %v2983_v61 = vld [vmem:[#allocation3 + $0xd8] sm:$0x1] }
 0x414   : > { %5589 = vmatprep.mubr.bf16.mxu1 %v2919_v3  ;;  %5609 = vmatpush1.bf16.msra.mxu1 %v17841_v38  ;;  %v2963_v38 = vld [vmem:[#allocation3 + $0x38] sm:$0x1] }
 0x415   : > { %5610 = vmatprep.subr.bf16.mxu1 %v17846_v63  ;;  %v17892_v63 = vld [vmem:[#allocation11 + $0x450] ss:$8 sps:$4 sm:$0xff]   ;;  %v3028_v3 = vrot.slane %v2963_v38, 1  ;;  %v3035_v8 = vsel %vm799_vm0, %v3033_v52, %v3034_v49 }
 0x417   : > { %v3029_v5 = vsel %vm799_vm0, %v3027_v2, %v3028_v3  ;;  %v3058_v3 = vrot.slane %v2983_v61, 1 }
 0x418   : > { %5611 = vmatpush1.bf16.msra.mxu1 %v17844_v6  ;;  %v17900_v6 = vld [vmem:[#allocation11 + $0x474] ss:$8 sps:$4 sm:$0xff]   ;;  %v3089_v7 = vpack.c.bf16 %v3035_v8, %v3029_v5  ;;  %v17928_v8 = vld [vmem:[#allocation11 + $0x510] ss:$8 sps:$4 sm:$0xff]   ;;  %v17933_v5 = vld [vmem:[#allocation11 + $0x524] ss:$8 sps:$4 sm:$0xff]  }
 0x419   : > { %5612 = vmatprep.subr.bf16.mxu1 %v17849_v10  ;;  %v17903_v10 = vld [vmem:[#allocation11 + $0x484] ss:$8 sps:$4 sm:$0xff]  }
 0x41b   : > { %5590 = vmatmul.mubr.bf16.gmra.mrb[12].mxu1 %v2918_v14  ;;  %v17909_v14 = vld [vmem:[#allocation11 + $0x4a4] ss:$8 sps:$4 sm:$0xff]  }
 0x41c   : > { %5613 = vmatpush1.bf16.msra.mxu1 %v17847_v13  ;;  %5632 = vmatprep.mubr.bf16.mxu1 %v2945_v17  ;;  %v17904_v13 = vld [vmem:[#allocation11 + $0x490] ss:$8 sps:$4 sm:$0xff]  }
 0x41d   : > { %5614 = vmatprep.subr.bf16.mxu1 %v17852_v16  ;;  %v17912_v16 = vld [vmem:[#allocation11 + $0x4b4] ss:$8 sps:$4 sm:$0xff]   ;;  %v17910_v17 = vld [vmem:[#allocation11 + $0x4b0] ss:$8 sps:$4 sm:$0xff]  }
 0x420   : > { %5615 = vmatpush1.bf16.msra.mxu1 %v17850_v50  ;;  %v17915_v50 = vld [vmem:[#allocation11 + $0x4c4] ss:$8 sps:$4 sm:$0xff]  }
 0x421   : > { %5616 = vmatprep.subr.bf16.mxu1 %v17855_v19  ;;  %v17913_v19 = vld [vmem:[#allocation11 + $0x4c0] ss:$8 sps:$4 sm:$0xff]  }
 0x424   : > { %5617 = vmatpush1.bf16.msra.mxu1 %v17853_v20  ;;  %v17918_v20 = vld [vmem:[#allocation11 + $0x4d4] ss:$8 sps:$4 sm:$0xff]  }
 0x425   : > { %5618 = vmatprep.subr.bf16.mxu1 %v17858_v21  ;;  %v17916_v21 = vld [vmem:[#allocation11 + $0x4d0] ss:$8 sps:$4 sm:$0xff]  }
 0x428   : > { %5619 = vmatpush1.bf16.msra.mxu1 %v17856_v23  ;;  %v17921_v23 = vld [vmem:[#allocation11 + $0x4e4] ss:$8 sps:$4 sm:$0xff]  }
 0x429   : > { %5620 = vmatprep.subr.bf16.mxu1 %v17861_v0  ;;  %v2964_v0 = vld [vmem:[#allocation3 + $0x40] sm:$0xfe] }
 0x42c   : > { %5621 = vmatpush1.bf16.msra.mxu1 %v17859_v24  ;;  %v2966_v24 = vld [vmem:[#allocation3 + $0x50] sm:$0x1] }
 0x42d   : > { %5622 = vmatprep.subr.bf16.mxu1 %v17864_v25  ;;  %v17919_v25 = vld [vmem:[#allocation11 + $0x4e0] ss:$8 sps:$4 sm:$0xff]  }
 0x430   : > { %5623 = vmatpush1.bf16.msra.mxu1 %v17862_v18  ;;  %v2973_v18 = vld [vmem:[#allocation3 + $0x88] sm:$0xfe] }
 0x431   : > { %5624 = vmatprep.subr.bf16.mxu1 %v17867_v37  ;;  %v2975_v37 = vld [vmem:[#allocation3 + $0x98] sm:$0x1] }
 0x432   : > { %v3046_v40 = vrot.slane %v2975_v37, 1 }
 0x434   : > { %5625 = vmatpush1.bf16.msra.mxu1 %v17865_v30  ;;  %v17924_v30 = vld [vmem:[#allocation11 + $0x4f4] ss:$8 sps:$4 sm:$0xff]  }
 0x435   : > { %5626 = vmatprep.subr.bf16.mxu1 %v17870_v31  ;;  %v2960_v31 = vld [vmem:[#allocation3 + $0x20] sm:$0xfe] }
 0x438   : > { %5627 = vmatpush1.bf16.msra.mxu1 %v17868_v32  ;;  %v2962_v32 = vld [vmem:[#allocation3 + $0x30] sm:$0x1] }
 0x439   : > { %5628 = vmatprep.subr.bf16.mxu1 %v17873_v33  ;;  %v3030_v33 = vrot.slane %v2964_v0, 1 }
 0x43c   : > { %5629 = vmatpush1.bf16.msra.mxu1 %v17871_v35  ;;  %v3031_v35 = vrot.slane %v2966_v24, 1 }
 0x43d   : > { %5630 = vmatprep.subr.bf16.mxu1 %v17876_v36  ;;  %v2969_v36 = vld [vmem:[#allocation3 + $0x68] sm:$0xfe] }
 0x440   : > { %5631 = vmatpush1.bf16.msra.mxu1 %v17874_v28  ;;  %v2971_v28 = vld [vmem:[#allocation3 + $0x78] sm:$0x1] }
 0x441   : > { %5673 = vmatprep.subr.bf16.mxu1 %v17879_v39  ;;  %v3045_v39 = vrot.slane %v2973_v18, 1  ;;  %v2987_v18 = vld [vmem:[#allocation3 + $0xf8] sm:$0x1] }
 0x443   : > { %5633 = vmatmul.mubr.bf16.vlgmr.msra.gmra.mrb[0].mxu1 %v2944_v42  ;;  %v3024_v42 = vrot.slane %v2960_v31, 1  ;;  %v17934_v31 = vld [vmem:[#allocation11 + $0x530] ss:$8 sps:$4 sm:$0xff]  }
 0x444   : > { %5642 = vmatprep.mubr.bf16.mxu1 %v2947_v46  ;;  %5674 = vmatpush1.bf16.msra.mxu1 %v17877_v41  ;;  %v17922_v41 = vld [vmem:[#allocation11 + $0x4f0] ss:$8 sps:$4 sm:$0xff]   ;;  %v17927_v46 = vld [vmem:[#allocation11 + $0x504] ss:$8 sps:$4 sm:$0xff]  }
 0x445   : > { %5675 = vmatprep.subr.bf16.mxu1 %v17882_v22  ;;  %v3025_v22 = vrot.slane %v2962_v32, 1 }
 0x448   : > { %5676 = vmatpush1.bf16.msra.mxu1 %v17880_v53  ;;  %v3039_v53 = vrot.slane %v2969_v36, 1 }
 0x449   : > { %5677 = vmatprep.subr.bf16.mxu1 %v17885_v54  ;;  %v3040_v54 = vrot.slane %v2971_v28, 1  ;;  %v3064_v28 = vrot.slane %v2987_v18, 1  ;;  %v3117_v18 = vld [vmem:[#allocation3 + $0x88] sm:$0xfc] }
 0x44b   : > { %5643 = vmatmul.mubr.bf16.gmra.mrb[4].mxu1 %v2946_v57  ;;  %v3047_v57 = vsel %vm799_vm0, %v3045_v39, %v3046_v40 }
 0x44c   : > { %5652 = vmatprep.mubr.bf16.mxu1 %v2949_v56  ;;  %5678 = vmatpush1.bf16.msra.mxu1 %v17883_v55  ;;  %v3032_v55 = vsel %vm799_vm0, %v3030_v33, %v3031_v35  ;;  %v2974_v56 = vld [vmem:[#allocation3 + $0x90] sm:$0x1] }
 0x44d   : > { %5679 = vmatprep.subr.bf16.mxu1 %v17888_v58  ;;  %v2972_v58 = vld [vmem:[#allocation3 + $0x80] sm:$0xfe]  ;;  %v3043_v49 = vrot.slane %v2974_v56, 1 }
 0x44e   : > { %v3042_v52 = vrot.slane %v2972_v58, 1  ;;  %v17939_v35 = vld [vmem:[#allocation11 + $0x544] ss:$8 sps:$4 sm:$0xff]   ;;  %v17942_v58 = vld [vmem:[#allocation11 + $0x554] ss:$8 sps:$4 sm:$0xff]  }
 0x44f   : > { %v2984_v56 = vld [vmem:[#allocation3 + $0xe0] sm:$0xfe] }
 0x450   : > { %5680 = vmatpush1.bf16.msra.mxu1 %v17886_v45  ;;  %v3026_v45 = vsel %vm799_vm0, %v3024_v42, %v3025_v22  ;;  %v2990_v42 = vld [vmem:[#allocation3 + $0x110] sm:$0x1] }
 0x451   : > { %5681 = vmatprep.subr.bf16.mxu1 %v17891_v11  ;;  %v17925_v11 = vld [vmem:[#allocation11 + $0x500] ss:$8 sps:$4 sm:$0xff]   ;;  %v3088_v62 = vpack.c.bf16 %v3032_v55, %v3026_v45  ;;  %v2986_v45 = vld [vmem:[#allocation3 + $0xf0] sm:$0x1]  ;;  %v3067_v61 = vrot.slane %v2990_v42, 1 }
 0x453   : > { %5653 = vmatmul.mubr.bf16.gmra.mrb[8].mxu1 %v2948_v44  ;;  %v3041_v44 = vsel %vm799_vm0, %v3039_v53, %v3040_v54  ;;  %v3109_v53 = vld [vmem:[#allocation3 + $0x48] sm:$0xfc]  ;;  %v3111_v54 = vld [vmem:[#allocation3 + $0x58] sm:$0x3] }
 0x454   : > { %5662 = vmatprep.mubr.bf16.mxu1 %v2951_v12  ;;  %5682 = vmatpush1.bf16.msra.mxu1 %v17889_v60  ;;  %v2981_v60 = vld [vmem:[#allocation3 + $0xc8] sm:$0xfe]  ;;  %v2968_v12 = vld [vmem:[#allocation3 + $0x60] sm:$0xfe]  ;;  %v3091_v38 = vpack.c.bf16 %v3047_v57, %v3041_v44  ;;  %v3107_v44 = vld [vmem:[#allocation3 + $0x38] sm:$0x3] }
 0x455   : > { %5683 = vmatprep.subr.bf16.mxu1 %v17894_v15  ;;  %v17930_v15 = vld [vmem:[#allocation11 + $0x514] ss:$8 sps:$4 sm:$0xff]   ;;  %v3057_v2 = vrot.slane %v2981_v60, 1 }
 0x458   : > { %5684 = vmatpush1.bf16.msra.mxu1 %v17892_v63  ;;  %v2977_v63 = vld [vmem:[#allocation3 + $0xa8] sm:$0xfe] }
 0x459   : > { %5685 = vmatprep.subr.bf16.mxu1 %v17897_v1  ;;  %v2979_v1 = vld [vmem:[#allocation3 + $0xb8] sm:$0x1] }
 0x45b   : > { %5663 = vmatmul.mubr.bf16.gmra.mrb[12].mxu1 %v2950_v29  ;;  %v3037_v29 = vrot.slane %v2970_v27, 1  ;;  %v17940_v27 = vld [vmem:[#allocation11 + $0x550] ss:$8 sps:$4 sm:$0xff]  }
 0x45c   : > { %5686 = vmatpush1.bf16.msra.mxu1 %v17895_v34  ;;  %5705 = vmatprep.mubr.bf16.mxu1 %v3089_v7  ;;  %v3036_v34 = vrot.slane %v2968_v12, 1  ;;  %v3052_v7 = vrot.slane %v2979_v1, 1  ;;  %v3178_v12 = vrot.slane %v3111_v54, 2  ;;  %v3172_v1 = vrot.slane %v3107_v44, 2 }
 0x45d   : > { %5687 = vmatprep.subr.bf16.mxu1 %v17900_v6  ;;  %v3051_v6 = vrot.slane %v2977_v63, 1 }
 0x460   : > { %5688 = vmatpush1.bf16.msra.mxu1 %v17898_v9  ;;  %v3044_v9 = vsel %vm799_vm0, %v3042_v52, %v3043_v49  ;;  %v3061_v52 = vrot.slane %v2986_v45, 1  ;;  %v17945_v49 = vld [vmem:[#allocation11 + $0x564] ss:$8 sps:$4 sm:$0xff]  }
 0x461   : > { %5689 = vmatprep.subr.bf16.mxu1 %v17903_v10  ;;  %v3059_v10 = vsel %vm799_vm0, %v3057_v2, %v3058_v3 }
 0x464   : > { %5690 = vmatpush1.bf16.msra.mxu1 %v17901_v51  ;;  %v2980_v51 = vld [vmem:[#allocation3 + $0xc0] sm:$0xfe] }
 0x465   : > { %5691 = vmatprep.subr.bf16.mxu1 %v17906_v43  ;;  %v2982_v43 = vld [vmem:[#allocation3 + $0xd0] sm:$0x1]  ;;  %v3054_v0 = vrot.slane %v2980_v51, 1  ;;  %v17949_v51 = vld [vmem:[#allocation11 + $0x580] ss:$8 sps:$4 sm:$0xff]  }
 0x466   : > { %v3055_v24 = vrot.slane %v2982_v43, 1  ;;  %v17954_v43 = vld [vmem:[#allocation11 + $0x594] ss:$8 sps:$4 sm:$0xff]  }
 0x468   : > { %5692 = vmatpush1.bf16.msra.mxu1 %v17904_v13  ;;  %v3038_v13 = vsel %vm799_vm0, %v3036_v34, %v3037_v29  ;;  %v3056_v39 = vsel %vm799_vm0, %v3054_v0, %v3055_v24  ;;  %v17943_v34 = vld [vmem:[#allocation11 + $0x560] ss:$8 sps:$4 sm:$0xff]   ;;  %v3110_v24 = vld [vmem:[#allocation3 + $0x50] sm:$0x3] }
 0x469   : > { %5693 = vmatprep.subr.bf16.mxu1 %v17909_v14  ;;  %v17931_v14 = vld [vmem:[#allocation11 + $0x520] ss:$8 sps:$4 sm:$0xff]  }
 0x46a   : > { %v3108_v0 = vld [vmem:[#allocation3 + $0x40] sm:$0xfc] }
 0x46c   : > { %5694 = vmatpush1.bf16.msra.mxu1 %v17907_v26  ;;  %v2989_v26 = vld [vmem:[#allocation3 + $0x108] sm:$0xfe] }
 0x46d   : > { %5695 = vmatprep.subr.bf16.mxu1 %v17912_v16  ;;  %v2991_v16 = vld [vmem:[#allocation3 + $0x118] sm:$0x1]  ;;  %v3069_v37 = vrot.slane %v2989_v26, 1  ;;  %v17955_v26 = vld [vmem:[#allocation11 + $0x5a0] ss:$8 sps:$4 sm:$0xff]  }
 0x470   : > { %5696 = vmatpush1.bf16.msra.mxu1 %v17910_v17  ;;  %v3090_v17 = vpack.c.bf16 %v3044_v9, %v3038_v13  ;;  %v17946_v9 = vld [vmem:[#allocation11 + $0x570] ss:$8 sps:$4 sm:$0xff]  }
 0x471   : > { %5697 = vmatprep.subr.bf16.mxu1 %v17915_v50  ;;  %v3053_v50 = vsel %vm799_vm0, %v3051_v6, %v3052_v7  ;;  %v17948_v6 = vld [vmem:[#allocation11 + $0x574] ss:$8 sps:$4 sm:$0xff]   ;;  %v17952_v13 = vld [vmem:[#allocation11 + $0x590] ss:$8 sps:$4 sm:$0xff]  }
 0x474   : > { %5698 = vmatpush1.bf16.msra.mxu1 %v17913_v19  ;;  %v17936_v19 = vld [vmem:[#allocation11 + $0x534] ss:$8 sps:$4 sm:$0xff]  }
 0x475   : > { %5699 = vmatprep.subr.bf16.mxu1 %v17918_v20  ;;  %v2976_v20 = vld [vmem:[#allocation3 + $0xa0] sm:$0xfe] }
 0x476   : > { %v3048_v32 = vrot.slane %v2976_v20, 1  ;;  %v17966_v20 = vld [vmem:[#allocation11 + $0x5d4] ss:$8 sps:$4 sm:$0xff]  }
 0x478   : > { %5700 = vmatpush1.bf16.msra.mxu1 %v17916_v21  ;;  %v2978_v21 = vld [vmem:[#allocation3 + $0xb0] sm:$0x1] }
 0x479   : > { %5701 = vmatprep.subr.bf16.mxu1 %v17921_v23  ;;  %v3093_v23 = vpack.c.bf16 %v3059_v10, %v3053_v50  ;;  %v3049_v33 = vrot.slane %v2978_v21, 1  ;;  %v17951_v10 = vld [vmem:[#allocation11 + $0x584] ss:$8 sps:$4 sm:$0xff]   ;;  %v17964_v21 = vld [vmem:[#allocation11 + $0x5d0] ss:$8 sps:$4 sm:$0xff]  }
 0x47a   : > { %v17963_v50 = vld [vmem:[#allocation11 + $0x5c4] ss:$8 sps:$4 sm:$0xff]  }
 0x47b   : > { %v3050_v22 = vsel %vm799_vm0, %v3048_v32, %v3049_v33  ;;  %v3106_v32 = vld [vmem:[#allocation3 + $0x30] sm:$0x3]  ;;  %v3174_v33 = vrot.slane %v3108_v0, 2 }
 0x47c   : > { %5702 = vmatpush1.bf16.msra.mxu1 %v17919_v25  ;;  %v2985_v25 = vld [vmem:[#allocation3 + $0xe8] sm:$0xfe]  ;;  %v3092_v55 = vpack.c.bf16 %v3056_v39, %v3050_v22  ;;  %v3189_v39 = vrot.slane %v3117_v18, 2  ;;  %v3169_v22 = vrot.slane %v3106_v32, 2  ;;  %v3131_v18 = vld [vmem:[#allocation3 + $0xf8] sm:$0x3] }
 0x47d   : > { %5703 = vmatprep.subr.bf16.mxu1 %v17924_v30  ;;  %v3070_v30 = vrot.slane %v2991_v16, 1  ;;  %v3063_v36 = vrot.slane %v2985_v25, 1  ;;  %v17960_v16 = vld [vmem:[#allocation11 + $0x5b4] ss:$8 sps:$4 sm:$0xff]   ;;  %v17967_v25 = vld [vmem:[#allocation11 + $0x5e0] ss:$8 sps:$4 sm:$0xff]  }
 0x47f   : > { %v3071_v40 = vsel %vm799_vm0, %v3069_v37, %v3070_v30  ;;  %v3065_v57 = vsel %vm799_vm0, %v3063_v36, %v3064_v28  ;;  %v3119_v37 = vld [vmem:[#allocation3 + $0x98] sm:$0x3]  ;;  %v3113_v36 = vld [vmem:[#allocation3 + $0x68] sm:$0xfc] }
 0x480   : > { %5704 = vmatpush1.bf16.msra.mxu1 %v17922_v41  ;;  %v2988_v41 = vld [vmem:[#allocation3 + $0x100] sm:$0xfe]  ;;  %v3115_v28 = vld [vmem:[#allocation3 + $0x78] sm:$0x3] }
 0x481   : > { %5746 = vmatprep.subr.bf16.mxu1 %v17927_v46  ;;  %v17937_v46 = vld [vmem:[#allocation11 + $0x540] ss:$8 sps:$4 sm:$0xff]   ;;  %v3066_v60 = vrot.slane %v2988_v41, 1  ;;  %v17972_v30 = vld [vmem:[#allocation11 + $0x5f4] ss:$8 sps:$4 sm:$0xff]   ;;  %v3184_v54 = vrot.slane %v3115_v28, 2 }
 0x482   : > { %v17970_v41 = vld [vmem:[#allocation11 + $0x5f0] ss:$8 sps:$4 sm:$0xff]   ;;  %v3208_v28 = vrot.slane %v3131_v18, 2 }
 0x483   : > { %5706 = vmatmul.mubr.bf16.vlgmr.msra.gmra.mrb[0].mxu1 %v3088_v62  ;;  %v3105_v62 = vld [vmem:[#allocation3 + $0x28] sm:$0xfc]  ;;  %v3068_v2 = vsel %vm799_vm0, %v3066_v60, %v3067_v61  ;;  %v3127_v61 = vld [vmem:[#allocation3 + $0xd8] sm:$0x3] }
 0x484   : > { %5715 = vmatprep.mubr.bf16.mxu1 %v3091_v38  ;;  %5747 = vmatpush1.bf16.msra.mxu1 %v17925_v11  ;;  %v3095_v11 = vpack.c.bf16 %v3071_v40, %v3065_v57  ;;  %v3060_v38 = vrot.slane %v2984_v56, 1  ;;  %v3171_v63 = vrot.slane %v3105_v62, 2  ;;  %v3190_v40 = vrot.slane %v3119_v37, 2  ;;  %v3118_v56 = vld [vmem:[#allocation3 + $0x90] sm:$0x3] }
 0x485   : > { %5748 = vmatprep.subr.bf16.mxu1 %v17930_v15  ;;  %v3177_v15 = vrot.slane %v3109_v53, 2  ;;  %v3183_v53 = vrot.slane %v3113_v36, 2  ;;  %v3125_v60 = vld [vmem:[#allocation3 + $0xc8] sm:$0xfc] }
 0x486   : > { %v3191_v57 = vsel %vm872_vm1, %v3189_v39, %v3190_v40 }
 0x487   : > { %v3179_v3 = vsel %vm872_vm1, %v3177_v15, %v3178_v12  ;;  %v3185_v44 = vsel %vm872_vm1, %v3183_v53, %v3184_v54  ;;  %v17978_v15 = vld [vmem:[#allocation11 + $0x614] ss:$8 sps:$4 sm:$0xff]   ;;  %v3112_v12 = vld [vmem:[#allocation3 + $0x60] sm:$0xfc] }
 0x488   : > { %5749 = vmatpush1.bf16.msra.mxu1 %v17928_v8  ;;  %v3062_v8 = vsel %vm799_vm0, %v3060_v38, %v3061_v52  ;;  %v3235_v38 = vpack.c.bf16 %v3191_v57, %v3185_v44  ;;  %v3128_v57 = vld [vmem:[#allocation3 + $0xe0] sm:$0xfc] }
 0x489   : > { %5750 = vmatprep.subr.bf16.mxu1 %v17933_v5  ;;  %v3094_v29 = vpack.c.bf16 %v3068_v2, %v3062_v8  ;;  %v3173_v5 = vsel %vm872_vm1, %v3171_v63, %v3172_v1  ;;  %v3121_v63 = vld [vmem:[#allocation3 + $0xa8] sm:$0xfc]  ;;  %v3123_v1 = vld [vmem:[#allocation3 + $0xb8] sm:$0x3]  ;;  %v3201_v2 = vrot.slane %v3125_v60, 2 }
 0x48a   : > { %v3233_v7 = vpack.c.bf16 %v3179_v3, %v3173_v5  ;;  %v3202_v3 = vrot.slane %v3127_v61, 2  ;;  %v17976_v8 = vld [vmem:[#allocation11 + $0x610] ss:$8 sps:$4 sm:$0xff]   ;;  %v17981_v5 = vld [vmem:[#allocation11 + $0x624] ss:$8 sps:$4 sm:$0xff]   ;;  %v3204_v61 = vrot.slane %v3128_v57, 2 }
 0x48b   : > { %5716 = vmatmul.mubr.bf16.gmra.mrb[4].mxu1 %v3090_v17  ;;  %v17958_v17 = vld [vmem:[#allocation11 + $0x5b0] ss:$8 sps:$4 sm:$0xff]   ;;  %v17993_v44 = vld [vmem:[#allocation11 + $0x664] ss:$8 sps:$4 sm:$0xff]  }
 0x48c   : > { %5725 = vmatprep.mubr.bf16.mxu1 %v3093_v23  ;;  %5751 = vmatpush1.bf16.msra.mxu1 %v17931_v14  ;;  %v17957_v14 = vld [vmem:[#allocation11 + $0x5a4] ss:$8 sps:$4 sm:$0xff]   ;;  %v17988_v60 = vld [vmem:[#allocation11 + $0x650] ss:$8 sps:$4 sm:$0xff]  }
 0x48d   : > { %5752 = vmatprep.subr.bf16.mxu1 %v17936_v19  ;;  %v17961_v19 = vld [vmem:[#allocation11 + $0x5c0] ss:$8 sps:$4 sm:$0xff]   ;;  %v17969_v23 = vld [vmem:[#allocation11 + $0x5e4] ss:$8 sps:$4 sm:$0xff]  }
 0x490   : > { %5753 = vmatpush1.bf16.msra.mxu1 %v17934_v31  ;;  %v3104_v31 = vld [vmem:[#allocation3 + $0x20] sm:$0xfc] }
 0x491   : > { %5754 = vmatprep.subr.bf16.mxu1 %v17939_v35  ;;  %v3175_v35 = vrot.slane %v3110_v24, 2  ;;  %v3168_v42 = vrot.slane %v3104_v31, 2  ;;  %v17982_v31 = vld [vmem:[#allocation11 + $0x630] ss:$8 sps:$4 sm:$0xff]  }
 0x493   : > { %5726 = vmatmul.mubr.bf16.gmra.mrb[8].mxu1 %v3092_v55  ;;  %v3176_v55 = vsel %vm872_vm1, %v3174_v33, %v3175_v35  ;;  %v3170_v45 = vsel %vm872_vm1, %v3168_v42, %v3169_v22  ;;  %v17987_v35 = vld [vmem:[#allocation11 + $0x644] ss:$8 sps:$4 sm:$0xff]  }
 0x494   : > { %5735 = vmatprep.mubr.bf16.mxu1 %v3095_v11  ;;  %5755 = vmatpush1.bf16.msra.mxu1 %v17937_v46  ;;  %v17975_v46 = vld [vmem:[#allocation11 + $0x604] ss:$8 sps:$4 sm:$0xff]   ;;  %v17973_v11 = vld [vmem:[#allocation11 + $0x600] ss:$8 sps:$4 sm:$0xff]   ;;  %v3232_v62 = vpack.c.bf16 %v3176_v55, %v3170_v45  ;;  %v17990_v55 = vld [vmem:[#allocation11 + $0x654] ss:$8 sps:$4 sm:$0xff]  }
 0x495   : > { %5756 = vmatprep.subr.bf16.mxu1 %v17942_v58  ;;  %v3116_v58 = vld [vmem:[#allocation3 + $0x80] sm:$0xfc]  ;;  %v3134_v42 = vld [vmem:[#allocation3 + $0x110] sm:$0x3] }
 0x496   : > { %v3186_v52 = vrot.slane %v3116_v58, 2  ;;  %v3130_v58 = vld [vmem:[#allocation3 + $0xf0] sm:$0x3] }
 0x498   : > { %5757 = vmatpush1.bf16.msra.mxu1 %v17940_v27  ;;  %v3114_v27 = vld [vmem:[#allocation3 + $0x70] sm:$0x3] }
 0x499   : > { %5758 = vmatprep.subr.bf16.mxu1 %v17945_v49  ;;  %v3187_v49 = vrot.slane %v3118_v56, 2 }
 0x49b   : > { %5736 = vmatmul.mubr.bf16.gmra.mrb[12].mxu1 %v3094_v29  ;;  %v3181_v29 = vrot.slane %v3114_v27, 2 }
 0x49c   : > { %5759 = vmatpush1.bf16.msra.mxu1 %v17943_v34  ;;  %5778 = vmatprep.mubr.bf16.mxu1 %v3233_v7  ;;  %v3180_v34 = vrot.slane %v3112_v12, 2  ;;  %v3196_v7 = vrot.slane %v3123_v1, 2  ;;  %v3252_v12 = vld [vmem:[#allocation3 + $0x68] sm:$0xff] }
 0x49d   : > { %5760 = vmatprep.subr.bf16.mxu1 %v17948_v6  ;;  %v3195_v6 = vrot.slane %v3121_v63, 2  ;;  %v17996_v63 = vld [vmem:[#allocation11 + $0x674] ss:$8 sps:$4 sm:$0xff]  }
 0x4a0   : > { %5761 = vmatpush1.bf16.msra.mxu1 %v17946_v9  ;;  %v3188_v9 = vsel %vm872_vm1, %v3186_v52, %v3187_v49  ;;  %v3250_v49 = vld [vmem:[#allocation3 + $0x48] sm:$0xff] }
 0x4a1   : > { %5762 = vmatprep.subr.bf16.mxu1 %v17951_v10  ;;  %v3203_v10 = vsel %vm872_vm1, %v3201_v2, %v3202_v3  ;;  %v3266_v1 = vpack.c.bf16 %v3252_v12, %v3250_v49  ;;  %v17994_v2 = vld [vmem:[#allocation11 + $0x670] ss:$8 sps:$4 sm:$0xff]   ;;  %v17999_v3 = vld [vmem:[#allocation11 + $0x684] ss:$8 sps:$4 sm:$0xff]  }
 0x4a4   : > { %5763 = vmatpush1.bf16.msra.mxu1 %v17949_v51  ;;  %v3124_v51 = vld [vmem:[#allocation3 + $0xc0] sm:$0xfc] }
 0x4a5   : > { %5764 = vmatprep.subr.bf16.mxu1 %v17954_v43  ;;  %v3126_v43 = vld [vmem:[#allocation3 + $0xd0] sm:$0x3]  ;;  %v3198_v0 = vrot.slane %v3124_v51, 2  ;;  %v18009_v51 = vld [vmem:[#allocation11 + $0x6c0] ss:$8 sps:$4 sm:$0xff]  }
 0x4a6   : > { %v3199_v24 = vrot.slane %v3126_v43, 2  ;;  %v18014_v43 = vld [vmem:[#allocation11 + $0x6d4] ss:$8 sps:$4 sm:$0xff]  }
 0x4a8   : > { %5765 = vmatpush1.bf16.msra.mxu1 %v17952_v13  ;;  %v3182_v13 = vsel %vm872_vm1, %v3180_v34, %v3181_v29  ;;  %v3200_v39 = vsel %vm872_vm1, %v3198_v0, %v3199_v24  ;;  %v18002_v34 = vld [vmem:[#allocation11 + $0x694] ss:$8 sps:$4 sm:$0xff]   ;;  %v18000_v29 = vld [vmem:[#allocation11 + $0x690] ss:$8 sps:$4 sm:$0xff]   ;;  %v3254_v24 = vld [vmem:[#allocation3 + $0x88] sm:$0xff] }
 0x4a9   : > { %5766 = vmatprep.subr.bf16.mxu1 %v17957_v14  ;;  %v17979_v14 = vld [vmem:[#allocation11 + $0x620] ss:$8 sps:$4 sm:$0xff]  }
 0x4ac   : > { %5767 = vmatpush1.bf16.msra.mxu1 %v17955_v26  ;;  %v3133_v26 = vld [vmem:[#allocation3 + $0x108] sm:$0xfc] }
 0x4ad   : > { %5768 = vmatprep.subr.bf16.mxu1 %v17960_v16  ;;  %v3135_v16 = vld [vmem:[#allocation3 + $0x118] sm:$0x3]  ;;  %v3213_v37 = vrot.slane %v3133_v26, 2  ;;  %v18015_v26 = vld [vmem:[#allocation11 + $0x6e0] ss:$8 sps:$4 sm:$0xff]  }
 0x4b0   : > { %5769 = vmatpush1.bf16.msra.mxu1 %v17958_v17  ;;  %v3234_v17 = vpack.c.bf16 %v3188_v9, %v3182_v13  ;;  %v18006_v9 = vld [vmem:[#allocation11 + $0x6b0] ss:$8 sps:$4 sm:$0xff]  }
 0x4b1   : > { %5770 = vmatprep.subr.bf16.mxu1 %v17963_v50  ;;  %v3197_v50 = vsel %vm872_vm1, %v3195_v6, %v3196_v7  ;;  %v18003_v6 = vld [vmem:[#allocation11 + $0x6a0] ss:$8 sps:$4 sm:$0xff]   ;;  %v18008_v7 = vld [vmem:[#allocation11 + $0x6b4] ss:$8 sps:$4 sm:$0xff]   ;;  %v18012_v13 = vld [vmem:[#allocation11 + $0x6d0] ss:$8 sps:$4 sm:$0xff]  }
 0x4b4   : > { %5771 = vmatpush1.bf16.msra.mxu1 %v17961_v19  ;;  %v17984_v19 = vld [vmem:[#allocation11 + $0x634] ss:$8 sps:$4 sm:$0xff]  }
 0x4b5   : > { %5772 = vmatprep.subr.bf16.mxu1 %v17966_v20  ;;  %v3120_v20 = vld [vmem:[#allocation3 + $0xa0] sm:$0xfc] }
 0x4b6   : > { %v3192_v32 = vrot.slane %v3120_v20, 2  ;;  %v3256_v20 = vld [vmem:[#allocation3 + $0xa8] sm:$0xff] }
 0x4b7   : > { %v3268_v18 = vpack.c.bf16 %v3256_v20, %v3254_v24  ;;  %v18059_v20 = vld [vmem:[#allocation11 + $0x7c4] ss:$8 sps:$4 sm:$0xff]   ;;  %v18062_v24 = vld [vmem:[#allocation11 + $0x7d4] ss:$8 sps:$4 sm:$0xff]  }
 0x4b8   : > { %5773 = vmatpush1.bf16.msra.mxu1 %v17964_v21  ;;  %v3122_v21 = vld [vmem:[#allocation3 + $0xb0] sm:$0x3] }
 0x4b9   : > { %5774 = vmatprep.subr.bf16.mxu1 %v17969_v23  ;;  %v3237_v23 = vpack.c.bf16 %v3203_v10, %v3197_v50  ;;  %v3193_v33 = vrot.slane %v3122_v21, 2  ;;  %v18011_v10 = vld [vmem:[#allocation11 + $0x6c4] ss:$8 sps:$4 sm:$0xff]  }
 0x4ba   : > { %v18023_v50 = vld [vmem:[#allocation11 + $0x704] ss:$8 sps:$4 sm:$0xff]  }
 0x4bb   : > { %v3194_v22 = vsel %vm872_vm1, %v3192_v32, %v3193_v33  ;;  %v3249_v21 = vld [vmem:[#allocation3 + $0x40] sm:$0xff]  ;;  %v3260_v32 = vld [vmem:[#allocation3 + $0xe8] sm:$0xff] }
 0x4bc   : > { %5775 = vmatpush1.bf16.msra.mxu1 %v17967_v25  ;;  %v3129_v25 = vld [vmem:[#allocation3 + $0xe8] sm:$0xfc]  ;;  %v3236_v53 = vpack.c.bf16 %v3200_v39, %v3194_v22  ;;  %v3253_v33 = vld [vmem:[#allocation3 + $0x80] sm:$0xff] }
 0x4bd   : > { %5776 = vmatprep.subr.bf16.mxu1 %v17972_v30  ;;  %v3214_v30 = vrot.slane %v3135_v16, 2  ;;  %v3207_v36 = vrot.slane %v3129_v25, 2  ;;  %v18020_v16 = vld [vmem:[#allocation11 + $0x6f4] ss:$8 sps:$4 sm:$0xff]  }
 0x4be   : > { %v18026_v25 = vld [vmem:[#allocation11 + $0x714] ss:$8 sps:$4 sm:$0xff]  }
 0x4bf   : > { %v3215_v40 = vsel %vm872_vm1, %v3213_v37, %v3214_v30  ;;  %v3209_v54 = vsel %vm872_vm1, %v3207_v36, %v3208_v28  ;;  %v18024_v37 = vld [vmem:[#allocation11 + $0x710] ss:$8 sps:$4 sm:$0xff]   ;;  %v18029_v30 = vld [vmem:[#allocation11 + $0x724] ss:$8 sps:$4 sm:$0xff]   ;;  %v18032_v39 = vld [vmem:[#allocation11 + $0x734] ss:$8 sps:$4 sm:$0xff]  }
 0x4c0   : > { %5777 = vmatpush1.bf16.msra.mxu1 %v17970_v41  ;;  %v3132_v41 = vld [vmem:[#allocation3 + $0x100] sm:$0xfc]  ;;  %v3239_v56 = vpack.c.bf16 %v3215_v40, %v3209_v54  ;;  %v3258_v28 = vld [vmem:[#allocation3 + $0xc8] sm:$0xff] }
 0x4c1   : > { %5819 = vmatprep.subr.bf16.mxu1 %v17975_v46  ;;  %v17985_v46 = vld [vmem:[#allocation11 + $0x640] ss:$8 sps:$4 sm:$0xff]   ;;  %v3210_v45 = vrot.slane %v3132_v41, 2  ;;  %v3270_v40 = vpack.c.bf16 %v3260_v32, %v3258_v28  ;;  %v18030_v41 = vld [vmem:[#allocation11 + $0x730] ss:$8 sps:$4 sm:$0xff]  }
 0x4c2   : > { %v3259_v22 = vld [vmem:[#allocation3 + $0xe0] sm:$0xff]  ;;  %v3286_v54 = vld [vmem:[#allocation3 + $0x68] sm:$0xfe] }
 0x4c3   : > { %5779 = vmatmul.mubr.bf16.vlgmr.msra.gmra.mrb[0].mxu1 %v3232_v62  ;;  %v3205_v62 = vrot.slane %v3130_v58, 2  ;;  %v18038_v58 = vld [vmem:[#allocation11 + $0x754] ss:$8 sps:$4 sm:$0xff]   ;;  %v18063_v28 = vld [vmem:[#allocation11 + $0x7e0] ss:$8 sps:$4 sm:$0xff]  }
 0x4c4   : > { %5788 = vmatprep.mubr.bf16.mxu1 %v3235_v38  ;;  %5820 = vmatpush1.bf16.msra.mxu1 %v17973_v11  ;;  %v3211_v11 = vrot.slane %v3134_v42, 2  ;;  %v17991_v38 = vld [vmem:[#allocation11 + $0x660] ss:$8 sps:$4 sm:$0xff]   ;;  %v18035_v42 = vld [vmem:[#allocation11 + $0x744] ss:$8 sps:$4 sm:$0xff]  }
 0x4c5   : > { %5821 = vmatprep.subr.bf16.mxu1 %v17978_v15  ;;  %v3206_v27 = vsel %vm872_vm1, %v3204_v61, %v3205_v62  ;;  %v3354_v61 = vrot.slane %v3286_v54, 1  ;;  %v3281_v32 = vld [vmem:[#allocation3 + $0x40] sm:$0xfe]  ;;  %v3292_v54 = vld [vmem:[#allocation3 + $0x98] sm:$0x1] }
 0x4c6   : > { %v3212_v15 = vsel %vm872_vm1, %v3210_v45, %v3211_v11  ;;  %v3282_v11 = vld [vmem:[#allocation3 + $0x48] sm:$0xfe] }
 0x4c7   : > { %v3238_v52 = vpack.c.bf16 %v3212_v15, %v3206_v27  ;;  %v18041_v15 = vld [vmem:[#allocation11 + $0x764] ss:$8 sps:$4 sm:$0xff]   ;;  %v3348_v12 = vrot.slane %v3282_v11, 1  ;;  %v18066_v11 = vld [vmem:[#allocation11 + $0x7f0] ss:$8 sps:$4 sm:$0xff]  }
 0x4c8   : > { %5822 = vmatpush1.bf16.msra.mxu1 %v17976_v8  ;;  %v17997_v8 = vld [vmem:[#allocation11 + $0x680] ss:$8 sps:$4 sm:$0xff]  }
 0x4c9   : > { %5823 = vmatprep.subr.bf16.mxu1 %v17981_v5  ;;  %v18005_v5 = vld [vmem:[#allocation11 + $0x6a4] ss:$8 sps:$4 sm:$0xff]  }
 0x4cb   : > { %5789 = vmatmul.mubr.bf16.gmra.mrb[4].mxu1 %v3234_v17  ;;  %v18018_v17 = vld [vmem:[#allocation11 + $0x6f0] ss:$8 sps:$4 sm:$0xff]  }
 0x4cc   : > { %5798 = vmatprep.mubr.bf16.mxu1 %v3237_v23  ;;  %5824 = vmatpush1.bf16.msra.mxu1 %v17979_v14  ;;  %v18017_v14 = vld [vmem:[#allocation11 + $0x6e4] ss:$8 sps:$4 sm:$0xff]   ;;  %v18021_v23 = vld [vmem:[#allocation11 + $0x700] ss:$8 sps:$4 sm:$0xff]  }
 0x4cd   : > { %5825 = vmatprep.subr.bf16.mxu1 %v17984_v19  ;;  %v3251_v19 = vld [vmem:[#allocation3 + $0x60] sm:$0xff] }
 0x4ce   : > { %v3265_v0 = vpack.c.bf16 %v3251_v19, %v3249_v21  ;;  %v18054_v19 = vld [vmem:[#allocation11 + $0x7b0] ss:$8 sps:$4 sm:$0xff]  }
 0x4cf   : > { %v18132_v21 = vld [vmem:[#allocation14 + $0x50] ss:$8 sps:$4 sm:$0xff]  }
 0x4d0   : > { %5826 = vmatpush1.bf16.msra.mxu1 %v17982_v31  ;;  %v3255_v31 = vld [vmem:[#allocation3 + $0xa0] sm:$0xff] }
 0x4d1   : > { %5827 = vmatprep.subr.bf16.mxu1 %v17987_v35  ;;  %v18027_v35 = vld [vmem:[#allocation11 + $0x720] ss:$8 sps:$4 sm:$0xff]   ;;  %v3267_v36 = vpack.c.bf16 %v3255_v31, %v3253_v33  ;;  %v18138_v31 = vld [vmem:[#allocation14 + $0x70] ss:$8 sps:$4 sm:$0xff]  }
 0x4d2   : > { %v3285_v33 = vld [vmem:[#allocation3 + $0x60] sm:$0xfe] }
 0x4d3   : > { %5799 = vmatmul.mubr.bf16.gmra.mrb[8].mxu1 %v3236_v53  ;;  %v18033_v53 = vld [vmem:[#allocation11 + $0x740] ss:$8 sps:$4 sm:$0xff]  }
 0x4d4   : > { %5808 = vmatprep.mubr.bf16.mxu1 %v3239_v56  ;;  %5828 = vmatpush1.bf16.msra.mxu1 %v17985_v46  ;;  %v3257_v46 = vld [vmem:[#allocation3 + $0xc0] sm:$0xff] }
 0x4d5   : > { %5829 = vmatprep.subr.bf16.mxu1 %v17990_v55  ;;  %v3288_v55 = vld [vmem:[#allocation3 + $0x78] sm:$0x1]  ;;  %v3269_v57 = vpack.c.bf16 %v3259_v22, %v3257_v46  ;;  %v20358_v56 = vld [vmem:[#allocation2] sm:$0xff]  ;;  %v3290_v22 = vld [vmem:[#allocation3 + $0x88] sm:$0xfe]  ;;  %v3351_v46 = vrot.slane %v3285_v33, 1 }
 0x4d6   : > { %v3272_v45 = vpack.c.bf16 %v20358_v56, %v20316_v59  ;;  %v3355_v62 = vrot.slane %v3288_v55, 1  ;;  %v3271_v49 = vpack.c.bf16 %v20358_v56, %v20322_v4  ;;  %v18045_v4 = vld [vmem:[#allocation11 + $0x780] ss:$8 sps:$4 sm:$0xff]  }
 0x4d7   : > { %v18141_v55 = vld [vmem:[#allocation14 + $0x80] ss:$8 sps:$4 sm:$0xff]  }
 0x4d8   : > { %5830 = vmatpush1.bf16.msra.mxu1 %v17988_v60  ;;  %v3284_v60 = vld [vmem:[#allocation3 + $0x58] sm:$0x1]  ;;  %v3306_v33 = vld [vmem:[#allocation3 + $0x108] sm:$0xfe] }
 0x4d9   : > { %5831 = vmatprep.subr.bf16.mxu1 %v17993_v44  ;;  %v18036_v44 = vld [vmem:[#allocation11 + $0x750] ss:$8 sps:$4 sm:$0xff]   ;;  %v3349_v27 = vrot.slane %v3284_v60, 1  ;;  %v3345_v60 = vrot.slane %v3281_v32, 1  ;;  %v18075_v32 = vld [vmem:[#allocation11 + $0x820] ss:$8 sps:$4 sm:$0xff]  }
 0x4db   : > { %5809 = vmatmul.mubr.bf16.gmra.mrb[12].mxu1 %v3238_v52  ;;  %v18039_v52 = vld [vmem:[#allocation11 + $0x760] ss:$8 sps:$4 sm:$0xff]   ;;  %v3350_v59 = vsel %vm799_vm0, %v3348_v12, %v3349_v27 }
 0x4dc   : > { %5832 = vmatpush1.bf16.msra.mxu1 %v17991_v38  ;;  %5851 = vmatprep.mubr.bf16.mxu1 %v3266_v1  ;;  %v3356_v38 = vsel %vm799_vm0, %v3354_v61, %v3355_v62  ;;  %v18071_v62 = vld [vmem:[#allocation11 + $0x804] ss:$8 sps:$4 sm:$0xff]  }
 0x4dd   : > { %5833 = vmatprep.subr.bf16.mxu1 %v17996_v63  ;;  %v18044_v63 = vld [vmem:[#allocation11 + $0x774] ss:$8 sps:$4 sm:$0xff]   ;;  %v3410_v1 = vpack.c.bf16 %v3356_v38, %v3350_v59  ;;  %v3295_v38 = vld [vmem:[#allocation3 + $0xb0] sm:$0x1] }
 0x4de   : > { %v3293_v27 = vld [vmem:[#allocation3 + $0xa0] sm:$0xfe] }
 0x4df   : > { %v3289_v59 = vld [vmem:[#allocation3 + $0x80] sm:$0xfe] }
 0x4e0   : > { %5834 = vmatpush1.bf16.msra.mxu1 %v17994_v2  ;;  %v18117_v2 = vld [vmem:[#allocation14] ss:$8 sps:$4 sm:$0xff]  }
 0x4e1   : > { %5835 = vmatprep.subr.bf16.mxu1 %v17999_v3  ;;  %v18119_v3 = vld [vmem:[#allocation14 + $0x4] ss:$8 sps:$4 sm:$0xff]  }
 0x4e2   : > { %8906 = vmatprep.subr.bf16.mxu0 %v18119_v3  ;;  %v3302_v3 = vld [vmem:[#allocation3 + $0xe8] sm:$0xfe] }
 0x4e3   : > { %8907 = vmatpush1.bf16.msra.mxu0 %v18117_v2  ;;  %v18069_v2 = vld [vmem:[#allocation11 + $0x800] ss:$8 sps:$4 sm:$0xff]  }
 0x4e4   : > { %5836 = vmatpush1.bf16.msra.mxu1 %v17997_v8  ;;  %v18042_v8 = vld [vmem:[#allocation11 + $0x770] ss:$8 sps:$4 sm:$0xff]  }
 0x4e5   : > { %5837 = vmatprep.subr.bf16.mxu1 %v18002_v34  ;;  %v18122_v34 = vld [vmem:[#allocation14 + $0x14] ss:$8 sps:$4 sm:$0xff]  }
 0x4e6   : > { %8908 = vmatprep.subr.bf16.mxu0 %v18122_v34 }
 0x4e8   : > { %5838 = vmatpush1.bf16.msra.mxu1 %v18000_v29  ;;  %v18047_v29 = vld [vmem:[#allocation11 + $0x784] ss:$8 sps:$4 sm:$0xff]  }
 0x4e9   : > { %5839 = vmatprep.subr.bf16.mxu1 %v18005_v5  ;;  %v18120_v5 = vld [vmem:[#allocation14 + $0x10] ss:$8 sps:$4 sm:$0xff]  }
 0x4ea   : > { %8909 = vmatpush1.bf16.msra.mxu0 %v18120_v5  ;;  %v18074_v5 = vld [vmem:[#allocation11 + $0x814] ss:$8 sps:$4 sm:$0xff]  }
 0x4ec   : > { %5840 = vmatpush1.bf16.msra.mxu1 %v18003_v6  ;;  %v18125_v6 = vld [vmem:[#allocation14 + $0x24] ss:$8 sps:$4 sm:$0xff]  }
 0x4ed   : > { %5841 = vmatprep.subr.bf16.mxu1 %v18008_v7  ;;  %v18050_v7 = vld [vmem:[#allocation11 + $0x794] ss:$8 sps:$4 sm:$0xff]   ;;  %8910 = vmatprep.subr.bf16.mxu0 %v18125_v6  ;;  %v3291_v6 = vld [vmem:[#allocation3 + $0x90] sm:$0x1] }
 0x4f0   : > { %5842 = vmatpush1.bf16.msra.mxu1 %v18006_v9  ;;  %v18123_v9 = vld [vmem:[#allocation14 + $0x20] ss:$8 sps:$4 sm:$0xff]  }
 0x4f1   : > { %5843 = vmatprep.subr.bf16.mxu1 %v18011_v10  ;;  %v18128_v10 = vld [vmem:[#allocation14 + $0x34] ss:$8 sps:$4 sm:$0xff]   ;;  %8911 = vmatpush1.bf16.msra.mxu0 %v18123_v9 }
 0x4f2   : > { %8912 = vmatprep.subr.bf16.mxu0 %v18128_v10  ;;  %v3298_v10 = vld [vmem:[#allocation3 + $0xc8] sm:$0xfe] }
 0x4f4   : > { %5844 = vmatpush1.bf16.msra.mxu1 %v18009_v51  ;;  %v18048_v51 = vld [vmem:[#allocation11 + $0x790] ss:$8 sps:$4 sm:$0xff]  }
 0x4f5   : > { %5845 = vmatprep.subr.bf16.mxu1 %v18014_v43  ;;  %v18053_v43 = vld [vmem:[#allocation11 + $0x7a4] ss:$8 sps:$4 sm:$0xff]  }
 0x4f8   : > { %5846 = vmatpush1.bf16.msra.mxu1 %v18012_v13  ;;  %v18126_v13 = vld [vmem:[#allocation14 + $0x30] ss:$8 sps:$4 sm:$0xff]  }
 0x4f9   : > { %5847 = vmatprep.subr.bf16.mxu1 %v18017_v14  ;;  %v18131_v14 = vld [vmem:[#allocation14 + $0x44] ss:$8 sps:$4 sm:$0xff]   ;;  %8913 = vmatpush1.bf16.msra.mxu0 %v18126_v13  ;;  %v3378_v13 = vrot.slane %v3302_v3, 1 }
 0x4fa   : > { %8914 = vmatprep.subr.bf16.mxu0 %v18131_v14 }
 0x4fc   : > { %5848 = vmatpush1.bf16.msra.mxu1 %v18015_v26  ;;  %v18051_v26 = vld [vmem:[#allocation11 + $0x7a0] ss:$8 sps:$4 sm:$0xff]  }
 0x4fd   : > { %5849 = vmatprep.subr.bf16.mxu1 %v18020_v16  ;;  %v18056_v16 = vld [vmem:[#allocation11 + $0x7b4] ss:$8 sps:$4 sm:$0xff]  }
 0x500   : > { %5850 = vmatpush1.bf16.msra.mxu1 %v18018_v17  ;;  %v18129_v17 = vld [vmem:[#allocation14 + $0x40] ss:$8 sps:$4 sm:$0xff]  }
 0x501   : > { %5892 = vmatprep.subr.bf16.mxu1 %v18023_v50  ;;  %v18134_v50 = vld [vmem:[#allocation14 + $0x54] ss:$8 sps:$4 sm:$0xff]   ;;  %8915 = vmatpush1.bf16.msra.mxu0 %v18129_v17  ;;  %v3357_v17 = vrot.slane %v3289_v59, 1  ;;  %v3430_v59 = vld [vmem:[#allocation3 + $0x68] sm:$0xfc] }
 0x502   : > { %8916 = vmatprep.subr.bf16.mxu0 %v18134_v50  ;;  %v3358_v50 = vrot.slane %v3291_v6, 1  ;;  %v3426_v6 = vld [vmem:[#allocation3 + $0x48] sm:$0xfc] }
 0x503   : > { %5852 = vmatmul.mubr.bf16.vlgmr.msra.gmra.mrb[0].mxu1 %v3265_v0  ;;  %v18057_v0 = vld [vmem:[#allocation11 + $0x7c0] ss:$8 sps:$4 sm:$0xff]  }
 0x504   : > { %5861 = vmatprep.mubr.bf16.mxu1 %v3268_v18  ;;  %5893 = vmatpush1.bf16.msra.mxu1 %v18021_v23  ;;  %v18137_v23 = vld [vmem:[#allocation14 + $0x64] ss:$8 sps:$4 sm:$0xff]   ;;  %v18140_v18 = vld [vmem:[#allocation14 + $0x74] ss:$8 sps:$4 sm:$0xff]  }
 0x505   : > { %5894 = vmatprep.subr.bf16.mxu1 %v18026_v25  ;;  %8917 = vmatpush1.bf16.msra.mxu0 %v18132_v21  ;;  %v18135_v25 = vld [vmem:[#allocation14 + $0x60] ss:$8 sps:$4 sm:$0xff]  }
 0x506   : > { %8918 = vmatprep.subr.bf16.mxu0 %v18137_v23 }
 0x508   : > { %5895 = vmatpush1.bf16.msra.mxu1 %v18024_v37  ;;  %v18060_v37 = vld [vmem:[#allocation11 + $0x7d0] ss:$8 sps:$4 sm:$0xff]  }
 0x509   : > { %5896 = vmatprep.subr.bf16.mxu1 %v18029_v30  ;;  %v18065_v30 = vld [vmem:[#allocation11 + $0x7e4] ss:$8 sps:$4 sm:$0xff]   ;;  %8919 = vmatpush1.bf16.msra.mxu0 %v18135_v25 }
 0x50a   : > { %8920 = vmatprep.subr.bf16.mxu0 %v18140_v18  ;;  %v3301_v18 = vld [vmem:[#allocation3 + $0xe0] sm:$0xfe] }
 0x50b   : > { %5862 = vmatmul.mubr.bf16.gmra.mrb[4].mxu1 %v3267_v36  ;;  %v18143_v36 = vld [vmem:[#allocation14 + $0x84] ss:$8 sps:$4 sm:$0xff]  }
 0x50c   : > { %5871 = vmatprep.mubr.bf16.mxu1 %v3270_v40  ;;  %5897 = vmatpush1.bf16.msra.mxu1 %v18027_v35  ;;  %v3287_v35 = vld [vmem:[#allocation3 + $0x70] sm:$0x1]  ;;  %v3296_v40 = vld [vmem:[#allocation3 + $0xb8] sm:$0x1] }
 0x50d   : > { %5898 = vmatprep.subr.bf16.mxu1 %v18032_v39  ;;  %v3294_v39 = vld [vmem:[#allocation3 + $0xa8] sm:$0xfe]  ;;  %8921 = vmatpush1.bf16.msra.mxu0 %v18138_v31  ;;  %v3359_v31 = vsel %vm799_vm0, %v3357_v17, %v3358_v50 }
 0x50e   : > { %8922 = vmatprep.subr.bf16.mxu0 %v18143_v36  ;;  %v18087_v17 = vld [vmem:[#allocation11 + $0x860] ss:$8 sps:$4 sm:$0xff]  }
 0x510   : > { %5899 = vmatpush1.bf16.msra.mxu1 %v18030_v41  ;;  %v18068_v41 = vld [vmem:[#allocation11 + $0x7f4] ss:$8 sps:$4 sm:$0xff]  }
 0x511   : > { %5900 = vmatprep.subr.bf16.mxu1 %v18035_v42  ;;  %v3283_v42 = vld [vmem:[#allocation3 + $0x50] sm:$0x1]  ;;  %8923 = vmatpush1.bf16.msra.mxu0 %v18141_v55 }
 0x512   : > { %v3346_v61 = vrot.slane %v3283_v42, 1 }
 0x513   : > { %5872 = vmatmul.mubr.bf16.gmra.mrb[8].mxu1 %v3269_v57  ;;  %v3366_v57 = vrot.slane %v3294_v39, 1  ;;  %v18080_v39 = vld [vmem:[#allocation11 + $0x834] ss:$8 sps:$4 sm:$0xff]  }
 0x514   : > { %5881 = vmatprep.mubr.bf16.mxu1 %v3272_v45  ;;  %5901 = vmatpush1.bf16.msra.mxu1 %v18033_v53  ;;  %v3352_v53 = vrot.slane %v3287_v35, 1  ;;  %v18146_v45 = vld [vmem:[#allocation14 + $0x94] ss:$8 sps:$4 sm:$0xff]  }
 0x515   : > { %5902 = vmatprep.subr.bf16.mxu1 %v18038_v58  ;;  %v3367_v58 = vrot.slane %v3296_v40, 1  ;;  %8924 = vmatprep.subr.bf16.mxu0 %v18146_v45  ;;  %v3308_v35 = vld [vmem:[#allocation3 + $0x118] sm:$0x1]  ;;  %v3297_v40 = vld [vmem:[#allocation3 + $0xc0] sm:$0xfe] }
 0x516   : > { %v3353_v12 = vsel %vm799_vm0, %v3351_v46, %v3352_v53  ;;  %v3384_v53 = vrot.slane %v3306_v33, 1  ;;  %v3369_v45 = vrot.slane %v3297_v40, 1  ;;  %v18107_v33 = vld [vmem:[#allocation11 + $0x8c4] ss:$8 sps:$4 sm:$0xff]  }
 0x517   : > { %v3429_v40 = vld [vmem:[#allocation3 + $0x60] sm:$0xfc] }
 0x518   : > { %5903 = vmatpush1.bf16.msra.mxu1 %v18036_v44  ;;  %v3360_v44 = vrot.slane %v3290_v22, 1  ;;  %v3375_v22 = vrot.slane %v3301_v18, 1  ;;  %v18096_v18 = vld [vmem:[#allocation11 + $0x890] ss:$8 sps:$4 sm:$0xff]  }
 0x519   : > { %5904 = vmatprep.subr.bf16.mxu1 %v18041_v15  ;;  %v3361_v15 = vrot.slane %v3292_v54, 1  ;;  %v3385_v54 = vrot.slane %v3308_v35, 1  ;;  %v18105_v35 = vld [vmem:[#allocation11 + $0x8c0] ss:$8 sps:$4 sm:$0xff]  }
 0x51b   : > { %5882 = vmatmul.mubr.bf16.gmra.mrb[12].mxu1 %v3271_v49  ;;  %v3368_v49 = vsel %vm799_vm0, %v3366_v57, %v3367_v58  ;;  %v18078_v58 = vld [vmem:[#allocation11 + $0x830] ss:$8 sps:$4 sm:$0xff]  }
 0x51c   : > { %5905 = vmatpush1.bf16.msra.mxu1 %v18039_v52  ;;  %5924 = vmatprep.mubr.bf16.mxu1 %v3410_v1  ;;  %v18144_v52 = vld [vmem:[#allocation14 + $0x90] ss:$8 sps:$4 sm:$0xff]   ;;  %v3347_v1 = vsel %vm799_vm0, %v3345_v60, %v3346_v61  ;;  %v18083_v60 = vld [vmem:[#allocation11 + $0x844] ss:$8 sps:$4 sm:$0xff]  }
 0x51d   : > { %5906 = vmatprep.subr.bf16.mxu1 %v18044_v63  ;;  %v18149_v63 = vld [vmem:[#allocation14 + $0xa4] ss:$8 sps:$4 sm:$0xff]   ;;  %v3409_v34 = vpack.c.bf16 %v3353_v12, %v3347_v1  ;;  %8925 = vmatpush1.bf16.msra.mxu0 %v18144_v52 }
 0x51e   : > { %8926 = vmatprep.subr.bf16.mxu0 %v18149_v63  ;;  %v3432_v63 = vld [vmem:[#allocation3 + $0x78] sm:$0x3] }
 0x520   : > { %5907 = vmatpush1.bf16.msra.mxu1 %v18042_v8  ;;  %v3304_v8 = vld [vmem:[#allocation3 + $0xf8] sm:$0x1] }
 0x521   : > { %5908 = vmatprep.subr.bf16.mxu1 %v18047_v29  ;;  %v3362_v29 = vsel %vm799_vm0, %v3360_v44, %v3361_v15  ;;  %v3379_v14 = vrot.slane %v3304_v8, 1  ;;  %v3311_v44 = vld [vmem:[#allocation3 + $0x130] sm:$0x1]  ;;  %v3386_v15 = vsel %vm799_vm0, %v3384_v53, %v3385_v54  ;;  %v18116_v53 = vld [vmem:[#allocation11 + $0x8f4] ss:$8 sps:$4 sm:$0xff]  }
 0x522   : > { %v3412_v9 = vpack.c.bf16 %v3368_v49, %v3362_v29  ;;  %v18081_v49 = vld [vmem:[#allocation11 + $0x840] ss:$8 sps:$4 sm:$0xff]   ;;  %v3388_v8 = vrot.slane %v3311_v44, 1 }
 0x523   : > { %v3380_v25 = vsel %vm799_vm0, %v3378_v13, %v3379_v14  ;;  %v3425_v54 = vld [vmem:[#allocation3 + $0x40] sm:$0xfc] }
 0x524   : > { %5909 = vmatpush1.bf16.msra.mxu1 %v18045_v4  ;;  %v3363_v4 = vrot.slane %v3293_v27, 1  ;;  %v3305_v27 = vld [vmem:[#allocation3 + $0x100] sm:$0xfe]  ;;  %v3489_v44 = vrot.slane %v3425_v54, 2  ;;  %v3451_v54 = vld [vmem:[#allocation3 + $0x110] sm:$0x3] }
 0x525   : > { %5910 = vmatprep.subr.bf16.mxu1 %v18050_v7  ;;  %v3364_v7 = vrot.slane %v3295_v38, 1  ;;  %v3307_v38 = vld [vmem:[#allocation3 + $0x110] sm:$0x1]  ;;  %v3381_v29 = vrot.slane %v3305_v27, 1 }
 0x527   : > { %v3365_v23 = vsel %vm799_vm0, %v3363_v4, %v3364_v7  ;;  %v3428_v4 = vld [vmem:[#allocation3 + $0x58] sm:$0x3]  ;;  %v3498_v7 = vrot.slane %v3430_v59, 2  ;;  %v3439_v59 = vld [vmem:[#allocation3 + $0xb0] sm:$0x3] }
 0x528   : > { %5911 = vmatpush1.bf16.msra.mxu1 %v18048_v51  ;;  %v3300_v51 = vld [vmem:[#allocation3 + $0xd8] sm:$0x1]  ;;  %v3411_v36 = vpack.c.bf16 %v3365_v23, %v3359_v31  ;;  %v3493_v13 = vrot.slane %v3428_v4, 2  ;;  %v18090_v23 = vld [vmem:[#allocation11 + $0x870] ss:$8 sps:$4 sm:$0xff]   ;;  %v3508_v4 = vrot.slane %v3439_v59, 2 }
 0x529   : > { %5912 = vmatprep.subr.bf16.mxu1 %v18053_v43  ;;  %v18147_v43 = vld [vmem:[#allocation14 + $0xa0] ss:$8 sps:$4 sm:$0xff]   ;;  %v3373_v21 = vrot.slane %v3300_v51, 1  ;;  %v18104_v31 = vld [vmem:[#allocation11 + $0x8b4] ss:$8 sps:$4 sm:$0xff]  }
 0x52a   : > { %8927 = vmatpush1.bf16.msra.mxu0 %v18147_v43  ;;  %v18089_v51 = vld [vmem:[#allocation11 + $0x864] ss:$8 sps:$4 sm:$0xff]   ;;  %v3492_v43 = vrot.slane %v3426_v6, 2  ;;  %v18156_v59 = vld [vmem:[#allocation14 + $0xd0] ss:$8 sps:$4 sm:$0xff]  }
 0x52c   : > { %5913 = vmatpush1.bf16.msra.mxu1 %v18051_v26  ;;  %v18152_v26 = vld [vmem:[#allocation14 + $0xb4] ss:$8 sps:$4 sm:$0xff]  }
 0x52d   : > { %5914 = vmatprep.subr.bf16.mxu1 %v18056_v16  ;;  %v18072_v16 = vld [vmem:[#allocation11 + $0x810] ss:$8 sps:$4 sm:$0xff]   ;;  %8928 = vmatprep.subr.bf16.mxu0 %v18152_v26 }
 0x530   : > { %5915 = vmatpush1.bf16.msra.mxu1 %v18054_v19  ;;  %v18077_v19 = vld [vmem:[#allocation11 + $0x824] ss:$8 sps:$4 sm:$0xff]  }
 0x531   : > { %5916 = vmatprep.subr.bf16.mxu1 %v18059_v20  ;;  %v3372_v20 = vrot.slane %v3298_v10, 1  ;;  %v18084_v10 = vld [vmem:[#allocation11 + $0x850] ss:$8 sps:$4 sm:$0xff]  }
 0x534   : > { %5917 = vmatpush1.bf16.msra.mxu1 %v18057_v0  ;;  %v3310_v0 = vld [vmem:[#allocation3 + $0x128] sm:$0xfe] }
 0x535   : > { %5918 = vmatprep.subr.bf16.mxu1 %v18062_v24  ;;  %v18150_v24 = vld [vmem:[#allocation14 + $0xb0] ss:$8 sps:$4 sm:$0xff]   ;;  %v3390_v55 = vrot.slane %v3310_v0, 1  ;;  %v18095_v0 = vld [vmem:[#allocation11 + $0x884] ss:$8 sps:$4 sm:$0xff]  }
 0x536   : > { %8929 = vmatpush1.bf16.msra.mxu0 %v18150_v24  ;;  %v18093_v24 = vld [vmem:[#allocation11 + $0x880] ss:$8 sps:$4 sm:$0xff]  }
 0x538   : > { %5919 = vmatpush1.bf16.msra.mxu1 %v18060_v37  ;;  %v3303_v37 = vld [vmem:[#allocation3 + $0xf0] sm:$0x1] }
 0x539   : > { %5920 = vmatprep.subr.bf16.mxu1 %v18065_v30  ;;  %v3312_v30 = vld [vmem:[#allocation3 + $0x138] sm:$0x1]  ;;  %v3376_v46 = vrot.slane %v3303_v37, 1  ;;  %v18101_v37 = vld [vmem:[#allocation11 + $0x8a4] ss:$8 sps:$4 sm:$0xff]  }
 0x53a   : > { %v3391_v57 = vrot.slane %v3312_v30, 1  ;;  %v18099_v30 = vld [vmem:[#allocation11 + $0x8a0] ss:$8 sps:$4 sm:$0xff]  }
 0x53b   : > { %v3377_v61 = vsel %vm799_vm0, %v3375_v22, %v3376_v46  ;;  %v3438_v22 = vld [vmem:[#allocation3 + $0xa8] sm:$0xfc]  ;;  %v3440_v46 = vld [vmem:[#allocation3 + $0xb8] sm:$0x3] }
 0x53c   : > { %5921 = vmatpush1.bf16.msra.mxu1 %v18063_v28  ;;  %v3374_v28 = vsel %vm799_vm0, %v3372_v20, %v3373_v21  ;;  %v3392_v12 = vsel %vm799_vm0, %v3390_v55, %v3391_v57  ;;  %v18092_v20 = vld [vmem:[#allocation11 + $0x874] ss:$8 sps:$4 sm:$0xff]   ;;  %v3427_v55 = vld [vmem:[#allocation3 + $0x50] sm:$0x3]  ;;  %v3495_v57 = vrot.slane %v3429_v40, 2 }
 0x53d   : > { %5922 = vmatprep.subr.bf16.mxu1 %v18068_v41  ;;  %v3299_v41 = vld [vmem:[#allocation3 + $0xd0] sm:$0x1]  ;;  %v3414_v42 = vpack.c.bf16 %v3380_v25, %v3374_v28  ;;  %v18098_v25 = vld [vmem:[#allocation11 + $0x894] ss:$8 sps:$4 sm:$0xff]   ;;  %v18108_v28 = vld [vmem:[#allocation11 + $0x8d0] ss:$8 sps:$4 sm:$0xff]  }
 0x540   : > { %5923 = vmatpush1.bf16.msra.mxu1 %v18066_v11  ;;  %v3370_v11 = vrot.slane %v3299_v41, 1  ;;  %v3431_v41 = vld [vmem:[#allocation3 + $0x70] sm:$0x3] }
 0x541   : > { %5965 = vmatprep.subr.bf16.mxu1 %v18071_v62  ;;  %v3309_v62 = vld [vmem:[#allocation3 + $0x120] sm:$0xfe] }
 0x542   : > { %v3371_v52 = vsel %vm799_vm0, %v3369_v45, %v3370_v11  ;;  %v3387_v3 = vrot.slane %v3309_v62, 1  ;;  %v3434_v45 = vld [vmem:[#allocation3 + $0x88] sm:$0xfc]  ;;  %v3436_v11 = vld [vmem:[#allocation3 + $0x98] sm:$0x3] }
 0x543   : > { %5925 = vmatmul.mubr.bf16.vlgmr.msra.gmra.mrb[0].mxu1 %v3409_v34  ;;  %v3413_v1 = vpack.c.bf16 %v3377_v61, %v3371_v52  ;;  %v3416_v34 = vpack.c.bf16 %v3392_v12, %v3386_v15  ;;  %v3511_v61 = vrot.slane %v3440_v46, 2  ;;  %v18114_v62 = vld [vmem:[#allocation11 + $0x8f0] ss:$8 sps:$4 sm:$0xff]   ;;  %v3490_v15 = vrot.slane %v3427_v55, 2  ;;  %v3453_v55 = vld [vmem:[#allocation3 + $0x120] sm:$0xfc] }
 0x544   : > { %5934 = vmatprep.mubr.bf16.mxu1 %v3412_v9  ;;  %5966 = vmatpush1.bf16.msra.mxu1 %v18069_v2  ;;  %v18086_v2 = vld [vmem:[#allocation11 + $0x854] ss:$8 sps:$4 sm:$0xff]   ;;  %v3499_v9 = vrot.slane %v3432_v63, 2  ;;  %v3389_v26 = vsel %vm799_vm0, %v3387_v3, %v3388_v8  ;;  %v3504_v12 = vrot.slane %v3434_v45, 2  ;;  %v3505_v27 = vrot.slane %v3436_v11, 2 }
 0x545   : > { %5967 = vmatprep.subr.bf16.mxu1 %v18074_v5  ;;  %v3382_v5 = vrot.slane %v3307_v38, 1  ;;  %v3491_v63 = vsel %vm872_vm1, %v3489_v44, %v3490_v15 }
 0x546   : > { %v3506_v8 = vsel %vm872_vm1, %v3504_v12, %v3505_v27 }
 0x547   : > { %v3383_v14 = vsel %vm799_vm0, %v3381_v29, %v3382_v5  ;;  %v3435_v29 = vld [vmem:[#allocation3 + $0x90] sm:$0x3] }
 0x548   : > { %5968 = vmatpush1.bf16.msra.mxu1 %v18072_v16  ;;  %v3500_v16 = vsel %vm872_vm1, %v3498_v7, %v3499_v9  ;;  %v3415_v50 = vpack.c.bf16 %v3389_v26, %v3383_v14  ;;  %v3442_v7 = vld [vmem:[#allocation3 + $0xc8] sm:$0xfc]  ;;  %v3444_v9 = vld [vmem:[#allocation3 + $0xd8] sm:$0x3] }
 0x549   : > { %5969 = vmatprep.subr.bf16.mxu1 %v18077_v19  ;;  %v3494_v19 = vsel %vm872_vm1, %v3492_v43, %v3493_v13  ;;  %v3502_v13 = vrot.slane %v3435_v29, 2  ;;  %v3516_v14 = vrot.slane %v3442_v7, 2  ;;  %v3517_v26 = vrot.slane %v3444_v9, 2 }
 0x54a   : > { %v3554_v21 = vpack.c.bf16 %v3500_v16, %v3494_v19  ;;  %v3447_v19 = vld [vmem:[#allocation3 + $0xf0] sm:$0x3] }
 0x54b   : > { %5935 = vmatmul.mubr.bf16.gmra.mrb[4].mxu1 %v3411_v36  ;;  %v18110_v36 = vld [vmem:[#allocation11 + $0x8d4] ss:$8 sps:$4 sm:$0xff]  }
 0x54c   : > { %5944 = vmatprep.mubr.bf16.mxu1 %v3414_v42  ;;  %5970 = vmatpush1.bf16.msra.mxu1 %v18075_v32  ;;  %v18102_v32 = vld [vmem:[#allocation11 + $0x8b0] ss:$8 sps:$4 sm:$0xff]   ;;  %v18111_v42 = vld [vmem:[#allocation11 + $0x8e0] ss:$8 sps:$4 sm:$0xff]  }
 0x54d   : > { %5971 = vmatprep.subr.bf16.mxu1 %v18080_v39  ;;  %v18113_v39 = vld [vmem:[#allocation11 + $0x8e4] ss:$8 sps:$4 sm:$0xff]  }
 0x550   : > { %5972 = vmatpush1.bf16.msra.mxu1 %v18078_v58  ;;  %v3496_v58 = vrot.slane %v3431_v41, 2 }
 0x551   : > { %5973 = vmatprep.subr.bf16.mxu1 %v18083_v60  ;;  %v3510_v60 = vrot.slane %v3438_v22, 2  ;;  %v3449_v22 = vld [vmem:[#allocation3 + $0x100] sm:$0xfc] }
 0x552   : > { %v3497_v38 = vsel %vm872_vm1, %v3495_v57, %v3496_v58  ;;  %v3455_v57 = vld [vmem:[#allocation3 + $0x130] sm:$0x3]  ;;  %v3525_v11 = vrot.slane %v3449_v22, 2 }
 0x553   : > { %5945 = vmatmul.mubr.bf16.gmra.mrb[8].mxu1 %v3413_v1  ;;  %v3512_v52 = vsel %vm872_vm1, %v3510_v60, %v3511_v61  ;;  %v3446_v1 = vld [vmem:[#allocation3 + $0xe8] sm:$0xfc]  ;;  %v3553_v3 = vpack.c.bf16 %v3497_v38, %v3491_v63  ;;  %v3526_v61 = vrot.slane %v3451_v54, 2  ;;  %v3532_v44 = vrot.slane %v3455_v57, 2 }
 0x554   : > { %5954 = vmatprep.mubr.bf16.mxu1 %v3416_v34  ;;  %5974 = vmatpush1.bf16.msra.mxu1 %v18081_v49  ;;  %v3437_v49 = vld [vmem:[#allocation3 + $0xa0] sm:$0xfc]  ;;  %v3556_v5 = vpack.c.bf16 %v3512_v52, %v3506_v8  ;;  %v18155_v52 = vld [vmem:[#allocation14 + $0xc4] ss:$8 sps:$4 sm:$0xff]  }
 0x555   : > { %5975 = vmatprep.subr.bf16.mxu1 %v18086_v2  ;;  %v3448_v2 = vld [vmem:[#allocation3 + $0xf8] sm:$0x3]  ;;  %v3433_v34 = vld [vmem:[#allocation3 + $0x80] sm:$0xfc]  ;;  %v3507_v6 = vrot.slane %v3437_v49, 2  ;;  %v3527_v15 = vsel %vm872_vm1, %v3525_v11, %v3526_v61  ;;  %8930 = vmatprep.subr.bf16.mxu0 %v18155_v52 }
 0x556   : > { %v3501_v43 = vrot.slane %v3433_v34, 2  ;;  %v18153_v38 = vld [vmem:[#allocation14 + $0xc0] ss:$8 sps:$4 sm:$0xff]   ;;  %v18158_v49 = vld [vmem:[#allocation14 + $0xd4] ss:$8 sps:$4 sm:$0xff]  }
 0x557   : > { %v3509_v16 = vsel %vm872_vm1, %v3507_v6, %v3508_v4  ;;  %8931 = vmatpush1.bf16.msra.mxu0 %v18153_v38  ;;  %v18159_v63 = vld [vmem:[#allocation14 + $0xe0] ss:$8 sps:$4 sm:$0xff]   ;;  %v18167_v8 = vld [vmem:[#allocation14 + $0x104] ss:$8 sps:$4 sm:$0xff]   ;;  %v3929_v34 = vld [vmem:[#allocation13] sm:$0x3] }
 0x558   : > { %5976 = vmatpush1.bf16.msra.mxu1 %v18084_v10  ;;  %v3522_v10 = vrot.slane %v3446_v1, 2  ;;  %8932 = vmatprep.subr.bf16.mxu0 %v18158_v49  ;;  %v18161_v1 = vld [vmem:[#allocation14 + $0xe4] ss:$8 sps:$4 sm:$0xff]   ;;  %v20397_v29 = vrot.slane %v3929_v34, %v20210_v47  ;;  %v18165_v54 = vld [vmem:[#allocation14 + $0x100] ss:$8 sps:$4 sm:$0xff]  }
 0x559   : > { %5977 = vmatprep.subr.bf16.mxu1 %v18089_v51  ;;  %v3523_v51 = vrot.slane %v3448_v2, 2  ;;  %v18164_v2 = vld [vmem:[#allocation14 + $0xf4] ss:$8 sps:$4 sm:$0xff]   ;;  %v18168_v38 = vld [vmem:[#allocation14 + $0x110] ss:$8 sps:$4 sm:$0xff]  }
 0x55b   : > { %5955 = vmatmul.mubr.bf16.gmra.mrb[12].mxu1 %v3415_v50  ;;  %v3445_v50 = vld [vmem:[#allocation3 + $0xe0] sm:$0xfc]  ;;  %8933 = vmatpush1.bf16.msra.mxu0 %v18156_v59  ;;  %v18173_v59 = vld [vmem:[#allocation14 + $0x124] ss:$8 sps:$4 sm:$0xff]  }
 0x55c   : > { %5978 = vmatpush1.bf16.msra.mxu1 %v18087_v17  ;;  %5997 = vmatprep.mubr.bf16.mxu1 %v3554_v21  ;;  %v3524_v17 = vsel %vm872_vm1, %v3522_v10, %v3523_v51  ;;  %v3503_v21 = vsel %vm872_vm1, %v3501_v43, %v3502_v13 }
 0x55d   : > { %5979 = vmatprep.subr.bf16.mxu1 %v18092_v20  ;;  %v3450_v20 = vld [vmem:[#allocation3 + $0x108] sm:$0xfc]  ;;  %8934 = vmatprep.subr.bf16.mxu0 %v18161_v1 }
 0x55f   : > { %8935 = vmatpush1.bf16.msra.mxu0 %v18159_v63 }
 0x560   : > { %5980 = vmatpush1.bf16.msra.mxu1 %v18090_v23  ;;  %v3452_v23 = vld [vmem:[#allocation3 + $0x118] sm:$0x3]  ;;  %8936 = vmatprep.subr.bf16.mxu0 %v18164_v2 }
 0x561   : > { %5981 = vmatprep.subr.bf16.mxu1 %v18095_v0  ;;  %v3454_v0 = vld [vmem:[#allocation3 + $0x128] sm:$0xfc] }
 0x564   : > { %5982 = vmatpush1.bf16.msra.mxu1 %v18093_v24  ;;  %v3456_v24 = vld [vmem:[#allocation3 + $0x138] sm:$0x3] }
 0x565   : > { %5983 = vmatprep.subr.bf16.mxu1 %v18098_v25  ;;  %v3555_v25 = vpack.c.bf16 %v3509_v16, %v3503_v21 }
 0x568   : > { %5984 = vmatpush1.bf16.msra.mxu1 %v18096_v18  ;;  %v3518_v18 = vsel %vm872_vm1, %v3516_v14, %v3517_v26 }
 0x569   : > { %5985 = vmatprep.subr.bf16.mxu1 %v18101_v37  ;;  %v3441_v37 = vld [vmem:[#allocation3 + $0xc0] sm:$0xfc] }
 0x56a   : > { %v3513_v40 = vrot.slane %v3441_v37, 2 }
 0x56c   : > { %5986 = vmatpush1.bf16.msra.mxu1 %v18099_v30  ;;  %v3443_v30 = vld [vmem:[#allocation3 + $0xd0] sm:$0x3] }
 0x56d   : > { %5987 = vmatprep.subr.bf16.mxu1 %v18104_v31  ;;  %v3558_v31 = vpack.c.bf16 %v3524_v17, %v3518_v18  ;;  %v3514_v41 = vrot.slane %v3443_v30, 2 }
 0x56f   : > { %v3515_v58 = vsel %vm872_vm1, %v3513_v40, %v3514_v41 }
 0x570   : > { %5988 = vmatpush1.bf16.msra.mxu1 %v18102_v32  ;;  %v3519_v32 = vrot.slane %v3445_v50, 2 }
 0x571   : > { %5989 = vmatprep.subr.bf16.mxu1 %v18107_v33  ;;  %v3520_v33 = vrot.slane %v3447_v19, 2 }
 0x574   : > { %5990 = vmatpush1.bf16.msra.mxu1 %v18105_v35  ;;  %v3528_v35 = vrot.slane %v3450_v20, 2 }
 0x575   : > { %5991 = vmatprep.subr.bf16.mxu1 %v18110_v36  ;;  %v3529_v36 = vrot.slane %v3452_v23, 2 }
 0x577   : > { %v3530_v46 = vsel %vm872_vm1, %v3528_v35, %v3529_v36 }
 0x578   : > { %5992 = vmatpush1.bf16.msra.mxu1 %v18108_v28  ;;  %v3534_v28 = vrot.slane %v3454_v0, 2 }
 0x579   : > { %5993 = vmatprep.subr.bf16.mxu1 %v18113_v39  ;;  %v3535_v39 = vrot.slane %v3456_v24, 2 }
 0x57c   : > { %5994 = vmatpush1.bf16.msra.mxu1 %v18111_v42  ;;  %v3521_v42 = vsel %vm872_vm1, %v3519_v32, %v3520_v33 }
 0x57d   : > { %5995 = vmatprep.subr.bf16.mxu1 %v18116_v53  ;;  %v3536_v53 = vsel %vm872_vm1, %v3534_v28, %v3535_v39  ;;  %v3557_v45 = vpack.c.bf16 %v3521_v42, %v3515_v58 }
 0x57e   : > { %v3560_v60 = vpack.c.bf16 %v3536_v53, %v3530_v46 }
 0x580   : > { %5996 = vmatpush1.bf16.msra.mxu1 %v18114_v62  ;;  %v3531_v62 = vrot.slane %v3453_v55, 2 }
 0x582   : > { %v3533_v12 = vsel %vm872_vm1, %v3531_v62, %v3532_v44 }
 0x583   : > { %5998 = vmatmul.mubr.bf16.vlgmr.msra.gmra.mrb[0].mxu1 %v3553_v3  ;;  %v3559_v27 = vpack.c.bf16 %v3533_v12, %v3527_v15  ;;  %v18162_v3 = vld [vmem:[#allocation14 + $0xf0] ss:$8 sps:$4 sm:$0xff]  }
 0x584   : > { %6007 = vmatprep.mubr.bf16.mxu1 %v3556_v5  ;;  %8937 = vmatpush1.bf16.msra.mxu0 %v18162_v3  ;;  %v20400_v5 = vrot.slane %v3929_v34, %v20212_v48 }
 0x585   : > { %8979 = vmatprep.subr.bf16.mxu0 %v18167_v8 }
 0x58b   : > { %6008 = vmatmul.mubr.bf16.gmra.mrb[4].mxu1 %v3555_v25 }
 0x58c   : > { %6017 = vmatprep.mubr.bf16.mxu1 %v3558_v31 }
 0x593   : > { %6018 = vmatmul.mubr.bf16.gmra.mrb[8].mxu1 %v3557_v45  ;;  %v18170_v45 = vld [vmem:[#allocation14 + $0x114] ss:$8 sps:$4 sm:$0xff]  }
 0x594   : > { %6027 = vmatprep.mubr.bf16.mxu1 %v3560_v60 }
 0x59b   : > { %6028 = vmatmul.mubr.bf16.gmra.mrb[12].mxu1 %v3559_v27 }
 0x656   : > { %v5999_v6 = vpop.f32.mrb[0].mxu1 }
 0x657   : > { %v16796_v4 = vadd.f32 %v5999_v6, %v20397_v29  ;;  %v6001_v7 = vpop.f32.mrb[1].mxu1 }
 0x658   : > { %v16797_v9 = vadd.f32 %v6001_v7, %v20400_v5  ;;  %v6003_v10 = vpop.f32.mrb[2].mxu1  ;;  %v18171_v7 = vld [vmem:[#allocation14 + $0x120] ss:$8 sps:$4 sm:$0xff]  }
 0x659   : > { %v6038_v51 = vmax.f32 %v16796_v4, 0.0  ;;  %v16798_v43 = vadd.f32 %v6003_v10, %v20397_v29  ;;  %v6005_v13 = vpop.f32.mrb[3].mxu1 }
 0x65a   : > { %v6039_v14 = vmax.f32 %v16797_v9, 0.0  ;;  %v16799_v26 = vadd.f32 %v6005_v13, %v20400_v5  ;;  %v18176_v13 = vld [vmem:[#allocation14 + $0x134] ss:$8 sps:$4 sm:$0xff]  }
 0x65b   : > { %v6070_v16 = vrot.slane %v6038_v51, 7  ;;  %v6040_v17 = vmax.f32 %v16798_v43, 0.0 }
 0x65c   : > { %v6071_v50 = vrot.slane %v6039_v14, 7  ;;  %v6041_v19 = vmax.f32 %v16799_v26, 0.0 }
 0x65d   : > { %6102 = vst [vmem:[#allocation2 + $0x20] sm:$0xfe] %v6070_v16  ;;  %6104 = vst [vmem:[#allocation2 + $0x30] sm:$0x1] %v6070_v16  ;;  %v6072_v20 = vrot.slane %v6040_v17, 7 }
 0x65e   : > { %6103 = vst [vmem:[#allocation2 + $0x28] sm:$0xfe] %v6071_v50  ;;  %6105 = vst [vmem:[#allocation2 + $0x38] sm:$0x1] %v6071_v50  ;;  %v6073_v21 = vrot.slane %v6041_v19, 7  ;;  %v6009_v23 = vpop.f32.mrb[4].mxu1 }
 0x65f   : > { %6106 = vst [vmem:[#allocation2 + $0x40] sm:$0xfe] %v6072_v20  ;;  %6108 = vst [vmem:[#allocation2 + $0x50] sm:$0x1] %v6072_v20  ;;  %v16800_v0 = vadd.f32 %v6009_v23, %v20397_v29  ;;  %v6011_v24 = vpop.f32.mrb[5].mxu1 }
 0x660   : > { %6107 = vst [vmem:[#allocation2 + $0x48] sm:$0xfe] %v6073_v21  ;;  %6109 = vst [vmem:[#allocation2 + $0x58] sm:$0x1] %v6073_v21  ;;  %v16801_v25 = vadd.f32 %v6011_v24, %v20400_v5  ;;  %v6013_v18 = vpop.f32.mrb[6].mxu1 }
 0x661   : > { %v6042_v37 = vmax.f32 %v16800_v0, 0.0  ;;  %v16802_v30 = vadd.f32 %v6013_v18, %v20397_v29  ;;  %v6015_v31 = vpop.f32.mrb[7].mxu1  ;;  %v18174_v0 = vld [vmem:[#allocation14 + $0x130] ss:$8 sps:$4 sm:$0xff]  }
 0x662   : > { %v6043_v32 = vmax.f32 %v16801_v25, 0.0  ;;  %v16803_v33 = vadd.f32 %v6015_v31, %v20400_v5 }
 0x663   : > { %v6074_v35 = vrot.slane %v6042_v37, 7  ;;  %v6044_v36 = vmax.f32 %v16802_v30, 0.0  ;;  %v18179_v37 = vld [vmem:[#allocation14 + $0x144] ss:$8 sps:$4 sm:$0xff]  }
 0x664   : > { %v6075_v28 = vrot.slane %v6043_v32, 7  ;;  %v6045_v39 = vmax.f32 %v16803_v33, 0.0  ;;  %v6136_v40 = vld [vmem:[#allocation2 + $0x20] sm:$0xff] }
 0x665   : > { %6110 = vst [vmem:[#allocation2 + $0x60] sm:$0xfe] %v6074_v35  ;;  %6112 = vst [vmem:[#allocation2 + $0x70] sm:$0x1] %v6074_v35  ;;  %v6076_v41 = vrot.slane %v6044_v36, 7  ;;  %v20410_v42 = vld [vmem:[#allocation2 + $0x28] sm:$0xff]  ;;  %v6150_v58 = vpack.c.bf16 %v6136_v40, %v20358_v56 }
 0x666   : > { %6111 = vst [vmem:[#allocation2 + $0x68] sm:$0xfe] %v6075_v28  ;;  %6113 = vst [vmem:[#allocation2 + $0x78] sm:$0x1] %v6075_v28  ;;  %v6077_v22 = vrot.slane %v6045_v39, 7  ;;  %v6019_v46 = vpop.f32.mrb[8].mxu1  ;;  %v6151_v53 = vpack.c.bf16 %v20410_v42, %v20358_v56 }
 0x667   : > { %6114 = vst [vmem:[#allocation2 + $0x80] sm:$0xfe] %v6076_v41  ;;  %6116 = vst [vmem:[#allocation2 + $0x90] sm:$0x1] %v6076_v41  ;;  %v16804_v55 = vadd.f32 %v6019_v46, %v20397_v29  ;;  %v6021_v57 = vpop.f32.mrb[9].mxu1  ;;  %v20416_v11 = vld [vmem:[#allocation2 + $0x48] sm:$0xff] }
 0x668   : > { %6115 = vst [vmem:[#allocation2 + $0x88] sm:$0xfe] %v6077_v22  ;;  %6117 = vst [vmem:[#allocation2 + $0x98] sm:$0x1] %v6077_v22  ;;  %v16805_v60 = vadd.f32 %v6021_v57, %v20400_v5  ;;  %v6023_v61 = vpop.f32.mrb[10].mxu1  ;;  %8938 = vmatprep.mubr.bf16.mxu0 %v6151_v53  ;;  %v6471_v62 = vpack.c.bf16 %v20416_v11, %v20410_v42  ;;  %v20429_v9 = vld [vmem:[#allocation2 + $0x40] sm:$0xff] }
 0x669   : > { %v6046_v44 = vmax.f32 %v16804_v55, 0.0  ;;  %v16806_v15 = vadd.f32 %v6023_v61, %v20397_v29  ;;  %v6025_v12 = vpop.f32.mrb[11].mxu1  ;;  %8939 = vmatmul.mubr.bf16.vlgmr.msra.gmra.mrb[16].mxu0 %v6150_v58  ;;  %v18177_v32 = vld [vmem:[#allocation14 + $0x140] ss:$8 sps:$4 sm:$0xff]   ;;  %v6173_v22 = vld [vmem:[#allocation2 + $0x38] sm:$0x1] }
 0x66a   : > { %v6047_v27 = vmax.f32 %v16805_v60, 0.0  ;;  %v16807_v56 = vadd.f32 %v6025_v12, %v20400_v5  ;;  %8980 = vmatpush1.bf16.msra.mxu0 %v18165_v54  ;;  %v6167_v36 = vld [vmem:[#allocation2 + $0x8] sm:$0xfe]  ;;  %v18182_v53 = vld [vmem:[#allocation14 + $0x154] ss:$8 sps:$4 sm:$0xff]   ;;  %v6240_v61 = vrot.slane %v6173_v22, 1 }
 0x66b   : > { %v6078_v52 = vrot.slane %v6046_v44, 7  ;;  %v6048_v49 = vmax.f32 %v16806_v15, 0.0  ;;  %8981 = vmatprep.subr.bf16.mxu0 %v18170_v45  ;;  %v6171_v41 = vld [vmem:[#allocation2 + $0x28] sm:$0xfe]  ;;  %v6233_v58 = vrot.slane %v6167_v36, 1 }
 0x66c   : > { %v6079_v63 = vrot.slane %v6047_v27, 7  ;;  %v6049_v1 = vmax.f32 %v16807_v56, 0.0  ;;  %v20423_v2 = vld [vmem:[#allocation2 + $0x60] sm:$0xff]  ;;  %v6239_v60 = vrot.slane %v6171_v41, 1  ;;  %v18180_v44 = vld [vmem:[#allocation14 + $0x150] ss:$8 sps:$4 sm:$0xff]  }
 0x66d   : > { %6118 = vst [vmem:[#allocation2 + $0xa0] sm:$0xfe] %v6078_v52  ;;  %6120 = vst [vmem:[#allocation2 + $0xb0] sm:$0x1] %v6078_v52  ;;  %v6080_v3 = vrot.slane %v6048_v49, 7  ;;  %v20425_v8 = vld [vmem:[#allocation2 + $0x68] sm:$0xff]  ;;  %v6152_v43 = vpack.c.bf16 %v20423_v2, %v20429_v9 }
 0x66e   : > { %6119 = vst [vmem:[#allocation2 + $0xa8] sm:$0xfe] %v6079_v63  ;;  %6121 = vst [vmem:[#allocation2 + $0xb8] sm:$0x1] %v6079_v63  ;;  %v6081_v34 = vrot.slane %v6049_v1, 7  ;;  %8982 = vmatpush1.bf16.msra.mxu0 %v18168_v38  ;;  %v6029_v6 = vpop.f32.mrb[12].mxu1  ;;  %v6153_v4 = vpack.c.bf16 %v20425_v8, %v20416_v11  ;;  %v6241_v52 = vsel %vm799_vm0, %v6239_v60, %v6240_v61 }
 0x66f   : > { %6122 = vst [vmem:[#allocation2 + $0xc0] sm:$0xfe] %v6080_v3  ;;  %6124 = vst [vmem:[#allocation2 + $0xd0] sm:$0x1] %v6080_v3  ;;  %v16808_v10 = vadd.f32 %v6029_v6, %v20397_v29  ;;  %v6031_v51 = vpop.f32.mrb[13].mxu1  ;;  %8983 = vmatprep.subr.bf16.mxu0 %v18173_v59  ;;  %v20434_v14 = vld [vmem:[#allocation2 + $0x88] sm:$0xff] }
 0x670   : > { %6123 = vst [vmem:[#allocation2 + $0xc8] sm:$0xfe] %v6081_v34  ;;  %6125 = vst [vmem:[#allocation2 + $0xd8] sm:$0x1] %v6081_v34  ;;  %v16809_v26 = vadd.f32 %v6031_v51, %v20400_v5  ;;  %v6033_v16 = vpop.f32.mrb[14].mxu1  ;;  %8948 = vmatprep.mubr.bf16.mxu0 %v6153_v4  ;;  %v6473_v17 = vpack.c.bf16 %v20434_v14, %v20425_v8  ;;  %v20441_v24 = vld [vmem:[#allocation2 + $0x80] sm:$0xff] }
 0x671   : > { %v6050_v50 = vmax.f32 %v16808_v10, 0.0  ;;  %v16810_v19 = vadd.f32 %v6033_v16, %v20397_v29  ;;  %v6035_v20 = vpop.f32.mrb[15].mxu1  ;;  %8949 = vmatmul.mubr.bf16.gmra.mrb[20].mxu0 %v6152_v43  ;;  %v6472_v28 = vpack.c.bf16 %v20441_v24, %v20423_v2  ;;  %v18185_v15 = vld [vmem:[#allocation14 + $0x164] ss:$8 sps:$4 sm:$0xff]   ;;  %v18183_v59 = vld [vmem:[#allocation14 + $0x160] ss:$8 sps:$4 sm:$0xff]  }
 0x672   : > { %v6051_v21 = vmax.f32 %v16809_v26, 0.0  ;;  %v16811_v23 = vadd.f32 %v6035_v20, %v20400_v5  ;;  %8984 = vmatpush1.bf16.msra.mxu0 %v18171_v7  ;;  %v6169_v5 = vld [vmem:[#allocation2 + $0x18] sm:$0x1]  ;;  %v18186_v34 = vld [vmem:[#allocation14 + $0x170] ss:$8 sps:$4 sm:$0xff]  }
 0x673   : > { %v6082_v25 = vrot.slane %v6050_v50, 7  ;;  %v6052_v18 = vmax.f32 %v16810_v19, 0.0  ;;  %8985 = vmatprep.subr.bf16.mxu0 %v18176_v13  ;;  %v6234_v45 = vrot.slane %v6169_v5, 1  ;;  %v18188_v1 = vld [vmem:[#allocation14 + $0x174] ss:$8 sps:$4 sm:$0xff]  }
 0x674   : > { %v6083_v30 = vrot.slane %v6051_v21, 7  ;;  %v6053_v31 = vmax.f32 %v16811_v23, 0.0  ;;  %v20443_v33 = vld [vmem:[#allocation2 + $0xa0] sm:$0xff]  ;;  %v18191_v6 = vld [vmem:[#allocation14 + $0x184] ss:$8 sps:$4 sm:$0xff]  }
 0x675   : > { %6126 = vst [vmem:[#allocation2 + $0xe0] sm:$0xfe] %v6082_v25  ;;  %6128 = vst [vmem:[#allocation2 + $0xf0] sm:$0x1] %v6082_v25  ;;  %v6084_v29 = vrot.slane %v6052_v18, 7  ;;  %v20445_v35 = vld [vmem:[#allocation2 + $0xa8] sm:$0xff]  ;;  %v6154_v46 = vpack.c.bf16 %v20443_v33, %v20441_v24  ;;  %v6235_v38 = vsel %vm799_vm0, %v6233_v58, %v6234_v45 }
 0x676   : > { %6127 = vst [vmem:[#allocation2 + $0xe8] sm:$0xfe] %v6083_v30  ;;  %6129 = vst [vmem:[#allocation2 + $0xf8] sm:$0x1] %v6083_v30  ;;  %v6085_v39 = vrot.slane %v6053_v31, 7  ;;  %8986 = vmatpush1.bf16.msra.mxu0 %v18174_v0  ;;  %v6155_v40 = vpack.c.bf16 %v20445_v35, %v20434_v14  ;;  %v20455_v55 = vld [vmem:[#allocation2 + $0xc0] sm:$0xff]  ;;  %v6295_v3 = vpack.c.bf16 %v6241_v52, %v6235_v38 }
 0x677   : > { %6132 = vst [vmem:[#allocation2 + $0x110] sm:$0x1] %v6084_v29  ;;  %6130 = vst [vmem:[#allocation2 + $0x100] sm:$0xfe] %v6084_v29  ;;  %8987 = vmatprep.subr.bf16.mxu0 %v18179_v37  ;;  %v20453_v54 = vld [vmem:[#allocation2 + $0xc8] sm:$0xff]  ;;  %v6474_v12 = vpack.c.bf16 %v20455_v55, %v20443_v33 }
 0x678   : > { %6131 = vst [vmem:[#allocation2 + $0x108] sm:$0xfe] %v6085_v39  ;;  %6133 = vst [vmem:[#allocation2 + $0x118] sm:$0x1] %v6085_v39  ;;  %8958 = vmatprep.mubr.bf16.mxu0 %v6155_v40  ;;  %v6475_v57 = vpack.c.bf16 %v20453_v54, %v20445_v35  ;;  %v18189_v4 = vld [vmem:[#allocation14 + $0x180] ss:$8 sps:$4 sm:$0xff]  }
 0x679   : > { %8959 = vmatmul.mubr.bf16.gmra.mrb[24].mxu0 %v6154_v46  ;;  %v18194_v7 = vld [vmem:[#allocation14 + $0x194] ss:$8 sps:$4 sm:$0xff]   ;;  %v18192_v10 = vld [vmem:[#allocation14 + $0x190] ss:$8 sps:$4 sm:$0xff]   ;;  %v18197_v51 = vld [vmem:[#allocation14 + $0x1a4] ss:$8 sps:$4 sm:$0xff]  }
 0x67a   : > { %8988 = vmatpush1.bf16.msra.mxu0 %v18177_v32  ;;  %v18195_v43 = vld [vmem:[#allocation14 + $0x1a0] ss:$8 sps:$4 sm:$0xff]   ;;  %v18200_v13 = vld [vmem:[#allocation14 + $0x1b4] ss:$8 sps:$4 sm:$0xff]   ;;  %v18198_v26 = vld [vmem:[#allocation14 + $0x1b0] ss:$8 sps:$4 sm:$0xff]  }
 0x67b   : > { %8989 = vmatprep.subr.bf16.mxu0 %v18182_v53  ;;  %v18203_v16 = vld [vmem:[#allocation14 + $0x1c4] ss:$8 sps:$4 sm:$0xff]   ;;  %v18201_v50 = vld [vmem:[#allocation14 + $0x1c0] ss:$8 sps:$4 sm:$0xff]   ;;  %v18206_v19 = vld [vmem:[#allocation14 + $0x1d4] ss:$8 sps:$4 sm:$0xff]  }
 0x67c   : > { %v20461_v27 = vld [vmem:[#allocation2 + $0xe0] sm:$0xff]  ;;  %v18204_v20 = vld [vmem:[#allocation14 + $0x1d0] ss:$8 sps:$4 sm:$0xff]   ;;  %v18209_v21 = vld [vmem:[#allocation14 + $0x1e4] ss:$8 sps:$4 sm:$0xff]  }
 0x67d   : > { %v20463_v56 = vld [vmem:[#allocation2 + $0xe8] sm:$0xff]  ;;  %v6156_v63 = vpack.c.bf16 %v20461_v27, %v20455_v55  ;;  %v6166_v23 = vld [vmem:[#allocation2] sm:$0xfe]  ;;  %v6168_v0 = vld [vmem:[#allocation2 + $0x10] sm:$0x1] }
 0x67e   : > { %8990 = vmatpush1.bf16.msra.mxu0 %v18180_v44  ;;  %v6157_v49 = vpack.c.bf16 %v20463_v56, %v20453_v54  ;;  %v6170_v25 = vld [vmem:[#allocation2 + $0x20] sm:$0xfe]  ;;  %v6172_v18 = vld [vmem:[#allocation2 + $0x30] sm:$0x1]  ;;  %v6179_v30 = vld [vmem:[#allocation2 + $0x68] sm:$0xfe] }
 0x67f   : > { %8991 = vmatprep.subr.bf16.mxu0 %v18185_v15  ;;  %v18207_v37 = vld [vmem:[#allocation14 + $0x1e0] ss:$8 sps:$4 sm:$0xff]   ;;  %v6181_v31 = vld [vmem:[#allocation2 + $0x78] sm:$0x1]  ;;  %v6230_v29 = vrot.slane %v6166_v23, 1  ;;  %v6231_v36 = vrot.slane %v6168_v0, 1 }
 0x680   : > { %8968 = vmatprep.mubr.bf16.mxu0 %v6157_v49  ;;  %v18212_v32 = vld [vmem:[#allocation14 + $0x1f4] ss:$8 sps:$4 sm:$0xff]   ;;  %v6236_v5 = vrot.slane %v6170_v25, 1  ;;  %v6237_v39 = vrot.slane %v6172_v18, 1  ;;  %v6175_v40 = vld [vmem:[#allocation2 + $0x48] sm:$0xfe] }
 0x681   : > { %8969 = vmatmul.mubr.bf16.gmra.mrb[28].mxu0 %v6156_v63  ;;  %v6177_v41 = vld [vmem:[#allocation2 + $0x58] sm:$0x1]  ;;  %v6251_v22 = vrot.slane %v6179_v30, 1  ;;  %v6252_v46 = vrot.slane %v6181_v31, 1  ;;  %v18210_v53 = vld [vmem:[#allocation14 + $0x1f0] ss:$8 sps:$4 sm:$0xff]   ;;  %v6232_v61 = vsel %vm799_vm0, %v6230_v29, %v6231_v36 }
 0x682   : > { %8992 = vmatpush1.bf16.msra.mxu0 %v18183_v59  ;;  %9011 = vmatprep.mubr.bf16.mxu0 %v6295_v3  ;;  %v18215_v58 = vld [vmem:[#allocation14 + $0x204] ss:$8 sps:$4 sm:$0xff]   ;;  %v6245_v45 = vrot.slane %v6175_v40, 1  ;;  %v6246_v60 = vrot.slane %v6177_v41, 1  ;;  %v6238_v44 = vsel %vm799_vm0, %v6236_v5, %v6237_v39  ;;  %v6178_v38 = vld [vmem:[#allocation2 + $0x60] sm:$0xfe] }
 0x683   : > { %8993 = vmatprep.subr.bf16.mxu0 %v18188_v1  ;;  %v6253_v15 = vsel %vm799_vm0, %v6251_v22, %v6252_v46  ;;  %v6180_v52 = vld [vmem:[#allocation2 + $0x70] sm:$0x1]  ;;  %v18213_v49 = vld [vmem:[#allocation14 + $0x200] ss:$8 sps:$4 sm:$0xff]   ;;  %v6189_v63 = vld [vmem:[#allocation2 + $0xb8] sm:$0x1]  ;;  %v6294_v1 = vpack.c.bf16 %v6238_v44, %v6232_v61 }
 0x684   : > { %v6187_v59 = vld [vmem:[#allocation2 + $0xa8] sm:$0xfe]  ;;  %v6247_v3 = vsel %vm799_vm0, %v6245_v45, %v6246_v60  ;;  %v6188_v30 = vld [vmem:[#allocation2 + $0xb0] sm:$0x1]  ;;  %v6197_v36 = vld [vmem:[#allocation2 + $0xf8] sm:$0x1] }
 0x685   : > { %v6195_v29 = vld [vmem:[#allocation2 + $0xe8] sm:$0xfe]  ;;  %v18224_v40 = vld [vmem:[#allocation14 + $0x234] ss:$8 sps:$4 sm:$0xff]   ;;  %v6184_v22 = vld [vmem:[#allocation2 + $0x90] sm:$0x1] }
 0x686   : > { %8994 = vmatpush1.bf16.msra.mxu0 %v18186_v34  ;;  %v18218_v34 = vld [vmem:[#allocation14 + $0x214] ss:$8 sps:$4 sm:$0xff]   ;;  %v6191_v45 = vld [vmem:[#allocation2 + $0xc8] sm:$0xfe]  ;;  %v6275_v61 = vrot.slane %v6195_v29, 1  ;;  %v6276_v44 = vrot.slane %v6197_v36, 1 }
 0x687   : > { %8995 = vmatprep.subr.bf16.mxu0 %v18191_v6  ;;  %v6174_v6 = vld [vmem:[#allocation2 + $0x40] sm:$0xfe]  ;;  %v6193_v60 = vld [vmem:[#allocation2 + $0xd8] sm:$0x1]  ;;  %v18233_v36 = vld [vmem:[#allocation14 + $0x264] ss:$8 sps:$4 sm:$0xff]  }
 0x688   : > { %v6182_v41 = vld [vmem:[#allocation2 + $0x80] sm:$0xfe]  ;;  %v18299_v42 = vld [vmem:[#allocation14 + $0x3c4] ss:$8 sps:$4 sm:$0xff]  }
 0x689   : > { %v18297_v11 = vld [vmem:[#allocation14 + $0x3c0] ss:$8 sps:$4 sm:$0xff]   ;;  %v18323_v8 = vld [vmem:[#allocation14 + $0x444] ss:$8 sps:$4 sm:$0xff]   ;;  %v18332_v55 = vld [vmem:[#allocation14 + $0x474] ss:$8 sps:$4 sm:$0xff]  }
 0x68a   : > { %8996 = vmatpush1.bf16.msra.mxu0 %v18189_v4  ;;  %v6176_v4 = vld [vmem:[#allocation2 + $0x50] sm:$0x1]  ;;  %v20514_v14 = vld [vmem:[#allocation2 + $0x108] sm:$0xff] }
 0x68b   : > { %8997 = vmatprep.subr.bf16.mxu0 %v18194_v7  ;;  %v6297_v7 = vpack.c.bf16 %v6253_v15, %v6247_v3  ;;  %v18222_v15 = vld [vmem:[#allocation14 + $0x230] ss:$8 sps:$4 sm:$0xff]   ;;  %v18225_v3 = vld [vmem:[#allocation14 + $0x240] ss:$8 sps:$4 sm:$0xff]   ;;  %v6477_v2 = vpack.c.bf16 %v20514_v14, %v20463_v56 }
 0x68c   : > { %v6487_v24 = vld [vmem:[#allocation2 + $0x28] sm:$0xfe] }
 0x68d   : > { %v18327_v56 = vld [vmem:[#allocation14 + $0x460] ss:$8 sps:$4 sm:$0xff]  }
 0x68e   : > { %8998 = vmatpush1.bf16.msra.mxu0 %v18192_v10  ;;  %v6248_v10 = vrot.slane %v6178_v38, 1  ;;  %v6254_v38 = vrot.slane %v6182_v41, 1 }
 0x68f   : > { %8999 = vmatprep.subr.bf16.mxu0 %v18197_v51  ;;  %v6249_v51 = vrot.slane %v6180_v52, 1  ;;  %v6255_v52 = vrot.slane %v6184_v22, 1  ;;  %v18231_v22 = vld [vmem:[#allocation14 + $0x260] ss:$8 sps:$4 sm:$0xff]  }
 0x691   : > { %v6250_v25 = vsel %vm799_vm0, %v6248_v10, %v6249_v51  ;;  %v6256_v10 = vsel %vm799_vm0, %v6254_v38, %v6255_v52  ;;  %v6313_v51 = vld [vmem:[#allocation2 + $0x18] sm:$0x3]  ;;  %v18245_v38 = vld [vmem:[#allocation14 + $0x2a4] ss:$8 sps:$4 sm:$0xff]   ;;  %v18243_v52 = vld [vmem:[#allocation14 + $0x2a0] ss:$8 sps:$4 sm:$0xff]  }
 0x692   : > { %9000 = vmatpush1.bf16.msra.mxu0 %v18195_v43  ;;  %v6183_v43 = vld [vmem:[#allocation2 + $0x88] sm:$0xfe] }
 0x693   : > { %9001 = vmatprep.subr.bf16.mxu0 %v18200_v13  ;;  %v6185_v13 = vld [vmem:[#allocation2 + $0x98] sm:$0x1]  ;;  %v6257_v23 = vrot.slane %v6183_v43, 1  ;;  %v6315_v43 = vld [vmem:[#allocation2 + $0x28] sm:$0xfc] }
 0x694   : > { %v6258_v0 = vrot.slane %v6185_v13, 1  ;;  %v6317_v13 = vld [vmem:[#allocation2 + $0x38] sm:$0x3] }
 0x696   : > { %9002 = vmatpush1.bf16.msra.mxu0 %v18198_v26  ;;  %v6263_v26 = vrot.slane %v6187_v59, 1  ;;  %v6259_v39 = vsel %vm799_vm0, %v6257_v23, %v6258_v0  ;;  %v6269_v59 = vrot.slane %v6191_v45, 1  ;;  %v18234_v45 = vld [vmem:[#allocation14 + $0x270] ss:$8 sps:$4 sm:$0xff]  }
 0x697   : > { %9003 = vmatprep.subr.bf16.mxu0 %v18203_v16  ;;  %v6264_v16 = vrot.slane %v6189_v63, 1  ;;  %v6270_v63 = vrot.slane %v6193_v60, 1  ;;  %v18239_v60 = vld [vmem:[#allocation14 + $0x284] ss:$8 sps:$4 sm:$0xff]  }
 0x699   : > { %v6265_v18 = vsel %vm799_vm0, %v6263_v26, %v6264_v16  ;;  %v6271_v16 = vsel %vm799_vm0, %v6269_v59, %v6270_v63  ;;  %v18246_v59 = vld [vmem:[#allocation14 + $0x2b0] ss:$8 sps:$4 sm:$0xff]   ;;  %v18251_v63 = vld [vmem:[#allocation14 + $0x2c4] ss:$8 sps:$4 sm:$0xff]  }
 0x69a   : > { %9004 = vmatpush1.bf16.msra.mxu0 %v18201_v50  ;;  %v18216_v50 = vld [vmem:[#allocation14 + $0x210] ss:$8 sps:$4 sm:$0xff]   ;;  %v6299_v46 = vpack.c.bf16 %v6265_v18, %v6259_v39  ;;  %v6378_v18 = vrot.slane %v6313_v51, 2  ;;  %v6316_v51 = vld [vmem:[#allocation2 + $0x30] sm:$0x3] }
 0x69b   : > { %9005 = vmatprep.subr.bf16.mxu0 %v18206_v19  ;;  %v6242_v19 = vrot.slane %v6174_v6, 1  ;;  %v6194_v6 = vld [vmem:[#allocation2 + $0xe0] sm:$0xfe] }
 0x69c   : > { %v6272_v23 = vrot.slane %v6194_v6, 1  ;;  %v18257_v6 = vld [vmem:[#allocation14 + $0x2e4] ss:$8 sps:$4 sm:$0xff]  }
 0x69e   : > { %9006 = vmatpush1.bf16.msra.mxu0 %v18204_v20  ;;  %v6243_v20 = vrot.slane %v6176_v4, 1  ;;  %v6196_v4 = vld [vmem:[#allocation2 + $0xf0] sm:$0x1] }
 0x69f   : > { %9007 = vmatprep.subr.bf16.mxu0 %v18209_v21  ;;  %v18221_v21 = vld [vmem:[#allocation14 + $0x224] ss:$8 sps:$4 sm:$0xff]   ;;  %v6273_v0 = vrot.slane %v6196_v4, 1  ;;  %v6310_v4 = vld [vmem:[#allocation2] sm:$0xfc] }
 0x6a0   : > { %v6244_v31 = vsel %vm799_vm0, %v6242_v19, %v6243_v20  ;;  %v6190_v19 = vld [vmem:[#allocation2 + $0xc0] sm:$0xfe]  ;;  %v6192_v20 = vld [vmem:[#allocation2 + $0xd0] sm:$0x1] }
 0x6a1   : > { %v6296_v5 = vpack.c.bf16 %v6250_v25, %v6244_v31  ;;  %v18228_v31 = vld [vmem:[#allocation14 + $0x250] ss:$8 sps:$4 sm:$0xff]   ;;  %v6267_v29 = vrot.slane %v6192_v20, 1 }
 0x6a2   : > { %9008 = vmatpush1.bf16.msra.mxu0 %v18207_v37  ;;  %v6186_v37 = vld [vmem:[#allocation2 + $0xa0] sm:$0xfe] }
 0x6a3   : > { %9009 = vmatprep.subr.bf16.mxu0 %v18212_v32  ;;  %v18219_v32 = vld [vmem:[#allocation14 + $0x220] ss:$8 sps:$4 sm:$0xff]  }
 0x6a6   : > { %9010 = vmatpush1.bf16.msra.mxu0 %v18210_v53  ;;  %v6260_v53 = vrot.slane %v6186_v37, 1  ;;  %v6383_v37 = vrot.slane %v6315_v43, 2  ;;  %v18255_v43 = vld [vmem:[#allocation14 + $0x2e0] ss:$8 sps:$4 sm:$0xff]  }
 0x6a7   : > { %9052 = vmatprep.subr.bf16.mxu0 %v18215_v58  ;;  %v6261_v58 = vrot.slane %v6188_v30, 1  ;;  %v6384_v30 = vrot.slane %v6317_v13, 2  ;;  %v6323_v13 = vld [vmem:[#allocation2 + $0x68] sm:$0xfc] }
 0x6a9   : > { %9012 = vmatmul.mubr.bf16.vlgmr.msra.gmra.mrb[16].mxu0 %v6294_v1  ;;  %v6262_v1 = vsel %vm799_vm0, %v6260_v53, %v6261_v58  ;;  %v18236_v53 = vld [vmem:[#allocation14 + $0x274] ss:$8 sps:$4 sm:$0xff]  }
 0x6aa   : > { %9021 = vmatprep.mubr.bf16.mxu0 %v6297_v7  ;;  %9053 = vmatpush1.bf16.msra.mxu0 %v18213_v49  ;;  %v18227_v49 = vld [vmem:[#allocation14 + $0x244] ss:$8 sps:$4 sm:$0xff]   ;;  %v6298_v26 = vpack.c.bf16 %v6262_v1, %v6256_v10  ;;  %v18249_v1 = vld [vmem:[#allocation14 + $0x2c0] ss:$8 sps:$4 sm:$0xff]  }
 0x6ab   : > { %9054 = vmatprep.subr.bf16.mxu0 %v18218_v34  ;;  %v6277_v34 = vsel %vm799_vm0, %v6275_v61, %v6276_v44  ;;  %v6311_v7 = vld [vmem:[#allocation2 + $0x8] sm:$0xfc]  ;;  %v18242_v44 = vld [vmem:[#allocation14 + $0x294] ss:$8 sps:$4 sm:$0xff]  }
 0x6ac   : > { %v6377_v25 = vrot.slane %v6311_v7, 2  ;;  %v18237_v61 = vld [vmem:[#allocation14 + $0x280] ss:$8 sps:$4 sm:$0xff]   ;;  %v6312_v7 = vld [vmem:[#allocation2 + $0x10] sm:$0x3] }
 0x6ad   : > { %v6314_v10 = vld [vmem:[#allocation2 + $0x20] sm:$0xfc] }
 0x6ae   : > { %9055 = vmatpush1.bf16.msra.mxu0 %v18216_v50  ;;  %v18230_v50 = vld [vmem:[#allocation14 + $0x254] ss:$8 sps:$4 sm:$0xff]   ;;  %v6379_v39 = vsel %vm872_vm1, %v6377_v25, %v6378_v18  ;;  %v6380_v20 = vrot.slane %v6314_v10, 2  ;;  %v6395_v25 = vrot.slane %v6323_v13, 2  ;;  %v6332_v13 = vld [vmem:[#allocation2 + $0xb0] sm:$0x3] }
 0x6af   : > { %9056 = vmatprep.subr.bf16.mxu0 %v18221_v21  ;;  %v6301_v21 = vpack.c.bf16 %v6277_v34, %v6271_v16  ;;  %v18252_v34 = vld [vmem:[#allocation14 + $0x2d0] ss:$8 sps:$4 sm:$0xff]   ;;  %v18260_v16 = vld [vmem:[#allocation14 + $0x2f4] ss:$8 sps:$4 sm:$0xff]  }
 0x6b1   : > { %9022 = vmatmul.mubr.bf16.gmra.mrb[20].mxu0 %v6296_v5  ;;  %v6274_v5 = vsel %vm799_vm0, %v6272_v23, %v6273_v0  ;;  %v6319_v23 = vld [vmem:[#allocation2 + $0x48] sm:$0xfc]  ;;  %v6321_v0 = vld [vmem:[#allocation2 + $0x58] sm:$0x3] }
 0x6b2   : > { %9031 = vmatprep.mubr.bf16.mxu0 %v6299_v46  ;;  %9057 = vmatpush1.bf16.msra.mxu0 %v18219_v32  ;;  %v6266_v32 = vrot.slane %v6190_v19, 1  ;;  %v6375_v19 = vrot.slane %v6312_v7, 2 }
 0x6b3   : > { %9058 = vmatprep.subr.bf16.mxu0 %v18224_v40  ;;  %v6385_v40 = vsel %vm872_vm1, %v6383_v37, %v6384_v30  ;;  %v18258_v37 = vld [vmem:[#allocation14 + $0x2f0] ss:$8 sps:$4 sm:$0xff]   ;;  %v18263_v30 = vld [vmem:[#allocation14 + $0x304] ss:$8 sps:$4 sm:$0xff]  }
 0x6b4   : > { %v6268_v41 = vsel %vm799_vm0, %v6266_v32, %v6267_v29  ;;  %v6439_v58 = vpack.c.bf16 %v6385_v40, %v6379_v39  ;;  %v6390_v32 = vrot.slane %v6321_v0, 2  ;;  %v6322_v39 = vld [vmem:[#allocation2 + $0x60] sm:$0xfc]  ;;  %v6324_v40 = vld [vmem:[#allocation2 + $0x70] sm:$0x3] }
 0x6b5   : > { %v6300_v46 = vpack.c.bf16 %v6274_v5, %v6268_v41  ;;  %v18261_v41 = vld [vmem:[#allocation14 + $0x300] ss:$8 sps:$4 sm:$0xff]  }
 0x6b6   : > { %9059 = vmatpush1.bf16.msra.mxu0 %v18222_v15  ;;  %v18240_v15 = vld [vmem:[#allocation14 + $0x290] ss:$8 sps:$4 sm:$0xff]   ;;  %v6326_v0 = vld [vmem:[#allocation2 + $0x80] sm:$0xfc] }
 0x6b7   : > { %9060 = vmatprep.subr.bf16.mxu0 %v18227_v49  ;;  %v18248_v49 = vld [vmem:[#allocation14 + $0x2b4] ss:$8 sps:$4 sm:$0xff]  }
 0x6b9   : > { %9032 = vmatmul.mubr.bf16.gmra.mrb[24].mxu0 %v6298_v26  ;;  %v6325_v26 = vld [vmem:[#allocation2 + $0x78] sm:$0x3] }
 0x6ba   : > { %9041 = vmatprep.mubr.bf16.mxu0 %v6301_v21  ;;  %9061 = vmatpush1.bf16.msra.mxu0 %v18225_v3  ;;  %v18254_v3 = vld [vmem:[#allocation14 + $0x2d4] ss:$8 sps:$4 sm:$0xff]   ;;  %v6381_v21 = vrot.slane %v6316_v51, 2  ;;  %v6396_v18 = vrot.slane %v6325_v26, 2 }
 0x6bb   : > { %9062 = vmatprep.subr.bf16.mxu0 %v18230_v50  ;;  %v6374_v50 = vrot.slane %v6310_v4, 2 }
 0x6bc   : > { %v6397_v5 = vsel %vm872_vm1, %v6395_v25, %v6396_v18  ;;  %v6328_v25 = vld [vmem:[#allocation2 + $0x90] sm:$0x3] }
 0x6bd   : > { %v6376_v29 = vsel %vm872_vm1, %v6374_v50, %v6375_v19  ;;  %v6339_v50 = vld [vmem:[#allocation2 + $0xe8] sm:$0xfc]  ;;  %v6341_v19 = vld [vmem:[#allocation2 + $0xf8] sm:$0x3] }
 0x6be   : > { %9063 = vmatpush1.bf16.msra.mxu0 %v18228_v31  ;;  %v6389_v31 = vrot.slane %v6319_v23, 2  ;;  %v18272_v23 = vld [vmem:[#allocation14 + $0x334] ss:$8 sps:$4 sm:$0xff]  }
 0x6bf   : > { %9064 = vmatprep.subr.bf16.mxu0 %v18233_v36  ;;  %v6382_v36 = vsel %vm872_vm1, %v6380_v20, %v6381_v21 }
 0x6c1   : > { %9042 = vmatmul.mubr.bf16.gmra.mrb[28].mxu0 %v6300_v46  ;;  %v6333_v46 = vld [vmem:[#allocation2 + $0xb8] sm:$0x3] }
 0x6c2   : > { %9065 = vmatpush1.bf16.msra.mxu0 %v18231_v22  ;;  %9084 = vmatprep.mubr.bf16.mxu0 %v6439_v58  ;;  %v6331_v22 = vld [vmem:[#allocation2 + $0xa8] sm:$0xfc]  ;;  %v6391_v58 = vsel %vm872_vm1, %v6389_v31, %v6390_v32  ;;  %v6337_v32 = vld [vmem:[#allocation2 + $0xd8] sm:$0x3] }
 0x6c3   : > { %9066 = vmatprep.subr.bf16.mxu0 %v18236_v53  ;;  %v6438_v53 = vpack.c.bf16 %v6382_v36, %v6376_v29  ;;  %v6335_v31 = vld [vmem:[#allocation2 + $0xc8] sm:$0xfc]  ;;  %v6419_v29 = vrot.slane %v6339_v50, 2  ;;  %v6420_v36 = vrot.slane %v6341_v19, 2 }
 0x6c4   : > { %v18287_v50 = vld [vmem:[#allocation14 + $0x384] ss:$8 sps:$4 sm:$0xff]   ;;  %v18285_v19 = vld [vmem:[#allocation14 + $0x380] ss:$8 sps:$4 sm:$0xff]  }
 0x6c6   : > { %9067 = vmatpush1.bf16.msra.mxu0 %v18234_v45  ;;  %v18266_v45 = vld [vmem:[#allocation14 + $0x314] ss:$8 sps:$4 sm:$0xff]  }
 0x6c7   : > { %9068 = vmatprep.subr.bf16.mxu0 %v18239_v60  ;;  %v6318_v60 = vld [vmem:[#allocation2 + $0x40] sm:$0xfc] }
 0x6ca   : > { %9069 = vmatpush1.bf16.msra.mxu0 %v18237_v61  ;;  %v6320_v61 = vld [vmem:[#allocation2 + $0x50] sm:$0x3] }
 0x6cb   : > { %9070 = vmatprep.subr.bf16.mxu0 %v18242_v44  ;;  %v6441_v44 = vpack.c.bf16 %v6397_v5, %v6391_v58  ;;  %v18270_v5 = vld [vmem:[#allocation14 + $0x330] ss:$8 sps:$4 sm:$0xff]   ;;  %v6421_v58 = vsel %vm872_vm1, %v6419_v29, %v6420_v36  ;;  %v18311_v36 = vld [vmem:[#allocation14 + $0x404] ss:$8 sps:$4 sm:$0xff]  }
 0x6cc   : > { %v18306_v29 = vld [vmem:[#allocation14 + $0x3f0] ss:$8 sps:$4 sm:$0xff]  }
 0x6ce   : > { %9071 = vmatpush1.bf16.msra.mxu0 %v18240_v15  ;;  %v6392_v15 = vrot.slane %v6322_v39, 2  ;;  %v6398_v39 = vrot.slane %v6326_v0, 2  ;;  %v18291_v0 = vld [vmem:[#allocation14 + $0x3a0] ss:$8 sps:$4 sm:$0xff]  }
 0x6cf   : > { %9072 = vmatprep.subr.bf16.mxu0 %v18245_v38  ;;  %v6393_v38 = vrot.slane %v6324_v40, 2  ;;  %v6399_v40 = vrot.slane %v6328_v25, 2  ;;  %v18296_v25 = vld [vmem:[#allocation14 + $0x3b4] ss:$8 sps:$4 sm:$0xff]  }
 0x6d1   : > { %v6394_v10 = vsel %vm872_vm1, %v6392_v15, %v6393_v38 }
 0x6d2   : > { %9073 = vmatpush1.bf16.msra.mxu0 %v18243_v52  ;;  %v6327_v52 = vld [vmem:[#allocation2 + $0x88] sm:$0xfc] }
 0x6d3   : > { %9074 = vmatprep.subr.bf16.mxu0 %v18248_v49  ;;  %v6329_v49 = vld [vmem:[#allocation2 + $0x98] sm:$0x3]  ;;  %v6401_v4 = vrot.slane %v6327_v52, 2 }
 0x6d4   : > { %v6402_v7 = vrot.slane %v6329_v49, 2  ;;  %v18278_v52 = vld [vmem:[#allocation14 + $0x354] ss:$8 sps:$4 sm:$0xff]  }
 0x6d5   : > { %v6334_v49 = vld [vmem:[#allocation2 + $0xc0] sm:$0xfc] }
 0x6d6   : > { %9075 = vmatpush1.bf16.msra.mxu0 %v18246_v59  ;;  %v6407_v59 = vrot.slane %v6331_v22, 2  ;;  %v6403_v21 = vsel %vm872_vm1, %v6401_v4, %v6402_v7  ;;  %v6413_v22 = vrot.slane %v6335_v31, 2  ;;  %v18281_v7 = vld [vmem:[#allocation14 + $0x364] ss:$8 sps:$4 sm:$0xff]   ;;  %v18303_v31 = vld [vmem:[#allocation14 + $0x3e0] ss:$8 sps:$4 sm:$0xff]  }
 0x6d7   : > { %9076 = vmatprep.subr.bf16.mxu0 %v18251_v63  ;;  %v6408_v63 = vrot.slane %v6333_v46, 2  ;;  %v6414_v46 = vrot.slane %v6337_v32, 2  ;;  %v18308_v32 = vld [vmem:[#allocation14 + $0x3f4] ss:$8 sps:$4 sm:$0xff]  }
 0x6d9   : > { %v6409_v51 = vsel %vm872_vm1, %v6407_v59, %v6408_v63  ;;  %v6415_v38 = vsel %vm872_vm1, %v6413_v22, %v6414_v46  ;;  %v6336_v59 = vld [vmem:[#allocation2 + $0xd0] sm:$0x3]  ;;  %v18312_v22 = vld [vmem:[#allocation14 + $0x410] ss:$8 sps:$4 sm:$0xff]  }
 0x6da   : > { %9077 = vmatpush1.bf16.msra.mxu0 %v18249_v1  ;;  %v18264_v1 = vld [vmem:[#allocation14 + $0x310] ss:$8 sps:$4 sm:$0xff]   ;;  %v6443_v18 = vpack.c.bf16 %v6409_v51, %v6403_v21  ;;  %v6445_v63 = vpack.c.bf16 %v6421_v58, %v6415_v38  ;;  %v6411_v4 = vrot.slane %v6336_v59, 2  ;;  %v18317_v46 = vld [vmem:[#allocation14 + $0x424] ss:$8 sps:$4 sm:$0xff]  }
 0x6db   : > { %9078 = vmatprep.subr.bf16.mxu0 %v18254_v3  ;;  %v6386_v3 = vrot.slane %v6318_v60, 2  ;;  %v6340_v60 = vld [vmem:[#allocation2 + $0xf0] sm:$0x3]  ;;  %v18288_v21 = vld [vmem:[#allocation14 + $0x390] ss:$8 sps:$4 sm:$0xff]  }
 0x6dc   : > { %v18320_v58 = vld [vmem:[#allocation14 + $0x434] ss:$8 sps:$4 sm:$0xff]  }
 0x6de   : > { %9079 = vmatpush1.bf16.msra.mxu0 %v18252_v34  ;;  %v6387_v34 = vrot.slane %v6320_v61, 2  ;;  %v6400_v61 = vsel %vm872_vm1, %v6398_v39, %v6399_v40  ;;  %v18309_v39 = vld [vmem:[#allocation14 + $0x400] ss:$8 sps:$4 sm:$0xff]  }
 0x6df   : > { %9080 = vmatprep.subr.bf16.mxu0 %v18257_v6  ;;  %v18269_v6 = vld [vmem:[#allocation14 + $0x324] ss:$8 sps:$4 sm:$0xff]  }
 0x6e0   : > { %v6388_v26 = vsel %vm872_vm1, %v6386_v3, %v6387_v34  ;;  %v6417_v3 = vrot.slane %v6340_v60, 2  ;;  %v18276_v34 = vld [vmem:[#allocation14 + $0x350] ss:$8 sps:$4 sm:$0xff]   ;;  %v6493_v60 = vld [vmem:[#allocation2 + $0x58] sm:$0x1] }
 0x6e1   : > { %v6440_v20 = vpack.c.bf16 %v6394_v10, %v6388_v26  ;;  %v18284_v26 = vld [vmem:[#allocation14 + $0x374] ss:$8 sps:$4 sm:$0xff]   ;;  %v6560_v54 = vrot.slane %v6493_v60, 1 }
 0x6e2   : > { %9081 = vmatpush1.bf16.msra.mxu0 %v18255_v43  ;;  %v6330_v43 = vld [vmem:[#allocation2 + $0xa0] sm:$0xfc] }
 0x6e3   : > { %9082 = vmatprep.subr.bf16.mxu0 %v18260_v16  ;;  %v18267_v16 = vld [vmem:[#allocation14 + $0x320] ss:$8 sps:$4 sm:$0xff]  }
 0x6e6   : > { %9083 = vmatpush1.bf16.msra.mxu0 %v18258_v37  ;;  %v6404_v37 = vrot.slane %v6330_v43, 2  ;;  %v18279_v43 = vld [vmem:[#allocation14 + $0x360] ss:$8 sps:$4 sm:$0xff]  }
 0x6e7   : > { %9125 = vmatprep.subr.bf16.mxu0 %v18263_v30  ;;  %v6405_v30 = vrot.slane %v6332_v13, 2 }
 0x6e9   : > { %9085 = vmatmul.mubr.bf16.vlgmr.msra.gmra.mrb[16].mxu0 %v6438_v53  ;;  %v6406_v53 = vsel %vm872_vm1, %v6404_v37, %v6405_v30  ;;  %v18300_v37 = vld [vmem:[#allocation14 + $0x3d0] ss:$8 sps:$4 sm:$0xff]   ;;  %v18305_v30 = vld [vmem:[#allocation14 + $0x3e4] ss:$8 sps:$4 sm:$0xff]  }
 0x6ea   : > { %9094 = vmatprep.mubr.bf16.mxu0 %v6441_v44  ;;  %9126 = vmatpush1.bf16.msra.mxu0 %v18261_v41  ;;  %v18275_v41 = vld [vmem:[#allocation14 + $0x344] ss:$8 sps:$4 sm:$0xff]   ;;  %v18273_v44 = vld [vmem:[#allocation14 + $0x340] ss:$8 sps:$4 sm:$0xff]   ;;  %v6442_v15 = vpack.c.bf16 %v6406_v53, %v6400_v61  ;;  %v18326_v61 = vld [vmem:[#allocation14 + $0x454] ss:$8 sps:$4 sm:$0xff]  }
 0x6eb   : > { %9127 = vmatprep.subr.bf16.mxu0 %v18266_v45  ;;  %v6338_v45 = vld [vmem:[#allocation2 + $0xe0] sm:$0xfc] }
 0x6ec   : > { %v18315_v53 = vld [vmem:[#allocation14 + $0x420] ss:$8 sps:$4 sm:$0xff]  }
 0x6ee   : > { %9128 = vmatpush1.bf16.msra.mxu0 %v18264_v1  ;;  %v6416_v1 = vrot.slane %v6338_v45, 2  ;;  %v6491_v45 = vld [vmem:[#allocation2 + $0x48] sm:$0xfe] }
 0x6ef   : > { %9129 = vmatprep.subr.bf16.mxu0 %v18269_v6  ;;  %v6410_v6 = vrot.slane %v6334_v49, 2  ;;  %v6559_v35 = vrot.slane %v6491_v45, 1 }
 0x6f0   : > { %v6418_v10 = vsel %vm872_vm1, %v6416_v1, %v6417_v3  ;;  %v18335_v1 = vld [vmem:[#allocation14 + $0x484] ss:$8 sps:$4 sm:$0xff]   ;;  %v18333_v3 = vld [vmem:[#allocation14 + $0x480] ss:$8 sps:$4 sm:$0xff]  }
 0x6f1   : > { %9095 = vmatmul.mubr.bf16.gmra.mrb[20].mxu0 %v6440_v20  ;;  %v6412_v51 = vsel %vm872_vm1, %v6410_v6, %v6411_v4  ;;  %v18290_v20 = vld [vmem:[#allocation14 + $0x394] ss:$8 sps:$4 sm:$0xff]   ;;  %v6561_v49 = vsel %vm799_vm0, %v6559_v35, %v6560_v54  ;;  %v18336_v6 = vld [vmem:[#allocation14 + $0x490] ss:$8 sps:$4 sm:$0xff]   ;;  %v18341_v4 = vld [vmem:[#allocation14 + $0x4a4] ss:$8 sps:$4 sm:$0xff]  }
 0x6f2   : > { %9104 = vmatprep.mubr.bf16.mxu0 %v6443_v18  ;;  %9130 = vmatpush1.bf16.msra.mxu0 %v18267_v16  ;;  %v6444_v13 = vpack.c.bf16 %v6418_v10, %v6412_v51  ;;  %v18282_v16 = vld [vmem:[#allocation14 + $0x370] ss:$8 sps:$4 sm:$0xff]   ;;  %v18347_v51 = vld [vmem:[#allocation14 + $0x4c4] ss:$8 sps:$4 sm:$0xff]  }
 0x6f3   : > { %9131 = vmatprep.subr.bf16.mxu0 %v18272_v23  ;;  %v18293_v23 = vld [vmem:[#allocation14 + $0x3a4] ss:$8 sps:$4 sm:$0xff]   ;;  %v18294_v18 = vld [vmem:[#allocation14 + $0x3b0] ss:$8 sps:$4 sm:$0xff]  }
 0x6f4   : > { %v18342_v10 = vld [vmem:[#allocation14 + $0x4b0] ss:$8 sps:$4 sm:$0xff]  }
 0x6f6   : > { %9132 = vmatpush1.bf16.msra.mxu0 %v18270_v5  ;;  %v6454_v5 = vld [vmem:[#allocation2 + $0x20] sm:$0xff] }
 0x6f7   : > { %9133 = vmatprep.subr.bf16.mxu0 %v18275_v41  ;;  %v6470_v40 = vpack.c.bf16 %v20429_v9, %v6454_v5  ;;  %v18314_v41 = vld [vmem:[#allocation14 + $0x414] ss:$8 sps:$4 sm:$0xff]   ;;  %v18318_v9 = vld [vmem:[#allocation14 + $0x430] ss:$8 sps:$4 sm:$0xff]   ;;  %v18359_v5 = vld [vmem:[#allocation14 + $0x504] ss:$8 sps:$4 sm:$0xff]  }
 0x6f9   : > { %9105 = vmatmul.mubr.bf16.gmra.mrb[24].mxu0 %v6442_v15  ;;  %v6553_v15 = vrot.slane %v6487_v24, 1  ;;  %v6496_v24 = vld [vmem:[#allocation2 + $0x70] sm:$0x1] }
 0x6fa   : > { %9114 = vmatprep.mubr.bf16.mxu0 %v6445_v63  ;;  %9134 = vmatpush1.bf16.msra.mxu0 %v18273_v44  ;;  %v18329_v44 = vld [vmem:[#allocation14 + $0x464] ss:$8 sps:$4 sm:$0xff]   ;;  %v18330_v63 = vld [vmem:[#allocation14 + $0x470] ss:$8 sps:$4 sm:$0xff]  }
 0x6fb   : > { %9135 = vmatprep.subr.bf16.mxu0 %v18278_v52  ;;  %v20521_v52 = vld [vmem:[#allocation2 + $0x100] sm:$0xff] }
 0x6fc   : > { %v6476_v59 = vpack.c.bf16 %v20521_v52, %v20461_v27  ;;  %v18339_v27 = vld [vmem:[#allocation14 + $0x4a0] ss:$8 sps:$4 sm:$0xff]  }
 0x6fe   : > { %9136 = vmatpush1.bf16.msra.mxu0 %v18276_v34  ;;  %v18338_v34 = vld [vmem:[#allocation14 + $0x494] ss:$8 sps:$4 sm:$0xff]  }
 0x6ff   : > { %9137 = vmatprep.subr.bf16.mxu0 %v18281_v7  ;;  %v18344_v7 = vld [vmem:[#allocation14 + $0x4b4] ss:$8 sps:$4 sm:$0xff]  }
 0x701   : > { %9115 = vmatmul.mubr.bf16.gmra.mrb[28].mxu0 %v6444_v13  ;;  %v18350_v13 = vld [vmem:[#allocation14 + $0x4d4] ss:$8 sps:$4 sm:$0xff]  }
 0x702   : > { %9138 = vmatpush1.bf16.msra.mxu0 %v18279_v43  ;;  %9157 = vmatprep.mubr.bf16.mxu0 %v6471_v62  ;;  %v18302_v62 = vld [vmem:[#allocation14 + $0x3d4] ss:$8 sps:$4 sm:$0xff]   ;;  %v18345_v43 = vld [vmem:[#allocation14 + $0x4c0] ss:$8 sps:$4 sm:$0xff]  }
 0x703   : > { %9139 = vmatprep.subr.bf16.mxu0 %v18284_v26  ;;  %v18348_v26 = vld [vmem:[#allocation14 + $0x4d0] ss:$8 sps:$4 sm:$0xff]  }
 0x706   : > { %9140 = vmatpush1.bf16.msra.mxu0 %v18282_v16  ;;  %v18353_v16 = vld [vmem:[#allocation14 + $0x4e4] ss:$8 sps:$4 sm:$0xff]  }
 0x707   : > { %9141 = vmatprep.subr.bf16.mxu0 %v18287_v50  ;;  %v6490_v50 = vld [vmem:[#allocation2 + $0x40] sm:$0xfe] }
 0x70a   : > { %9142 = vmatpush1.bf16.msra.mxu0 %v18285_v19  ;;  %v6492_v19 = vld [vmem:[#allocation2 + $0x50] sm:$0x1] }
 0x70b   : > { %9143 = vmatprep.subr.bf16.mxu0 %v18290_v20  ;;  %v18351_v20 = vld [vmem:[#allocation14 + $0x4e0] ss:$8 sps:$4 sm:$0xff]  }
 0x70e   : > { %9144 = vmatpush1.bf16.msra.mxu0 %v18288_v21  ;;  %v6499_v21 = vld [vmem:[#allocation2 + $0x88] sm:$0xfe] }
 0x70f   : > { %9145 = vmatprep.subr.bf16.mxu0 %v18293_v23  ;;  %v6501_v23 = vld [vmem:[#allocation2 + $0x98] sm:$0x1] }
 0x712   : > { %9146 = vmatpush1.bf16.msra.mxu0 %v18291_v0  ;;  %v18356_v0 = vld [vmem:[#allocation14 + $0x4f4] ss:$8 sps:$4 sm:$0xff]  }
 0x713   : > { %9147 = vmatprep.subr.bf16.mxu0 %v18296_v25  ;;  %v6486_v25 = vld [vmem:[#allocation2 + $0x20] sm:$0xfe] }
 0x716   : > { %9148 = vmatpush1.bf16.msra.mxu0 %v18294_v18  ;;  %v6488_v18 = vld [vmem:[#allocation2 + $0x30] sm:$0x1] }
 0x717   : > { %9149 = vmatprep.subr.bf16.mxu0 %v18299_v42  ;;  %v6556_v42 = vrot.slane %v6490_v50, 1 }
 0x71a   : > { %9150 = vmatpush1.bf16.msra.mxu0 %v18297_v11  ;;  %v6557_v11 = vrot.slane %v6492_v19, 1 }
 0x71b   : > { %9151 = vmatprep.subr.bf16.mxu0 %v18302_v62  ;;  %v6495_v62 = vld [vmem:[#allocation2 + $0x68] sm:$0xfe] }
 0x71e   : > { %9152 = vmatpush1.bf16.msra.mxu0 %v18300_v37  ;;  %v6497_v37 = vld [vmem:[#allocation2 + $0x78] sm:$0x1] }
 0x71f   : > { %9153 = vmatprep.subr.bf16.mxu0 %v18305_v30  ;;  %v6571_v30 = vrot.slane %v6499_v21, 1  ;;  %v6513_v21 = vld [vmem:[#allocation2 + $0xf8] sm:$0x1] }
 0x722   : > { %9154 = vmatpush1.bf16.msra.mxu0 %v18303_v31  ;;  %v6572_v31 = vrot.slane %v6501_v23, 1 }
 0x723   : > { %9155 = vmatprep.subr.bf16.mxu0 %v18308_v32  ;;  %v18354_v32 = vld [vmem:[#allocation14 + $0x4f0] ss:$8 sps:$4 sm:$0xff]  }
 0x726   : > { %9156 = vmatpush1.bf16.msra.mxu0 %v18306_v29  ;;  %v6550_v29 = vrot.slane %v6486_v25, 1  ;;  %v18366_v25 = vld [vmem:[#allocation14 + $0x530] ss:$8 sps:$4 sm:$0xff]  }
 0x727   : > { %9198 = vmatprep.subr.bf16.mxu0 %v18311_v36  ;;  %v6551_v36 = vrot.slane %v6488_v18, 1 }
 0x729   : > { %9158 = vmatmul.mubr.bf16.vlgmr.msra.gmra.mrb[16].mxu0 %v6470_v40  ;;  %v6566_v40 = vrot.slane %v6497_v37, 1  ;;  %v6590_v37 = vrot.slane %v6513_v21, 1  ;;  %v6643_v21 = vld [vmem:[#allocation2 + $0x88] sm:$0xfc] }
 0x72a   : > { %9167 = vmatprep.mubr.bf16.mxu0 %v6473_v17  ;;  %9199 = vmatpush1.bf16.msra.mxu0 %v18309_v39  ;;  %v18321_v17 = vld [vmem:[#allocation14 + $0x440] ss:$8 sps:$4 sm:$0xff]   ;;  %v6565_v39 = vrot.slane %v6495_v62, 1 }
 0x72b   : > { %9200 = vmatprep.subr.bf16.mxu0 %v18314_v41  ;;  %v6558_v41 = vsel %vm799_vm0, %v6556_v42, %v6557_v11  ;;  %v18371_v11 = vld [vmem:[#allocation14 + $0x544] ss:$8 sps:$4 sm:$0xff]  }
 0x72c   : > { %v6567_v60 = vsel %vm799_vm0, %v6565_v39, %v6566_v40  ;;  %v6635_v39 = vld [vmem:[#allocation2 + $0x48] sm:$0xfc]  ;;  %v6637_v40 = vld [vmem:[#allocation2 + $0x58] sm:$0x3] }
 0x72e   : > { %9201 = vmatpush1.bf16.msra.mxu0 %v18312_v22  ;;  %v6573_v22 = vsel %vm799_vm0, %v6571_v30, %v6572_v31 }
 0x72f   : > { %9202 = vmatprep.subr.bf16.mxu0 %v18317_v46  ;;  %v6498_v46 = vld [vmem:[#allocation2 + $0x80] sm:$0xfe] }
 0x730   : > { %v6568_v35 = vrot.slane %v6498_v46, 1  ;;  %v18374_v46 = vld [vmem:[#allocation14 + $0x554] ss:$8 sps:$4 sm:$0xff]  }
 0x731   : > { %9168 = vmatmul.mubr.bf16.gmra.mrb[20].mxu0 %v6472_v28  ;;  %v6489_v28 = vld [vmem:[#allocation2 + $0x38] sm:$0x1] }
 0x732   : > { %9177 = vmatprep.mubr.bf16.mxu0 %v6475_v57  ;;  %9203 = vmatpush1.bf16.msra.mxu0 %v18315_v53  ;;  %v18324_v57 = vld [vmem:[#allocation14 + $0x450] ss:$8 sps:$4 sm:$0xff]   ;;  %v6554_v38 = vrot.slane %v6489_v28, 1  ;;  %v6500_v53 = vld [vmem:[#allocation2 + $0x90] sm:$0x1]  ;;  %v6617_v28 = vpack.c.bf16 %v6573_v22, %v6567_v60 }
 0x733   : > { %9204 = vmatprep.subr.bf16.mxu0 %v18320_v58  ;;  %v6552_v58 = vsel %vm799_vm0, %v6550_v29, %v6551_v36  ;;  %v6569_v54 = vrot.slane %v6500_v53, 1  ;;  %v6516_v29 = vld [vmem:[#allocation2 + $0x110] sm:$0x1]  ;;  %v6510_v53 = vld [vmem:[#allocation2 + $0xe0] sm:$0xfe] }
 0x734   : > { %v6555_v33 = vsel %vm799_vm0, %v6553_v15, %v6554_v38  ;;  %v6614_v45 = vpack.c.bf16 %v6558_v41, %v6552_v58  ;;  %v6512_v58 = vld [vmem:[#allocation2 + $0xf0] sm:$0x1]  ;;  %v6633_v60 = vld [vmem:[#allocation2 + $0x38] sm:$0x3] }
 0x736   : > { %9205 = vmatpush1.bf16.msra.mxu0 %v18318_v9  ;;  %v18357_v9 = vld [vmem:[#allocation14 + $0x500] ss:$8 sps:$4 sm:$0xff]  }
 0x737   : > { %9206 = vmatprep.subr.bf16.mxu0 %v18323_v8  ;;  %v6507_v8 = vld [vmem:[#allocation2 + $0xc8] sm:$0xfe] }
 0x738   : > { %v6583_v15 = vrot.slane %v6507_v8, 1 }
 0x739   : > { %9178 = vmatmul.mubr.bf16.gmra.mrb[24].mxu0 %v6474_v12  ;;  %v6615_v12 = vpack.c.bf16 %v6561_v49, %v6555_v33  ;;  %v18360_v49 = vld [vmem:[#allocation14 + $0x510] ss:$8 sps:$4 sm:$0xff]   ;;  %v18365_v33 = vld [vmem:[#allocation14 + $0x524] ss:$8 sps:$4 sm:$0xff]  }
 0x73a   : > { %9187 = vmatprep.mubr.bf16.mxu0 %v6477_v2  ;;  %9207 = vmatpush1.bf16.msra.mxu0 %v18321_v17  ;;  %v6509_v17 = vld [vmem:[#allocation2 + $0xd8] sm:$0x1]  ;;  %v6494_v2 = vld [vmem:[#allocation2 + $0x60] sm:$0xfe] }
 0x73b   : > { %9208 = vmatprep.subr.bf16.mxu0 %v18326_v61  ;;  %v18362_v61 = vld [vmem:[#allocation14 + $0x514] ss:$8 sps:$4 sm:$0xff]   ;;  %v6584_v38 = vrot.slane %v6509_v17, 1  ;;  %v6593_v17 = vrot.slane %v6516_v29, 1 }
 0x73e   : > { %9209 = vmatpush1.bf16.msra.mxu0 %v18324_v57  ;;  %v6503_v57 = vld [vmem:[#allocation2 + $0xa8] sm:$0xfe] }
 0x73f   : > { %9210 = vmatprep.subr.bf16.mxu0 %v18329_v44  ;;  %v6505_v44 = vld [vmem:[#allocation2 + $0xb8] sm:$0x1] }
 0x741   : > { %9188 = vmatmul.mubr.bf16.gmra.mrb[28].mxu0 %v6476_v59  ;;  %v6563_v59 = vrot.slane %v6496_v24, 1  ;;  %v18372_v24 = vld [vmem:[#allocation14 + $0x550] ss:$8 sps:$4 sm:$0xff]  }
 0x742   : > { %9211 = vmatpush1.bf16.msra.mxu0 %v18327_v56  ;;  %9230 = vmatprep.mubr.bf16.mxu0 %v6615_v12  ;;  %v6562_v56 = vrot.slane %v6494_v2, 1  ;;  %v6578_v12 = vrot.slane %v6505_v44, 1  ;;  %v6704_v2 = vrot.slane %v6637_v40, 2  ;;  %v6698_v44 = vrot.slane %v6633_v60, 2 }
 0x743   : > { %9212 = vmatprep.subr.bf16.mxu0 %v18332_v55  ;;  %v6577_v55 = vrot.slane %v6503_v57, 1 }
 0x746   : > { %9213 = vmatpush1.bf16.msra.mxu0 %v18330_v63  ;;  %v6570_v63 = vsel %vm799_vm0, %v6568_v35, %v6569_v54  ;;  %v6587_v35 = vrot.slane %v6512_v58, 1  ;;  %v18377_v54 = vld [vmem:[#allocation14 + $0x564] ss:$8 sps:$4 sm:$0xff]  }
 0x747   : > { %9214 = vmatprep.subr.bf16.mxu0 %v18335_v1  ;;  %v6585_v1 = vsel %vm799_vm0, %v6583_v15, %v6584_v38 }
 0x74a   : > { %9215 = vmatpush1.bf16.msra.mxu0 %v18333_v3  ;;  %v6506_v3 = vld [vmem:[#allocation2 + $0xc0] sm:$0xfe] }
 0x74b   : > { %9216 = vmatprep.subr.bf16.mxu0 %v18338_v34  ;;  %v6508_v34 = vld [vmem:[#allocation2 + $0xd0] sm:$0x1]  ;;  %v6580_v50 = vrot.slane %v6506_v3, 1  ;;  %v18381_v3 = vld [vmem:[#allocation14 + $0x580] ss:$8 sps:$4 sm:$0xff]  }
 0x74c   : > { %v6581_v19 = vrot.slane %v6508_v34, 1  ;;  %v18386_v34 = vld [vmem:[#allocation14 + $0x594] ss:$8 sps:$4 sm:$0xff]  }
 0x74e   : > { %9217 = vmatpush1.bf16.msra.mxu0 %v18336_v6  ;;  %v6564_v6 = vsel %vm799_vm0, %v6562_v56, %v6563_v59  ;;  %v6582_v30 = vsel %vm799_vm0, %v6580_v50, %v6581_v19  ;;  %v18375_v56 = vld [vmem:[#allocation14 + $0x560] ss:$8 sps:$4 sm:$0xff]   ;;  %v6636_v19 = vld [vmem:[#allocation2 + $0x50] sm:$0x3] }
 0x74f   : > { %9218 = vmatprep.subr.bf16.mxu0 %v18341_v4  ;;  %v18363_v4 = vld [vmem:[#allocation14 + $0x520] ss:$8 sps:$4 sm:$0xff]  }
 0x750   : > { %v6634_v50 = vld [vmem:[#allocation2 + $0x40] sm:$0xfc] }
 0x752   : > { %9219 = vmatpush1.bf16.msra.mxu0 %v18339_v27  ;;  %v6515_v27 = vld [vmem:[#allocation2 + $0x108] sm:$0xfe] }
 0x753   : > { %9220 = vmatprep.subr.bf16.mxu0 %v18344_v7  ;;  %v6517_v7 = vld [vmem:[#allocation2 + $0x118] sm:$0x1]  ;;  %v6595_v23 = vrot.slane %v6515_v27, 1  ;;  %v18387_v27 = vld [vmem:[#allocation14 + $0x5a0] ss:$8 sps:$4 sm:$0xff]  }
 0x756   : > { %9221 = vmatpush1.bf16.msra.mxu0 %v18342_v10  ;;  %v6616_v10 = vpack.c.bf16 %v6570_v63, %v6564_v6  ;;  %v18378_v63 = vld [vmem:[#allocation14 + $0x570] ss:$8 sps:$4 sm:$0xff]  }
 0x757   : > { %9222 = vmatprep.subr.bf16.mxu0 %v18347_v51  ;;  %v6579_v51 = vsel %vm799_vm0, %v6577_v55, %v6578_v12  ;;  %v18380_v55 = vld [vmem:[#allocation14 + $0x574] ss:$8 sps:$4 sm:$0xff]   ;;  %v18384_v6 = vld [vmem:[#allocation14 + $0x590] ss:$8 sps:$4 sm:$0xff]  }
 0x75a   : > { %9223 = vmatpush1.bf16.msra.mxu0 %v18345_v43  ;;  %v18368_v43 = vld [vmem:[#allocation14 + $0x534] ss:$8 sps:$4 sm:$0xff]  }
 0x75b   : > { %9224 = vmatprep.subr.bf16.mxu0 %v18350_v13  ;;  %v6502_v13 = vld [vmem:[#allocation2 + $0xa0] sm:$0xfe] }
 0x75c   : > { %v6574_v18 = vrot.slane %v6502_v13, 1  ;;  %v18398_v13 = vld [vmem:[#allocation14 + $0x5d4] ss:$8 sps:$4 sm:$0xff]  }
 0x75e   : > { %9225 = vmatpush1.bf16.msra.mxu0 %v18348_v26  ;;  %v6504_v26 = vld [vmem:[#allocation2 + $0xb0] sm:$0x1] }
 0x75f   : > { %9226 = vmatprep.subr.bf16.mxu0 %v18353_v16  ;;  %v6619_v16 = vpack.c.bf16 %v6585_v1, %v6579_v51  ;;  %v6575_v42 = vrot.slane %v6504_v26, 1  ;;  %v18383_v1 = vld [vmem:[#allocation14 + $0x584] ss:$8 sps:$4 sm:$0xff]   ;;  %v18396_v26 = vld [vmem:[#allocation14 + $0x5d0] ss:$8 sps:$4 sm:$0xff]  }
 0x760   : > { %v18395_v51 = vld [vmem:[#allocation14 + $0x5c4] ss:$8 sps:$4 sm:$0xff]  }
 0x761   : > { %v6576_v36 = vsel %vm799_vm0, %v6574_v18, %v6575_v42  ;;  %v6632_v18 = vld [vmem:[#allocation2 + $0x30] sm:$0x3]  ;;  %v6700_v42 = vrot.slane %v6634_v50, 2 }
 0x762   : > { %9227 = vmatpush1.bf16.msra.mxu0 %v18351_v20  ;;  %v6511_v20 = vld [vmem:[#allocation2 + $0xe8] sm:$0xfe]  ;;  %v6618_v41 = vpack.c.bf16 %v6582_v30, %v6576_v36  ;;  %v6715_v30 = vrot.slane %v6643_v21, 2  ;;  %v6695_v36 = vrot.slane %v6632_v18, 2  ;;  %v6657_v21 = vld [vmem:[#allocation2 + $0xf8] sm:$0x3] }
 0x763   : > { %9228 = vmatprep.subr.bf16.mxu0 %v18356_v0  ;;  %v6596_v0 = vrot.slane %v6517_v7, 1  ;;  %v6589_v62 = vrot.slane %v6511_v20, 1  ;;  %v18392_v7 = vld [vmem:[#allocation14 + $0x5b4] ss:$8 sps:$4 sm:$0xff]   ;;  %v18399_v20 = vld [vmem:[#allocation14 + $0x5e0] ss:$8 sps:$4 sm:$0xff]  }
 0x765   : > { %v6597_v31 = vsel %vm799_vm0, %v6595_v23, %v6596_v0  ;;  %v6591_v22 = vsel %vm799_vm0, %v6589_v62, %v6590_v37  ;;  %v6645_v23 = vld [vmem:[#allocation2 + $0x98] sm:$0x3]  ;;  %v6639_v62 = vld [vmem:[#allocation2 + $0x68] sm:$0xfc] }
 0x766   : > { %9229 = vmatpush1.bf16.msra.mxu0 %v18354_v32  ;;  %v6514_v32 = vld [vmem:[#allocation2 + $0x100] sm:$0xfe]  ;;  %v6641_v37 = vld [vmem:[#allocation2 + $0x78] sm:$0x3] }
 0x767   : > { %9271 = vmatprep.subr.bf16.mxu0 %v18359_v5  ;;  %v18369_v5 = vld [vmem:[#allocation14 + $0x540] ss:$8 sps:$4 sm:$0xff]   ;;  %v6592_v8 = vrot.slane %v6514_v32, 1  ;;  %v18404_v0 = vld [vmem:[#allocation14 + $0x5f4] ss:$8 sps:$4 sm:$0xff]   ;;  %v6710_v40 = vrot.slane %v6641_v37, 2 }
 0x768   : > { %v18402_v32 = vld [vmem:[#allocation14 + $0x5f0] ss:$8 sps:$4 sm:$0xff]   ;;  %v6734_v37 = vrot.slane %v6657_v21, 2 }
 0x769   : > { %9231 = vmatmul.mubr.bf16.vlgmr.msra.gmra.mrb[16].mxu0 %v6614_v45  ;;  %v6631_v45 = vld [vmem:[#allocation2 + $0x28] sm:$0xfc]  ;;  %v6594_v15 = vsel %vm799_vm0, %v6592_v8, %v6593_v17  ;;  %v6653_v17 = vld [vmem:[#allocation2 + $0xd8] sm:$0x3] }
 0x76a   : > { %9240 = vmatprep.mubr.bf16.mxu0 %v6617_v28  ;;  %9272 = vmatpush1.bf16.msra.mxu0 %v18357_v9  ;;  %v6621_v9 = vpack.c.bf16 %v6597_v31, %v6591_v22  ;;  %v6586_v28 = vrot.slane %v6510_v53, 1  ;;  %v6697_v57 = vrot.slane %v6631_v45, 2  ;;  %v6716_v31 = vrot.slane %v6645_v23, 2  ;;  %v6644_v53 = vld [vmem:[#allocation2 + $0x90] sm:$0x3] }
 0x76b   : > { %9273 = vmatprep.subr.bf16.mxu0 %v18362_v61  ;;  %v6703_v61 = vrot.slane %v6635_v39, 2  ;;  %v6709_v39 = vrot.slane %v6639_v62, 2  ;;  %v6651_v8 = vld [vmem:[#allocation2 + $0xc8] sm:$0xfc] }
 0x76c   : > { %v6717_v22 = vsel %vm872_vm1, %v6715_v30, %v6716_v31 }
 0x76d   : > { %v6705_v38 = vsel %vm872_vm1, %v6703_v61, %v6704_v2  ;;  %v6711_v60 = vsel %vm872_vm1, %v6709_v39, %v6710_v40  ;;  %v18410_v61 = vld [vmem:[#allocation14 + $0x614] ss:$8 sps:$4 sm:$0xff]  }
 0x76e   : > { %9274 = vmatpush1.bf16.msra.mxu0 %v18360_v49  ;;  %v6588_v49 = vsel %vm799_vm0, %v6586_v28, %v6587_v35  ;;  %v6638_v2 = vld [vmem:[#allocation2 + $0x60] sm:$0xfc]  ;;  %v6761_v28 = vpack.c.bf16 %v6717_v22, %v6711_v60  ;;  %v18425_v60 = vld [vmem:[#allocation14 + $0x664] ss:$8 sps:$4 sm:$0xff]  }
 0x76f   : > { %9275 = vmatprep.subr.bf16.mxu0 %v18365_v33  ;;  %v6620_v59 = vpack.c.bf16 %v6594_v15, %v6588_v49  ;;  %v6699_v33 = vsel %vm872_vm1, %v6697_v57, %v6698_v44  ;;  %v6647_v57 = vld [vmem:[#allocation2 + $0xa8] sm:$0xfc]  ;;  %v6649_v44 = vld [vmem:[#allocation2 + $0xb8] sm:$0x3]  ;;  %v6727_v15 = vrot.slane %v6651_v8, 2 }
 0x770   : > { %v6759_v12 = vpack.c.bf16 %v6705_v38, %v6699_v33  ;;  %v6728_v38 = vrot.slane %v6653_v17, 2  ;;  %v18408_v49 = vld [vmem:[#allocation14 + $0x610] ss:$8 sps:$4 sm:$0xff]   ;;  %v18413_v33 = vld [vmem:[#allocation14 + $0x624] ss:$8 sps:$4 sm:$0xff]  }
 0x771   : > { %9241 = vmatmul.mubr.bf16.gmra.mrb[20].mxu0 %v6616_v10  ;;  %v18390_v10 = vld [vmem:[#allocation14 + $0x5b0] ss:$8 sps:$4 sm:$0xff]   ;;  %v6654_v22 = vld [vmem:[#allocation2 + $0xe0] sm:$0xfc] }
 0x772   : > { %9250 = vmatprep.mubr.bf16.mxu0 %v6619_v16  ;;  %9276 = vmatpush1.bf16.msra.mxu0 %v18363_v4  ;;  %v18389_v4 = vld [vmem:[#allocation14 + $0x5a4] ss:$8 sps:$4 sm:$0xff]   ;;  %v18420_v8 = vld [vmem:[#allocation14 + $0x650] ss:$8 sps:$4 sm:$0xff]   ;;  %v6730_v17 = vrot.slane %v6654_v22, 2 }
 0x773   : > { %9277 = vmatprep.subr.bf16.mxu0 %v18368_v43  ;;  %v18393_v43 = vld [vmem:[#allocation14 + $0x5c0] ss:$8 sps:$4 sm:$0xff]   ;;  %v18401_v16 = vld [vmem:[#allocation14 + $0x5e4] ss:$8 sps:$4 sm:$0xff]  }
 0x776   : > { %9278 = vmatpush1.bf16.msra.mxu0 %v18366_v25  ;;  %v6630_v25 = vld [vmem:[#allocation2 + $0x20] sm:$0xfc] }
 0x777   : > { %9279 = vmatprep.subr.bf16.mxu0 %v18371_v11  ;;  %v6701_v11 = vrot.slane %v6636_v19, 2  ;;  %v6694_v29 = vrot.slane %v6630_v25, 2  ;;  %v18414_v25 = vld [vmem:[#allocation14 + $0x630] ss:$8 sps:$4 sm:$0xff]  }
 0x779   : > { %9251 = vmatmul.mubr.bf16.gmra.mrb[24].mxu0 %v6618_v41  ;;  %v6702_v41 = vsel %vm872_vm1, %v6700_v42, %v6701_v11  ;;  %v6696_v58 = vsel %vm872_vm1, %v6694_v29, %v6695_v36  ;;  %v18419_v11 = vld [vmem:[#allocation14 + $0x644] ss:$8 sps:$4 sm:$0xff]  }
 0x77a   : > { %9260 = vmatprep.mubr.bf16.mxu0 %v6621_v9  ;;  %9280 = vmatpush1.bf16.msra.mxu0 %v18369_v5  ;;  %v18407_v5 = vld [vmem:[#allocation14 + $0x604] ss:$8 sps:$4 sm:$0xff]   ;;  %v18405_v9 = vld [vmem:[#allocation14 + $0x600] ss:$8 sps:$4 sm:$0xff]   ;;  %v6758_v45 = vpack.c.bf16 %v6702_v41, %v6696_v58  ;;  %v18422_v41 = vld [vmem:[#allocation14 + $0x654] ss:$8 sps:$4 sm:$0xff]  }
 0x77b   : > { %9281 = vmatprep.subr.bf16.mxu0 %v18374_v46  ;;  %v6642_v46 = vld [vmem:[#allocation2 + $0x80] sm:$0xfc]  ;;  %v6660_v29 = vld [vmem:[#allocation2 + $0x110] sm:$0x3] }
 0x77c   : > { %v6712_v35 = vrot.slane %v6642_v46, 2  ;;  %v6656_v46 = vld [vmem:[#allocation2 + $0xf0] sm:$0x3] }
 0x77e   : > { %9282 = vmatpush1.bf16.msra.mxu0 %v18372_v24  ;;  %v6640_v24 = vld [vmem:[#allocation2 + $0x70] sm:$0x3] }
 0x77f   : > { %9283 = vmatprep.subr.bf16.mxu0 %v18377_v54  ;;  %v6713_v54 = vrot.slane %v6644_v53, 2 }
 0x781   : > { %9261 = vmatmul.mubr.bf16.gmra.mrb[28].mxu0 %v6620_v59  ;;  %v6707_v59 = vrot.slane %v6640_v24, 2 }
 0x782   : > { %9284 = vmatpush1.bf16.msra.mxu0 %v18375_v56  ;;  %9303 = vmatprep.mubr.bf16.mxu0 %v6759_v12  ;;  %v6706_v56 = vrot.slane %v6638_v2, 2  ;;  %v6722_v12 = vrot.slane %v6649_v44, 2  ;;  %v6777_v2 = vld [vmem:[#allocation2 + $0x68] sm:$0xff] }
 0x783   : > { %9285 = vmatprep.subr.bf16.mxu0 %v18380_v55  ;;  %v6721_v55 = vrot.slane %v6647_v57, 2  ;;  %v18428_v57 = vld [vmem:[#allocation14 + $0x674] ss:$8 sps:$4 sm:$0xff]  }
 0x786   : > { %9286 = vmatpush1.bf16.msra.mxu0 %v18378_v63  ;;  %v6714_v63 = vsel %vm872_vm1, %v6712_v35, %v6713_v54  ;;  %v6775_v54 = vld [vmem:[#allocation2 + $0x48] sm:$0xff] }
 0x787   : > { %9287 = vmatprep.subr.bf16.mxu0 %v18383_v1  ;;  %v6729_v1 = vsel %vm872_vm1, %v6727_v15, %v6728_v38  ;;  %v6791_v44 = vpack.c.bf16 %v6777_v2, %v6775_v54  ;;  %v18426_v15 = vld [vmem:[#allocation14 + $0x670] ss:$8 sps:$4 sm:$0xff]   ;;  %v18431_v38 = vld [vmem:[#allocation14 + $0x684] ss:$8 sps:$4 sm:$0xff]  }
 0x78a   : > { %9288 = vmatpush1.bf16.msra.mxu0 %v18381_v3  ;;  %v6650_v3 = vld [vmem:[#allocation2 + $0xc0] sm:$0xfc] }
 0x78b   : > { %9289 = vmatprep.subr.bf16.mxu0 %v18386_v34  ;;  %v6652_v34 = vld [vmem:[#allocation2 + $0xd0] sm:$0x3]  ;;  %v6724_v50 = vrot.slane %v6650_v3, 2  ;;  %v18441_v3 = vld [vmem:[#allocation14 + $0x6c0] ss:$8 sps:$4 sm:$0xff]  }
 0x78c   : > { %v6725_v19 = vrot.slane %v6652_v34, 2  ;;  %v18446_v34 = vld [vmem:[#allocation14 + $0x6d4] ss:$8 sps:$4 sm:$0xff]  }
 0x78e   : > { %9290 = vmatpush1.bf16.msra.mxu0 %v18384_v6  ;;  %v6708_v6 = vsel %vm872_vm1, %v6706_v56, %v6707_v59  ;;  %v6726_v30 = vsel %vm872_vm1, %v6724_v50, %v6725_v19  ;;  %v18434_v56 = vld [vmem:[#allocation14 + $0x694] ss:$8 sps:$4 sm:$0xff]   ;;  %v18432_v59 = vld [vmem:[#allocation14 + $0x690] ss:$8 sps:$4 sm:$0xff]   ;;  %v6779_v19 = vld [vmem:[#allocation2 + $0x88] sm:$0xff] }
 0x78f   : > { %9291 = vmatprep.subr.bf16.mxu0 %v18389_v4  ;;  %v18411_v4 = vld [vmem:[#allocation14 + $0x620] ss:$8 sps:$4 sm:$0xff]  }
 0x792   : > { %9292 = vmatpush1.bf16.msra.mxu0 %v18387_v27  ;;  %v6659_v27 = vld [vmem:[#allocation2 + $0x108] sm:$0xfc] }
 0x793   : > { %9293 = vmatprep.subr.bf16.mxu0 %v18392_v7  ;;  %v6661_v7 = vld [vmem:[#allocation2 + $0x118] sm:$0x3]  ;;  %v6739_v23 = vrot.slane %v6659_v27, 2  ;;  %v18447_v27 = vld [vmem:[#allocation14 + $0x6e0] ss:$8 sps:$4 sm:$0xff]  }
 0x796   : > { %9294 = vmatpush1.bf16.msra.mxu0 %v18390_v10  ;;  %v6760_v10 = vpack.c.bf16 %v6714_v63, %v6708_v6  ;;  %v18438_v63 = vld [vmem:[#allocation14 + $0x6b0] ss:$8 sps:$4 sm:$0xff]  }
 0x797   : > { %9295 = vmatprep.subr.bf16.mxu0 %v18395_v51  ;;  %v6723_v51 = vsel %vm872_vm1, %v6721_v55, %v6722_v12  ;;  %v18435_v55 = vld [vmem:[#allocation14 + $0x6a0] ss:$8 sps:$4 sm:$0xff]   ;;  %v18440_v12 = vld [vmem:[#allocation14 + $0x6b4] ss:$8 sps:$4 sm:$0xff]   ;;  %v18444_v6 = vld [vmem:[#allocation14 + $0x6d0] ss:$8 sps:$4 sm:$0xff]  }
 0x79a   : > { %9296 = vmatpush1.bf16.msra.mxu0 %v18393_v43  ;;  %v18416_v43 = vld [vmem:[#allocation14 + $0x634] ss:$8 sps:$4 sm:$0xff]  }
 0x79b   : > { %9297 = vmatprep.subr.bf16.mxu0 %v18398_v13  ;;  %v6646_v13 = vld [vmem:[#allocation2 + $0xa0] sm:$0xfc] }
 0x79c   : > { %v6718_v18 = vrot.slane %v6646_v13, 2  ;;  %v6781_v13 = vld [vmem:[#allocation2 + $0xa8] sm:$0xff] }
 0x79d   : > { %v6793_v21 = vpack.c.bf16 %v6781_v13, %v6779_v19  ;;  %v18491_v13 = vld [vmem:[#allocation14 + $0x7c4] ss:$8 sps:$4 sm:$0xff]   ;;  %v18494_v19 = vld [vmem:[#allocation14 + $0x7d4] ss:$8 sps:$4 sm:$0xff]  }
 0x79e   : > { %9298 = vmatpush1.bf16.msra.mxu0 %v18396_v26  ;;  %v6648_v26 = vld [vmem:[#allocation2 + $0xb0] sm:$0x3] }
 0x79f   : > { %9299 = vmatprep.subr.bf16.mxu0 %v18401_v16  ;;  %v6763_v16 = vpack.c.bf16 %v6729_v1, %v6723_v51  ;;  %v6719_v42 = vrot.slane %v6648_v26, 2  ;;  %v18443_v1 = vld [vmem:[#allocation14 + $0x6c4] ss:$8 sps:$4 sm:$0xff]   ;;  %v6774_v26 = vld [vmem:[#allocation2 + $0x40] sm:$0xff] }
 0x7a0   : > { %v18455_v51 = vld [vmem:[#allocation14 + $0x704] ss:$8 sps:$4 sm:$0xff]  }
 0x7a1   : > { %v6720_v36 = vsel %vm872_vm1, %v6718_v18, %v6719_v42  ;;  %v6785_v18 = vld [vmem:[#allocation2 + $0xe8] sm:$0xff]  ;;  %v6778_v42 = vld [vmem:[#allocation2 + $0x80] sm:$0xff] }
 0x7a2   : > { %9300 = vmatpush1.bf16.msra.mxu0 %v18399_v20  ;;  %v6655_v20 = vld [vmem:[#allocation2 + $0xe8] sm:$0xfc]  ;;  %v6762_v39 = vpack.c.bf16 %v6726_v30, %v6720_v36  ;;  %v18464_v30 = vld [vmem:[#allocation14 + $0x734] ss:$8 sps:$4 sm:$0xff]  }
 0x7a3   : > { %9301 = vmatprep.subr.bf16.mxu0 %v18404_v0  ;;  %v6740_v0 = vrot.slane %v6661_v7, 2  ;;  %v6733_v62 = vrot.slane %v6655_v20, 2  ;;  %v18452_v7 = vld [vmem:[#allocation14 + $0x6f4] ss:$8 sps:$4 sm:$0xff]  }
 0x7a4   : > { %v18458_v20 = vld [vmem:[#allocation14 + $0x714] ss:$8 sps:$4 sm:$0xff]  }
 0x7a5   : > { %v6741_v31 = vsel %vm872_vm1, %v6739_v23, %v6740_v0  ;;  %v6735_v40 = vsel %vm872_vm1, %v6733_v62, %v6734_v37  ;;  %v18456_v23 = vld [vmem:[#allocation14 + $0x710] ss:$8 sps:$4 sm:$0xff]   ;;  %v18461_v0 = vld [vmem:[#allocation14 + $0x724] ss:$8 sps:$4 sm:$0xff]   ;;  %v6784_v36 = vld [vmem:[#allocation2 + $0xe0] sm:$0xff] }
 0x7a6   : > { %9302 = vmatpush1.bf16.msra.mxu0 %v18402_v32  ;;  %v6658_v32 = vld [vmem:[#allocation2 + $0x100] sm:$0xfc]  ;;  %v6765_v53 = vpack.c.bf16 %v6741_v31, %v6735_v40  ;;  %v6783_v37 = vld [vmem:[#allocation2 + $0xc8] sm:$0xff] }
 0x7a7   : > { %9344 = vmatprep.subr.bf16.mxu0 %v18407_v5  ;;  %v18417_v5 = vld [vmem:[#allocation14 + $0x640] ss:$8 sps:$4 sm:$0xff]   ;;  %v6736_v58 = vrot.slane %v6658_v32, 2  ;;  %v6795_v31 = vpack.c.bf16 %v6785_v18, %v6783_v37  ;;  %v18462_v32 = vld [vmem:[#allocation14 + $0x730] ss:$8 sps:$4 sm:$0xff]  }
 0x7a8   : > { %v6811_v40 = vld [vmem:[#allocation2 + $0x68] sm:$0xfe]  ;;  %v6806_v18 = vld [vmem:[#allocation2 + $0x40] sm:$0xfe] }
 0x7a9   : > { %9304 = vmatmul.mubr.bf16.vlgmr.msra.gmra.mrb[16].mxu0 %v6758_v45  ;;  %v6731_v45 = vrot.slane %v6656_v46, 2  ;;  %v18470_v46 = vld [vmem:[#allocation14 + $0x754] ss:$8 sps:$4 sm:$0xff]   ;;  %v18495_v37 = vld [vmem:[#allocation14 + $0x7e0] ss:$8 sps:$4 sm:$0xff]  }
 0x7aa   : > { %9313 = vmatprep.mubr.bf16.mxu0 %v6761_v28  ;;  %9345 = vmatpush1.bf16.msra.mxu0 %v18405_v9  ;;  %v6737_v9 = vrot.slane %v6660_v29, 2  ;;  %v18423_v28 = vld [vmem:[#allocation14 + $0x660] ss:$8 sps:$4 sm:$0xff]   ;;  %v18467_v29 = vld [vmem:[#allocation14 + $0x744] ss:$8 sps:$4 sm:$0xff]  }
 0x7ab   : > { %9346 = vmatprep.subr.bf16.mxu0 %v18410_v61  ;;  %v6732_v24 = vsel %vm872_vm1, %v6730_v17, %v6731_v45  ;;  %v6879_v17 = vrot.slane %v6811_v40, 1  ;;  %v6817_v40 = vld [vmem:[#allocation2 + $0x98] sm:$0x1] }
 0x7ac   : > { %v6738_v61 = vsel %vm872_vm1, %v6736_v58, %v6737_v9  ;;  %v6807_v9 = vld [vmem:[#allocation2 + $0x48] sm:$0xfe] }
 0x7ad   : > { %v6764_v35 = vpack.c.bf16 %v6738_v61, %v6732_v24  ;;  %v18473_v61 = vld [vmem:[#allocation14 + $0x764] ss:$8 sps:$4 sm:$0xff]   ;;  %v6873_v2 = vrot.slane %v6807_v9, 1  ;;  %v18498_v9 = vld [vmem:[#allocation14 + $0x7f0] ss:$8 sps:$4 sm:$0xff]  }
 0x7ae   : > { %9347 = vmatpush1.bf16.msra.mxu0 %v18408_v49  ;;  %v18429_v49 = vld [vmem:[#allocation14 + $0x680] ss:$8 sps:$4 sm:$0xff]  }
 0x7af   : > { %9348 = vmatprep.subr.bf16.mxu0 %v18413_v33  ;;  %v18437_v33 = vld [vmem:[#allocation14 + $0x6a4] ss:$8 sps:$4 sm:$0xff]  }
 0x7b1   : > { %9314 = vmatmul.mubr.bf16.gmra.mrb[20].mxu0 %v6760_v10  ;;  %v18450_v10 = vld [vmem:[#allocation14 + $0x6f0] ss:$8 sps:$4 sm:$0xff]  }
 0x7b2   : > { %9323 = vmatprep.mubr.bf16.mxu0 %v6763_v16  ;;  %9349 = vmatpush1.bf16.msra.mxu0 %v18411_v4  ;;  %v18449_v4 = vld [vmem:[#allocation14 + $0x6e4] ss:$8 sps:$4 sm:$0xff]   ;;  %v18453_v16 = vld [vmem:[#allocation14 + $0x700] ss:$8 sps:$4 sm:$0xff]  }
 0x7b3   : > { %9350 = vmatprep.subr.bf16.mxu0 %v18416_v43  ;;  %v6776_v43 = vld [vmem:[#allocation2 + $0x60] sm:$0xff] }
 0x7b4   : > { %v6790_v50 = vpack.c.bf16 %v6776_v43, %v6774_v26  ;;  %v18486_v43 = vld [vmem:[#allocation14 + $0x7b0] ss:$8 sps:$4 sm:$0xff]  }
 0x7b5   : > { %v18564_v26 = vld [vmem:[#allocation17 + $0x50] ss:$8 sps:$4 sm:$0xff]  }
 0x7b6   : > { %9351 = vmatpush1.bf16.msra.mxu0 %v18414_v25  ;;  %v6780_v25 = vld [vmem:[#allocation2 + $0xa0] sm:$0xff] }
 0x7b7   : > { %9352 = vmatprep.subr.bf16.mxu0 %v18419_v11  ;;  %v18459_v11 = vld [vmem:[#allocation14 + $0x720] ss:$8 sps:$4 sm:$0xff]   ;;  %v6792_v62 = vpack.c.bf16 %v6780_v25, %v6778_v42  ;;  %v18570_v25 = vld [vmem:[#allocation17 + $0x70] ss:$8 sps:$4 sm:$0xff]  }
 0x7b8   : > { %v6810_v42 = vld [vmem:[#allocation2 + $0x60] sm:$0xfe] }
 0x7b9   : > { %9324 = vmatmul.mubr.bf16.gmra.mrb[24].mxu0 %v6762_v39  ;;  %v18465_v39 = vld [vmem:[#allocation14 + $0x740] ss:$8 sps:$4 sm:$0xff]  }
 0x7ba   : > { %9333 = vmatprep.mubr.bf16.mxu0 %v6765_v53  ;;  %9353 = vmatpush1.bf16.msra.mxu0 %v18417_v5  ;;  %v6782_v5 = vld [vmem:[#allocation2 + $0xc0] sm:$0xff] }
 0x7bb   : > { %9354 = vmatprep.subr.bf16.mxu0 %v18422_v41  ;;  %v6813_v41 = vld [vmem:[#allocation2 + $0x78] sm:$0x1]  ;;  %v6794_v22 = vpack.c.bf16 %v6784_v36, %v6782_v5  ;;  %v20557_v53 = vld [vmem:[#allocation2] sm:$0xff]  ;;  %v6815_v36 = vld [vmem:[#allocation2 + $0x88] sm:$0xfe]  ;;  %v6876_v5 = vrot.slane %v6810_v42, 1 }
 0x7bc   : > { %v6797_v58 = vpack.c.bf16 %v20557_v53, %v20514_v14  ;;  %v6880_v45 = vrot.slane %v6813_v41, 1  ;;  %v6796_v54 = vpack.c.bf16 %v20557_v53, %v20521_v52  ;;  %v18477_v52 = vld [vmem:[#allocation14 + $0x780] ss:$8 sps:$4 sm:$0xff]  }
 0x7bd   : > { %v18573_v41 = vld [vmem:[#allocation17 + $0x80] ss:$8 sps:$4 sm:$0xff]  }
 0x7be   : > { %9355 = vmatpush1.bf16.msra.mxu0 %v18420_v8  ;;  %v6809_v8 = vld [vmem:[#allocation2 + $0x58] sm:$0x1]  ;;  %v6835_v42 = vld [vmem:[#allocation2 + $0x128] sm:$0xfe] }
 0x7bf   : > { %9356 = vmatprep.subr.bf16.mxu0 %v18425_v60  ;;  %v18468_v60 = vld [vmem:[#allocation14 + $0x750] ss:$8 sps:$4 sm:$0xff]   ;;  %v6874_v24 = vrot.slane %v6809_v8, 1  ;;  %v6870_v8 = vrot.slane %v6806_v18, 1  ;;  %v18507_v18 = vld [vmem:[#allocation14 + $0x820] ss:$8 sps:$4 sm:$0xff]  }
 0x7c1   : > { %9334 = vmatmul.mubr.bf16.gmra.mrb[28].mxu0 %v6764_v35  ;;  %v18471_v35 = vld [vmem:[#allocation14 + $0x760] ss:$8 sps:$4 sm:$0xff]   ;;  %v6875_v14 = vsel %vm799_vm0, %v6873_v2, %v6874_v24 }
 0x7c2   : > { %9357 = vmatpush1.bf16.msra.mxu0 %v18423_v28  ;;  %9376 = vmatprep.mubr.bf16.mxu0 %v6791_v44  ;;  %v6881_v28 = vsel %vm799_vm0, %v6879_v17, %v6880_v45  ;;  %v18503_v45 = vld [vmem:[#allocation14 + $0x804] ss:$8 sps:$4 sm:$0xff]   ;;  %v6818_v24 = vld [vmem:[#allocation2 + $0xa0] sm:$0xfe] }
 0x7c3   : > { %9358 = vmatprep.subr.bf16.mxu0 %v18428_v57  ;;  %v18476_v57 = vld [vmem:[#allocation14 + $0x774] ss:$8 sps:$4 sm:$0xff]   ;;  %v6935_v44 = vpack.c.bf16 %v6881_v28, %v6875_v14  ;;  %v6820_v28 = vld [vmem:[#allocation2 + $0xb0] sm:$0x1] }
 0x7c4   : > { %v6814_v14 = vld [vmem:[#allocation2 + $0x80] sm:$0xfe] }
 0x7c6   : > { %9359 = vmatpush1.bf16.msra.mxu0 %v18426_v15  ;;  %v18549_v15 = vld [vmem:[#allocation17] ss:$8 sps:$4 sm:$0xff]  }
 0x7c7   : > { %9360 = vmatprep.subr.bf16.mxu0 %v18431_v38  ;;  %v18551_v38 = vld [vmem:[#allocation17 + $0x4] ss:$8 sps:$4 sm:$0xff]  }
 0x7c8   : > { %12431 = vmatprep.subr.bf16.mxu1 %v18551_v38  ;;  %v6827_v38 = vld [vmem:[#allocation2 + $0xe8] sm:$0xfe] }
 0x7c9   : > { %12432 = vmatpush1.bf16.msra.mxu1 %v18549_v15  ;;  %v18501_v15 = vld [vmem:[#allocation14 + $0x800] ss:$8 sps:$4 sm:$0xff]  }
 0x7ca   : > { %9361 = vmatpush1.bf16.msra.mxu0 %v18429_v49  ;;  %v18474_v49 = vld [vmem:[#allocation14 + $0x770] ss:$8 sps:$4 sm:$0xff]  }
 0x7cb   : > { %9362 = vmatprep.subr.bf16.mxu0 %v18434_v56  ;;  %v18554_v56 = vld [vmem:[#allocation17 + $0x14] ss:$8 sps:$4 sm:$0xff]  }
 0x7cc   : > { %12433 = vmatprep.subr.bf16.mxu1 %v18554_v56 }
 0x7ce   : > { %9363 = vmatpush1.bf16.msra.mxu0 %v18432_v59  ;;  %v18479_v59 = vld [vmem:[#allocation14 + $0x784] ss:$8 sps:$4 sm:$0xff]  }
 0x7cf   : > { %9364 = vmatprep.subr.bf16.mxu0 %v18437_v33  ;;  %v18552_v33 = vld [vmem:[#allocation17 + $0x10] ss:$8 sps:$4 sm:$0xff]  }
 0x7d0   : > { %12434 = vmatpush1.bf16.msra.mxu1 %v18552_v33  ;;  %v18506_v33 = vld [vmem:[#allocation14 + $0x814] ss:$8 sps:$4 sm:$0xff]  }
 0x7d2   : > { %9365 = vmatpush1.bf16.msra.mxu0 %v18435_v55  ;;  %v18557_v55 = vld [vmem:[#allocation17 + $0x24] ss:$8 sps:$4 sm:$0xff]  }
 0x7d3   : > { %9366 = vmatprep.subr.bf16.mxu0 %v18440_v12  ;;  %v18482_v12 = vld [vmem:[#allocation14 + $0x794] ss:$8 sps:$4 sm:$0xff]   ;;  %12435 = vmatprep.subr.bf16.mxu1 %v18557_v55  ;;  %v6816_v55 = vld [vmem:[#allocation2 + $0x90] sm:$0x1] }
 0x7d6   : > { %9367 = vmatpush1.bf16.msra.mxu0 %v18438_v63  ;;  %v18555_v63 = vld [vmem:[#allocation17 + $0x20] ss:$8 sps:$4 sm:$0xff]  }
 0x7d7   : > { %9368 = vmatprep.subr.bf16.mxu0 %v18443_v1  ;;  %v18560_v1 = vld [vmem:[#allocation17 + $0x34] ss:$8 sps:$4 sm:$0xff]   ;;  %12436 = vmatpush1.bf16.msra.mxu1 %v18555_v63 }
 0x7d8   : > { %12437 = vmatprep.subr.bf16.mxu1 %v18560_v1  ;;  %v6823_v1 = vld [vmem:[#allocation2 + $0xc8] sm:$0xfe] }
 0x7da   : > { %9369 = vmatpush1.bf16.msra.mxu0 %v18441_v3  ;;  %v18480_v3 = vld [vmem:[#allocation14 + $0x790] ss:$8 sps:$4 sm:$0xff]  }
 0x7db   : > { %9370 = vmatprep.subr.bf16.mxu0 %v18446_v34  ;;  %v18485_v34 = vld [vmem:[#allocation14 + $0x7a4] ss:$8 sps:$4 sm:$0xff]  }
 0x7de   : > { %9371 = vmatpush1.bf16.msra.mxu0 %v18444_v6  ;;  %v18558_v6 = vld [vmem:[#allocation17 + $0x30] ss:$8 sps:$4 sm:$0xff]  }
 0x7df   : > { %9372 = vmatprep.subr.bf16.mxu0 %v18449_v4  ;;  %v18563_v4 = vld [vmem:[#allocation17 + $0x44] ss:$8 sps:$4 sm:$0xff]   ;;  %12438 = vmatpush1.bf16.msra.mxu1 %v18558_v6  ;;  %v6903_v6 = vrot.slane %v6827_v38, 1 }
 0x7e0   : > { %12439 = vmatprep.subr.bf16.mxu1 %v18563_v4 }
 0x7e2   : > { %9373 = vmatpush1.bf16.msra.mxu0 %v18447_v27  ;;  %v18483_v27 = vld [vmem:[#allocation14 + $0x7a0] ss:$8 sps:$4 sm:$0xff]  }
 0x7e3   : > { %9374 = vmatprep.subr.bf16.mxu0 %v18452_v7  ;;  %v18488_v7 = vld [vmem:[#allocation14 + $0x7b4] ss:$8 sps:$4 sm:$0xff]  }
 0x7e6   : > { %9375 = vmatpush1.bf16.msra.mxu0 %v18450_v10  ;;  %v18561_v10 = vld [vmem:[#allocation17 + $0x40] ss:$8 sps:$4 sm:$0xff]  }
 0x7e7   : > { %9417 = vmatprep.subr.bf16.mxu0 %v18455_v51  ;;  %v18566_v51 = vld [vmem:[#allocation17 + $0x54] ss:$8 sps:$4 sm:$0xff]   ;;  %12440 = vmatpush1.bf16.msra.mxu1 %v18561_v10  ;;  %v6882_v10 = vrot.slane %v6814_v14, 1  ;;  %v6955_v14 = vld [vmem:[#allocation2 + $0x68] sm:$0xfc] }
 0x7e8   : > { %12441 = vmatprep.subr.bf16.mxu1 %v18566_v51  ;;  %v6883_v51 = vrot.slane %v6816_v55, 1  ;;  %v6951_v55 = vld [vmem:[#allocation2 + $0x48] sm:$0xfc] }
 0x7e9   : > { %9377 = vmatmul.mubr.bf16.vlgmr.msra.gmra.mrb[16].mxu0 %v6790_v50  ;;  %v18489_v50 = vld [vmem:[#allocation14 + $0x7c0] ss:$8 sps:$4 sm:$0xff]  }
 0x7ea   : > { %9386 = vmatprep.mubr.bf16.mxu0 %v6793_v21  ;;  %9418 = vmatpush1.bf16.msra.mxu0 %v18453_v16  ;;  %v18569_v16 = vld [vmem:[#allocation17 + $0x64] ss:$8 sps:$4 sm:$0xff]   ;;  %v18572_v21 = vld [vmem:[#allocation17 + $0x74] ss:$8 sps:$4 sm:$0xff]  }
 0x7eb   : > { %9419 = vmatprep.subr.bf16.mxu0 %v18458_v20  ;;  %12442 = vmatpush1.bf16.msra.mxu1 %v18564_v26  ;;  %v18567_v20 = vld [vmem:[#allocation17 + $0x60] ss:$8 sps:$4 sm:$0xff]  }
 0x7ec   : > { %12443 = vmatprep.subr.bf16.mxu1 %v18569_v16 }
 0x7ee   : > { %9420 = vmatpush1.bf16.msra.mxu0 %v18456_v23  ;;  %v18492_v23 = vld [vmem:[#allocation14 + $0x7d0] ss:$8 sps:$4 sm:$0xff]  }
 0x7ef   : > { %9421 = vmatprep.subr.bf16.mxu0 %v18461_v0  ;;  %v18497_v0 = vld [vmem:[#allocation14 + $0x7e4] ss:$8 sps:$4 sm:$0xff]   ;;  %12444 = vmatpush1.bf16.msra.mxu1 %v18567_v20 }
 0x7f0   : > { %12445 = vmatprep.subr.bf16.mxu1 %v18572_v21  ;;  %v6828_v21 = vld [vmem:[#allocation2 + $0xf0] sm:$0x1] }
 0x7f1   : > { %9387 = vmatmul.mubr.bf16.gmra.mrb[20].mxu0 %v6792_v62  ;;  %v18575_v62 = vld [vmem:[#allocation17 + $0x84] ss:$8 sps:$4 sm:$0xff]  }
 0x7f2   : > { %9396 = vmatprep.mubr.bf16.mxu0 %v6795_v31  ;;  %9422 = vmatpush1.bf16.msra.mxu0 %v18459_v11  ;;  %v6812_v11 = vld [vmem:[#allocation2 + $0x70] sm:$0x1]  ;;  %v6821_v31 = vld [vmem:[#allocation2 + $0xb8] sm:$0x1] }
 0x7f3   : > { %9423 = vmatprep.subr.bf16.mxu0 %v18464_v30  ;;  %v6819_v30 = vld [vmem:[#allocation2 + $0xa8] sm:$0xfe]  ;;  %12446 = vmatpush1.bf16.msra.mxu1 %v18570_v25  ;;  %v6884_v25 = vsel %vm799_vm0, %v6882_v10, %v6883_v51 }
 0x7f4   : > { %12447 = vmatprep.subr.bf16.mxu1 %v18575_v62  ;;  %v18519_v10 = vld [vmem:[#allocation14 + $0x860] ss:$8 sps:$4 sm:$0xff]  }
 0x7f6   : > { %9424 = vmatpush1.bf16.msra.mxu0 %v18462_v32  ;;  %v18500_v32 = vld [vmem:[#allocation14 + $0x7f4] ss:$8 sps:$4 sm:$0xff]  }
 0x7f7   : > { %9425 = vmatprep.subr.bf16.mxu0 %v18467_v29  ;;  %v6808_v29 = vld [vmem:[#allocation2 + $0x50] sm:$0x1]  ;;  %12448 = vmatpush1.bf16.msra.mxu1 %v18573_v41  ;;  %v6915_v41 = vrot.slane %v6835_v42, 1 }
 0x7f8   : > { %v6871_v17 = vrot.slane %v6808_v29, 1  ;;  %v18539_v42 = vld [vmem:[#allocation14 + $0x8c4] ss:$8 sps:$4 sm:$0xff]  }
 0x7f9   : > { %9397 = vmatmul.mubr.bf16.gmra.mrb[24].mxu0 %v6794_v22  ;;  %v6891_v22 = vrot.slane %v6819_v30, 1  ;;  %v18512_v30 = vld [vmem:[#allocation14 + $0x834] ss:$8 sps:$4 sm:$0xff]  }
 0x7fa   : > { %9406 = vmatprep.mubr.bf16.mxu0 %v6797_v58  ;;  %9426 = vmatpush1.bf16.msra.mxu0 %v18465_v39  ;;  %v6877_v39 = vrot.slane %v6812_v11, 1  ;;  %v18578_v58 = vld [vmem:[#allocation17 + $0x94] ss:$8 sps:$4 sm:$0xff]   ;;  %v6837_v11 = vld [vmem:[#allocation2 + $0x138] sm:$0x1] }
 0x7fb   : > { %9427 = vmatprep.subr.bf16.mxu0 %v18470_v46  ;;  %v6892_v46 = vrot.slane %v6821_v31, 1  ;;  %12449 = vmatprep.subr.bf16.mxu1 %v18578_v58  ;;  %v6822_v31 = vld [vmem:[#allocation2 + $0xc0] sm:$0xfe] }
 0x7fc   : > { %v6878_v2 = vsel %vm799_vm0, %v6876_v5, %v6877_v39  ;;  %v6901_v5 = vrot.slane %v6828_v21, 1  ;;  %v6894_v58 = vrot.slane %v6822_v31, 1  ;;  %v18528_v21 = vld [vmem:[#allocation14 + $0x890] ss:$8 sps:$4 sm:$0xff]   ;;  %v6954_v31 = vld [vmem:[#allocation2 + $0x60] sm:$0xfc] }
 0x7fe   : > { %9428 = vmatpush1.bf16.msra.mxu0 %v18468_v60  ;;  %v6885_v60 = vrot.slane %v6815_v36, 1 }
 0x7ff   : > { %9429 = vmatprep.subr.bf16.mxu0 %v18473_v61  ;;  %v6886_v61 = vrot.slane %v6817_v40, 1 }
 0x801   : > { %9407 = vmatmul.mubr.bf16.gmra.mrb[28].mxu0 %v6796_v54  ;;  %v6893_v54 = vsel %vm799_vm0, %v6891_v22, %v6892_v46  ;;  %v6916_v22 = vrot.slane %v6837_v11, 1  ;;  %v18510_v46 = vld [vmem:[#allocation14 + $0x830] ss:$8 sps:$4 sm:$0xff]   ;;  %v18537_v11 = vld [vmem:[#allocation14 + $0x8c0] ss:$8 sps:$4 sm:$0xff]  }
 0x802   : > { %9430 = vmatpush1.bf16.msra.mxu0 %v18471_v35  ;;  %9449 = vmatprep.mubr.bf16.mxu0 %v6935_v44  ;;  %v18576_v35 = vld [vmem:[#allocation17 + $0x90] ss:$8 sps:$4 sm:$0xff]   ;;  %v6872_v44 = vsel %vm799_vm0, %v6870_v8, %v6871_v17  ;;  %v18515_v8 = vld [vmem:[#allocation14 + $0x844] ss:$8 sps:$4 sm:$0xff]  }
 0x803   : > { %9431 = vmatprep.subr.bf16.mxu0 %v18476_v57  ;;  %v18581_v57 = vld [vmem:[#allocation17 + $0xa4] ss:$8 sps:$4 sm:$0xff]   ;;  %v6934_v56 = vpack.c.bf16 %v6878_v2, %v6872_v44  ;;  %12450 = vmatpush1.bf16.msra.mxu1 %v18576_v35  ;;  %v6917_v2 = vsel %vm799_vm0, %v6915_v41, %v6916_v22  ;;  %v6952_v41 = vld [vmem:[#allocation2 + $0x50] sm:$0x3]  ;;  %v7020_v22 = vrot.slane %v6954_v31, 2 }
 0x804   : > { %12451 = vmatprep.subr.bf16.mxu1 %v18581_v57  ;;  %v6957_v57 = vld [vmem:[#allocation2 + $0x78] sm:$0x3] }
 0x806   : > { %9432 = vmatpush1.bf16.msra.mxu0 %v18474_v49  ;;  %v6829_v49 = vld [vmem:[#allocation2 + $0xf8] sm:$0x1] }
 0x807   : > { %9433 = vmatprep.subr.bf16.mxu0 %v18479_v59  ;;  %v6887_v59 = vsel %vm799_vm0, %v6885_v60, %v6886_v61  ;;  %v6904_v4 = vrot.slane %v6829_v49, 1  ;;  %v6832_v60 = vld [vmem:[#allocation2 + $0x110] sm:$0x1] }
 0x808   : > { %v6937_v63 = vpack.c.bf16 %v6893_v54, %v6887_v59  ;;  %v18513_v54 = vld [vmem:[#allocation14 + $0x840] ss:$8 sps:$4 sm:$0xff]   ;;  %v6907_v49 = vrot.slane %v6832_v60, 1 }
 0x809   : > { %v6905_v20 = vsel %vm799_vm0, %v6903_v6, %v6904_v4 }
 0x80a   : > { %9434 = vmatpush1.bf16.msra.mxu0 %v18477_v52  ;;  %v6888_v52 = vrot.slane %v6818_v24, 1  ;;  %v6834_v24 = vld [vmem:[#allocation2 + $0x120] sm:$0xfe] }
 0x80b   : > { %9435 = vmatprep.subr.bf16.mxu0 %v18482_v12  ;;  %v6889_v12 = vrot.slane %v6820_v28, 1  ;;  %v6836_v28 = vld [vmem:[#allocation2 + $0x130] sm:$0x1]  ;;  %v6912_v59 = vrot.slane %v6834_v24, 1 }
 0x80d   : > { %v6890_v16 = vsel %vm799_vm0, %v6888_v52, %v6889_v12  ;;  %v6953_v52 = vld [vmem:[#allocation2 + $0x58] sm:$0x3]  ;;  %v7023_v12 = vrot.slane %v6955_v14, 2  ;;  %v6964_v14 = vld [vmem:[#allocation2 + $0xb0] sm:$0x3] }
 0x80e   : > { %9436 = vmatpush1.bf16.msra.mxu0 %v18480_v3  ;;  %v6825_v3 = vld [vmem:[#allocation2 + $0xd8] sm:$0x1]  ;;  %v6936_v62 = vpack.c.bf16 %v6890_v16, %v6884_v25  ;;  %v7018_v6 = vrot.slane %v6953_v52, 2  ;;  %v18522_v16 = vld [vmem:[#allocation14 + $0x870] ss:$8 sps:$4 sm:$0xff]   ;;  %v7033_v52 = vrot.slane %v6964_v14, 2 }
 0x80f   : > { %9437 = vmatprep.subr.bf16.mxu0 %v18485_v34  ;;  %v18579_v34 = vld [vmem:[#allocation17 + $0xa0] ss:$8 sps:$4 sm:$0xff]   ;;  %v6898_v26 = vrot.slane %v6825_v3, 1  ;;  %v18536_v25 = vld [vmem:[#allocation14 + $0x8b4] ss:$8 sps:$4 sm:$0xff]  }
 0x810   : > { %12452 = vmatpush1.bf16.msra.mxu1 %v18579_v34  ;;  %v18521_v3 = vld [vmem:[#allocation14 + $0x864] ss:$8 sps:$4 sm:$0xff]   ;;  %v7017_v34 = vrot.slane %v6951_v55, 2  ;;  %v18588_v14 = vld [vmem:[#allocation17 + $0xd0] ss:$8 sps:$4 sm:$0xff]  }
 0x812   : > { %9438 = vmatpush1.bf16.msra.mxu0 %v18483_v27  ;;  %v18584_v27 = vld [vmem:[#allocation17 + $0xb4] ss:$8 sps:$4 sm:$0xff]  }
 0x813   : > { %9439 = vmatprep.subr.bf16.mxu0 %v18488_v7  ;;  %v18504_v7 = vld [vmem:[#allocation14 + $0x810] ss:$8 sps:$4 sm:$0xff]   ;;  %12453 = vmatprep.subr.bf16.mxu1 %v18584_v27 }
 0x816   : > { %9440 = vmatpush1.bf16.msra.mxu0 %v18486_v43  ;;  %v18509_v43 = vld [vmem:[#allocation14 + $0x824] ss:$8 sps:$4 sm:$0xff]  }
 0x817   : > { %9441 = vmatprep.subr.bf16.mxu0 %v18491_v13  ;;  %v6897_v13 = vrot.slane %v6823_v1, 1  ;;  %v18516_v1 = vld [vmem:[#allocation14 + $0x850] ss:$8 sps:$4 sm:$0xff]  }
 0x81a   : > { %9442 = vmatpush1.bf16.msra.mxu0 %v18489_v50  ;;  %v6826_v50 = vld [vmem:[#allocation2 + $0xe0] sm:$0xfe] }
 0x81b   : > { %9443 = vmatprep.subr.bf16.mxu0 %v18494_v19  ;;  %v18582_v19 = vld [vmem:[#allocation17 + $0xb0] ss:$8 sps:$4 sm:$0xff]   ;;  %v6900_v36 = vrot.slane %v6826_v50, 1  ;;  %v18527_v50 = vld [vmem:[#allocation14 + $0x884] ss:$8 sps:$4 sm:$0xff]  }
 0x81c   : > { %12454 = vmatpush1.bf16.msra.mxu1 %v18582_v19  ;;  %v18525_v19 = vld [vmem:[#allocation14 + $0x880] ss:$8 sps:$4 sm:$0xff]  }
 0x81d   : > { %v6902_v17 = vsel %vm799_vm0, %v6900_v36, %v6901_v5  ;;  %v6963_v36 = vld [vmem:[#allocation2 + $0xa8] sm:$0xfc]  ;;  %v6965_v5 = vld [vmem:[#allocation2 + $0xb8] sm:$0x3] }
 0x81e   : > { %9444 = vmatpush1.bf16.msra.mxu0 %v18492_v23  ;;  %v6831_v23 = vld [vmem:[#allocation2 + $0x108] sm:$0xfe] }
 0x81f   : > { %9445 = vmatprep.subr.bf16.mxu0 %v18497_v0  ;;  %v6833_v0 = vld [vmem:[#allocation2 + $0x118] sm:$0x1]  ;;  %v6909_v39 = vrot.slane %v6831_v23, 1  ;;  %v18533_v23 = vld [vmem:[#allocation14 + $0x8a4] ss:$8 sps:$4 sm:$0xff]  }
 0x820   : > { %v6910_v40 = vrot.slane %v6833_v0, 1  ;;  %v18531_v0 = vld [vmem:[#allocation14 + $0x8a0] ss:$8 sps:$4 sm:$0xff]  }
 0x822   : > { %9446 = vmatpush1.bf16.msra.mxu0 %v18495_v37  ;;  %v6899_v37 = vsel %vm799_vm0, %v6897_v13, %v6898_v26  ;;  %v6911_v61 = vsel %vm799_vm0, %v6909_v39, %v6910_v40  ;;  %v18524_v13 = vld [vmem:[#allocation14 + $0x874] ss:$8 sps:$4 sm:$0xff]  }
 0x823   : > { %9447 = vmatprep.subr.bf16.mxu0 %v18500_v32  ;;  %v6824_v32 = vld [vmem:[#allocation2 + $0xd0] sm:$0x1]  ;;  %v6939_v29 = vpack.c.bf16 %v6905_v20, %v6899_v37  ;;  %v18530_v20 = vld [vmem:[#allocation14 + $0x894] ss:$8 sps:$4 sm:$0xff]   ;;  %v18540_v37 = vld [vmem:[#allocation14 + $0x8d0] ss:$8 sps:$4 sm:$0xff]  }
 0x824   : > { %v18548_v39 = vld [vmem:[#allocation14 + $0x8f4] ss:$8 sps:$4 sm:$0xff]  }
 0x825   : > { %v6950_v40 = vld [vmem:[#allocation2 + $0x40] sm:$0xfc] }
 0x826   : > { %9448 = vmatpush1.bf16.msra.mxu0 %v18498_v9  ;;  %v6895_v9 = vrot.slane %v6824_v32, 1  ;;  %v6956_v32 = vld [vmem:[#allocation2 + $0x70] sm:$0x3]  ;;  %v7014_v60 = vrot.slane %v6950_v40, 2 }
 0x827   : > { %9490 = vmatprep.subr.bf16.mxu0 %v18503_v45  ;;  %v6830_v45 = vld [vmem:[#allocation2 + $0x100] sm:$0xfe]  ;;  %v6976_v40 = vld [vmem:[#allocation2 + $0x110] sm:$0x3] }
 0x828   : > { %v6896_v35 = vsel %vm799_vm0, %v6894_v58, %v6895_v9  ;;  %v6906_v38 = vrot.slane %v6830_v45, 1  ;;  %v6959_v58 = vld [vmem:[#allocation2 + $0x88] sm:$0xfc]  ;;  %v6961_v9 = vld [vmem:[#allocation2 + $0x98] sm:$0x3] }
 0x829   : > { %9450 = vmatmul.mubr.bf16.vlgmr.msra.gmra.mrb[16].mxu0 %v6934_v56  ;;  %v6938_v44 = vpack.c.bf16 %v6902_v17, %v6896_v35  ;;  %v6941_v56 = vpack.c.bf16 %v6917_v2, %v6911_v61  ;;  %v7036_v17 = vrot.slane %v6965_v5, 2  ;;  %v18546_v45 = vld [vmem:[#allocation14 + $0x8f0] ss:$8 sps:$4 sm:$0xff]   ;;  %v7015_v61 = vrot.slane %v6952_v41, 2  ;;  %v6978_v41 = vld [vmem:[#allocation2 + $0x120] sm:$0xfc] }
 0x82a   : > { %9459 = vmatprep.mubr.bf16.mxu0 %v6937_v63  ;;  %9491 = vmatpush1.bf16.msra.mxu0 %v18501_v15  ;;  %v18518_v15 = vld [vmem:[#allocation14 + $0x854] ss:$8 sps:$4 sm:$0xff]   ;;  %v7024_v63 = vrot.slane %v6957_v57, 2  ;;  %v6908_v4 = vsel %vm799_vm0, %v6906_v38, %v6907_v49  ;;  %v7029_v2 = vrot.slane %v6959_v58, 2  ;;  %v7030_v24 = vrot.slane %v6961_v9, 2 }
 0x82b   : > { %9492 = vmatprep.subr.bf16.mxu0 %v18506_v33  ;;  %v6913_v33 = vrot.slane %v6836_v28, 1  ;;  %v7016_v57 = vsel %vm872_vm1, %v7014_v60, %v7015_v61 }
 0x82c   : > { %v7031_v49 = vsel %vm872_vm1, %v7029_v2, %v7030_v24 }
 0x82d   : > { %v6914_v27 = vsel %vm799_vm0, %v6912_v59, %v6913_v33  ;;  %v6960_v59 = vld [vmem:[#allocation2 + $0x90] sm:$0x3] }
 0x82e   : > { %9493 = vmatpush1.bf16.msra.mxu0 %v18504_v7  ;;  %v7025_v7 = vsel %vm872_vm1, %v7023_v12, %v7024_v63  ;;  %v6940_v51 = vpack.c.bf16 %v6914_v27, %v6908_v4  ;;  %v6967_v12 = vld [vmem:[#allocation2 + $0xc8] sm:$0xfc]  ;;  %v6969_v63 = vld [vmem:[#allocation2 + $0xd8] sm:$0x3] }
 0x82f   : > { %9494 = vmatprep.subr.bf16.mxu0 %v18509_v43  ;;  %v7019_v43 = vsel %vm872_vm1, %v7017_v34, %v7018_v6  ;;  %v7027_v6 = vrot.slane %v6960_v59, 2  ;;  %v7041_v4 = vrot.slane %v6967_v12, 2  ;;  %v7042_v27 = vrot.slane %v6969_v63, 2 }
 0x830   : > { %v7079_v26 = vpack.c.bf16 %v7025_v7, %v7019_v43  ;;  %v6972_v43 = vld [vmem:[#allocation2 + $0xf0] sm:$0x3] }
 0x831   : > { %9460 = vmatmul.mubr.bf16.gmra.mrb[20].mxu0 %v6936_v62  ;;  %v18542_v62 = vld [vmem:[#allocation14 + $0x8d4] ss:$8 sps:$4 sm:$0xff]  }
 0x832   : > { %9469 = vmatprep.mubr.bf16.mxu0 %v6939_v29  ;;  %9495 = vmatpush1.bf16.msra.mxu0 %v18507_v18  ;;  %v18534_v18 = vld [vmem:[#allocation14 + $0x8b0] ss:$8 sps:$4 sm:$0xff]   ;;  %v18543_v29 = vld [vmem:[#allocation14 + $0x8e0] ss:$8 sps:$4 sm:$0xff]  }
 0x833   : > { %9496 = vmatprep.subr.bf16.mxu0 %v18512_v30  ;;  %v18545_v30 = vld [vmem:[#allocation14 + $0x8e4] ss:$8 sps:$4 sm:$0xff]  }
 0x836   : > { %9497 = vmatpush1.bf16.msra.mxu0 %v18510_v46  ;;  %v7021_v46 = vrot.slane %v6956_v32, 2 }
 0x837   : > { %9498 = vmatprep.subr.bf16.mxu0 %v18515_v8  ;;  %v7035_v8 = vrot.slane %v6963_v36, 2  ;;  %v6974_v36 = vld [vmem:[#allocation2 + $0x100] sm:$0xfc] }
 0x838   : > { %v7022_v28 = vsel %vm872_vm1, %v7020_v22, %v7021_v46  ;;  %v6980_v22 = vld [vmem:[#allocation2 + $0x130] sm:$0x3]  ;;  %v7050_v9 = vrot.slane %v6974_v36, 2 }
 0x839   : > { %9470 = vmatmul.mubr.bf16.gmra.mrb[24].mxu0 %v6938_v44  ;;  %v7037_v35 = vsel %vm872_vm1, %v7035_v8, %v7036_v17  ;;  %v6971_v44 = vld [vmem:[#allocation2 + $0xe8] sm:$0xfc]  ;;  %v7078_v38 = vpack.c.bf16 %v7022_v28, %v7016_v57  ;;  %v7051_v17 = vrot.slane %v6976_v40, 2  ;;  %v7057_v60 = vrot.slane %v6980_v22, 2 }
 0x83a   : > { %9479 = vmatprep.mubr.bf16.mxu0 %v6941_v56  ;;  %9499 = vmatpush1.bf16.msra.mxu0 %v18513_v54  ;;  %v6962_v54 = vld [vmem:[#allocation2 + $0xa0] sm:$0xfc]  ;;  %v7081_v33 = vpack.c.bf16 %v7037_v35, %v7031_v49  ;;  %v18587_v35 = vld [vmem:[#allocation17 + $0xc4] ss:$8 sps:$4 sm:$0xff]  }
 0x83b   : > { %9500 = vmatprep.subr.bf16.mxu0 %v18518_v15  ;;  %v6973_v15 = vld [vmem:[#allocation2 + $0xf8] sm:$0x3]  ;;  %v6958_v56 = vld [vmem:[#allocation2 + $0x80] sm:$0xfc]  ;;  %v7032_v55 = vrot.slane %v6962_v54, 2  ;;  %v7052_v61 = vsel %vm872_vm1, %v7050_v9, %v7051_v17  ;;  %12455 = vmatprep.subr.bf16.mxu1 %v18587_v35 }
 0x83c   : > { %v7026_v34 = vrot.slane %v6958_v56, 2  ;;  %v18585_v28 = vld [vmem:[#allocation17 + $0xc0] ss:$8 sps:$4 sm:$0xff]   ;;  %v18590_v54 = vld [vmem:[#allocation17 + $0xd4] ss:$8 sps:$4 sm:$0xff]  }
 0x83d   : > { %v7034_v7 = vsel %vm872_vm1, %v7032_v55, %v7033_v52  ;;  %12456 = vmatpush1.bf16.msra.mxu1 %v18585_v28  ;;  %v18591_v57 = vld [vmem:[#allocation17 + $0xe0] ss:$8 sps:$4 sm:$0xff]   ;;  %v18599_v49 = vld [vmem:[#allocation17 + $0x104] ss:$8 sps:$4 sm:$0xff]   ;;  %v7454_v56 = vld [vmem:[#allocation16] sm:$0x3] }
 0x83e   : > { %9501 = vmatpush1.bf16.msra.mxu0 %v18516_v1  ;;  %v7047_v1 = vrot.slane %v6971_v44, 2  ;;  %12457 = vmatprep.subr.bf16.mxu1 %v18590_v54  ;;  %v18593_v44 = vld [vmem:[#allocation17 + $0xe4] ss:$8 sps:$4 sm:$0xff]   ;;  %v20596_v59 = vrot.slane %v7454_v56, %v20210_v47  ;;  %v18597_v40 = vld [vmem:[#allocation17 + $0x100] ss:$8 sps:$4 sm:$0xff]  }
 0x83f   : > { %9502 = vmatprep.subr.bf16.mxu0 %v18521_v3  ;;  %v7048_v3 = vrot.slane %v6973_v15, 2  ;;  %v18596_v15 = vld [vmem:[#allocation17 + $0xf4] ss:$8 sps:$4 sm:$0xff]   ;;  %v18600_v28 = vld [vmem:[#allocation17 + $0x110] ss:$8 sps:$4 sm:$0xff]  }
 0x841   : > { %9480 = vmatmul.mubr.bf16.gmra.mrb[28].mxu0 %v6940_v51  ;;  %v6970_v51 = vld [vmem:[#allocation2 + $0xe0] sm:$0xfc]  ;;  %12458 = vmatpush1.bf16.msra.mxu1 %v18588_v14  ;;  %v18605_v14 = vld [vmem:[#allocation17 + $0x124] ss:$8 sps:$4 sm:$0xff]  }
 0x842   : > { %9503 = vmatpush1.bf16.msra.mxu0 %v18519_v10  ;;  %9522 = vmatprep.mubr.bf16.mxu0 %v7079_v26  ;;  %v7049_v10 = vsel %vm872_vm1, %v7047_v1, %v7048_v3  ;;  %v7028_v26 = vsel %vm872_vm1, %v7026_v34, %v7027_v6 }
 0x843   : > { %9504 = vmatprep.subr.bf16.mxu0 %v18524_v13  ;;  %v6975_v13 = vld [vmem:[#allocation2 + $0x108] sm:$0xfc]  ;;  %12459 = vmatprep.subr.bf16.mxu1 %v18593_v44 }
 0x845   : > { %12460 = vmatpush1.bf16.msra.mxu1 %v18591_v57 }
 0x846   : > { %9505 = vmatpush1.bf16.msra.mxu0 %v18522_v16  ;;  %v6977_v16 = vld [vmem:[#allocation2 + $0x118] sm:$0x3]  ;;  %12461 = vmatprep.subr.bf16.mxu1 %v18596_v15 }
 0x847   : > { %9506 = vmatprep.subr.bf16.mxu0 %v18527_v50  ;;  %v6979_v50 = vld [vmem:[#allocation2 + $0x128] sm:$0xfc] }
 0x84a   : > { %9507 = vmatpush1.bf16.msra.mxu0 %v18525_v19  ;;  %v6981_v19 = vld [vmem:[#allocation2 + $0x138] sm:$0x3] }
 0x84b   : > { %9508 = vmatprep.subr.bf16.mxu0 %v18530_v20  ;;  %v7080_v20 = vpack.c.bf16 %v7034_v7, %v7028_v26 }
 0x84e   : > { %9509 = vmatpush1.bf16.msra.mxu0 %v18528_v21  ;;  %v7043_v21 = vsel %vm872_vm1, %v7041_v4, %v7042_v27 }
 0x84f   : > { %9510 = vmatprep.subr.bf16.mxu0 %v18533_v23  ;;  %v6966_v23 = vld [vmem:[#allocation2 + $0xc0] sm:$0xfc] }
 0x850   : > { %v7038_v31 = vrot.slane %v6966_v23, 2 }
 0x852   : > { %9511 = vmatpush1.bf16.msra.mxu0 %v18531_v0  ;;  %v6968_v0 = vld [vmem:[#allocation2 + $0xd0] sm:$0x3] }
 0x853   : > { %9512 = vmatprep.subr.bf16.mxu0 %v18536_v25  ;;  %v7083_v25 = vpack.c.bf16 %v7049_v10, %v7043_v21  ;;  %v7039_v32 = vrot.slane %v6968_v0, 2 }
 0x855   : > { %v7040_v46 = vsel %vm872_vm1, %v7038_v31, %v7039_v32 }
 0x856   : > { %9513 = vmatpush1.bf16.msra.mxu0 %v18534_v18  ;;  %v7044_v18 = vrot.slane %v6970_v51, 2 }
 0x857   : > { %9514 = vmatprep.subr.bf16.mxu0 %v18539_v42  ;;  %v7045_v42 = vrot.slane %v6972_v43, 2 }
 0x85a   : > { %9515 = vmatpush1.bf16.msra.mxu0 %v18537_v11  ;;  %v7053_v11 = vrot.slane %v6975_v13, 2 }
 0x85b   : > { %9516 = vmatprep.subr.bf16.mxu0 %v18542_v62  ;;  %v7054_v62 = vrot.slane %v6977_v16, 2 }
 0x85d   : > { %v7055_v5 = vsel %vm872_vm1, %v7053_v11, %v7054_v62 }
 0x85e   : > { %9517 = vmatpush1.bf16.msra.mxu0 %v18540_v37  ;;  %v7059_v37 = vrot.slane %v6979_v50, 2 }
 0x85f   : > { %9518 = vmatprep.subr.bf16.mxu0 %v18545_v30  ;;  %v7060_v30 = vrot.slane %v6981_v19, 2 }
 0x862   : > { %9519 = vmatpush1.bf16.msra.mxu0 %v18543_v29  ;;  %v7046_v29 = vsel %vm872_vm1, %v7044_v18, %v7045_v42 }
 0x863   : > { %9520 = vmatprep.subr.bf16.mxu0 %v18548_v39  ;;  %v7061_v39 = vsel %vm872_vm1, %v7059_v37, %v7060_v30  ;;  %v7082_v58 = vpack.c.bf16 %v7046_v29, %v7040_v46 }
 0x864   : > { %v7085_v8 = vpack.c.bf16 %v7061_v39, %v7055_v5 }
 0x866   : > { %9521 = vmatpush1.bf16.msra.mxu0 %v18546_v45  ;;  %v7056_v45 = vrot.slane %v6978_v41, 2 }
 0x868   : > { %v7058_v2 = vsel %vm872_vm1, %v7056_v45, %v7057_v60 }
 0x869   : > { %9523 = vmatmul.mubr.bf16.vlgmr.msra.gmra.mrb[16].mxu0 %v7078_v38  ;;  %v7084_v24 = vpack.c.bf16 %v7058_v2, %v7052_v61  ;;  %v18594_v38 = vld [vmem:[#allocation17 + $0xf0] ss:$8 sps:$4 sm:$0xff]  }
 0x86a   : > { %9532 = vmatprep.mubr.bf16.mxu0 %v7081_v33  ;;  %12462 = vmatpush1.bf16.msra.mxu1 %v18594_v38  ;;  %v20599_v33 = vrot.slane %v7454_v56, %v20212_v48 }
 0x86b   : > { %12504 = vmatprep.subr.bf16.mxu1 %v18599_v49 }
 0x871   : > { %9533 = vmatmul.mubr.bf16.gmra.mrb[20].mxu0 %v7080_v20 }
 0x872   : > { %9542 = vmatprep.mubr.bf16.mxu0 %v7083_v25 }
 0x879   : > { %9543 = vmatmul.mubr.bf16.gmra.mrb[24].mxu0 %v7082_v58  ;;  %v18602_v58 = vld [vmem:[#allocation17 + $0x114] ss:$8 sps:$4 sm:$0xff]  }
 0x87a   : > { %9552 = vmatprep.mubr.bf16.mxu0 %v7085_v8 }
 0x881   : > { %9553 = vmatmul.mubr.bf16.gmra.mrb[28].mxu0 %v7084_v24 }
 0x93c   : > { %v9524_v55 = vpop.f32.mrb[16].mxu0 }
 0x93d   : > { %v16812_v52 = vadd.f32 %v9524_v55, %v20596_v59  ;;  %v9526_v12 = vpop.f32.mrb[17].mxu0 }
 0x93e   : > { %v16813_v63 = vadd.f32 %v9526_v12, %v20599_v33  ;;  %v9528_v1 = vpop.f32.mrb[18].mxu0  ;;  %v18603_v12 = vld [vmem:[#allocation17 + $0x120] ss:$8 sps:$4 sm:$0xff]  }
 0x93f   : > { %v9563_v3 = vmax.f32 %v16812_v52, 0.0  ;;  %v16814_v34 = vadd.f32 %v9528_v1, %v20596_v59  ;;  %v9530_v6 = vpop.f32.mrb[19].mxu0 }
 0x940   : > { %v9564_v4 = vmax.f32 %v16813_v63, 0.0  ;;  %v16815_v27 = vadd.f32 %v9530_v6, %v20599_v33  ;;  %v18608_v6 = vld [vmem:[#allocation17 + $0x134] ss:$8 sps:$4 sm:$0xff]  }
 0x941   : > { %v9595_v7 = vrot.slane %v9563_v3, 7  ;;  %v9565_v10 = vmax.f32 %v16814_v34, 0.0 }
 0x942   : > { %v9596_v51 = vrot.slane %v9564_v4, 7  ;;  %v9566_v43 = vmax.f32 %v16815_v27, 0.0 }
 0x943   : > { %9627 = vst [vmem:[#allocation3 + $0x20] sm:$0xfe] %v9595_v7  ;;  %9629 = vst [vmem:[#allocation3 + $0x30] sm:$0x1] %v9595_v7  ;;  %v9597_v13 = vrot.slane %v9565_v10, 7 }
 0x944   : > { %9630 = vst [vmem:[#allocation3 + $0x38] sm:$0x1] %v9596_v51  ;;  %9628 = vst [vmem:[#allocation3 + $0x28] sm:$0xfe] %v9596_v51  ;;  %v9598_v26 = vrot.slane %v9566_v43, 7  ;;  %v9534_v16 = vpop.f32.mrb[20].mxu0 }
 0x945   : > { %9631 = vst [vmem:[#allocation3 + $0x40] sm:$0xfe] %v9597_v13  ;;  %9633 = vst [vmem:[#allocation3 + $0x50] sm:$0x1] %v9597_v13  ;;  %v16816_v50 = vadd.f32 %v9534_v16, %v20596_v59  ;;  %v9536_v19 = vpop.f32.mrb[21].mxu0 }
 0x946   : > { %9632 = vst [vmem:[#allocation3 + $0x48] sm:$0xfe] %v9598_v26  ;;  %9634 = vst [vmem:[#allocation3 + $0x58] sm:$0x1] %v9598_v26  ;;  %v16817_v20 = vadd.f32 %v9536_v19, %v20599_v33  ;;  %v9538_v21 = vpop.f32.mrb[22].mxu0 }
 0x947   : > { %v9567_v23 = vmax.f32 %v16816_v50, 0.0  ;;  %v16818_v0 = vadd.f32 %v9538_v21, %v20596_v59  ;;  %v9540_v25 = vpop.f32.mrb[23].mxu0  ;;  %v18606_v50 = vld [vmem:[#allocation17 + $0x130] ss:$8 sps:$4 sm:$0xff]  }
 0x948   : > { %v9568_v18 = vmax.f32 %v16817_v20, 0.0  ;;  %v16819_v42 = vadd.f32 %v9540_v25, %v20599_v33 }
 0x949   : > { %v9599_v11 = vrot.slane %v9567_v23, 7  ;;  %v9569_v62 = vmax.f32 %v16818_v0, 0.0  ;;  %v18611_v23 = vld [vmem:[#allocation17 + $0x144] ss:$8 sps:$4 sm:$0xff]  }
 0x94a   : > { %v9600_v37 = vrot.slane %v9568_v18, 7  ;;  %v9570_v30 = vmax.f32 %v16819_v42, 0.0  ;;  %v9661_v31 = vld [vmem:[#allocation3 + $0x20] sm:$0xff] }
 0x94b   : > { %9635 = vst [vmem:[#allocation3 + $0x60] sm:$0xfe] %v9599_v11  ;;  %9637 = vst [vmem:[#allocation3 + $0x70] sm:$0x1] %v9599_v11  ;;  %v9601_v32 = vrot.slane %v9569_v62, 7  ;;  %v20609_v29 = vld [vmem:[#allocation3 + $0x28] sm:$0xff]  ;;  %v9675_v46 = vpack.c.bf16 %v9661_v31, %v20557_v53 }
 0x94c   : > { %9636 = vst [vmem:[#allocation3 + $0x68] sm:$0xfe] %v9600_v37  ;;  %9638 = vst [vmem:[#allocation3 + $0x78] sm:$0x1] %v9600_v37  ;;  %v9602_v36 = vrot.slane %v9570_v30, 7  ;;  %v9544_v5 = vpop.f32.mrb[24].mxu0  ;;  %v9676_v39 = vpack.c.bf16 %v20609_v29, %v20557_v53 }
 0x94d   : > { %9639 = vst [vmem:[#allocation3 + $0x80] sm:$0xfe] %v9601_v32  ;;  %9641 = vst [vmem:[#allocation3 + $0x90] sm:$0x1] %v9601_v32  ;;  %v16820_v41 = vadd.f32 %v9544_v5, %v20596_v59  ;;  %v9546_v22 = vpop.f32.mrb[25].mxu0  ;;  %v20615_v9 = vld [vmem:[#allocation3 + $0x48] sm:$0xff] }
 0x94e   : > { %9640 = vst [vmem:[#allocation3 + $0x88] sm:$0xfe] %v9602_v36  ;;  %9642 = vst [vmem:[#allocation3 + $0x98] sm:$0x1] %v9602_v36  ;;  %v16821_v8 = vadd.f32 %v9546_v22, %v20599_v33  ;;  %v9548_v17 = vpop.f32.mrb[26].mxu0  ;;  %12463 = vmatprep.mubr.bf16.mxu1 %v9676_v39  ;;  %v9996_v45 = vpack.c.bf16 %v20615_v9, %v20609_v29  ;;  %v20628_v63 = vld [vmem:[#allocation3 + $0x40] sm:$0xff] }
 0x94f   : > { %v9571_v60 = vmax.f32 %v16820_v41, 0.0  ;;  %v16822_v61 = vadd.f32 %v9548_v17, %v20596_v59  ;;  %v9550_v2 = vpop.f32.mrb[27].mxu0  ;;  %12464 = vmatmul.mubr.bf16.vlgmr.msra.gmra.mrb[16].mxu1 %v9675_v46  ;;  %v18609_v18 = vld [vmem:[#allocation17 + $0x140] ss:$8 sps:$4 sm:$0xff]   ;;  %v9698_v36 = vld [vmem:[#allocation3 + $0x38] sm:$0x1] }
 0x950   : > { %v9572_v24 = vmax.f32 %v16821_v8, 0.0  ;;  %v16823_v53 = vadd.f32 %v9550_v2, %v20599_v33  ;;  %12505 = vmatpush1.bf16.msra.mxu1 %v18597_v40  ;;  %v9692_v62 = vld [vmem:[#allocation3 + $0x8] sm:$0xfe]  ;;  %v18614_v39 = vld [vmem:[#allocation17 + $0x154] ss:$8 sps:$4 sm:$0xff]   ;;  %v9765_v17 = vrot.slane %v9698_v36, 1 }
 0x951   : > { %v9603_v35 = vrot.slane %v9571_v60, 7  ;;  %v9573_v54 = vmax.f32 %v16822_v61, 0.0  ;;  %12506 = vmatprep.subr.bf16.mxu1 %v18602_v58  ;;  %v9696_v32 = vld [vmem:[#allocation3 + $0x28] sm:$0xfe]  ;;  %v9758_v46 = vrot.slane %v9692_v62, 1 }
 0x952   : > { %v9604_v57 = vrot.slane %v9572_v24, 7  ;;  %v9574_v44 = vmax.f32 %v16823_v53, 0.0  ;;  %v20622_v15 = vld [vmem:[#allocation3 + $0x60] sm:$0xff]  ;;  %v9764_v8 = vrot.slane %v9696_v32, 1  ;;  %v18617_v61 = vld [vmem:[#allocation17 + $0x164] ss:$8 sps:$4 sm:$0xff]  }
 0x953   : > { %9643 = vst [vmem:[#allocation3 + $0xa0] sm:$0xfe] %v9603_v35  ;;  %9645 = vst [vmem:[#allocation3 + $0xb0] sm:$0x1] %v9603_v35  ;;  %v9605_v38 = vrot.slane %v9573_v54, 7  ;;  %v20624_v49 = vld [vmem:[#allocation3 + $0x68] sm:$0xff]  ;;  %v9677_v34 = vpack.c.bf16 %v20622_v15, %v20628_v63 }
 0x954   : > { %9644 = vst [vmem:[#allocation3 + $0xa8] sm:$0xfe] %v9604_v57  ;;  %9646 = vst [vmem:[#allocation3 + $0xb8] sm:$0x1] %v9604_v57  ;;  %v9606_v56 = vrot.slane %v9574_v44, 7  ;;  %12507 = vmatpush1.bf16.msra.mxu1 %v18600_v28  ;;  %v9554_v55 = vpop.f32.mrb[28].mxu0  ;;  %v9678_v52 = vpack.c.bf16 %v20624_v49, %v20615_v9  ;;  %v9766_v35 = vsel %vm799_vm0, %v9764_v8, %v9765_v17 }
 0x955   : > { %9647 = vst [vmem:[#allocation3 + $0xc0] sm:$0xfe] %v9605_v38  ;;  %9649 = vst [vmem:[#allocation3 + $0xd0] sm:$0x1] %v9605_v38  ;;  %v16824_v1 = vadd.f32 %v9554_v55, %v20596_v59  ;;  %v9556_v3 = vpop.f32.mrb[29].mxu0  ;;  %12508 = vmatprep.subr.bf16.mxu1 %v18605_v14  ;;  %v20633_v4 = vld [vmem:[#allocation3 + $0x88] sm:$0xff] }
 0x956   : > { %9648 = vst [vmem:[#allocation3 + $0xc8] sm:$0xfe] %v9606_v56  ;;  %9650 = vst [vmem:[#allocation3 + $0xd8] sm:$0x1] %v9606_v56  ;;  %v16825_v27 = vadd.f32 %v9556_v3, %v20599_v33  ;;  %v9558_v7 = vpop.f32.mrb[30].mxu0  ;;  %12473 = vmatprep.mubr.bf16.mxu1 %v9678_v52  ;;  %v9998_v10 = vpack.c.bf16 %v20633_v4, %v20624_v49  ;;  %v20640_v19 = vld [vmem:[#allocation3 + $0x80] sm:$0xff] }
 0x957   : > { %v9575_v51 = vmax.f32 %v16824_v1, 0.0  ;;  %v16826_v43 = vadd.f32 %v9558_v7, %v20596_v59  ;;  %v9560_v13 = vpop.f32.mrb[31].mxu0  ;;  %12474 = vmatmul.mubr.bf16.gmra.mrb[20].mxu1 %v9677_v34  ;;  %v9997_v37 = vpack.c.bf16 %v20640_v19, %v20622_v15  ;;  %v18612_v60 = vld [vmem:[#allocation17 + $0x150] ss:$8 sps:$4 sm:$0xff]   ;;  %v18615_v14 = vld [vmem:[#allocation17 + $0x160] ss:$8 sps:$4 sm:$0xff]  }
 0x958   : > { %v9576_v26 = vmax.f32 %v16825_v27, 0.0  ;;  %v16827_v16 = vadd.f32 %v9560_v13, %v20599_v33  ;;  %12509 = vmatpush1.bf16.msra.mxu1 %v18603_v12  ;;  %v9694_v33 = vld [vmem:[#allocation3 + $0x18] sm:$0x1]  ;;  %v18620_v44 = vld [vmem:[#allocation17 + $0x174] ss:$8 sps:$4 sm:$0xff]  }
 0x959   : > { %v9607_v20 = vrot.slane %v9575_v51, 7  ;;  %v9577_v21 = vmax.f32 %v16826_v43, 0.0  ;;  %12510 = vmatprep.subr.bf16.mxu1 %v18608_v6  ;;  %v9759_v58 = vrot.slane %v9694_v33, 1  ;;  %v18618_v56 = vld [vmem:[#allocation17 + $0x170] ss:$8 sps:$4 sm:$0xff]  }
 0x95a   : > { %v9608_v0 = vrot.slane %v9576_v26, 7  ;;  %v9578_v25 = vmax.f32 %v16827_v16, 0.0  ;;  %v20642_v42 = vld [vmem:[#allocation3 + $0xa0] sm:$0xff]  ;;  %v18623_v55 = vld [vmem:[#allocation17 + $0x184] ss:$8 sps:$4 sm:$0xff]  }
 0x95b   : > { %9651 = vst [vmem:[#allocation3 + $0xe0] sm:$0xfe] %v9607_v20  ;;  %9653 = vst [vmem:[#allocation3 + $0xf0] sm:$0x1] %v9607_v20  ;;  %v9609_v59 = vrot.slane %v9577_v21, 7  ;;  %v20644_v11 = vld [vmem:[#allocation3 + $0xa8] sm:$0xff]  ;;  %v9679_v5 = vpack.c.bf16 %v20642_v42, %v20640_v19  ;;  %v9760_v28 = vsel %vm799_vm0, %v9758_v46, %v9759_v58 }
 0x95c   : > { %9652 = vst [vmem:[#allocation3 + $0xe8] sm:$0xfe] %v9608_v0  ;;  %9654 = vst [vmem:[#allocation3 + $0xf8] sm:$0x1] %v9608_v0  ;;  %v9610_v30 = vrot.slane %v9578_v25, 7  ;;  %12511 = vmatpush1.bf16.msra.mxu1 %v18606_v50  ;;  %v9680_v31 = vpack.c.bf16 %v20644_v11, %v20633_v4  ;;  %v20654_v41 = vld [vmem:[#allocation3 + $0xc0] sm:$0xff]  ;;  %v9820_v38 = vpack.c.bf16 %v9766_v35, %v9760_v28 }
 0x95d   : > { %9657 = vst [vmem:[#allocation3 + $0x110] sm:$0x1] %v9609_v59  ;;  %9655 = vst [vmem:[#allocation3 + $0x100] sm:$0xfe] %v9609_v59  ;;  %12512 = vmatprep.subr.bf16.mxu1 %v18611_v23  ;;  %v20652_v40 = vld [vmem:[#allocation3 + $0xc8] sm:$0xff]  ;;  %v9999_v2 = vpack.c.bf16 %v20654_v41, %v20642_v42 }
 0x95e   : > { %9658 = vst [vmem:[#allocation3 + $0x118] sm:$0x1] %v9610_v30  ;;  %9656 = vst [vmem:[#allocation3 + $0x108] sm:$0xfe] %v9610_v30  ;;  %12483 = vmatprep.mubr.bf16.mxu1 %v9680_v31  ;;  %v10000_v22 = vpack.c.bf16 %v20652_v40, %v20644_v11  ;;  %v18621_v52 = vld [vmem:[#allocation17 + $0x180] ss:$8 sps:$4 sm:$0xff]  }
 0x95f   : > { %12484 = vmatmul.mubr.bf16.gmra.mrb[24].mxu1 %v9679_v5  ;;  %v18626_v12 = vld [vmem:[#allocation17 + $0x194] ss:$8 sps:$4 sm:$0xff]   ;;  %v18624_v1 = vld [vmem:[#allocation17 + $0x190] ss:$8 sps:$4 sm:$0xff]   ;;  %v18629_v3 = vld [vmem:[#allocation17 + $0x1a4] ss:$8 sps:$4 sm:$0xff]  }
 0x960   : > { %12513 = vmatpush1.bf16.msra.mxu1 %v18609_v18  ;;  %v18627_v34 = vld [vmem:[#allocation17 + $0x1a0] ss:$8 sps:$4 sm:$0xff]   ;;  %v18632_v6 = vld [vmem:[#allocation17 + $0x1b4] ss:$8 sps:$4 sm:$0xff]   ;;  %v18630_v27 = vld [vmem:[#allocation17 + $0x1b0] ss:$8 sps:$4 sm:$0xff]  }
 0x961   : > { %12514 = vmatprep.subr.bf16.mxu1 %v18614_v39  ;;  %v18635_v7 = vld [vmem:[#allocation17 + $0x1c4] ss:$8 sps:$4 sm:$0xff]   ;;  %v18633_v51 = vld [vmem:[#allocation17 + $0x1c0] ss:$8 sps:$4 sm:$0xff]   ;;  %v18638_v43 = vld [vmem:[#allocation17 + $0x1d4] ss:$8 sps:$4 sm:$0xff]  }
 0x962   : > { %v20660_v24 = vld [vmem:[#allocation3 + $0xe0] sm:$0xff]  ;;  %v18641_v26 = vld [vmem:[#allocation17 + $0x1e4] ss:$8 sps:$4 sm:$0xff]   ;;  %v9693_v50 = vld [vmem:[#allocation3 + $0x10] sm:$0x1] }
 0x963   : > { %v20662_v53 = vld [vmem:[#allocation3 + $0xe8] sm:$0xff]  ;;  %v9681_v57 = vpack.c.bf16 %v20660_v24, %v20654_v41  ;;  %v18636_v13 = vld [vmem:[#allocation17 + $0x1d0] ss:$8 sps:$4 sm:$0xff]   ;;  %v9697_v21 = vld [vmem:[#allocation3 + $0x30] sm:$0x1]  ;;  %v9756_v62 = vrot.slane %v9693_v50, 1 }
 0x964   : > { %12515 = vmatpush1.bf16.msra.mxu1 %v18612_v60  ;;  %v9682_v54 = vpack.c.bf16 %v20662_v53, %v20652_v40  ;;  %v9691_v16 = vld [vmem:[#allocation3] sm:$0xfe]  ;;  %v9704_v0 = vld [vmem:[#allocation3 + $0x68] sm:$0xfe]  ;;  %v9706_v25 = vld [vmem:[#allocation3 + $0x78] sm:$0x1] }
 0x965   : > { %12516 = vmatprep.subr.bf16.mxu1 %v18617_v61  ;;  %v9695_v20 = vld [vmem:[#allocation3 + $0x20] sm:$0xfe]  ;;  %v9755_v59 = vrot.slane %v9691_v16, 1  ;;  %v9762_v30 = vrot.slane %v9697_v21, 1  ;;  %v9700_v31 = vld [vmem:[#allocation3 + $0x48] sm:$0xfe] }
 0x966   : > { %12493 = vmatprep.mubr.bf16.mxu1 %v9682_v54  ;;  %v18639_v23 = vld [vmem:[#allocation17 + $0x1e0] ss:$8 sps:$4 sm:$0xff]   ;;  %v18644_v18 = vld [vmem:[#allocation17 + $0x1f4] ss:$8 sps:$4 sm:$0xff]   ;;  %v9761_v33 = vrot.slane %v9695_v20, 1  ;;  %v9776_v36 = vrot.slane %v9704_v0, 1 }
 0x967   : > { %12494 = vmatmul.mubr.bf16.gmra.mrb[28].mxu1 %v9681_v57  ;;  %v9702_v32 = vld [vmem:[#allocation3 + $0x58] sm:$0x1]  ;;  %v9777_v5 = vrot.slane %v9706_v25, 1  ;;  %v18647_v46 = vld [vmem:[#allocation17 + $0x204] ss:$8 sps:$4 sm:$0xff]   ;;  %v9770_v58 = vrot.slane %v9700_v31, 1  ;;  %v9757_v17 = vsel %vm799_vm0, %v9755_v59, %v9756_v62 }
 0x968   : > { %12517 = vmatpush1.bf16.msra.mxu1 %v18615_v14  ;;  %12536 = vmatprep.mubr.bf16.mxu1 %v9820_v38  ;;  %v18642_v39 = vld [vmem:[#allocation17 + $0x1f0] ss:$8 sps:$4 sm:$0xff]   ;;  %v9771_v8 = vrot.slane %v9702_v32, 1  ;;  %v9763_v60 = vsel %vm799_vm0, %v9761_v33, %v9762_v30  ;;  %v9705_v35 = vld [vmem:[#allocation3 + $0x70] sm:$0x1]  ;;  %v20713_v4 = vld [vmem:[#allocation3 + $0x108] sm:$0xff] }
 0x969   : > { %12518 = vmatprep.subr.bf16.mxu1 %v18620_v44  ;;  %v9778_v61 = vsel %vm799_vm0, %v9776_v36, %v9777_v5  ;;  %v9703_v28 = vld [vmem:[#allocation3 + $0x60] sm:$0xfe]  ;;  %v9712_v14 = vld [vmem:[#allocation3 + $0xa8] sm:$0xfe]  ;;  %v9714_v57 = vld [vmem:[#allocation3 + $0xb8] sm:$0x1]  ;;  %v9819_v44 = vpack.c.bf16 %v9763_v60, %v9757_v17  ;;  %v10002_v15 = vpack.c.bf16 %v20713_v4, %v20662_v53 }
 0x96a   : > { %v18645_v54 = vld [vmem:[#allocation17 + $0x200] ss:$8 sps:$4 sm:$0xff]   ;;  %v9772_v38 = vsel %vm799_vm0, %v9770_v58, %v9771_v8  ;;  %v9722_v62 = vld [vmem:[#allocation3 + $0xf8] sm:$0x1]  ;;  %v18656_v31 = vld [vmem:[#allocation17 + $0x234] ss:$8 sps:$4 sm:$0xff]  }
 0x96b   : > { %v9713_v0 = vld [vmem:[#allocation3 + $0xb0] sm:$0x1]  ;;  %v9720_v59 = vld [vmem:[#allocation3 + $0xe8] sm:$0xfe]  ;;  %v9707_v32 = vld [vmem:[#allocation3 + $0x80] sm:$0xfe] }
 0x96c   : > { %12519 = vmatpush1.bf16.msra.mxu1 %v18618_v56  ;;  %v18650_v56 = vld [vmem:[#allocation17 + $0x214] ss:$8 sps:$4 sm:$0xff]   ;;  %v9709_v36 = vld [vmem:[#allocation3 + $0x90] sm:$0x1]  ;;  %v9716_v58 = vld [vmem:[#allocation3 + $0xc8] sm:$0xfe] }
 0x96d   : > { %12520 = vmatprep.subr.bf16.mxu1 %v18623_v55  ;;  %v9699_v55 = vld [vmem:[#allocation3 + $0x40] sm:$0xfe]  ;;  %v9718_v8 = vld [vmem:[#allocation3 + $0xd8] sm:$0x1]  ;;  %v9800_v17 = vrot.slane %v9720_v59, 1  ;;  %v9801_v60 = vrot.slane %v9722_v62, 1 }
 0x96e   : > { %v18665_v62 = vld [vmem:[#allocation17 + $0x264] ss:$8 sps:$4 sm:$0xff]   ;;  %v18729_v9 = vld [vmem:[#allocation17 + $0x3c0] ss:$8 sps:$4 sm:$0xff]   ;;  %v18764_v41 = vld [vmem:[#allocation17 + $0x474] ss:$8 sps:$4 sm:$0xff]  }
 0x96f   : > { %v18731_v29 = vld [vmem:[#allocation17 + $0x3c4] ss:$8 sps:$4 sm:$0xff]   ;;  %v18759_v53 = vld [vmem:[#allocation17 + $0x460] ss:$8 sps:$4 sm:$0xff]  }
 0x970   : > { %12521 = vmatpush1.bf16.msra.mxu1 %v18621_v52  ;;  %v9701_v52 = vld [vmem:[#allocation3 + $0x50] sm:$0x1]  ;;  %v18755_v49 = vld [vmem:[#allocation17 + $0x444] ss:$8 sps:$4 sm:$0xff]  }
 0x971   : > { %12522 = vmatprep.subr.bf16.mxu1 %v18626_v12  ;;  %v9822_v12 = vpack.c.bf16 %v9778_v61, %v9772_v38  ;;  %v18654_v61 = vld [vmem:[#allocation17 + $0x230] ss:$8 sps:$4 sm:$0xff]   ;;  %v18657_v38 = vld [vmem:[#allocation17 + $0x240] ss:$8 sps:$4 sm:$0xff]  }
 0x972   : > { %v10012_v19 = vld [vmem:[#allocation3 + $0x28] sm:$0xfe] }
 0x974   : > { %12523 = vmatpush1.bf16.msra.mxu1 %v18624_v1  ;;  %v9773_v1 = vrot.slane %v9703_v28, 1  ;;  %v9779_v28 = vrot.slane %v9707_v32, 1 }
 0x975   : > { %12524 = vmatprep.subr.bf16.mxu1 %v18629_v3  ;;  %v9774_v3 = vrot.slane %v9705_v35, 1  ;;  %v9780_v35 = vrot.slane %v9709_v36, 1  ;;  %v18663_v36 = vld [vmem:[#allocation17 + $0x260] ss:$8 sps:$4 sm:$0xff]  }
 0x977   : > { %v9775_v20 = vsel %vm799_vm0, %v9773_v1, %v9774_v3  ;;  %v9781_v1 = vsel %vm799_vm0, %v9779_v28, %v9780_v35  ;;  %v9838_v3 = vld [vmem:[#allocation3 + $0x18] sm:$0x3]  ;;  %v18677_v28 = vld [vmem:[#allocation17 + $0x2a4] ss:$8 sps:$4 sm:$0xff]   ;;  %v18675_v35 = vld [vmem:[#allocation17 + $0x2a0] ss:$8 sps:$4 sm:$0xff]  }
 0x978   : > { %12525 = vmatpush1.bf16.msra.mxu1 %v18627_v34  ;;  %v9708_v34 = vld [vmem:[#allocation3 + $0x88] sm:$0xfe] }
 0x979   : > { %12526 = vmatprep.subr.bf16.mxu1 %v18632_v6  ;;  %v9710_v6 = vld [vmem:[#allocation3 + $0x98] sm:$0x1]  ;;  %v9782_v16 = vrot.slane %v9708_v34, 1  ;;  %v9840_v34 = vld [vmem:[#allocation3 + $0x28] sm:$0xfc] }
 0x97a   : > { %v9783_v50 = vrot.slane %v9710_v6, 1  ;;  %v9842_v6 = vld [vmem:[#allocation3 + $0x38] sm:$0x3] }
 0x97c   : > { %12527 = vmatpush1.bf16.msra.mxu1 %v18630_v27  ;;  %v9788_v27 = vrot.slane %v9712_v14, 1  ;;  %v9784_v30 = vsel %vm799_vm0, %v9782_v16, %v9783_v50  ;;  %v9794_v14 = vrot.slane %v9716_v58, 1  ;;  %v18666_v58 = vld [vmem:[#allocation17 + $0x270] ss:$8 sps:$4 sm:$0xff]  }
 0x97d   : > { %12528 = vmatprep.subr.bf16.mxu1 %v18635_v7  ;;  %v9789_v7 = vrot.slane %v9714_v57, 1  ;;  %v9795_v57 = vrot.slane %v9718_v8, 1  ;;  %v18671_v8 = vld [vmem:[#allocation17 + $0x284] ss:$8 sps:$4 sm:$0xff]  }
 0x97f   : > { %v9790_v21 = vsel %vm799_vm0, %v9788_v27, %v9789_v7  ;;  %v9796_v7 = vsel %vm799_vm0, %v9794_v14, %v9795_v57  ;;  %v18678_v14 = vld [vmem:[#allocation17 + $0x2b0] ss:$8 sps:$4 sm:$0xff]   ;;  %v18683_v57 = vld [vmem:[#allocation17 + $0x2c4] ss:$8 sps:$4 sm:$0xff]  }
 0x980   : > { %12529 = vmatpush1.bf16.msra.mxu1 %v18633_v51  ;;  %v18648_v51 = vld [vmem:[#allocation17 + $0x210] ss:$8 sps:$4 sm:$0xff]   ;;  %v9824_v5 = vpack.c.bf16 %v9790_v21, %v9784_v30  ;;  %v9903_v21 = vrot.slane %v9838_v3, 2  ;;  %v9841_v3 = vld [vmem:[#allocation3 + $0x30] sm:$0x3] }
 0x981   : > { %12530 = vmatprep.subr.bf16.mxu1 %v18638_v43  ;;  %v9767_v43 = vrot.slane %v9699_v55, 1  ;;  %v9719_v55 = vld [vmem:[#allocation3 + $0xe0] sm:$0xfe] }
 0x982   : > { %v9797_v16 = vrot.slane %v9719_v55, 1  ;;  %v18689_v55 = vld [vmem:[#allocation17 + $0x2e4] ss:$8 sps:$4 sm:$0xff]  }
 0x984   : > { %12531 = vmatpush1.bf16.msra.mxu1 %v18636_v13  ;;  %v9768_v13 = vrot.slane %v9701_v52, 1  ;;  %v9721_v52 = vld [vmem:[#allocation3 + $0xf0] sm:$0x1] }
 0x985   : > { %12532 = vmatprep.subr.bf16.mxu1 %v18641_v26  ;;  %v18653_v26 = vld [vmem:[#allocation17 + $0x224] ss:$8 sps:$4 sm:$0xff]   ;;  %v9798_v50 = vrot.slane %v9721_v52, 1  ;;  %v9835_v52 = vld [vmem:[#allocation3] sm:$0xfc] }
 0x986   : > { %v9769_v25 = vsel %vm799_vm0, %v9767_v43, %v9768_v13  ;;  %v9715_v43 = vld [vmem:[#allocation3 + $0xc0] sm:$0xfe]  ;;  %v9717_v13 = vld [vmem:[#allocation3 + $0xd0] sm:$0x1] }
 0x987   : > { %v9821_v33 = vpack.c.bf16 %v9775_v20, %v9769_v25  ;;  %v18660_v25 = vld [vmem:[#allocation17 + $0x250] ss:$8 sps:$4 sm:$0xff]   ;;  %v9792_v59 = vrot.slane %v9717_v13, 1 }
 0x988   : > { %12533 = vmatpush1.bf16.msra.mxu1 %v18639_v23  ;;  %v9711_v23 = vld [vmem:[#allocation3 + $0xa0] sm:$0xfe] }
 0x989   : > { %12534 = vmatprep.subr.bf16.mxu1 %v18644_v18  ;;  %v18651_v18 = vld [vmem:[#allocation17 + $0x220] ss:$8 sps:$4 sm:$0xff]  }
 0x98c   : > { %12535 = vmatpush1.bf16.msra.mxu1 %v18642_v39  ;;  %v9785_v39 = vrot.slane %v9711_v23, 1  ;;  %v9908_v23 = vrot.slane %v9840_v34, 2  ;;  %v18687_v34 = vld [vmem:[#allocation17 + $0x2e0] ss:$8 sps:$4 sm:$0xff]  }
 0x98d   : > { %12577 = vmatprep.subr.bf16.mxu1 %v18647_v46  ;;  %v9786_v46 = vrot.slane %v9713_v0, 1  ;;  %v9909_v0 = vrot.slane %v9842_v6, 2  ;;  %v9848_v6 = vld [vmem:[#allocation3 + $0x68] sm:$0xfc] }
 0x98f   : > { %12537 = vmatmul.mubr.bf16.vlgmr.msra.gmra.mrb[16].mxu1 %v9819_v44  ;;  %v9787_v44 = vsel %vm799_vm0, %v9785_v39, %v9786_v46  ;;  %v18668_v39 = vld [vmem:[#allocation17 + $0x274] ss:$8 sps:$4 sm:$0xff]  }
 0x990   : > { %12546 = vmatprep.mubr.bf16.mxu1 %v9822_v12  ;;  %12578 = vmatpush1.bf16.msra.mxu1 %v18645_v54  ;;  %v18659_v54 = vld [vmem:[#allocation17 + $0x244] ss:$8 sps:$4 sm:$0xff]   ;;  %v9823_v27 = vpack.c.bf16 %v9787_v44, %v9781_v1  ;;  %v18681_v44 = vld [vmem:[#allocation17 + $0x2c0] ss:$8 sps:$4 sm:$0xff]  }
 0x991   : > { %12579 = vmatprep.subr.bf16.mxu1 %v18650_v56  ;;  %v9802_v56 = vsel %vm799_vm0, %v9800_v17, %v9801_v60  ;;  %v9836_v12 = vld [vmem:[#allocation3 + $0x8] sm:$0xfc]  ;;  %v18674_v60 = vld [vmem:[#allocation17 + $0x294] ss:$8 sps:$4 sm:$0xff]  }
 0x992   : > { %v9902_v20 = vrot.slane %v9836_v12, 2  ;;  %v18669_v17 = vld [vmem:[#allocation17 + $0x280] ss:$8 sps:$4 sm:$0xff]  }
 0x993   : > { %v9837_v12 = vld [vmem:[#allocation3 + $0x10] sm:$0x3]  ;;  %v9839_v1 = vld [vmem:[#allocation3 + $0x20] sm:$0xfc] }
 0x994   : > { %12580 = vmatpush1.bf16.msra.mxu1 %v18648_v51  ;;  %v18662_v51 = vld [vmem:[#allocation17 + $0x254] ss:$8 sps:$4 sm:$0xff]   ;;  %v9904_v30 = vsel %vm872_vm1, %v9902_v20, %v9903_v21  ;;  %v9905_v13 = vrot.slane %v9839_v1, 2  ;;  %v9920_v20 = vrot.slane %v9848_v6, 2  ;;  %v9857_v6 = vld [vmem:[#allocation3 + $0xb0] sm:$0x3] }
 0x995   : > { %12581 = vmatprep.subr.bf16.mxu1 %v18653_v26  ;;  %v9826_v26 = vpack.c.bf16 %v9802_v56, %v9796_v7  ;;  %v18684_v56 = vld [vmem:[#allocation17 + $0x2d0] ss:$8 sps:$4 sm:$0xff]   ;;  %v18692_v7 = vld [vmem:[#allocation17 + $0x2f4] ss:$8 sps:$4 sm:$0xff]  }
 0x997   : > { %12547 = vmatmul.mubr.bf16.gmra.mrb[20].mxu1 %v9821_v33  ;;  %v9799_v33 = vsel %vm799_vm0, %v9797_v16, %v9798_v50  ;;  %v9844_v16 = vld [vmem:[#allocation3 + $0x48] sm:$0xfc]  ;;  %v9846_v50 = vld [vmem:[#allocation3 + $0x58] sm:$0x3] }
 0x998   : > { %12556 = vmatprep.mubr.bf16.mxu1 %v9824_v5  ;;  %12582 = vmatpush1.bf16.msra.mxu1 %v18651_v18  ;;  %v9791_v18 = vrot.slane %v9715_v43, 1  ;;  %v9900_v43 = vrot.slane %v9837_v12, 2 }
 0x999   : > { %12583 = vmatprep.subr.bf16.mxu1 %v18656_v31  ;;  %v9910_v31 = vsel %vm872_vm1, %v9908_v23, %v9909_v0  ;;  %v18690_v23 = vld [vmem:[#allocation17 + $0x2f0] ss:$8 sps:$4 sm:$0xff]   ;;  %v18695_v0 = vld [vmem:[#allocation17 + $0x304] ss:$8 sps:$4 sm:$0xff]  }
 0x99a   : > { %v9793_v32 = vsel %vm799_vm0, %v9791_v18, %v9792_v59  ;;  %v9964_v46 = vpack.c.bf16 %v9910_v31, %v9904_v30  ;;  %v9915_v18 = vrot.slane %v9846_v50, 2  ;;  %v9847_v30 = vld [vmem:[#allocation3 + $0x60] sm:$0xfc]  ;;  %v9849_v31 = vld [vmem:[#allocation3 + $0x70] sm:$0x3] }
 0x99b   : > { %v9825_v5 = vpack.c.bf16 %v9799_v33, %v9793_v32  ;;  %v18693_v32 = vld [vmem:[#allocation17 + $0x300] ss:$8 sps:$4 sm:$0xff]  }
 0x99c   : > { %12584 = vmatpush1.bf16.msra.mxu1 %v18654_v61  ;;  %v18672_v61 = vld [vmem:[#allocation17 + $0x290] ss:$8 sps:$4 sm:$0xff]   ;;  %v9851_v50 = vld [vmem:[#allocation3 + $0x80] sm:$0xfc] }
 0x99d   : > { %12585 = vmatprep.subr.bf16.mxu1 %v18659_v54  ;;  %v18680_v54 = vld [vmem:[#allocation17 + $0x2b4] ss:$8 sps:$4 sm:$0xff]  }
 0x99f   : > { %12557 = vmatmul.mubr.bf16.gmra.mrb[24].mxu1 %v9823_v27  ;;  %v9850_v27 = vld [vmem:[#allocation3 + $0x78] sm:$0x3] }
 0x9a0   : > { %12566 = vmatprep.mubr.bf16.mxu1 %v9826_v26  ;;  %12586 = vmatpush1.bf16.msra.mxu1 %v18657_v38  ;;  %v18686_v38 = vld [vmem:[#allocation17 + $0x2d4] ss:$8 sps:$4 sm:$0xff]   ;;  %v9906_v26 = vrot.slane %v9841_v3, 2  ;;  %v9921_v21 = vrot.slane %v9850_v27, 2 }
 0x9a1   : > { %12587 = vmatprep.subr.bf16.mxu1 %v18662_v51  ;;  %v9899_v51 = vrot.slane %v9835_v52, 2 }
 0x9a2   : > { %v9922_v33 = vsel %vm872_vm1, %v9920_v20, %v9921_v21  ;;  %v9853_v20 = vld [vmem:[#allocation3 + $0x90] sm:$0x3] }
 0x9a3   : > { %v9901_v59 = vsel %vm872_vm1, %v9899_v51, %v9900_v43  ;;  %v9864_v51 = vld [vmem:[#allocation3 + $0xe8] sm:$0xfc]  ;;  %v9866_v43 = vld [vmem:[#allocation3 + $0xf8] sm:$0x3] }
 0x9a4   : > { %12588 = vmatpush1.bf16.msra.mxu1 %v18660_v25  ;;  %v9914_v25 = vrot.slane %v9844_v16, 2  ;;  %v18704_v16 = vld [vmem:[#allocation17 + $0x334] ss:$8 sps:$4 sm:$0xff]  }
 0x9a5   : > { %12589 = vmatprep.subr.bf16.mxu1 %v18665_v62  ;;  %v9907_v62 = vsel %vm872_vm1, %v9905_v13, %v9906_v26 }
 0x9a7   : > { %12567 = vmatmul.mubr.bf16.gmra.mrb[28].mxu1 %v9825_v5  ;;  %v9858_v5 = vld [vmem:[#allocation3 + $0xb8] sm:$0x3] }
 0x9a8   : > { %12590 = vmatpush1.bf16.msra.mxu1 %v18663_v36  ;;  %12609 = vmatprep.mubr.bf16.mxu1 %v9964_v46  ;;  %v9856_v36 = vld [vmem:[#allocation3 + $0xa8] sm:$0xfc]  ;;  %v9916_v46 = vsel %vm872_vm1, %v9914_v25, %v9915_v18  ;;  %v9862_v18 = vld [vmem:[#allocation3 + $0xd8] sm:$0x3] }
 0x9a9   : > { %12591 = vmatprep.subr.bf16.mxu1 %v18668_v39  ;;  %v9963_v39 = vpack.c.bf16 %v9907_v62, %v9901_v59  ;;  %v9860_v25 = vld [vmem:[#allocation3 + $0xc8] sm:$0xfc]  ;;  %v9944_v59 = vrot.slane %v9864_v51, 2  ;;  %v9945_v62 = vrot.slane %v9866_v43, 2 }
 0x9aa   : > { %v18719_v51 = vld [vmem:[#allocation17 + $0x384] ss:$8 sps:$4 sm:$0xff]   ;;  %v18717_v43 = vld [vmem:[#allocation17 + $0x380] ss:$8 sps:$4 sm:$0xff]  }
 0x9ac   : > { %12592 = vmatpush1.bf16.msra.mxu1 %v18666_v58  ;;  %v18698_v58 = vld [vmem:[#allocation17 + $0x314] ss:$8 sps:$4 sm:$0xff]  }
 0x9ad   : > { %12593 = vmatprep.subr.bf16.mxu1 %v18671_v8  ;;  %v9843_v8 = vld [vmem:[#allocation3 + $0x40] sm:$0xfc] }
 0x9b0   : > { %12594 = vmatpush1.bf16.msra.mxu1 %v18669_v17  ;;  %v9845_v17 = vld [vmem:[#allocation3 + $0x50] sm:$0x3] }
 0x9b1   : > { %12595 = vmatprep.subr.bf16.mxu1 %v18674_v60  ;;  %v9966_v60 = vpack.c.bf16 %v9922_v33, %v9916_v46  ;;  %v18702_v33 = vld [vmem:[#allocation17 + $0x330] ss:$8 sps:$4 sm:$0xff]   ;;  %v9946_v46 = vsel %vm872_vm1, %v9944_v59, %v9945_v62  ;;  %v18743_v62 = vld [vmem:[#allocation17 + $0x404] ss:$8 sps:$4 sm:$0xff]  }
 0x9b2   : > { %v18738_v59 = vld [vmem:[#allocation17 + $0x3f0] ss:$8 sps:$4 sm:$0xff]  }
 0x9b4   : > { %12596 = vmatpush1.bf16.msra.mxu1 %v18672_v61  ;;  %v9917_v61 = vrot.slane %v9847_v30, 2  ;;  %v9923_v30 = vrot.slane %v9851_v50, 2  ;;  %v18723_v50 = vld [vmem:[#allocation17 + $0x3a0] ss:$8 sps:$4 sm:$0xff]  }
 0x9b5   : > { %12597 = vmatprep.subr.bf16.mxu1 %v18677_v28  ;;  %v9918_v28 = vrot.slane %v9849_v31, 2  ;;  %v9924_v31 = vrot.slane %v9853_v20, 2  ;;  %v18728_v20 = vld [vmem:[#allocation17 + $0x3b4] ss:$8 sps:$4 sm:$0xff]  }
 0x9b7   : > { %v9919_v1 = vsel %vm872_vm1, %v9917_v61, %v9918_v28 }
 0x9b8   : > { %12598 = vmatpush1.bf16.msra.mxu1 %v18675_v35  ;;  %v9852_v35 = vld [vmem:[#allocation3 + $0x88] sm:$0xfc] }
 0x9b9   : > { %12599 = vmatprep.subr.bf16.mxu1 %v18680_v54  ;;  %v9854_v54 = vld [vmem:[#allocation3 + $0x98] sm:$0x3]  ;;  %v9926_v52 = vrot.slane %v9852_v35, 2  ;;  %v18710_v35 = vld [vmem:[#allocation17 + $0x354] ss:$8 sps:$4 sm:$0xff]  }
 0x9ba   : > { %v9927_v12 = vrot.slane %v9854_v54, 2  ;;  %v9859_v54 = vld [vmem:[#allocation3 + $0xc0] sm:$0xfc] }
 0x9bc   : > { %12600 = vmatpush1.bf16.msra.mxu1 %v18678_v14  ;;  %v9932_v14 = vrot.slane %v9856_v36, 2  ;;  %v9928_v26 = vsel %vm872_vm1, %v9926_v52, %v9927_v12  ;;  %v9938_v36 = vrot.slane %v9860_v25, 2  ;;  %v18713_v12 = vld [vmem:[#allocation17 + $0x364] ss:$8 sps:$4 sm:$0xff]   ;;  %v18735_v25 = vld [vmem:[#allocation17 + $0x3e0] ss:$8 sps:$4 sm:$0xff]  }
 0x9bd   : > { %12601 = vmatprep.subr.bf16.mxu1 %v18683_v57  ;;  %v9933_v57 = vrot.slane %v9858_v5, 2  ;;  %v9939_v5 = vrot.slane %v9862_v18, 2  ;;  %v18740_v18 = vld [vmem:[#allocation17 + $0x3f4] ss:$8 sps:$4 sm:$0xff]  }
 0x9bf   : > { %v9934_v3 = vsel %vm872_vm1, %v9932_v14, %v9933_v57  ;;  %v9940_v28 = vsel %vm872_vm1, %v9938_v36, %v9939_v5  ;;  %v9861_v14 = vld [vmem:[#allocation3 + $0xd0] sm:$0x3]  ;;  %v18744_v36 = vld [vmem:[#allocation17 + $0x410] ss:$8 sps:$4 sm:$0xff]   ;;  %v18749_v5 = vld [vmem:[#allocation17 + $0x424] ss:$8 sps:$4 sm:$0xff]  }
 0x9c0   : > { %12602 = vmatpush1.bf16.msra.mxu1 %v18681_v44  ;;  %v18696_v44 = vld [vmem:[#allocation17 + $0x310] ss:$8 sps:$4 sm:$0xff]   ;;  %v9968_v21 = vpack.c.bf16 %v9934_v3, %v9928_v26  ;;  %v9970_v57 = vpack.c.bf16 %v9946_v46, %v9940_v28  ;;  %v9936_v52 = vrot.slane %v9861_v14, 2  ;;  %v18752_v46 = vld [vmem:[#allocation17 + $0x434] ss:$8 sps:$4 sm:$0xff]  }
 0x9c1   : > { %12603 = vmatprep.subr.bf16.mxu1 %v18686_v38  ;;  %v9911_v38 = vrot.slane %v9843_v8, 2  ;;  %v9865_v8 = vld [vmem:[#allocation3 + $0xf0] sm:$0x3]  ;;  %v18720_v26 = vld [vmem:[#allocation17 + $0x390] ss:$8 sps:$4 sm:$0xff]  }
 0x9c4   : > { %12604 = vmatpush1.bf16.msra.mxu1 %v18684_v56  ;;  %v9912_v56 = vrot.slane %v9845_v17, 2  ;;  %v9925_v17 = vsel %vm872_vm1, %v9923_v30, %v9924_v31  ;;  %v18741_v30 = vld [vmem:[#allocation17 + $0x400] ss:$8 sps:$4 sm:$0xff]  }
 0x9c5   : > { %12605 = vmatprep.subr.bf16.mxu1 %v18689_v55  ;;  %v18701_v55 = vld [vmem:[#allocation17 + $0x324] ss:$8 sps:$4 sm:$0xff]  }
 0x9c6   : > { %v9913_v27 = vsel %vm872_vm1, %v9911_v38, %v9912_v56  ;;  %v9942_v38 = vrot.slane %v9865_v8, 2  ;;  %v18708_v56 = vld [vmem:[#allocation17 + $0x350] ss:$8 sps:$4 sm:$0xff]  }
 0x9c7   : > { %v9965_v13 = vpack.c.bf16 %v9919_v1, %v9913_v27  ;;  %v18716_v27 = vld [vmem:[#allocation17 + $0x374] ss:$8 sps:$4 sm:$0xff]   ;;  %v10018_v8 = vld [vmem:[#allocation3 + $0x58] sm:$0x1] }
 0x9c8   : > { %12606 = vmatpush1.bf16.msra.mxu1 %v18687_v34  ;;  %v9855_v34 = vld [vmem:[#allocation3 + $0xa0] sm:$0xfc]  ;;  %v10085_v40 = vrot.slane %v10018_v8, 1 }
 0x9c9   : > { %12607 = vmatprep.subr.bf16.mxu1 %v18692_v7  ;;  %v18699_v7 = vld [vmem:[#allocation17 + $0x320] ss:$8 sps:$4 sm:$0xff]  }
 0x9cc   : > { %12608 = vmatpush1.bf16.msra.mxu1 %v18690_v23  ;;  %v9929_v23 = vrot.slane %v9855_v34, 2  ;;  %v18711_v34 = vld [vmem:[#allocation17 + $0x360] ss:$8 sps:$4 sm:$0xff]  }
 0x9cd   : > { %12650 = vmatprep.subr.bf16.mxu1 %v18695_v0  ;;  %v9930_v0 = vrot.slane %v9857_v6, 2 }
 0x9cf   : > { %12610 = vmatmul.mubr.bf16.vlgmr.msra.gmra.mrb[16].mxu1 %v9963_v39  ;;  %v9931_v39 = vsel %vm872_vm1, %v9929_v23, %v9930_v0  ;;  %v18732_v23 = vld [vmem:[#allocation17 + $0x3d0] ss:$8 sps:$4 sm:$0xff]   ;;  %v18737_v0 = vld [vmem:[#allocation17 + $0x3e4] ss:$8 sps:$4 sm:$0xff]  }
 0x9d0   : > { %12619 = vmatprep.mubr.bf16.mxu1 %v9966_v60  ;;  %12651 = vmatpush1.bf16.msra.mxu1 %v18693_v32  ;;  %v18707_v32 = vld [vmem:[#allocation17 + $0x344] ss:$8 sps:$4 sm:$0xff]   ;;  %v18705_v60 = vld [vmem:[#allocation17 + $0x340] ss:$8 sps:$4 sm:$0xff]   ;;  %v9967_v61 = vpack.c.bf16 %v9931_v39, %v9925_v17  ;;  %v18758_v17 = vld [vmem:[#allocation17 + $0x454] ss:$8 sps:$4 sm:$0xff]  }
 0x9d1   : > { %12652 = vmatprep.subr.bf16.mxu1 %v18698_v58  ;;  %v9863_v58 = vld [vmem:[#allocation3 + $0xe0] sm:$0xfc] }
 0x9d2   : > { %v18747_v39 = vld [vmem:[#allocation17 + $0x420] ss:$8 sps:$4 sm:$0xff]  }
 0x9d4   : > { %12653 = vmatpush1.bf16.msra.mxu1 %v18696_v44  ;;  %v9941_v44 = vrot.slane %v9863_v58, 2  ;;  %v10016_v58 = vld [vmem:[#allocation3 + $0x48] sm:$0xfe] }
 0x9d5   : > { %12654 = vmatprep.subr.bf16.mxu1 %v18701_v55  ;;  %v9935_v55 = vrot.slane %v9859_v54, 2  ;;  %v10084_v11 = vrot.slane %v10016_v58, 1 }
 0x9d6   : > { %v9943_v1 = vsel %vm872_vm1, %v9941_v44, %v9942_v38  ;;  %v18767_v44 = vld [vmem:[#allocation17 + $0x484] ss:$8 sps:$4 sm:$0xff]   ;;  %v18765_v38 = vld [vmem:[#allocation17 + $0x480] ss:$8 sps:$4 sm:$0xff]  }
 0x9d7   : > { %12620 = vmatmul.mubr.bf16.gmra.mrb[20].mxu1 %v9965_v13  ;;  %v9937_v3 = vsel %vm872_vm1, %v9935_v55, %v9936_v52  ;;  %v18722_v13 = vld [vmem:[#allocation17 + $0x394] ss:$8 sps:$4 sm:$0xff]   ;;  %v10086_v54 = vsel %vm799_vm0, %v10084_v11, %v10085_v40  ;;  %v18768_v55 = vld [vmem:[#allocation17 + $0x490] ss:$8 sps:$4 sm:$0xff]   ;;  %v18773_v52 = vld [vmem:[#allocation17 + $0x4a4] ss:$8 sps:$4 sm:$0xff]  }
 0x9d8   : > { %12629 = vmatprep.mubr.bf16.mxu1 %v9968_v21  ;;  %12655 = vmatpush1.bf16.msra.mxu1 %v18699_v7  ;;  %v9969_v6 = vpack.c.bf16 %v9943_v1, %v9937_v3  ;;  %v18714_v7 = vld [vmem:[#allocation17 + $0x370] ss:$8 sps:$4 sm:$0xff]   ;;  %v18779_v3 = vld [vmem:[#allocation17 + $0x4c4] ss:$8 sps:$4 sm:$0xff]  }
 0x9d9   : > { %12656 = vmatprep.subr.bf16.mxu1 %v18704_v16  ;;  %v18725_v16 = vld [vmem:[#allocation17 + $0x3a4] ss:$8 sps:$4 sm:$0xff]   ;;  %v18726_v21 = vld [vmem:[#allocation17 + $0x3b0] ss:$8 sps:$4 sm:$0xff]  }
 0x9da   : > { %v18774_v1 = vld [vmem:[#allocation17 + $0x4b0] ss:$8 sps:$4 sm:$0xff]  }
 0x9dc   : > { %12657 = vmatpush1.bf16.msra.mxu1 %v18702_v33  ;;  %v9979_v33 = vld [vmem:[#allocation3 + $0x20] sm:$0xff] }
 0x9dd   : > { %12658 = vmatprep.subr.bf16.mxu1 %v18707_v32  ;;  %v9995_v31 = vpack.c.bf16 %v20628_v63, %v9979_v33  ;;  %v18746_v32 = vld [vmem:[#allocation17 + $0x414] ss:$8 sps:$4 sm:$0xff]   ;;  %v18750_v63 = vld [vmem:[#allocation17 + $0x430] ss:$8 sps:$4 sm:$0xff]   ;;  %v18791_v33 = vld [vmem:[#allocation17 + $0x504] ss:$8 sps:$4 sm:$0xff]  }
 0x9df   : > { %12630 = vmatmul.mubr.bf16.gmra.mrb[24].mxu1 %v9967_v61  ;;  %v10078_v61 = vrot.slane %v10012_v19, 1  ;;  %v10021_v19 = vld [vmem:[#allocation3 + $0x70] sm:$0x1] }
 0x9e0   : > { %12639 = vmatprep.mubr.bf16.mxu1 %v9970_v57  ;;  %12659 = vmatpush1.bf16.msra.mxu1 %v18705_v60  ;;  %v18761_v60 = vld [vmem:[#allocation17 + $0x464] ss:$8 sps:$4 sm:$0xff]   ;;  %v18762_v57 = vld [vmem:[#allocation17 + $0x470] ss:$8 sps:$4 sm:$0xff]  }
 0x9e1   : > { %12660 = vmatprep.subr.bf16.mxu1 %v18710_v35  ;;  %v20720_v35 = vld [vmem:[#allocation3 + $0x100] sm:$0xff] }
 0x9e2   : > { %v10001_v14 = vpack.c.bf16 %v20720_v35, %v20660_v24  ;;  %v18771_v24 = vld [vmem:[#allocation17 + $0x4a0] ss:$8 sps:$4 sm:$0xff]  }
 0x9e4   : > { %12661 = vmatpush1.bf16.msra.mxu1 %v18708_v56  ;;  %v18770_v56 = vld [vmem:[#allocation17 + $0x494] ss:$8 sps:$4 sm:$0xff]  }
 0x9e5   : > { %12662 = vmatprep.subr.bf16.mxu1 %v18713_v12  ;;  %v18776_v12 = vld [vmem:[#allocation17 + $0x4b4] ss:$8 sps:$4 sm:$0xff]  }
 0x9e7   : > { %12640 = vmatmul.mubr.bf16.gmra.mrb[28].mxu1 %v9969_v6  ;;  %v18782_v6 = vld [vmem:[#allocation17 + $0x4d4] ss:$8 sps:$4 sm:$0xff]  }
 0x9e8   : > { %12663 = vmatpush1.bf16.msra.mxu1 %v18711_v34  ;;  %12682 = vmatprep.mubr.bf16.mxu1 %v9996_v45  ;;  %v18734_v45 = vld [vmem:[#allocation17 + $0x3d4] ss:$8 sps:$4 sm:$0xff]   ;;  %v18777_v34 = vld [vmem:[#allocation17 + $0x4c0] ss:$8 sps:$4 sm:$0xff]  }
 0x9e9   : > { %12664 = vmatprep.subr.bf16.mxu1 %v18716_v27  ;;  %v18780_v27 = vld [vmem:[#allocation17 + $0x4d0] ss:$8 sps:$4 sm:$0xff]  }
 0x9ec   : > { %12665 = vmatpush1.bf16.msra.mxu1 %v18714_v7  ;;  %v18785_v7 = vld [vmem:[#allocation17 + $0x4e4] ss:$8 sps:$4 sm:$0xff]  }
 0x9ed   : > { %12666 = vmatprep.subr.bf16.mxu1 %v18719_v51  ;;  %v10015_v51 = vld [vmem:[#allocation3 + $0x40] sm:$0xfe] }
 0x9f0   : > { %12667 = vmatpush1.bf16.msra.mxu1 %v18717_v43  ;;  %v10017_v43 = vld [vmem:[#allocation3 + $0x50] sm:$0x1] }
 0x9f1   : > { %12668 = vmatprep.subr.bf16.mxu1 %v18722_v13  ;;  %v18783_v13 = vld [vmem:[#allocation17 + $0x4e0] ss:$8 sps:$4 sm:$0xff]  }
 0x9f4   : > { %12669 = vmatpush1.bf16.msra.mxu1 %v18720_v26  ;;  %v10024_v26 = vld [vmem:[#allocation3 + $0x88] sm:$0xfe] }
 0x9f5   : > { %12670 = vmatprep.subr.bf16.mxu1 %v18725_v16  ;;  %v10026_v16 = vld [vmem:[#allocation3 + $0x98] sm:$0x1] }
 0x9f8   : > { %12671 = vmatpush1.bf16.msra.mxu1 %v18723_v50  ;;  %v18788_v50 = vld [vmem:[#allocation17 + $0x4f4] ss:$8 sps:$4 sm:$0xff]  }
 0x9f9   : > { %12672 = vmatprep.subr.bf16.mxu1 %v18728_v20  ;;  %v10011_v20 = vld [vmem:[#allocation3 + $0x20] sm:$0xfe] }
 0x9fc   : > { %12673 = vmatpush1.bf16.msra.mxu1 %v18726_v21  ;;  %v10013_v21 = vld [vmem:[#allocation3 + $0x30] sm:$0x1] }
 0x9fd   : > { %12674 = vmatprep.subr.bf16.mxu1 %v18731_v29  ;;  %v10081_v29 = vrot.slane %v10015_v51, 1 }
 0xa00   : > { %12675 = vmatpush1.bf16.msra.mxu1 %v18729_v9  ;;  %v10082_v9 = vrot.slane %v10017_v43, 1 }
 0xa01   : > { %12676 = vmatprep.subr.bf16.mxu1 %v18734_v45  ;;  %v10020_v45 = vld [vmem:[#allocation3 + $0x68] sm:$0xfe] }
 0xa04   : > { %12677 = vmatpush1.bf16.msra.mxu1 %v18732_v23  ;;  %v10022_v23 = vld [vmem:[#allocation3 + $0x78] sm:$0x1] }
 0xa05   : > { %12678 = vmatprep.subr.bf16.mxu1 %v18737_v0  ;;  %v10096_v0 = vrot.slane %v10024_v26, 1  ;;  %v10038_v26 = vld [vmem:[#allocation3 + $0xf8] sm:$0x1] }
 0xa08   : > { %12679 = vmatpush1.bf16.msra.mxu1 %v18735_v25  ;;  %v10097_v25 = vrot.slane %v10026_v16, 1 }
 0xa09   : > { %12680 = vmatprep.subr.bf16.mxu1 %v18740_v18  ;;  %v18786_v18 = vld [vmem:[#allocation17 + $0x4f0] ss:$8 sps:$4 sm:$0xff]  }
 0xa0c   : > { %12681 = vmatpush1.bf16.msra.mxu1 %v18738_v59  ;;  %v10075_v59 = vrot.slane %v10011_v20, 1  ;;  %v18798_v20 = vld [vmem:[#allocation17 + $0x530] ss:$8 sps:$4 sm:$0xff]  }
 0xa0d   : > { %12723 = vmatprep.subr.bf16.mxu1 %v18743_v62  ;;  %v10076_v62 = vrot.slane %v10013_v21, 1 }
 0xa0f   : > { %12683 = vmatmul.mubr.bf16.vlgmr.msra.gmra.mrb[16].mxu1 %v9995_v31  ;;  %v10091_v31 = vrot.slane %v10022_v23, 1  ;;  %v10115_v23 = vrot.slane %v10038_v26, 1  ;;  %v10168_v26 = vld [vmem:[#allocation3 + $0x88] sm:$0xfc] }
 0xa10   : > { %12692 = vmatprep.mubr.bf16.mxu1 %v9998_v10  ;;  %12724 = vmatpush1.bf16.msra.mxu1 %v18741_v30  ;;  %v18753_v10 = vld [vmem:[#allocation17 + $0x440] ss:$8 sps:$4 sm:$0xff]   ;;  %v10090_v30 = vrot.slane %v10020_v45, 1 }
 0xa11   : > { %12725 = vmatprep.subr.bf16.mxu1 %v18746_v32  ;;  %v10083_v32 = vsel %vm799_vm0, %v10081_v29, %v10082_v9  ;;  %v18803_v9 = vld [vmem:[#allocation17 + $0x544] ss:$8 sps:$4 sm:$0xff]  }
 0xa12   : > { %v10092_v8 = vsel %vm799_vm0, %v10090_v30, %v10091_v31  ;;  %v10160_v30 = vld [vmem:[#allocation3 + $0x48] sm:$0xfc]  ;;  %v10162_v31 = vld [vmem:[#allocation3 + $0x58] sm:$0x3] }
 0xa14   : > { %12726 = vmatpush1.bf16.msra.mxu1 %v18744_v36  ;;  %v10098_v36 = vsel %vm799_vm0, %v10096_v0, %v10097_v25 }
 0xa15   : > { %12727 = vmatprep.subr.bf16.mxu1 %v18749_v5  ;;  %v10023_v5 = vld [vmem:[#allocation3 + $0x80] sm:$0xfe] }
 0xa16   : > { %v10093_v11 = vrot.slane %v10023_v5, 1  ;;  %v18806_v5 = vld [vmem:[#allocation17 + $0x554] ss:$8 sps:$4 sm:$0xff]  }
 0xa17   : > { %12693 = vmatmul.mubr.bf16.gmra.mrb[20].mxu1 %v9997_v37  ;;  %v10014_v37 = vld [vmem:[#allocation3 + $0x38] sm:$0x1] }
 0xa18   : > { %12702 = vmatprep.mubr.bf16.mxu1 %v10000_v22  ;;  %12728 = vmatpush1.bf16.msra.mxu1 %v18747_v39  ;;  %v18756_v22 = vld [vmem:[#allocation17 + $0x450] ss:$8 sps:$4 sm:$0xff]   ;;  %v10079_v28 = vrot.slane %v10014_v37, 1  ;;  %v10025_v39 = vld [vmem:[#allocation3 + $0x90] sm:$0x1]  ;;  %v10142_v37 = vpack.c.bf16 %v10098_v36, %v10092_v8 }
 0xa19   : > { %12729 = vmatprep.subr.bf16.mxu1 %v18752_v46  ;;  %v10077_v46 = vsel %vm799_vm0, %v10075_v59, %v10076_v62  ;;  %v10094_v40 = vrot.slane %v10025_v39, 1  ;;  %v10041_v59 = vld [vmem:[#allocation3 + $0x110] sm:$0x1]  ;;  %v10035_v39 = vld [vmem:[#allocation3 + $0xe0] sm:$0xfe] }
 0xa1a   : > { %v10080_v42 = vsel %vm799_vm0, %v10078_v61, %v10079_v28  ;;  %v10139_v58 = vpack.c.bf16 %v10083_v32, %v10077_v46  ;;  %v10037_v46 = vld [vmem:[#allocation3 + $0xf0] sm:$0x1]  ;;  %v10158_v8 = vld [vmem:[#allocation3 + $0x38] sm:$0x3] }
 0xa1c   : > { %12730 = vmatpush1.bf16.msra.mxu1 %v18750_v63  ;;  %v18789_v63 = vld [vmem:[#allocation17 + $0x500] ss:$8 sps:$4 sm:$0xff]  }
 0xa1d   : > { %12731 = vmatprep.subr.bf16.mxu1 %v18755_v49  ;;  %v10032_v49 = vld [vmem:[#allocation3 + $0xc8] sm:$0xfe] }
 0xa1e   : > { %v10108_v61 = vrot.slane %v10032_v49, 1 }
 0xa1f   : > { %12703 = vmatmul.mubr.bf16.gmra.mrb[24].mxu1 %v9999_v2  ;;  %v10140_v2 = vpack.c.bf16 %v10086_v54, %v10080_v42  ;;  %v18792_v54 = vld [vmem:[#allocation17 + $0x510] ss:$8 sps:$4 sm:$0xff]   ;;  %v18797_v42 = vld [vmem:[#allocation17 + $0x524] ss:$8 sps:$4 sm:$0xff]  }
 0xa20   : > { %12712 = vmatprep.mubr.bf16.mxu1 %v10002_v15  ;;  %12732 = vmatpush1.bf16.msra.mxu1 %v18753_v10  ;;  %v10034_v10 = vld [vmem:[#allocation3 + $0xd8] sm:$0x1]  ;;  %v10019_v15 = vld [vmem:[#allocation3 + $0x60] sm:$0xfe] }
 0xa21   : > { %12733 = vmatprep.subr.bf16.mxu1 %v18758_v17  ;;  %v18794_v17 = vld [vmem:[#allocation17 + $0x514] ss:$8 sps:$4 sm:$0xff]   ;;  %v10109_v28 = vrot.slane %v10034_v10, 1  ;;  %v10118_v10 = vrot.slane %v10041_v59, 1 }
 0xa24   : > { %12734 = vmatpush1.bf16.msra.mxu1 %v18756_v22  ;;  %v10028_v22 = vld [vmem:[#allocation3 + $0xa8] sm:$0xfe] }
 0xa25   : > { %12735 = vmatprep.subr.bf16.mxu1 %v18761_v60  ;;  %v10030_v60 = vld [vmem:[#allocation3 + $0xb8] sm:$0x1] }
 0xa27   : > { %12713 = vmatmul.mubr.bf16.gmra.mrb[28].mxu1 %v10001_v14  ;;  %v10088_v14 = vrot.slane %v10021_v19, 1  ;;  %v18804_v19 = vld [vmem:[#allocation17 + $0x550] ss:$8 sps:$4 sm:$0xff]  }
 0xa28   : > { %12736 = vmatpush1.bf16.msra.mxu1 %v18759_v53  ;;  %12755 = vmatprep.mubr.bf16.mxu1 %v10140_v2  ;;  %v10087_v53 = vrot.slane %v10019_v15, 1  ;;  %v10103_v2 = vrot.slane %v10030_v60, 1  ;;  %v10229_v15 = vrot.slane %v10162_v31, 2  ;;  %v10223_v60 = vrot.slane %v10158_v8, 2 }
 0xa29   : > { %12737 = vmatprep.subr.bf16.mxu1 %v18764_v41  ;;  %v10102_v41 = vrot.slane %v10028_v22, 1 }
 0xa2c   : > { %12738 = vmatpush1.bf16.msra.mxu1 %v18762_v57  ;;  %v10095_v57 = vsel %vm799_vm0, %v10093_v11, %v10094_v40  ;;  %v10112_v11 = vrot.slane %v10037_v46, 1  ;;  %v18809_v40 = vld [vmem:[#allocation17 + $0x564] ss:$8 sps:$4 sm:$0xff]  }
 0xa2d   : > { %12739 = vmatprep.subr.bf16.mxu1 %v18767_v44  ;;  %v10110_v44 = vsel %vm799_vm0, %v10108_v61, %v10109_v28 }
 0xa30   : > { %12740 = vmatpush1.bf16.msra.mxu1 %v18765_v38  ;;  %v10031_v38 = vld [vmem:[#allocation3 + $0xc0] sm:$0xfe] }
 0xa31   : > { %12741 = vmatprep.subr.bf16.mxu1 %v18770_v56  ;;  %v10033_v56 = vld [vmem:[#allocation3 + $0xd0] sm:$0x1]  ;;  %v10105_v51 = vrot.slane %v10031_v38, 1 }
 0xa32   : > { %v10106_v43 = vrot.slane %v10033_v56, 1  ;;  %v18813_v38 = vld [vmem:[#allocation17 + $0x580] ss:$8 sps:$4 sm:$0xff]   ;;  %v18818_v56 = vld [vmem:[#allocation17 + $0x594] ss:$8 sps:$4 sm:$0xff]  }
 0xa34   : > { %12742 = vmatpush1.bf16.msra.mxu1 %v18768_v55  ;;  %v10089_v55 = vsel %vm799_vm0, %v10087_v53, %v10088_v14  ;;  %v10107_v0 = vsel %vm799_vm0, %v10105_v51, %v10106_v43  ;;  %v18807_v53 = vld [vmem:[#allocation17 + $0x560] ss:$8 sps:$4 sm:$0xff]  }
 0xa35   : > { %12743 = vmatprep.subr.bf16.mxu1 %v18773_v52  ;;  %v18795_v52 = vld [vmem:[#allocation17 + $0x520] ss:$8 sps:$4 sm:$0xff]  }
 0xa36   : > { %v10159_v51 = vld [vmem:[#allocation3 + $0x40] sm:$0xfc]  ;;  %v10161_v43 = vld [vmem:[#allocation3 + $0x50] sm:$0x3] }
 0xa38   : > { %12744 = vmatpush1.bf16.msra.mxu1 %v18771_v24  ;;  %v10040_v24 = vld [vmem:[#allocation3 + $0x108] sm:$0xfe] }
 0xa39   : > { %12745 = vmatprep.subr.bf16.mxu1 %v18776_v12  ;;  %v10042_v12 = vld [vmem:[#allocation3 + $0x118] sm:$0x1]  ;;  %v10120_v16 = vrot.slane %v10040_v24, 1  ;;  %v18819_v24 = vld [vmem:[#allocation17 + $0x5a0] ss:$8 sps:$4 sm:$0xff]  }
 0xa3c   : > { %12746 = vmatpush1.bf16.msra.mxu1 %v18774_v1  ;;  %v10141_v1 = vpack.c.bf16 %v10095_v57, %v10089_v55  ;;  %v18810_v57 = vld [vmem:[#allocation17 + $0x570] ss:$8 sps:$4 sm:$0xff]  }
 0xa3d   : > { %12747 = vmatprep.subr.bf16.mxu1 %v18779_v3  ;;  %v10104_v3 = vsel %vm799_vm0, %v10102_v41, %v10103_v2  ;;  %v18812_v41 = vld [vmem:[#allocation17 + $0x574] ss:$8 sps:$4 sm:$0xff]   ;;  %v18816_v55 = vld [vmem:[#allocation17 + $0x590] ss:$8 sps:$4 sm:$0xff]  }
 0xa40   : > { %12748 = vmatpush1.bf16.msra.mxu1 %v18777_v34  ;;  %v18800_v34 = vld [vmem:[#allocation17 + $0x534] ss:$8 sps:$4 sm:$0xff]  }
 0xa41   : > { %12749 = vmatprep.subr.bf16.mxu1 %v18782_v6  ;;  %v10027_v6 = vld [vmem:[#allocation3 + $0xa0] sm:$0xfe] }
 0xa42   : > { %v10099_v21 = vrot.slane %v10027_v6, 1  ;;  %v18830_v6 = vld [vmem:[#allocation17 + $0x5d4] ss:$8 sps:$4 sm:$0xff]  }
 0xa44   : > { %12750 = vmatpush1.bf16.msra.mxu1 %v18780_v27  ;;  %v10029_v27 = vld [vmem:[#allocation3 + $0xb0] sm:$0x1] }
 0xa45   : > { %12751 = vmatprep.subr.bf16.mxu1 %v18785_v7  ;;  %v10144_v7 = vpack.c.bf16 %v10110_v44, %v10104_v3  ;;  %v10100_v29 = vrot.slane %v10029_v27, 1  ;;  %v18815_v44 = vld [vmem:[#allocation17 + $0x584] ss:$8 sps:$4 sm:$0xff]   ;;  %v18828_v27 = vld [vmem:[#allocation17 + $0x5d0] ss:$8 sps:$4 sm:$0xff]  }
 0xa46   : > { %v18827_v3 = vld [vmem:[#allocation17 + $0x5c4] ss:$8 sps:$4 sm:$0xff]  }
 0xa47   : > { %v10101_v62 = vsel %vm799_vm0, %v10099_v21, %v10100_v29  ;;  %v10157_v21 = vld [vmem:[#allocation3 + $0x30] sm:$0x3]  ;;  %v10225_v29 = vrot.slane %v10159_v51, 2 }
 0xa48   : > { %12752 = vmatpush1.bf16.msra.mxu1 %v18783_v13  ;;  %v10036_v13 = vld [vmem:[#allocation3 + $0xe8] sm:$0xfe]  ;;  %v10143_v32 = vpack.c.bf16 %v10107_v0, %v10101_v62  ;;  %v10240_v0 = vrot.slane %v10168_v26, 2  ;;  %v10220_v62 = vrot.slane %v10157_v21, 2  ;;  %v10182_v26 = vld [vmem:[#allocation3 + $0xf8] sm:$0x3] }
 0xa49   : > { %12753 = vmatprep.subr.bf16.mxu1 %v18788_v50  ;;  %v10121_v50 = vrot.slane %v10042_v12, 1  ;;  %v10114_v45 = vrot.slane %v10036_v13, 1  ;;  %v18824_v12 = vld [vmem:[#allocation17 + $0x5b4] ss:$8 sps:$4 sm:$0xff]   ;;  %v18831_v13 = vld [vmem:[#allocation17 + $0x5e0] ss:$8 sps:$4 sm:$0xff]  }
 0xa4b   : > { %v10122_v25 = vsel %vm799_vm0, %v10120_v16, %v10121_v50  ;;  %v10116_v36 = vsel %vm799_vm0, %v10114_v45, %v10115_v23  ;;  %v10170_v16 = vld [vmem:[#allocation3 + $0x98] sm:$0x3]  ;;  %v18836_v50 = vld [vmem:[#allocation17 + $0x5f4] ss:$8 sps:$4 sm:$0xff]   ;;  %v10164_v45 = vld [vmem:[#allocation3 + $0x68] sm:$0xfc] }
 0xa4c   : > { %12754 = vmatpush1.bf16.msra.mxu1 %v18786_v18  ;;  %v10039_v18 = vld [vmem:[#allocation3 + $0x100] sm:$0xfe]  ;;  %v10166_v23 = vld [vmem:[#allocation3 + $0x78] sm:$0x3] }
 0xa4d   : > { %12796 = vmatprep.subr.bf16.mxu1 %v18791_v33  ;;  %v18801_v33 = vld [vmem:[#allocation17 + $0x540] ss:$8 sps:$4 sm:$0xff]   ;;  %v10117_v49 = vrot.slane %v10039_v18, 1  ;;  %v18834_v18 = vld [vmem:[#allocation17 + $0x5f0] ss:$8 sps:$4 sm:$0xff]   ;;  %v10235_v31 = vrot.slane %v10166_v23, 2 }
 0xa4e   : > { %v10259_v23 = vrot.slane %v10182_v26, 2 }
 0xa4f   : > { %12756 = vmatmul.mubr.bf16.vlgmr.msra.gmra.mrb[16].mxu1 %v10139_v58  ;;  %v10156_v58 = vld [vmem:[#allocation3 + $0x28] sm:$0xfc]  ;;  %v10119_v61 = vsel %vm799_vm0, %v10117_v49, %v10118_v10  ;;  %v10178_v10 = vld [vmem:[#allocation3 + $0xd8] sm:$0x3] }
 0xa50   : > { %12765 = vmatprep.mubr.bf16.mxu1 %v10142_v37  ;;  %12797 = vmatpush1.bf16.msra.mxu1 %v18789_v63  ;;  %v10146_v63 = vpack.c.bf16 %v10122_v25, %v10116_v36  ;;  %v10111_v37 = vrot.slane %v10035_v39, 1  ;;  %v10222_v22 = vrot.slane %v10156_v58, 2  ;;  %v10241_v25 = vrot.slane %v10170_v16, 2  ;;  %v10169_v39 = vld [vmem:[#allocation3 + $0x90] sm:$0x3] }
 0xa51   : > { %12798 = vmatprep.subr.bf16.mxu1 %v18794_v17  ;;  %v10228_v17 = vrot.slane %v10160_v30, 2  ;;  %v10234_v30 = vrot.slane %v10164_v45, 2  ;;  %v10176_v49 = vld [vmem:[#allocation3 + $0xc8] sm:$0xfc] }
 0xa52   : > { %v10242_v36 = vsel %vm872_vm1, %v10240_v0, %v10241_v25 }
 0xa53   : > { %v10230_v28 = vsel %vm872_vm1, %v10228_v17, %v10229_v15  ;;  %v10236_v8 = vsel %vm872_vm1, %v10234_v30, %v10235_v31  ;;  %v18842_v17 = vld [vmem:[#allocation17 + $0x614] ss:$8 sps:$4 sm:$0xff]  }
 0xa54   : > { %12799 = vmatpush1.bf16.msra.mxu1 %v18792_v54  ;;  %v10113_v54 = vsel %vm799_vm0, %v10111_v37, %v10112_v11  ;;  %v10163_v15 = vld [vmem:[#allocation3 + $0x60] sm:$0xfc]  ;;  %v10286_v37 = vpack.c.bf16 %v10242_v36, %v10236_v8  ;;  %v18857_v8 = vld [vmem:[#allocation17 + $0x664] ss:$8 sps:$4 sm:$0xff]  }
 0xa55   : > { %12800 = vmatprep.subr.bf16.mxu1 %v18797_v42  ;;  %v10145_v14 = vpack.c.bf16 %v10119_v61, %v10113_v54  ;;  %v10224_v42 = vsel %vm872_vm1, %v10222_v22, %v10223_v60  ;;  %v10172_v22 = vld [vmem:[#allocation3 + $0xa8] sm:$0xfc]  ;;  %v10174_v60 = vld [vmem:[#allocation3 + $0xb8] sm:$0x3]  ;;  %v10252_v61 = vrot.slane %v10176_v49, 2 }
 0xa56   : > { %v10284_v2 = vpack.c.bf16 %v10230_v28, %v10224_v42  ;;  %v10253_v28 = vrot.slane %v10178_v10, 2  ;;  %v18840_v54 = vld [vmem:[#allocation17 + $0x610] ss:$8 sps:$4 sm:$0xff]   ;;  %v18845_v42 = vld [vmem:[#allocation17 + $0x624] ss:$8 sps:$4 sm:$0xff]  }
 0xa57   : > { %12766 = vmatmul.mubr.bf16.gmra.mrb[20].mxu1 %v10141_v1  ;;  %v18822_v1 = vld [vmem:[#allocation17 + $0x5b0] ss:$8 sps:$4 sm:$0xff]   ;;  %v10179_v36 = vld [vmem:[#allocation3 + $0xe0] sm:$0xfc] }
 0xa58   : > { %12775 = vmatprep.mubr.bf16.mxu1 %v10144_v7  ;;  %12801 = vmatpush1.bf16.msra.mxu1 %v18795_v52  ;;  %v18821_v52 = vld [vmem:[#allocation17 + $0x5a4] ss:$8 sps:$4 sm:$0xff]   ;;  %v18852_v49 = vld [vmem:[#allocation17 + $0x650] ss:$8 sps:$4 sm:$0xff]   ;;  %v10255_v10 = vrot.slane %v10179_v36, 2 }
 0xa59   : > { %12802 = vmatprep.subr.bf16.mxu1 %v18800_v34  ;;  %v18825_v34 = vld [vmem:[#allocation17 + $0x5c0] ss:$8 sps:$4 sm:$0xff]   ;;  %v18833_v7 = vld [vmem:[#allocation17 + $0x5e4] ss:$8 sps:$4 sm:$0xff]  }
 0xa5c   : > { %12803 = vmatpush1.bf16.msra.mxu1 %v18798_v20  ;;  %v10155_v20 = vld [vmem:[#allocation3 + $0x20] sm:$0xfc] }
 0xa5d   : > { %12804 = vmatprep.subr.bf16.mxu1 %v18803_v9  ;;  %v10226_v9 = vrot.slane %v10161_v43, 2  ;;  %v10219_v59 = vrot.slane %v10155_v20, 2  ;;  %v18846_v20 = vld [vmem:[#allocation17 + $0x630] ss:$8 sps:$4 sm:$0xff]  }
 0xa5f   : > { %12776 = vmatmul.mubr.bf16.gmra.mrb[24].mxu1 %v10143_v32  ;;  %v10227_v32 = vsel %vm872_vm1, %v10225_v29, %v10226_v9  ;;  %v10221_v46 = vsel %vm872_vm1, %v10219_v59, %v10220_v62  ;;  %v18851_v9 = vld [vmem:[#allocation17 + $0x644] ss:$8 sps:$4 sm:$0xff]   ;;  %v10185_v59 = vld [vmem:[#allocation3 + $0x110] sm:$0x3] }
 0xa60   : > { %12785 = vmatprep.mubr.bf16.mxu1 %v10146_v63  ;;  %12805 = vmatpush1.bf16.msra.mxu1 %v18801_v33  ;;  %v18839_v33 = vld [vmem:[#allocation17 + $0x604] ss:$8 sps:$4 sm:$0xff]   ;;  %v18837_v63 = vld [vmem:[#allocation17 + $0x600] ss:$8 sps:$4 sm:$0xff]   ;;  %v10283_v58 = vpack.c.bf16 %v10227_v32, %v10221_v46  ;;  %v18854_v32 = vld [vmem:[#allocation17 + $0x654] ss:$8 sps:$4 sm:$0xff]  }
 0xa61   : > { %12806 = vmatprep.subr.bf16.mxu1 %v18806_v5  ;;  %v10167_v5 = vld [vmem:[#allocation3 + $0x80] sm:$0xfc] }
 0xa62   : > { %v10237_v11 = vrot.slane %v10167_v5, 2  ;;  %v10181_v5 = vld [vmem:[#allocation3 + $0xf0] sm:$0x3] }
 0xa64   : > { %12807 = vmatpush1.bf16.msra.mxu1 %v18804_v19  ;;  %v10165_v19 = vld [vmem:[#allocation3 + $0x70] sm:$0x3] }
 0xa65   : > { %12808 = vmatprep.subr.bf16.mxu1 %v18809_v40  ;;  %v10238_v40 = vrot.slane %v10169_v39, 2 }
 0xa67   : > { %12786 = vmatmul.mubr.bf16.gmra.mrb[28].mxu1 %v10145_v14  ;;  %v10232_v14 = vrot.slane %v10165_v19, 2 }
 0xa68   : > { %12809 = vmatpush1.bf16.msra.mxu1 %v18807_v53  ;;  %12828 = vmatprep.mubr.bf16.mxu1 %v10284_v2  ;;  %v10231_v53 = vrot.slane %v10163_v15, 2  ;;  %v10247_v2 = vrot.slane %v10174_v60, 2  ;;  %v10302_v15 = vld [vmem:[#allocation3 + $0x68] sm:$0xff] }
 0xa69   : > { %12810 = vmatprep.subr.bf16.mxu1 %v18812_v41  ;;  %v10246_v41 = vrot.slane %v10172_v22, 2  ;;  %v18860_v22 = vld [vmem:[#allocation17 + $0x674] ss:$8 sps:$4 sm:$0xff]  }
 0xa6c   : > { %12811 = vmatpush1.bf16.msra.mxu1 %v18810_v57  ;;  %v10239_v57 = vsel %vm872_vm1, %v10237_v11, %v10238_v40  ;;  %v10300_v40 = vld [vmem:[#allocation3 + $0x48] sm:$0xff] }
 0xa6d   : > { %12812 = vmatprep.subr.bf16.mxu1 %v18815_v44  ;;  %v10254_v44 = vsel %vm872_vm1, %v10252_v61, %v10253_v28  ;;  %v10316_v60 = vpack.c.bf16 %v10302_v15, %v10300_v40  ;;  %v18858_v61 = vld [vmem:[#allocation17 + $0x670] ss:$8 sps:$4 sm:$0xff]   ;;  %v18863_v28 = vld [vmem:[#allocation17 + $0x684] ss:$8 sps:$4 sm:$0xff]  }
 0xa70   : > { %12813 = vmatpush1.bf16.msra.mxu1 %v18813_v38  ;;  %v10175_v38 = vld [vmem:[#allocation3 + $0xc0] sm:$0xfc] }
 0xa71   : > { %12814 = vmatprep.subr.bf16.mxu1 %v18818_v56  ;;  %v10177_v56 = vld [vmem:[#allocation3 + $0xd0] sm:$0x3]  ;;  %v10249_v51 = vrot.slane %v10175_v38, 2 }
 0xa72   : > { %v10250_v43 = vrot.slane %v10177_v56, 2  ;;  %v18873_v38 = vld [vmem:[#allocation17 + $0x6c0] ss:$8 sps:$4 sm:$0xff]   ;;  %v18878_v56 = vld [vmem:[#allocation17 + $0x6d4] ss:$8 sps:$4 sm:$0xff]  }
 0xa74   : > { %12815 = vmatpush1.bf16.msra.mxu1 %v18816_v55  ;;  %v10233_v55 = vsel %vm872_vm1, %v10231_v53, %v10232_v14  ;;  %v10251_v0 = vsel %vm872_vm1, %v10249_v51, %v10250_v43  ;;  %v18866_v53 = vld [vmem:[#allocation17 + $0x694] ss:$8 sps:$4 sm:$0xff]   ;;  %v18864_v14 = vld [vmem:[#allocation17 + $0x690] ss:$8 sps:$4 sm:$0xff]   ;;  %v10304_v43 = vld [vmem:[#allocation3 + $0x88] sm:$0xff] }
 0xa75   : > { %12816 = vmatprep.subr.bf16.mxu1 %v18821_v52  ;;  %v18843_v52 = vld [vmem:[#allocation17 + $0x620] ss:$8 sps:$4 sm:$0xff]  }
 0xa78   : > { %12817 = vmatpush1.bf16.msra.mxu1 %v18819_v24  ;;  %v10184_v24 = vld [vmem:[#allocation3 + $0x108] sm:$0xfc] }
 0xa79   : > { %12818 = vmatprep.subr.bf16.mxu1 %v18824_v12  ;;  %v10186_v12 = vld [vmem:[#allocation3 + $0x118] sm:$0x3]  ;;  %v10264_v16 = vrot.slane %v10184_v24, 2  ;;  %v18879_v24 = vld [vmem:[#allocation17 + $0x6e0] ss:$8 sps:$4 sm:$0xff]  }
 0xa7c   : > { %12819 = vmatpush1.bf16.msra.mxu1 %v18822_v1  ;;  %v10285_v1 = vpack.c.bf16 %v10239_v57, %v10233_v55  ;;  %v18870_v57 = vld [vmem:[#allocation17 + $0x6b0] ss:$8 sps:$4 sm:$0xff]  }
 0xa7d   : > { %12820 = vmatprep.subr.bf16.mxu1 %v18827_v3  ;;  %v10248_v3 = vsel %vm872_vm1, %v10246_v41, %v10247_v2  ;;  %v18867_v41 = vld [vmem:[#allocation17 + $0x6a0] ss:$8 sps:$4 sm:$0xff]   ;;  %v18872_v2 = vld [vmem:[#allocation17 + $0x6b4] ss:$8 sps:$4 sm:$0xff]   ;;  %v18876_v55 = vld [vmem:[#allocation17 + $0x6d0] ss:$8 sps:$4 sm:$0xff]  }
 0xa80   : > { %12821 = vmatpush1.bf16.msra.mxu1 %v18825_v34  ;;  %v18848_v34 = vld [vmem:[#allocation17 + $0x634] ss:$8 sps:$4 sm:$0xff]  }
 0xa81   : > { %12822 = vmatprep.subr.bf16.mxu1 %v18830_v6  ;;  %v10171_v6 = vld [vmem:[#allocation3 + $0xa0] sm:$0xfc] }
 0xa82   : > { %v10243_v21 = vrot.slane %v10171_v6, 2  ;;  %v10306_v6 = vld [vmem:[#allocation3 + $0xa8] sm:$0xff] }
 0xa83   : > { %v10318_v26 = vpack.c.bf16 %v10306_v6, %v10304_v43  ;;  %v18917_v6 = vld [vmem:[#allocation17 + $0x7a4] ss:$8 sps:$4 sm:$0xff]   ;;  %v18915_v43 = vld [vmem:[#allocation17 + $0x7a0] ss:$8 sps:$4 sm:$0xff]  }
 0xa84   : > { %12823 = vmatpush1.bf16.msra.mxu1 %v18828_v27  ;;  %v10173_v27 = vld [vmem:[#allocation3 + $0xb0] sm:$0x3] }
 0xa85   : > { %12824 = vmatprep.subr.bf16.mxu1 %v18833_v7  ;;  %v10288_v7 = vpack.c.bf16 %v10254_v44, %v10248_v3  ;;  %v10244_v29 = vrot.slane %v10173_v27, 2  ;;  %v18875_v44 = vld [vmem:[#allocation17 + $0x6c4] ss:$8 sps:$4 sm:$0xff]   ;;  %v10299_v27 = vld [vmem:[#allocation3 + $0x40] sm:$0xff] }
 0xa86   : > { %v18887_v3 = vld [vmem:[#allocation17 + $0x704] ss:$8 sps:$4 sm:$0xff]  }
 0xa87   : > { %v10245_v62 = vsel %vm872_vm1, %v10243_v21, %v10244_v29  ;;  %v10310_v21 = vld [vmem:[#allocation3 + $0xe8] sm:$0xff]  ;;  %v10303_v29 = vld [vmem:[#allocation3 + $0x80] sm:$0xff] }
 0xa88   : > { %12825 = vmatpush1.bf16.msra.mxu1 %v18831_v13  ;;  %v10180_v13 = vld [vmem:[#allocation3 + $0xe8] sm:$0xfc]  ;;  %v10287_v30 = vpack.c.bf16 %v10251_v0, %v10245_v62  ;;  %v18896_v0 = vld [vmem:[#allocation17 + $0x734] ss:$8 sps:$4 sm:$0xff]  }
 0xa89   : > { %12826 = vmatprep.subr.bf16.mxu1 %v18836_v50  ;;  %v10265_v50 = vrot.slane %v10186_v12, 2  ;;  %v10258_v45 = vrot.slane %v10180_v13, 2  ;;  %v18884_v12 = vld [vmem:[#allocation17 + $0x6f4] ss:$8 sps:$4 sm:$0xff]  }
 0xa8a   : > { %v18890_v13 = vld [vmem:[#allocation17 + $0x714] ss:$8 sps:$4 sm:$0xff]  }
 0xa8b   : > { %v10266_v25 = vsel %vm872_vm1, %v10264_v16, %v10265_v50  ;;  %v10260_v31 = vsel %vm872_vm1, %v10258_v45, %v10259_v23  ;;  %v18888_v16 = vld [vmem:[#allocation17 + $0x710] ss:$8 sps:$4 sm:$0xff]   ;;  %v18893_v50 = vld [vmem:[#allocation17 + $0x724] ss:$8 sps:$4 sm:$0xff]  }
 0xa8c   : > { %12827 = vmatpush1.bf16.msra.mxu1 %v18834_v18  ;;  %v10183_v18 = vld [vmem:[#allocation3 + $0x100] sm:$0xfc]  ;;  %v10290_v39 = vpack.c.bf16 %v10266_v25, %v10260_v31  ;;  %v10308_v23 = vld [vmem:[#allocation3 + $0xc8] sm:$0xff] }
 0xa8d   : > { %12869 = vmatprep.subr.bf16.mxu1 %v18839_v33  ;;  %v18849_v33 = vld [vmem:[#allocation17 + $0x640] ss:$8 sps:$4 sm:$0xff]   ;;  %v10261_v46 = vrot.slane %v10183_v18, 2  ;;  %v10320_v25 = vpack.c.bf16 %v10310_v21, %v10308_v23  ;;  %v18894_v18 = vld [vmem:[#allocation17 + $0x730] ss:$8 sps:$4 sm:$0xff]  }
 0xa8e   : > { %v10309_v62 = vld [vmem:[#allocation3 + $0xe0] sm:$0xff]  ;;  %v10336_v31 = vld [vmem:[#allocation3 + $0x68] sm:$0xfe] }
 0xa8f   : > { %12829 = vmatmul.mubr.bf16.vlgmr.msra.gmra.mrb[16].mxu1 %v10283_v58  ;;  %v10256_v58 = vrot.slane %v10181_v5, 2  ;;  %v18902_v5 = vld [vmem:[#allocation17 + $0x754] ss:$8 sps:$4 sm:$0xff]   ;;  %v18918_v21 = vld [vmem:[#allocation17 + $0x7b0] ss:$8 sps:$4 sm:$0xff]   ;;  %v13125_v23 = vld [vmem:[#allocation20 + $0x1a0] sm:$0xff] }
 0xa90   : > { %12838 = vmatprep.mubr.bf16.mxu1 %v10286_v37  ;;  %12870 = vmatpush1.bf16.msra.mxu1 %v18837_v63  ;;  %v10262_v63 = vrot.slane %v10185_v59, 2  ;;  %v18855_v37 = vld [vmem:[#allocation17 + $0x660] ss:$8 sps:$4 sm:$0xff]   ;;  %v18899_v59 = vld [vmem:[#allocation17 + $0x744] ss:$8 sps:$4 sm:$0xff]  }
 0xa91   : > { %12871 = vmatprep.subr.bf16.mxu1 %v18842_v17  ;;  %v10257_v19 = vsel %vm872_vm1, %v10255_v10, %v10256_v58  ;;  %v10404_v10 = vrot.slane %v10336_v31, 1  ;;  %v18924_v31 = vld [vmem:[#allocation17 + $0x7d0] ss:$8 sps:$4 sm:$0xff]  }
 0xa92   : > { %v10263_v17 = vsel %vm872_vm1, %v10261_v46, %v10262_v63  ;;  %v10332_v63 = vld [vmem:[#allocation3 + $0x48] sm:$0xfe] }
 0xa93   : > { %v10289_v11 = vpack.c.bf16 %v10263_v17, %v10257_v19  ;;  %v18905_v17 = vld [vmem:[#allocation17 + $0x764] ss:$8 sps:$4 sm:$0xff]   ;;  %v10398_v15 = vrot.slane %v10332_v63, 1  ;;  %v10333_v63 = vld [vmem:[#allocation3 + $0x50] sm:$0x1] }
 0xa94   : > { %12872 = vmatpush1.bf16.msra.mxu1 %v18840_v54  ;;  %v18861_v54 = vld [vmem:[#allocation17 + $0x680] ss:$8 sps:$4 sm:$0xff]  }
 0xa95   : > { %12873 = vmatprep.subr.bf16.mxu1 %v18845_v42  ;;  %v18869_v42 = vld [vmem:[#allocation17 + $0x6a4] ss:$8 sps:$4 sm:$0xff]  }
 0xa97   : > { %12839 = vmatmul.mubr.bf16.gmra.mrb[20].mxu1 %v10285_v1  ;;  %v18882_v1 = vld [vmem:[#allocation17 + $0x6f0] ss:$8 sps:$4 sm:$0xff]  }
 0xa98   : > { %12848 = vmatprep.mubr.bf16.mxu1 %v10288_v7  ;;  %12874 = vmatpush1.bf16.msra.mxu1 %v18843_v52  ;;  %v18881_v52 = vld [vmem:[#allocation17 + $0x6e4] ss:$8 sps:$4 sm:$0xff]   ;;  %v18885_v7 = vld [vmem:[#allocation17 + $0x700] ss:$8 sps:$4 sm:$0xff]  }
 0xa99   : > { %12875 = vmatprep.subr.bf16.mxu1 %v18848_v34  ;;  %v10301_v34 = vld [vmem:[#allocation3 + $0x60] sm:$0xff] }
 0xa9a   : > { %v10315_v51 = vpack.c.bf16 %v10301_v34, %v10299_v27  ;;  %v13120_v27 = vld [vmem:[#allocation20 + $0x100] sm:$0xff] }
 0xa9c   : > { %12876 = vmatpush1.bf16.msra.mxu1 %v18846_v20  ;;  %v10305_v20 = vld [vmem:[#allocation3 + $0xa0] sm:$0xff] }
 0xa9d   : > { %12877 = vmatprep.subr.bf16.mxu1 %v18851_v9  ;;  %v18891_v9 = vld [vmem:[#allocation17 + $0x720] ss:$8 sps:$4 sm:$0xff]   ;;  %v10317_v45 = vpack.c.bf16 %v10305_v20, %v10303_v29 }
 0xa9f   : > { %12849 = vmatmul.mubr.bf16.gmra.mrb[24].mxu1 %v10287_v30  ;;  %v18897_v30 = vld [vmem:[#allocation17 + $0x740] ss:$8 sps:$4 sm:$0xff]  }
 0xaa0   : > { %12858 = vmatprep.mubr.bf16.mxu1 %v10290_v39  ;;  %12878 = vmatpush1.bf16.msra.mxu1 %v18849_v33  ;;  %v10307_v33 = vld [vmem:[#allocation3 + $0xc0] sm:$0xff] }
 0xaa1   : > { %12879 = vmatprep.subr.bf16.mxu1 %v18854_v32  ;;  %v10338_v32 = vld [vmem:[#allocation3 + $0x78] sm:$0x1]  ;;  %v10319_v36 = vpack.c.bf16 %v10309_v62, %v10307_v33  ;;  %v19050_v39 = vld [vmem:[#allocation2] sm:$0xff]  ;;  %v13126_v62 = vld [vmem:[#allocation20 + $0x1c0] sm:$0xff] }
 0xaa2   : > { %v10322_v46 = vpack.c.bf16 %v19050_v39, %v20713_v4  ;;  %v10405_v58 = vrot.slane %v10338_v32, 1  ;;  %v10321_v40 = vpack.c.bf16 %v19050_v39, %v20720_v35  ;;  %v13117_v35 = vld [vmem:[#allocation20 + $0xa0] sm:$0xff] }
 0xaa3   : > { %v13127_v33 = vld [vmem:[#allocation20 + $0x1e0] sm:$0xff] }
 0xaa4   : > { %12880 = vmatpush1.bf16.msra.mxu1 %v18852_v49  ;;  %v10334_v49 = vld [vmem:[#allocation3 + $0x58] sm:$0x1]  ;;  %v16408_v32 = vcombine.high %v13126_v62, %v13127_v33  ;;  %v13129_v39 = vld [vmem:[#allocation20 + $0x220] sm:$0xff] }
 0xaa5   : > { %12881 = vmatprep.subr.bf16.mxu1 %v18857_v8  ;;  %v18900_v8 = vld [vmem:[#allocation17 + $0x750] ss:$8 sps:$4 sm:$0xff]   ;;  %v10399_v19 = vrot.slane %v10334_v49, 1 }
 0xaa6   : > { %v10335_v49 = vld [vmem:[#allocation3 + $0x60] sm:$0xfe] }
 0xaa7   : > { %12859 = vmatmul.mubr.bf16.gmra.mrb[28].mxu1 %v10289_v11  ;;  %v18903_v11 = vld [vmem:[#allocation17 + $0x760] ss:$8 sps:$4 sm:$0xff]   ;;  %v10400_v4 = vsel %vm799_vm0, %v10398_v15, %v10399_v19  ;;  %v10346_v15 = vld [vmem:[#allocation3 + $0xb8] sm:$0x1] }
 0xaa8   : > { %12882 = vmatpush1.bf16.msra.mxu1 %v18855_v37  ;;  %12901 = vmatprep.mubr.bf16.mxu1 %v10316_v60  ;;  %v10406_v37 = vsel %vm799_vm0, %v10404_v10, %v10405_v58  ;;  %v10337_v10 = vld [vmem:[#allocation3 + $0x70] sm:$0x1]  ;;  %v16407_v58 = vcombine.low %v13126_v62, %v13127_v33 }
 0xaa9   : > { %12883 = vmatprep.subr.bf16.mxu1 %v18860_v22  ;;  %v18908_v22 = vld [vmem:[#allocation17 + $0x774] ss:$8 sps:$4 sm:$0xff]   ;;  %v10460_v60 = vpack.c.bf16 %v10406_v37, %v10400_v4  ;;  %v10401_v4 = vrot.slane %v10335_v49, 1 }
 0xaaa   : > { %v18932_v37 = vld [vmem:[#allocation17 + $0x7f4] ss:$8 sps:$4 sm:$0xff]  }
 0xaac   : > { %12884 = vmatpush1.bf16.msra.mxu1 %v18858_v61  ;;  %v13112_v61 = vld [vmem:[#allocation20] sm:$0xff] }
 0xaad   : > { %12885 = vmatprep.subr.bf16.mxu1 %v18863_v28  ;;  %v13113_v28 = vld [vmem:[#allocation20 + $0x20] sm:$0xff] }
 0xab0   : > { %12886 = vmatpush1.bf16.msra.mxu1 %v18861_v54  ;;  %v13114_v54 = vld [vmem:[#allocation20 + $0x40] sm:$0xff] }
 0xab1   : > { %12887 = vmatprep.subr.bf16.mxu1 %v18866_v53  ;;  %v18906_v53 = vld [vmem:[#allocation17 + $0x770] ss:$8 sps:$4 sm:$0xff]  }
 0xab4   : > { %12888 = vmatpush1.bf16.msra.mxu1 %v18864_v14  ;;  %v16393_v14 = vcombine.low %v13112_v61, %v13113_v28 }
 0xab5   : > { %12889 = vmatprep.subr.bf16.mxu1 %v18869_v42  ;;  %v16394_v42 = vcombine.high %v13112_v61, %v13113_v28  ;;  %v10342_v61 = vld [vmem:[#allocation3 + $0x98] sm:$0x1] }
 0xab7   : > { %13316 = vmatprep.subr.bf16.mxu0 %v16394_v42 }
 0xab8   : > { %12890 = vmatpush1.bf16.msra.mxu1 %v18867_v41  ;;  %v13115_v41 = vld [vmem:[#allocation20 + $0x60] sm:$0xff]  ;;  %13317 = vmatpush1.bf16.msra.mxu0 %v16393_v14  ;;  %v18930_v14 = vld [vmem:[#allocation17 + $0x7f0] ss:$8 sps:$4 sm:$0xff]  }
 0xab9   : > { %12891 = vmatprep.subr.bf16.mxu1 %v18872_v2  ;;  %v18911_v2 = vld [vmem:[#allocation17 + $0x784] ss:$8 sps:$4 sm:$0xff]  }
 0xabc   : > { %12892 = vmatpush1.bf16.msra.mxu1 %v18870_v57  ;;  %v16396_v57 = vcombine.high %v13114_v54, %v13115_v41 }
 0xabd   : > { %12893 = vmatprep.subr.bf16.mxu1 %v18875_v44  ;;  %v13116_v44 = vld [vmem:[#allocation20 + $0x80] sm:$0xff] }
 0xabe   : > { %13318 = vmatprep.subr.bf16.mxu0 %v16396_v57  ;;  %v18935_v57 = vld [vmem:[#allocation17 + $0x804] ss:$8 sps:$4 sm:$0xff]  }
 0xac0   : > { %12894 = vmatpush1.bf16.msra.mxu1 %v18873_v38  ;;  %v16395_v38 = vcombine.low %v13114_v54, %v13115_v41  ;;  %v10417_v54 = vrot.slane %v10346_v15, 1  ;;  %v10396_v41 = vrot.slane %v10333_v63, 1  ;;  %v13137_v63 = vld [vmem:[#allocation20 + $0x320] sm:$0xff]  ;;  %v10358_v15 = vld [vmem:[#allocation3 + $0x118] sm:$0x1] }
 0xac1   : > { %12895 = vmatprep.subr.bf16.mxu1 %v18878_v56  ;;  %v18909_v56 = vld [vmem:[#allocation17 + $0x780] ss:$8 sps:$4 sm:$0xff]  }
 0xac2   : > { %13319 = vmatpush1.bf16.msra.mxu0 %v16395_v38 }
 0xac4   : > { %12896 = vmatpush1.bf16.msra.mxu1 %v18876_v55  ;;  %v16398_v55 = vcombine.high %v13116_v44, %v13117_v35 }
 0xac5   : > { %12897 = vmatprep.subr.bf16.mxu1 %v18881_v52  ;;  %v18914_v52 = vld [vmem:[#allocation17 + $0x794] ss:$8 sps:$4 sm:$0xff]  }
 0xac6   : > { %13320 = vmatprep.subr.bf16.mxu0 %v16398_v55  ;;  %v13133_v55 = vld [vmem:[#allocation20 + $0x2a0] sm:$0xff] }
 0xac8   : > { %12898 = vmatpush1.bf16.msra.mxu1 %v18879_v24  ;;  %v13118_v24 = vld [vmem:[#allocation20 + $0xc0] sm:$0xff] }
 0xac9   : > { %12899 = vmatprep.subr.bf16.mxu1 %v18884_v12  ;;  %v13119_v12 = vld [vmem:[#allocation20 + $0xe0] sm:$0xff] }
 0xaca   : > { %v16400_v34 = vcombine.high %v13118_v24, %v13119_v12 }
 0xacc   : > { %12900 = vmatpush1.bf16.msra.mxu1 %v18882_v1  ;;  %v16397_v1 = vcombine.low %v13116_v44, %v13117_v35  ;;  %v10411_v35 = vrot.slane %v10342_v61, 1  ;;  %v18944_v61 = vld [vmem:[#allocation17 + $0x834] ss:$8 sps:$4 sm:$0xff]  }
 0xacd   : > { %12942 = vmatprep.subr.bf16.mxu1 %v18887_v3  ;;  %v18912_v3 = vld [vmem:[#allocation17 + $0x790] ss:$8 sps:$4 sm:$0xff]  }
 0xace   : > { %13321 = vmatpush1.bf16.msra.mxu0 %v16397_v1  ;;  %v10343_v1 = vld [vmem:[#allocation3 + $0xa0] sm:$0xfe] }
 0xacf   : > { %12902 = vmatmul.mubr.bf16.vlgmr.msra.gmra.mrb[16].mxu1 %v10315_v51  ;;  %v16399_v51 = vcombine.low %v13118_v24, %v13119_v12  ;;  %13322 = vmatprep.subr.bf16.mxu0 %v16400_v34  ;;  %v10339_v24 = vld [vmem:[#allocation3 + $0x80] sm:$0xfe]  ;;  %v10341_v12 = vld [vmem:[#allocation3 + $0x90] sm:$0x1] }
 0xad0   : > { %12911 = vmatprep.mubr.bf16.mxu1 %v10318_v26  ;;  %12943 = vmatpush1.bf16.msra.mxu1 %v18885_v7  ;;  %v13121_v7 = vld [vmem:[#allocation20 + $0x120] sm:$0xff]  ;;  %v18920_v26 = vld [vmem:[#allocation17 + $0x7b4] ss:$8 sps:$4 sm:$0xff]   ;;  %v10407_v62 = vrot.slane %v10339_v24, 1  ;;  %v10408_v33 = vrot.slane %v10341_v12, 1 }
 0xad1   : > { %12944 = vmatprep.subr.bf16.mxu1 %v18890_v13  ;;  %v16402_v13 = vcombine.high %v13120_v27, %v13121_v7  ;;  %v16401_v20 = vcombine.low %v13120_v27, %v13121_v7  ;;  %v18933_v27 = vld [vmem:[#allocation17 + $0x800] ss:$8 sps:$4 sm:$0xff]   ;;  %v18947_v12 = vld [vmem:[#allocation17 + $0x844] ss:$8 sps:$4 sm:$0xff]  }
 0xad2   : > { %13323 = vmatpush1.bf16.msra.mxu0 %v16399_v51  ;;  %v10352_v7 = vld [vmem:[#allocation3 + $0xe8] sm:$0xfe]  ;;  %v10354_v51 = vld [vmem:[#allocation3 + $0xf8] sm:$0x1] }
 0xad3   : > { %13324 = vmatprep.subr.bf16.mxu0 %v16402_v13 }
 0xad4   : > { %12945 = vmatpush1.bf16.msra.mxu1 %v18888_v16  ;;  %v13122_v16 = vld [vmem:[#allocation20 + $0x140] sm:$0xff] }
 0xad5   : > { %12946 = vmatprep.subr.bf16.mxu1 %v18893_v50  ;;  %v13123_v50 = vld [vmem:[#allocation20 + $0x160] sm:$0xff] }
 0xad6   : > { %v16404_v29 = vcombine.high %v13122_v16, %v13123_v50  ;;  %13325 = vmatpush1.bf16.msra.mxu0 %v16401_v20  ;;  %v13135_v20 = vld [vmem:[#allocation20 + $0x2e0] sm:$0xff] }
 0xad7   : > { %12912 = vmatmul.mubr.bf16.gmra.mrb[20].mxu1 %v10317_v45  ;;  %v13124_v45 = vld [vmem:[#allocation20 + $0x180] sm:$0xff] }
 0xad8   : > { %12921 = vmatprep.mubr.bf16.mxu1 %v10320_v25  ;;  %12947 = vmatpush1.bf16.msra.mxu1 %v18891_v9  ;;  %v18923_v9 = vld [vmem:[#allocation17 + $0x7c4] ss:$8 sps:$4 sm:$0xff]   ;;  %v18921_v25 = vld [vmem:[#allocation17 + $0x7c0] ss:$8 sps:$4 sm:$0xff]  }
 0xad9   : > { %12948 = vmatprep.subr.bf16.mxu1 %v18896_v0  ;;  %v16403_v0 = vcombine.low %v13122_v16, %v13123_v50  ;;  %13326 = vmatprep.subr.bf16.mxu0 %v16404_v29  ;;  %v13134_v50 = vld [vmem:[#allocation20 + $0x2c0] sm:$0xff]  ;;  %v10413_v29 = vrot.slane %v10343_v1, 1 }
 0xadb   : > { %13327 = vmatpush1.bf16.msra.mxu0 %v16403_v0  ;;  %v10428_v0 = vrot.slane %v10352_v7, 1  ;;  %v10359_v7 = vld [vmem:[#allocation3 + $0x120] sm:$0xfe] }
 0xadc   : > { %12949 = vmatpush1.bf16.msra.mxu1 %v18894_v18  ;;  %v16406_v18 = vcombine.high %v13124_v45, %v13125_v23 }
 0xadd   : > { %12950 = vmatprep.subr.bf16.mxu1 %v18899_v59  ;;  %v18926_v59 = vld [vmem:[#allocation17 + $0x7d4] ss:$8 sps:$4 sm:$0xff]  }
 0xade   : > { %13328 = vmatprep.subr.bf16.mxu0 %v16406_v18 }
 0xadf   : > { %12922 = vmatmul.mubr.bf16.gmra.mrb[24].mxu1 %v10319_v36  ;;  %v18929_v36 = vld [vmem:[#allocation17 + $0x7e4] ss:$8 sps:$4 sm:$0xff]  }
 0xae0   : > { %12931 = vmatprep.mubr.bf16.mxu1 %v10322_v46  ;;  %12951 = vmatpush1.bf16.msra.mxu1 %v18897_v30  ;;  %v16405_v30 = vcombine.low %v13124_v45, %v13125_v23  ;;  %v10331_v46 = vld [vmem:[#allocation3 + $0x40] sm:$0xfe]  ;;  %v10348_v45 = vld [vmem:[#allocation3 + $0xc8] sm:$0xfe]  ;;  %v10350_v23 = vld [vmem:[#allocation3 + $0xd8] sm:$0x1] }
 0xae1   : > { %12952 = vmatprep.subr.bf16.mxu1 %v18902_v5  ;;  %v13128_v5 = vld [vmem:[#allocation20 + $0x200] sm:$0xff]  ;;  %v10395_v42 = vrot.slane %v10331_v46, 1 }
 0xae2   : > { %13329 = vmatpush1.bf16.msra.mxu0 %v16405_v30  ;;  %v16410_v19 = vcombine.high %v13128_v5, %v13129_v39  ;;  %v16416_v30 = vcombine.high %v13134_v50, %v13135_v20  ;;  %v13136_v46 = vld [vmem:[#allocation20 + $0x300] sm:$0xff] }
 0xae3   : > { %13330 = vmatprep.subr.bf16.mxu0 %v16408_v32  ;;  %v10422_v32 = vrot.slane %v10348_v45, 1 }
 0xae4   : > { %12953 = vmatpush1.bf16.msra.mxu1 %v18900_v8  ;;  %v18927_v8 = vld [vmem:[#allocation17 + $0x7e0] ss:$8 sps:$4 sm:$0xff]  }
 0xae5   : > { %12954 = vmatprep.subr.bf16.mxu1 %v18905_v17  ;;  %v10344_v17 = vld [vmem:[#allocation3 + $0xa8] sm:$0xfe] }
 0xae6   : > { %v10416_v28 = vrot.slane %v10344_v17, 1  ;;  %13331 = vmatpush1.bf16.msra.mxu0 %v16407_v58  ;;  %v10349_v58 = vld [vmem:[#allocation3 + $0xd0] sm:$0x1]  ;;  %v10356_v17 = vld [vmem:[#allocation3 + $0x108] sm:$0xfe] }
 0xae7   : > { %12932 = vmatmul.mubr.bf16.gmra.mrb[28].mxu1 %v10321_v40  ;;  %v13131_v40 = vld [vmem:[#allocation20 + $0x260] sm:$0xff]  ;;  %13332 = vmatprep.subr.bf16.mxu0 %v16410_v19  ;;  %v16415_v19 = vcombine.low %v13134_v50, %v13135_v20  ;;  %v10482_v50 = vld [vmem:[#allocation3 + $0x78] sm:$0x3] }
 0xae8   : > { %12955 = vmatpush1.bf16.msra.mxu1 %v18903_v11  ;;  %12974 = vmatprep.mubr.bf16.mxu1 %v10460_v60  ;;  %v13130_v11 = vld [vmem:[#allocation20 + $0x240] sm:$0xff] }
 0xae9   : > { %12956 = vmatprep.subr.bf16.mxu1 %v18908_v22  ;;  %v10402_v22 = vrot.slane %v10337_v10, 1  ;;  %v10340_v60 = vld [vmem:[#allocation3 + $0x88] sm:$0xfe]  ;;  %v16411_v34 = vcombine.low %v13130_v11, %v13131_v40  ;;  %v10347_v10 = vld [vmem:[#allocation3 + $0xc0] sm:$0xfe] }
 0xaea   : > { %v10410_v44 = vrot.slane %v10340_v60, 1 }
 0xaeb   : > { %v10403_v38 = vsel %vm799_vm0, %v10401_v4, %v10402_v22  ;;  %v10362_v4 = vld [vmem:[#allocation3 + $0x138] sm:$0x1] }
 0xaec   : > { %12957 = vmatpush1.bf16.msra.mxu1 %v18906_v53  ;;  %v16409_v53 = vcombine.low %v13128_v5, %v13129_v39  ;;  %v10412_v13 = vsel %vm799_vm0, %v10410_v44, %v10411_v35  ;;  %v10351_v39 = vld [vmem:[#allocation3 + $0xe0] sm:$0xfe]  ;;  %v10441_v35 = vrot.slane %v10362_v4, 1 }
 0xaed   : > { %12958 = vmatprep.subr.bf16.mxu1 %v18911_v2  ;;  %v16412_v2 = vcombine.high %v13130_v11, %v13131_v40  ;;  %v18939_v11 = vld [vmem:[#allocation17 + $0x820] ss:$8 sps:$4 sm:$0xff]   ;;  %v18968_v4 = vld [vmem:[#allocation17 + $0x8b4] ss:$8 sps:$4 sm:$0xff]  }
 0xaee   : > { %13333 = vmatpush1.bf16.msra.mxu0 %v16409_v53  ;;  %v10360_v40 = vld [vmem:[#allocation3 + $0x128] sm:$0xfe] }
 0xaef   : > { %13334 = vmatprep.subr.bf16.mxu0 %v16412_v2  ;;  %v13139_v53 = vld [vmem:[#allocation20 + $0x360] sm:$0xff]  ;;  %v10434_v2 = vrot.slane %v10356_v17, 1  ;;  %v10440_v44 = vrot.slane %v10360_v40, 1 }
 0xaf0   : > { %12959 = vmatpush1.bf16.msra.mxu1 %v18909_v56  ;;  %v13132_v56 = vld [vmem:[#allocation20 + $0x280] sm:$0xff] }
 0xaf1   : > { %12960 = vmatprep.subr.bf16.mxu1 %v18914_v52  ;;  %v10418_v52 = vsel %vm799_vm0, %v10416_v28, %v10417_v54  ;;  %v16414_v16 = vcombine.high %v13132_v56, %v13133_v55  ;;  %v16413_v18 = vcombine.low %v13132_v56, %v13133_v55  ;;  %v16418_v28 = vcombine.high %v13136_v46, %v13137_v63  ;;  %v13138_v54 = vld [vmem:[#allocation20 + $0x340] sm:$0xff]  ;;  %v18942_v56 = vld [vmem:[#allocation17 + $0x830] ss:$8 sps:$4 sm:$0xff]  }
 0xaf2   : > { %13335 = vmatpush1.bf16.msra.mxu0 %v16411_v34  ;;  %v10419_v55 = vrot.slane %v10347_v10, 1  ;;  %v16420_v24 = vcombine.high %v13138_v54, %v13139_v53  ;;  %v10357_v34 = vld [vmem:[#allocation3 + $0x110] sm:$0x1]  ;;  %v18956_v10 = vld [vmem:[#allocation17 + $0x874] ss:$8 sps:$4 sm:$0xff]  }
 0xaf3   : > { %13336 = vmatprep.subr.bf16.mxu0 %v16414_v16  ;;  %v10480_v16 = vld [vmem:[#allocation3 + $0x68] sm:$0xfc] }
 0xaf4   : > { %12961 = vmatpush1.bf16.msra.mxu1 %v18912_v3  ;;  %v10345_v3 = vld [vmem:[#allocation3 + $0xb0] sm:$0x1]  ;;  %v18959_v17 = vld [vmem:[#allocation17 + $0x884] ss:$8 sps:$4 sm:$0xff]  }
 0xaf5   : > { %12962 = vmatprep.subr.bf16.mxu1 %v18917_v6  ;;  %v10397_v6 = vsel %vm799_vm0, %v10395_v42, %v10396_v41  ;;  %v10425_v42 = vrot.slane %v10351_v39, 1  ;;  %v18963_v40 = vld [vmem:[#allocation17 + $0x8a0] ss:$8 sps:$4 sm:$0xff]  }
 0xaf6   : > { %13337 = vmatpush1.bf16.msra.mxu0 %v16413_v18  ;;  %v10478_v18 = vld [vmem:[#allocation3 + $0x58] sm:$0x3] }
 0xaf7   : > { %13338 = vmatprep.subr.bf16.mxu0 %v16416_v30  ;;  %v18953_v30 = vld [vmem:[#allocation17 + $0x864] ss:$8 sps:$4 sm:$0xff]  }
 0xaf8   : > { %12963 = vmatpush1.bf16.msra.mxu1 %v18915_v43  ;;  %v10459_v43 = vpack.c.bf16 %v10403_v38, %v10397_v6  ;;  %v16417_v38 = vcombine.low %v13136_v46, %v13137_v63  ;;  %v18951_v46 = vld [vmem:[#allocation17 + $0x860] ss:$8 sps:$4 sm:$0xff]  }
 0xaf9   : > { %12964 = vmatprep.subr.bf16.mxu1 %v18920_v26  ;;  %v18938_v26 = vld [vmem:[#allocation17 + $0x814] ss:$8 sps:$4 sm:$0xff]  }
 0xafa   : > { %13339 = vmatpush1.bf16.msra.mxu0 %v16415_v19  ;;  %v18962_v19 = vld [vmem:[#allocation17 + $0x894] ss:$8 sps:$4 sm:$0xff]  }
 0xafb   : > { %13340 = vmatprep.subr.bf16.mxu0 %v16418_v28  ;;  %v18974_v28 = vld [vmem:[#allocation17 + $0x8d4] ss:$8 sps:$4 sm:$0xff]  }
 0xafc   : > { %12965 = vmatpush1.bf16.msra.mxu1 %v18918_v21  ;;  %v10462_v21 = vpack.c.bf16 %v10418_v52, %v10412_v13  ;;  %v10420_v52 = vrot.slane %v10349_v58, 1 }
 0xafd   : > { %12966 = vmatprep.subr.bf16.mxu1 %v18923_v9  ;;  %v10414_v9 = vrot.slane %v10345_v3, 1  ;;  %v10355_v3 = vld [vmem:[#allocation3 + $0x100] sm:$0xfe] }
 0xafe   : > { %13341 = vmatpush1.bf16.msra.mxu0 %v16417_v38  ;;  %v10421_v13 = vsel %vm799_vm0, %v10419_v55, %v10420_v52  ;;  %v10477_v38 = vld [vmem:[#allocation3 + $0x50] sm:$0x3]  ;;  %v10484_v52 = vld [vmem:[#allocation3 + $0x88] sm:$0xfc] }
 0xaff   : > { %v10415_v5 = vsel %vm799_vm0, %v10413_v29, %v10414_v9  ;;  %13342 = vmatprep.subr.bf16.mxu0 %v16420_v24  ;;  %v10431_v29 = vrot.slane %v10355_v3, 1  ;;  %v10432_v9 = vrot.slane %v10357_v34, 1  ;;  %v10486_v24 = vld [vmem:[#allocation3 + $0x98] sm:$0x3] }
 0xb00   : > { %12967 = vmatpush1.bf16.msra.mxu1 %v18921_v25  ;;  %v10429_v25 = vrot.slane %v10354_v51, 1  ;;  %v10361_v51 = vld [vmem:[#allocation3 + $0x130] sm:$0x1]  ;;  %v18978_v3 = vld [vmem:[#allocation17 + $0x8f0] ss:$8 sps:$4 sm:$0xff]  }
 0xb01   : > { %12968 = vmatprep.subr.bf16.mxu1 %v18926_v59  ;;  %v18936_v59 = vld [vmem:[#allocation17 + $0x810] ss:$8 sps:$4 sm:$0xff]  }
 0xb02   : > { %v10430_v49 = vsel %vm799_vm0, %v10428_v0, %v10429_v25  ;;  %v10438_v0 = vrot.slane %v10361_v51, 1  ;;  %v10476_v25 = vld [vmem:[#allocation3 + $0x48] sm:$0xfc] }
 0xb04   : > { %12969 = vmatpush1.bf16.msra.mxu1 %v18924_v31  ;;  %v18941_v31 = vld [vmem:[#allocation17 + $0x824] ss:$8 sps:$4 sm:$0xff]  }
 0xb05   : > { %12970 = vmatprep.subr.bf16.mxu1 %v18929_v36  ;;  %v10423_v36 = vrot.slane %v10350_v23, 1  ;;  %v10437_v23 = vrot.slane %v10359_v7, 1  ;;  %v10555_v7 = vrot.slane %v10486_v24, 2 }
 0xb07   : > { %v10424_v60 = vsel %vm799_vm0, %v10422_v32, %v10423_v36  ;;  %v10543_v32 = vrot.slane %v10478_v18, 2  ;;  %v10433_v36 = vsel %vm799_vm0, %v10431_v29, %v10432_v9  ;;  %v10483_v9 = vld [vmem:[#allocation3 + $0x80] sm:$0xfc]  ;;  %v10492_v18 = vld [vmem:[#allocation3 + $0xc8] sm:$0xfc] }
 0xb08   : > { %12971 = vmatpush1.bf16.msra.mxu1 %v18927_v8  ;;  %v10353_v8 = vld [vmem:[#allocation3 + $0xf0] sm:$0x1] }
 0xb09   : > { %12972 = vmatprep.subr.bf16.mxu1 %v18932_v37  ;;  %v10409_v37 = vsel %vm799_vm0, %v10407_v62, %v10408_v33  ;;  %v10426_v41 = vrot.slane %v10353_v8, 1  ;;  %v10549_v62 = vrot.slane %v10482_v50, 2  ;;  %v18948_v33 = vld [vmem:[#allocation17 + $0x850] ss:$8 sps:$4 sm:$0xff]   ;;  %v10496_v50 = vld [vmem:[#allocation3 + $0xe8] sm:$0xfc] }
 0xb0a   : > { %v10461_v22 = vpack.c.bf16 %v10415_v5, %v10409_v37  ;;  %v10439_v5 = vsel %vm799_vm0, %v10437_v23, %v10438_v0  ;;  %v18954_v8 = vld [vmem:[#allocation17 + $0x870] ss:$8 sps:$4 sm:$0xff]  }
 0xb0b   : > { %v10427_v1 = vsel %vm799_vm0, %v10425_v42, %v10426_v41  ;;  %v10465_v63 = vpack.c.bf16 %v10439_v5, %v10433_v36  ;;  %v18960_v37 = vld [vmem:[#allocation17 + $0x890] ss:$8 sps:$4 sm:$0xff]   ;;  %v10481_v42 = vld [vmem:[#allocation3 + $0x70] sm:$0x3] }
 0xb0c   : > { %12973 = vmatpush1.bf16.msra.mxu1 %v18930_v14  ;;  %v10464_v14 = vpack.c.bf16 %v10430_v49, %v10424_v60  ;;  %v10463_v20 = vpack.c.bf16 %v10427_v1, %v10421_v13  ;;  %v18971_v60 = vld [vmem:[#allocation17 + $0x8c4] ss:$8 sps:$4 sm:$0xff]   ;;  %v18975_v41 = vld [vmem:[#allocation17 + $0x8e0] ss:$8 sps:$4 sm:$0xff]   ;;  %v10546_v55 = vrot.slane %v10481_v42, 2 }
 0xb0d   : > { %13015 = vmatprep.subr.bf16.mxu1 %v18935_v57  ;;  %v10435_v57 = vrot.slane %v10358_v15, 1  ;;  %v18957_v15 = vld [vmem:[#allocation17 + $0x880] ss:$8 sps:$4 sm:$0xff]  }
 0xb0e   : > { %v10487_v13 = vld [vmem:[#allocation3 + $0xa0] sm:$0xfc] }
 0xb0f   : > { %12975 = vmatmul.mubr.bf16.vlgmr.msra.gmra.mrb[16].mxu1 %v10459_v43  ;;  %v10436_v6 = vsel %vm799_vm0, %v10434_v2, %v10435_v57  ;;  %v16419_v43 = vcombine.low %v13138_v54, %v13139_v53  ;;  %v18972_v54 = vld [vmem:[#allocation17 + $0x8d0] ss:$8 sps:$4 sm:$0xff]   ;;  %v18977_v53 = vld [vmem:[#allocation17 + $0x8e4] ss:$8 sps:$4 sm:$0xff]   ;;  %v10557_v0 = vrot.slane %v10487_v13, 2 }
 0xb10   : > { %12984 = vmatprep.mubr.bf16.mxu1 %v10462_v21  ;;  %13016 = vmatpush1.bf16.msra.mxu1 %v18933_v27  ;;  %v10442_v27 = vsel %vm799_vm0, %v10440_v44, %v10441_v35  ;;  %v18950_v21 = vld [vmem:[#allocation17 + $0x854] ss:$8 sps:$4 sm:$0xff]   ;;  %v10488_v2 = vld [vmem:[#allocation3 + $0xa8] sm:$0xfc]  ;;  %v10490_v57 = vld [vmem:[#allocation3 + $0xb8] sm:$0x3] }
 0xb11   : > { %13017 = vmatprep.subr.bf16.mxu1 %v18938_v26  ;;  %v18945_v26 = vld [vmem:[#allocation17 + $0x840] ss:$8 sps:$4 sm:$0xff]   ;;  %v10466_v45 = vpack.c.bf16 %v10442_v27, %v10436_v6  ;;  %13343 = vmatpush1.bf16.msra.mxu0 %v16419_v43  ;;  %v18980_v44 = vld [vmem:[#allocation17 + $0x8f4] ss:$8 sps:$4 sm:$0xff]   ;;  %v10561_v1 = vrot.slane %v10490_v57, 2  ;;  %v10540_v6 = vrot.slane %v10477_v38, 2 }
 0xb12   : > { %v10475_v35 = vld [vmem:[#allocation3 + $0x40] sm:$0xfc]  ;;  %v10554_v27 = vrot.slane %v10484_v52, 2  ;;  %v10505_v38 = vld [vmem:[#allocation3 + $0x130] sm:$0x3] }
 0xb13   : > { %v10539_v34 = vrot.slane %v10475_v35, 2  ;;  %v10503_v35 = vld [vmem:[#allocation3 + $0x120] sm:$0xfc] }
 0xb14   : > { %13018 = vmatpush1.bf16.msra.mxu1 %v18936_v59  ;;  %v10548_v59 = vrot.slane %v10480_v16, 2  ;;  %v10556_v29 = vsel %vm872_vm1, %v10554_v27, %v10555_v7  ;;  %v13140_v7 = vld [vmem:[#allocation20 + $0x380] sm:$0xff] }
 0xb15   : > { %13019 = vmatprep.subr.bf16.mxu1 %v18941_v31  ;;  %v10542_v31 = vrot.slane %v10476_v25, 2  ;;  %v10541_v16 = vsel %vm872_vm1, %v10539_v34, %v10540_v6 }
 0xb16   : > { %v10550_v39 = vsel %vm872_vm1, %v10548_v59, %v10549_v62  ;;  %v10494_v59 = vld [vmem:[#allocation3 + $0xd8] sm:$0x3]  ;;  %v10572_v62 = vrot.slane %v10496_v50, 2 }
 0xb17   : > { %12985 = vmatmul.mubr.bf16.gmra.mrb[20].mxu1 %v10461_v22  ;;  %v10544_v49 = vsel %vm872_vm1, %v10542_v31, %v10543_v32  ;;  %v18966_v22 = vld [vmem:[#allocation17 + $0x8b0] ss:$8 sps:$4 sm:$0xff]   ;;  %v10566_v32 = vrot.slane %v10492_v18, 2  ;;  %v10567_v36 = vrot.slane %v10494_v59, 2 }
 0xb18   : > { %12994 = vmatprep.mubr.bf16.mxu1 %v10464_v14  ;;  %13020 = vmatpush1.bf16.msra.mxu1 %v18939_v11  ;;  %v10604_v58 = vpack.c.bf16 %v10550_v39, %v10544_v49  ;;  %v18965_v11 = vld [vmem:[#allocation17 + $0x8a4] ss:$8 sps:$4 sm:$0xff]   ;;  %v10479_v14 = vld [vmem:[#allocation3 + $0x60] sm:$0xfc] }
 0xb19   : > { %13021 = vmatprep.subr.bf16.mxu1 %v18944_v61  ;;  %v18969_v61 = vld [vmem:[#allocation17 + $0x8c0] ss:$8 sps:$4 sm:$0xff]  }
 0xb1a   : > { %v10500_v49 = vld [vmem:[#allocation3 + $0x108] sm:$0xfc] }
 0xb1c   : > { %13022 = vmatpush1.bf16.msra.mxu1 %v18942_v56  ;;  %v10545_v56 = vrot.slane %v10479_v14, 2 }
 0xb1d   : > { %13023 = vmatprep.subr.bf16.mxu1 %v18947_v12  ;;  %v10560_v12 = vrot.slane %v10488_v2, 2 }
 0xb1e   : > { %v10547_v51 = vsel %vm872_vm1, %v10545_v56, %v10546_v55 }
 0xb1f   : > { %12995 = vmatmul.mubr.bf16.gmra.mrb[24].mxu1 %v10463_v20  ;;  %v10562_v43 = vsel %vm872_vm1, %v10560_v12, %v10561_v1  ;;  %v10498_v20 = vld [vmem:[#allocation3 + $0xf8] sm:$0x3]  ;;  %v10581_v1 = vrot.slane %v10503_v35, 2 }
 0xb20   : > { %13004 = vmatprep.mubr.bf16.mxu1 %v10466_v45  ;;  %13024 = vmatpush1.bf16.msra.mxu1 %v18945_v26  ;;  %v10489_v26 = vld [vmem:[#allocation3 + $0xb0] sm:$0x3]  ;;  %v10606_v23 = vpack.c.bf16 %v10562_v43, %v10556_v29  ;;  %v13142_v43 = vld [vmem:[#allocation20 + $0x3c0] sm:$0xff]  ;;  %v10979_v29 = vld [vmem:[#allocation19] sm:$0x3] }
 0xb21   : > { %13025 = vmatprep.subr.bf16.mxu1 %v18950_v21  ;;  %v10603_v21 = vpack.c.bf16 %v10547_v51, %v10541_v16  ;;  %v10485_v45 = vld [vmem:[#allocation3 + $0x90] sm:$0x3]  ;;  %v10558_v25 = vrot.slane %v10489_v26, 2  ;;  %v13141_v51 = vld [vmem:[#allocation20 + $0x3a0] sm:$0xff] }
 0xb22   : > { %v10552_v31 = vrot.slane %v10485_v45, 2  ;;  %v16421_v13 = vcombine.low %v13140_v7, %v13141_v51  ;;  %v16422_v26 = vcombine.high %v13140_v7, %v13141_v51  ;;  %v13143_v16 = vld [vmem:[#allocation20 + $0x3e0] sm:$0xff]  ;;  %v20794_v45 = vrot.slane %v10979_v29, %v20212_v48 }
 0xb23   : > { %v10559_v5 = vsel %vm872_vm1, %v10557_v0, %v10558_v25  ;;  %v16424_v50 = vcombine.high %v13142_v43, %v13143_v16  ;;  %v18990_v51 = vld [vmem:[#allocation23 + $0x20] sm:$0xff]  }
 0xb24   : > { %13026 = vmatpush1.bf16.msra.mxu1 %v18948_v33  ;;  %v10573_v33 = vrot.slane %v10498_v20, 2  ;;  %13344 = vmatprep.subr.bf16.mxu0 %v16422_v26  ;;  %v16423_v20 = vcombine.low %v13142_v43, %v13143_v16  ;;  %v18991_v26 = vld [vmem:[#allocation23 + $0x68] sm:$0xff]  }
 0xb25   : > { %13027 = vmatprep.subr.bf16.mxu1 %v18953_v30  ;;  %v10551_v30 = vrot.slane %v10483_v9, 2  ;;  %13345 = vmatpush1.bf16.msra.mxu0 %v16421_v13  ;;  %v20791_v9 = vrot.slane %v10979_v29, %v20210_v47 }
 0xb26   : > { %v10574_v39 = vsel %vm872_vm1, %v10572_v62, %v10573_v33  ;;  %13346 = vmatprep.subr.bf16.mxu0 %v16424_v50 }
 0xb27   : > { %13005 = vmatmul.mubr.bf16.gmra.mrb[28].mxu1 %v10465_v63  ;;  %v10497_v63 = vld [vmem:[#allocation3 + $0xf0] sm:$0x3] }
 0xb28   : > { %13028 = vmatpush1.bf16.msra.mxu1 %v18951_v46  ;;  %13047 = vmatprep.mubr.bf16.mxu1 %v10604_v58  ;;  %v10495_v46 = vld [vmem:[#allocation3 + $0xe0] sm:$0xfc]  ;;  %v10502_v58 = vld [vmem:[#allocation3 + $0x118] sm:$0x3] }
 0xb29   : > { %13029 = vmatprep.subr.bf16.mxu1 %v18956_v10  ;;  %v10553_v10 = vsel %vm872_vm1, %v10551_v30, %v10552_v31  ;;  %13347 = vmatpush1.bf16.msra.mxu0 %v16423_v20 }
 0xb2c   : > { %13030 = vmatpush1.bf16.msra.mxu1 %v18954_v8  ;;  %v10504_v8 = vld [vmem:[#allocation3 + $0x128] sm:$0xfc] }
 0xb2d   : > { %13031 = vmatprep.subr.bf16.mxu1 %v18959_v17  ;;  %v10506_v17 = vld [vmem:[#allocation3 + $0x138] sm:$0x3] }
 0xb30   : > { %13032 = vmatpush1.bf16.msra.mxu1 %v18957_v15  ;;  %v10605_v15 = vpack.c.bf16 %v10559_v5, %v10553_v10 }
 0xb31   : > { %13033 = vmatprep.subr.bf16.mxu1 %v18962_v19  ;;  %v10568_v19 = vsel %vm872_vm1, %v10566_v32, %v10567_v36 }
 0xb34   : > { %13034 = vmatpush1.bf16.msra.mxu1 %v18960_v37  ;;  %v10491_v37 = vld [vmem:[#allocation3 + $0xc0] sm:$0xfc] }
 0xb35   : > { %13035 = vmatprep.subr.bf16.mxu1 %v18965_v11  ;;  %v10493_v11 = vld [vmem:[#allocation3 + $0xd0] sm:$0x3] }
 0xb36   : > { %v10564_v14 = vrot.slane %v10493_v11, 2 }
 0xb38   : > { %13036 = vmatpush1.bf16.msra.mxu1 %v18963_v40  ;;  %v10608_v40 = vpack.c.bf16 %v10574_v39, %v10568_v19 }
 0xb39   : > { %13037 = vmatprep.subr.bf16.mxu1 %v18968_v4  ;;  %v10569_v4 = vrot.slane %v10495_v46, 2 }
 0xb3c   : > { %13038 = vmatpush1.bf16.msra.mxu1 %v18966_v22  ;;  %v10570_v22 = vrot.slane %v10497_v63, 2 }
 0xb3d   : > { %13039 = vmatprep.subr.bf16.mxu1 %v18971_v60  ;;  %v10578_v60 = vrot.slane %v10500_v49, 2  ;;  %v18982_v49 = vld [vmem:[#allocation23] sm:$0xff]  }
 0xb3e   : > { %v10571_v42 = vsel %vm872_vm1, %v10569_v4, %v10570_v22 }
 0xb40   : > { %13040 = vmatpush1.bf16.msra.mxu1 %v18969_v61  ;;  %v10579_v61 = vrot.slane %v10502_v58, 2 }
 0xb41   : > { %13041 = vmatprep.subr.bf16.mxu1 %v18974_v28  ;;  %v10584_v28 = vrot.slane %v10504_v8, 2  ;;  %v18983_v8 = vld [vmem:[#allocation23 + $0x48] sm:$0xff]  }
 0xb42   : > { %v10580_v2 = vsel %vm872_vm1, %v10578_v60, %v10579_v61  ;;  %v18985_v60 = vld [vmem:[#allocation23 + $0x50] sm:$0xff]  }
 0xb44   : > { %13042 = vmatpush1.bf16.msra.mxu1 %v18972_v54  ;;  %v10585_v54 = vrot.slane %v10506_v17, 2 }
 0xb45   : > { %13043 = vmatprep.subr.bf16.mxu1 %v18977_v53  ;;  %v10563_v53 = vrot.slane %v10491_v37, 2 }
 0xb46   : > { %v10586_v57 = vsel %vm872_vm1, %v10584_v28, %v10585_v54 }
 0xb47   : > { %v10565_v56 = vsel %vm872_vm1, %v10563_v53, %v10564_v14  ;;  %v10610_v24 = vpack.c.bf16 %v10586_v57, %v10580_v2  ;;  %v18987_v57 = vld [vmem:[#allocation23 + $0x58] sm:$0xff]  }
 0xb48   : > { %13044 = vmatpush1.bf16.msra.mxu1 %v18975_v41  ;;  %v10499_v41 = vld [vmem:[#allocation3 + $0x100] sm:$0xfc]  ;;  %v10607_v55 = vpack.c.bf16 %v10571_v42, %v10565_v56  ;;  %v18986_v42 = vld [vmem:[#allocation23 + $0x10] sm:$0xff]  }
 0xb49   : > { %13045 = vmatprep.subr.bf16.mxu1 %v18980_v44  ;;  %v10501_v44 = vld [vmem:[#allocation3 + $0x110] sm:$0x3]  ;;  %v10575_v52 = vrot.slane %v10499_v41, 2 }
 0xb4a   : > { %v10576_v12 = vrot.slane %v10501_v44, 2 }
 0xb4c   : > { %13046 = vmatpush1.bf16.msra.mxu1 %v18978_v3  ;;  %v10582_v3 = vrot.slane %v10505_v38, 2  ;;  %v10577_v34 = vsel %vm872_vm1, %v10575_v52, %v10576_v12  ;;  %v18988_v52 = vld [vmem:[#allocation23 + $0x18] sm:$0xff]  }
 0xb4e   : > { %v10583_v6 = vsel %vm872_vm1, %v10581_v1, %v10582_v3  ;;  %v18989_v1 = vld [vmem:[#allocation23 + $0x60] sm:$0xff]  }
 0xb4f   : > { %13048 = vmatmul.mubr.bf16.vlgmr.msra.gmra.mrb[16].mxu1 %v10603_v21  ;;  %v10609_v27 = vpack.c.bf16 %v10583_v6, %v10577_v34  ;;  %v18981_v21 = vld [vmem:[#allocation23 + $0x40] sm:$0xff]  }
 0xb50   : > { %13057 = vmatprep.mubr.bf16.mxu1 %v10606_v23  ;;  %16620 = vmatprep.subr.bf16.mxu0 %v18981_v21 }
 0xb57   : > { %13058 = vmatmul.mubr.bf16.gmra.mrb[20].mxu1 %v10605_v15 }
 0xb58   : > { %13067 = vmatprep.mubr.bf16.mxu1 %v10608_v40  ;;  %v18984_v40 = vld [vmem:[#allocation23 + $0x8] sm:$0xff]  }
 0xb5f   : > { %13068 = vmatmul.mubr.bf16.gmra.mrb[24].mxu1 %v10607_v55 }
 0xb60   : > { %13077 = vmatprep.mubr.bf16.mxu1 %v10610_v24 }
 0xb67   : > { %13078 = vmatmul.mubr.bf16.gmra.mrb[28].mxu1 %v10609_v27 }
 0xc22   : > { %v13049_v23 = vpop.f32.mrb[16].mxu1 }
 0xc23   : > { %v16828_v0 = vadd.f32 %v13049_v23, %v20791_v9  ;;  %v13051_v25 = vpop.f32.mrb[17].mxu1  ;;  %v18992_v23 = vld [vmem:[#allocation23 + $0x28] sm:$0xff]  }
 0xc24   : > { %v16829_v18 = vadd.f32 %v13051_v25, %v20794_v45  ;;  %v13053_v59 = vpop.f32.mrb[18].mxu1 }
 0xc25   : > { %v16830_v62 = vadd.f32 %v13053_v59, %v20791_v9  ;;  %v13055_v33 = vpop.f32.mrb[19].mxu1  ;;  %v13088_v31 = vmax.f32 %v16828_v0, 0.0 }
 0xc26   : > { %v16831_v30 = vadd.f32 %v13055_v33, %v20794_v45  ;;  %v13089_v36 = vmax.f32 %v16829_v18, 0.0 }
 0xc27   : > { %v13090_v32 = vmax.f32 %v16830_v62, 0.0 }
 0xc28   : > { %v13091_v5 = vmax.f32 %v16831_v30, 0.0  ;;  %v18994_v30 = vld [vmem:[#allocation23 + $0x30] sm:$0xff]  }
 0xc29   : > { %v20800_v39 = vpack.c.bf16 %v13090_v32, %v13088_v31  ;;  %v18995_v31 = vld [vmem:[#allocation23 + $0x78] sm:$0xff]   ;;  %v13621_v32 = vld [vmem:[#allocation20 + $0x8] sm:$0xff] }
 0xc2a   : > { %v20802_v46 = vpack.c.bf16 %v13091_v5, %v13089_v36  ;;  %v13059_v63 = vpop.f32.mrb[20].mxu1  ;;  %v13622_v36 = vld [vmem:[#allocation20 + $0x28] sm:$0xff] }
 0xc2b   : > { %v16832_v10 = vadd.f32 %v13059_v63, %v20791_v9  ;;  %v13061_v58 = vpop.f32.mrb[21].mxu1  ;;  %v16442_v5 = vcombine.low %v13621_v32, %v13622_v36  ;;  %v16443_v63 = vcombine.high %v13621_v32, %v13622_v36 }
 0xc2c   : > { %v16833_v17 = vadd.f32 %v13061_v58, %v20794_v45  ;;  %v13063_v15 = vpop.f32.mrb[22].mxu1  ;;  %13348 = vmatprep.mubr.bf16.mxu0 %v20802_v46 }
 0xc2d   : > { %v16834_v19 = vadd.f32 %v13063_v15, %v20791_v9  ;;  %v13065_v37 = vpop.f32.mrb[23].mxu1  ;;  %13349 = vmatmul.mubr.bf16.vlgmr.msra.gmra.mrb[32].mxu0 %v20800_v39  ;;  %v13092_v4 = vmax.f32 %v16832_v10, 0.0 }
 0xc2e   : > { %v16835_v11 = vadd.f32 %v13065_v37, %v20794_v45  ;;  %16621 = vmatpush3.bf16.msra.mxu0 %v18982_v49  ;;  %v13093_v61 = vmax.f32 %v16833_v17, 0.0  ;;  %v13144_v49 = vld [vmem:[#allocation22] sm:$0x3] }
 0xc2f   : > { %v13094_v22 = vmax.f32 %v16834_v19, 0.0  ;;  %16622 = vmatprep.subr.bf16.mxu0 %v18983_v8  ;;  %v20837_v10 = vrot.slane %v13144_v49, %v20210_v47  ;;  %v20840_v58 = vrot.slane %v13144_v49, %v20212_v48 }
 0xc30   : > { %v13095_v28 = vmax.f32 %v16835_v11, 0.0 }
 0xc31   : > { %v20810_v54 = vpack.c.bf16 %v13094_v22, %v13092_v4 }
 0xc32   : > { %v20812_v53 = vpack.c.bf16 %v13095_v28, %v13093_v61  ;;  %v13069_v14 = vpop.f32.mrb[24].mxu1  ;;  %16623 = vmatpush3.bf16.msra.mxu0 %v18984_v40 }
 0xc33   : > { %v16836_v41 = vadd.f32 %v13069_v14, %v20791_v9  ;;  %v13071_v2 = vpop.f32.mrb[25].mxu1  ;;  %16624 = vmatprep.subr.bf16.mxu0 %v18985_v60  ;;  %v13623_v14 = vld [vmem:[#allocation20 + $0x48] sm:$0xff] }
 0xc34   : > { %v16837_v44 = vadd.f32 %v13071_v2, %v20794_v45  ;;  %v13073_v35 = vpop.f32.mrb[26].mxu1  ;;  %13358 = vmatprep.mubr.bf16.mxu0 %v20812_v53 }
 0xc35   : > { %v16838_v38 = vadd.f32 %v13073_v35, %v20791_v9  ;;  %v13075_v56 = vpop.f32.mrb[27].mxu1  ;;  %13359 = vmatmul.mubr.bf16.gmra.mrb[36].mxu0 %v20810_v54  ;;  %v13096_v24 = vmax.f32 %v16836_v41, 0.0 }
 0xc36   : > { %v16839_v55 = vadd.f32 %v13075_v56, %v20794_v45  ;;  %16625 = vmatpush3.bf16.msra.mxu0 %v18986_v42  ;;  %v13097_v3 = vmax.f32 %v16837_v44, 0.0  ;;  %v13624_v42 = vld [vmem:[#allocation20 + $0x68] sm:$0xff] }
 0xc37   : > { %v13098_v12 = vmax.f32 %v16838_v38, 0.0  ;;  %16626 = vmatprep.subr.bf16.mxu0 %v18987_v57  ;;  %v16445_v38 = vcombine.high %v13623_v14, %v13624_v42 }
 0xc38   : > { %v13099_v34 = vmax.f32 %v16839_v55, 0.0 }
 0xc39   : > { %v20820_v6 = vpack.c.bf16 %v13098_v12, %v13096_v24  ;;  %v13626_v24 = vld [vmem:[#allocation20 + $0xa8] sm:$0xff] }
 0xc3a   : > { %v20822_v27 = vpack.c.bf16 %v13099_v34, %v13097_v3  ;;  %v13079_v7 = vpop.f32.mrb[28].mxu1  ;;  %16627 = vmatpush3.bf16.msra.mxu0 %v18988_v52  ;;  %v13625_v52 = vld [vmem:[#allocation20 + $0x88] sm:$0xff]  ;;  %v16444_v34 = vcombine.low %v13623_v14, %v13624_v42 }
 0xc3b   : > { %v16840_v43 = vadd.f32 %v13079_v7, %v20791_v9  ;;  %v13081_v13 = vpop.f32.mrb[29].mxu1  ;;  %16628 = vmatprep.subr.bf16.mxu0 %v18989_v1 }
 0xc3c   : > { %v16841_v16 = vadd.f32 %v13081_v13, %v20794_v45  ;;  %v13083_v50 = vpop.f32.mrb[30].mxu1  ;;  %13368 = vmatprep.mubr.bf16.mxu0 %v20822_v27 }
 0xc3d   : > { %v16842_v20 = vadd.f32 %v13083_v50, %v20791_v9  ;;  %v13085_v21 = vpop.f32.mrb[31].mxu1  ;;  %13369 = vmatmul.mubr.bf16.gmra.mrb[40].mxu0 %v20820_v6  ;;  %v13100_v0 = vmax.f32 %v16840_v43, 0.0  ;;  %v18993_v9 = vld [vmem:[#allocation23 + $0x70] sm:$0xff]   ;;  %v16447_v43 = vcombine.high %v13625_v52, %v13626_v24  ;;  %v13628_v50 = vld [vmem:[#allocation20 + $0xe8] sm:$0xff] }
 0xc3e   : > { %v16843_v29 = vadd.f32 %v13085_v21, %v20794_v45  ;;  %16629 = vmatpush3.bf16.msra.mxu0 %v18990_v51  ;;  %v13101_v18 = vmax.f32 %v16841_v16, 0.0  ;;  %v18996_v45 = vld [vmem:[#allocation23 + $0x38] sm:$0xff]   ;;  %v13627_v16 = vld [vmem:[#allocation20 + $0xc8] sm:$0xff] }
 0xc3f   : > { %v13102_v25 = vmax.f32 %v16842_v20, 0.0  ;;  %16630 = vmatprep.subr.bf16.mxu0 %v18991_v26 }
 0xc40   : > { %v13103_v59 = vmax.f32 %v16843_v29, 0.0 }
 0xc41   : > { %v20830_v62 = vpack.c.bf16 %v13102_v25, %v13100_v0 }
 0xc42   : > { %v20832_v33 = vpack.c.bf16 %v13103_v59, %v13101_v18  ;;  %16631 = vmatpush3.bf16.msra.mxu0 %v18992_v23  ;;  %v16446_v23 = vcombine.low %v13625_v52, %v13626_v24  ;;  %v16449_v18 = vcombine.high %v13627_v16, %v13628_v50 }
 0xc43   : > { %16632 = vmatprep.subr.bf16.mxu0 %v18993_v9 }
 0xc44   : > { %13378 = vmatprep.mubr.bf16.mxu0 %v20832_v33 }
 0xc45   : > { %13379 = vmatmul.mubr.bf16.gmra.mrb[44].mxu0 %v20830_v62 }
 0xc46   : > { %16633 = vmatpush3.bf16.msra.mxu0 %v18994_v30  ;;  %v13629_v30 = vld [vmem:[#allocation20 + $0x108] sm:$0xff] }
 0xc47   : > { %16634 = vmatprep.subr.bf16.mxu0 %v18995_v31  ;;  %v13630_v31 = vld [vmem:[#allocation20 + $0x128] sm:$0xff] }
 0xc4a   : > { %16635 = vmatpush3.bf16.msra.mxu0 %v18996_v45 }
 0xc4b   : > { %13825 = vmatprep.subr.bf16.mxu0 %v16443_v63 }
 0xd00   : > { %v13350_v8 = vpop.f32.mrb[32].mxu0 }
 0xd01   : > { %v13351_v17 = vadd.f32 %v13350_v8, %v20837_v10  ;;  %v13352_v15 = vpop.f32.mrb[33].mxu0  ;;  %v16451_v8 = vcombine.high %v13629_v30, %v13630_v31 }
 0xd02   : > { %v13353_v19 = vadd.f32 %v13352_v15, %v20840_v58  ;;  %v13354_v37 = vpop.f32.mrb[34].mxu0 }
 0xd03   : > { %v13355_v11 = vadd.f32 %v13354_v37, %v20837_v10  ;;  %v13356_v40 = vpop.f32.mrb[35].mxu0  ;;  %v13389_v22 = vmax.f32 %v13351_v17, 0.0  ;;  %v13632_v37 = vld [vmem:[#allocation20 + $0x168] sm:$0xff] }
 0xd04   : > { %v13357_v4 = vadd.f32 %v13356_v40, %v20840_v58  ;;  %v13390_v61 = vmax.f32 %v13353_v19, 0.0  ;;  %v13631_v19 = vld [vmem:[#allocation20 + $0x148] sm:$0xff] }
 0xd05   : > { %v13391_v60 = vmax.f32 %v13355_v11, 0.0 }
 0xd06   : > { %v13392_v28 = vmax.f32 %v13357_v4, 0.0 }
 0xd07   : > { %v13405_v41 = vpack.c.bf16 %v13391_v60, %v13389_v22  ;;  %v16450_v22 = vcombine.low %v13629_v30, %v13630_v31  ;;  %v13645_v31 = vld [vmem:[#allocation20 + $0x308] sm:$0xff] }
 0xd08   : > { %v13406_v2 = vpack.c.bf16 %v13392_v28, %v13390_v61  ;;  %v13360_v57 = vpop.f32.mrb[36].mxu0  ;;  %v16453_v28 = vcombine.high %v13631_v19, %v13632_v37 }
 0xd09   : > { %v13361_v44 = vadd.f32 %v13360_v57, %v20837_v10  ;;  %v13362_v35 = vpop.f32.mrb[37].mxu0 }
 0xd0a   : > { %v13363_v56 = vadd.f32 %v13362_v35, %v20840_v58  ;;  %v13364_v55 = vpop.f32.mrb[38].mxu0  ;;  %13580 = vmatprep.mubr.bf16.mxu0 %v13406_v2  ;;  %v13634_v2 = vld [vmem:[#allocation20 + $0x1a8] sm:$0xff] }
 0xd0b   : > { %v13365_v12 = vadd.f32 %v13364_v55, %v20837_v10  ;;  %v13366_v1 = vpop.f32.mrb[39].mxu0  ;;  %13581 = vmatmul.mubr.bf16.vlgmr.msra.gmra.mrb[48].mxu0 %v13405_v41  ;;  %v13393_v7 = vmax.f32 %v13361_v44, 0.0  ;;  %v13633_v41 = vld [vmem:[#allocation20 + $0x188] sm:$0xff] }
 0xd0c   : > { %v13367_v3 = vadd.f32 %v13366_v1, %v20840_v58  ;;  %13826 = vmatpush1.bf16.msra.mxu0 %v16442_v5  ;;  %v13394_v13 = vmax.f32 %v13363_v56, 0.0  ;;  %v16448_v5 = vcombine.low %v13627_v16, %v13628_v50  ;;  %v16455_v52 = vcombine.high %v13633_v41, %v13634_v2  ;;  %v13635_v1 = vld [vmem:[#allocation20 + $0x1c8] sm:$0xff] }
 0xd0d   : > { %v13395_v51 = vmax.f32 %v13365_v12, 0.0  ;;  %13827 = vmatprep.subr.bf16.mxu0 %v16445_v38  ;;  %v16452_v38 = vcombine.low %v13631_v19, %v13632_v37  ;;  %v13639_v16 = vld [vmem:[#allocation20 + $0x248] sm:$0xff] }
 0xd0e   : > { %v13396_v26 = vmax.f32 %v13367_v3, 0.0  ;;  %v13636_v3 = vld [vmem:[#allocation20 + $0x1e8] sm:$0xff] }
 0xd0f   : > { %v13407_v20 = vpack.c.bf16 %v13395_v51, %v13393_v7  ;;  %v16454_v51 = vcombine.low %v13633_v41, %v13634_v2  ;;  %v13640_v50 = vld [vmem:[#allocation20 + $0x268] sm:$0xff]  ;;  %v19001_v41 = vld [vmem:[#allocation23 + $0x50] sm:$0xff]  }
 0xd10   : > { %v13408_v21 = vpack.c.bf16 %v13396_v26, %v13394_v13  ;;  %13828 = vmatpush1.bf16.msra.mxu0 %v16444_v34  ;;  %v13370_v29 = vpop.f32.mrb[40].mxu0  ;;  %v13638_v13 = vld [vmem:[#allocation20 + $0x228] sm:$0xff]  ;;  %v19002_v2 = vld [vmem:[#allocation23 + $0x10] sm:$0xff]  }
 0xd11   : > { %v13371_v0 = vadd.f32 %v13370_v29, %v20837_v10  ;;  %v13372_v25 = vpop.f32.mrb[41].mxu0  ;;  %13829 = vmatprep.subr.bf16.mxu0 %v16447_v43  ;;  %v13637_v43 = vld [vmem:[#allocation20 + $0x208] sm:$0xff] }
 0xd12   : > { %v13373_v59 = vadd.f32 %v13372_v25, %v20840_v58  ;;  %v13374_v9 = vpop.f32.mrb[42].mxu0  ;;  %13588 = vmatprep.mubr.bf16.mxu0 %v13408_v21  ;;  %v16459_v26 = vcombine.high %v13637_v43, %v13638_v13  ;;  %v16461_v21 = vcombine.high %v13639_v16, %v13640_v50  ;;  %v13641_v29 = vld [vmem:[#allocation20 + $0x288] sm:$0xff] }
 0xd13   : > { %v13375_v45 = vadd.f32 %v13374_v9, %v20837_v10  ;;  %v13376_v32 = vpop.f32.mrb[43].mxu0  ;;  %13589 = vmatmul.mubr.bf16.gmra.mrb[52].mxu0 %v13407_v20  ;;  %v13397_v63 = vmax.f32 %v13371_v0, 0.0  ;;  %v16458_v20 = vcombine.low %v13637_v43, %v13638_v13  ;;  %v16460_v0 = vcombine.low %v13639_v16, %v13640_v50  ;;  %v20875_v43 = vld [vmem:[#allocation25] ss:$0 sm:$0xff] }
 0xd14   : > { %v13377_v36 = vadd.f32 %v13376_v32, %v20840_v58  ;;  %13830 = vmatpush1.bf16.msra.mxu0 %v16446_v23  ;;  %v13398_v17 = vmax.f32 %v13373_v59, 0.0  ;;  %v13642_v23 = vld [vmem:[#allocation20 + $0x2a8] sm:$0xff] }
 0xd15   : > { %v13399_v49 = vmax.f32 %v13375_v45, 0.0  ;;  %13831 = vmatprep.subr.bf16.mxu0 %v16449_v18  ;;  %v16463_v25 = vcombine.high %v13641_v29, %v13642_v23  ;;  %v13643_v18 = vld [vmem:[#allocation20 + $0x2c8] sm:$0xff]  ;;  %v16462_v9 = vcombine.low %v13641_v29, %v13642_v23 }
 0xd16   : > { %v13400_v15 = vmax.f32 %v13377_v36, 0.0  ;;  %v13644_v59 = vld [vmem:[#allocation20 + $0x2e8] sm:$0xff] }
 0xd17   : > { %v13409_v11 = vpack.c.bf16 %v13399_v49, %v13397_v63  ;;  %v16465_v30 = vcombine.high %v13643_v18, %v13644_v59  ;;  %v13646_v45 = vld [vmem:[#allocation20 + $0x328] sm:$0xff]  ;;  %v16464_v32 = vcombine.low %v13643_v18, %v13644_v59 }
 0xd18   : > { %v13410_v40 = vpack.c.bf16 %v13400_v15, %v13398_v17  ;;  %13832 = vmatpush1.bf16.msra.mxu0 %v16448_v5  ;;  %v13380_v4 = vpop.f32.mrb[44].mxu0  ;;  %v16467_v36 = vcombine.high %v13645_v31, %v13646_v45  ;;  %v13647_v5 = vld [vmem:[#allocation20 + $0x348] sm:$0xff]  ;;  %v16466_v49 = vcombine.low %v13645_v31, %v13646_v45 }
 0xd19   : > { %v13381_v60 = vadd.f32 %v13380_v4, %v20837_v10  ;;  %v13382_v61 = vpop.f32.mrb[45].mxu0  ;;  %13833 = vmatprep.subr.bf16.mxu0 %v16451_v8  ;;  %v13648_v63 = vld [vmem:[#allocation20 + $0x368] sm:$0xff] }
 0xd1a   : > { %v13383_v14 = vadd.f32 %v13382_v61, %v20840_v58  ;;  %v13384_v42 = vpop.f32.mrb[46].mxu0  ;;  %13596 = vmatprep.mubr.bf16.mxu0 %v13410_v40  ;;  %v16469_v8 = vcombine.high %v13647_v5, %v13648_v63  ;;  %v13649_v17 = vld [vmem:[#allocation20 + $0x388] sm:$0xff]  ;;  %v16468_v19 = vcombine.low %v13647_v5, %v13648_v63 }
 0xd1b   : > { %v13385_v57 = vadd.f32 %v13384_v42, %v20837_v10  ;;  %v13386_v44 = vpop.f32.mrb[47].mxu0  ;;  %13597 = vmatmul.mubr.bf16.gmra.mrb[56].mxu0 %v13409_v11  ;;  %v13401_v56 = vmax.f32 %v13381_v60, 0.0  ;;  %v16457_v10 = vcombine.high %v13635_v1, %v13636_v3  ;;  %v13650_v15 = vld [vmem:[#allocation20 + $0x3a8] sm:$0xff] }
 0xd1c   : > { %v13387_v35 = vadd.f32 %v13386_v44, %v20840_v58  ;;  %13834 = vmatpush1.bf16.msra.mxu0 %v16450_v22  ;;  %v13402_v24 = vmax.f32 %v13383_v14, 0.0  ;;  %v16456_v58 = vcombine.low %v13635_v1, %v13636_v3  ;;  %v16471_v37 = vcombine.high %v13649_v17, %v13650_v15  ;;  %v13651_v11 = vld [vmem:[#allocation20 + $0x3c8] sm:$0xff]  ;;  %v19004_v44 = vld [vmem:[#allocation23 + $0x18] sm:$0xff]   ;;  %v20866_v3 = vld [vmem:[#allocation20 + $0x10] sm:$0xff] }
 0xd1d   : > { %v13403_v55 = vmax.f32 %v13385_v57, 0.0  ;;  %13835 = vmatprep.subr.bf16.mxu0 %v16453_v28  ;;  %v13652_v40 = vld [vmem:[#allocation20 + $0x3e8] sm:$0xff]  ;;  %v16470_v4 = vcombine.low %v13649_v17, %v13650_v15  ;;  %v19003_v57 = vld [vmem:[#allocation23 + $0x58] sm:$0xff]  }
 0xd1e   : > { %v13404_v12 = vmax.f32 %v13387_v35, 0.0  ;;  %v16473_v22 = vcombine.high %v13651_v11, %v13652_v40  ;;  %v16472_v60 = vcombine.low %v13651_v11, %v13652_v40  ;;  %v18997_v61 = vld [vmem:[#allocation23 + $0x40] sm:$0xff]   ;;  %v18999_v14 = vld [vmem:[#allocation23 + $0x48] sm:$0xff]   ;;  %v19012_v1 = vld [vmem:[#allocation23 + $0x38] sm:$0xff]  }
 0xd1f   : > { %v13411_v34 = vpack.c.bf16 %v13403_v55, %v13401_v56  ;;  %v18998_v28 = vld [vmem:[#allocation23] sm:$0xff]   ;;  %v19000_v42 = vld [vmem:[#allocation23 + $0x8] sm:$0xff]  }
 0xd20   : > { %v13412_v7 = vpack.c.bf16 %v13404_v12, %v13402_v24  ;;  %13836 = vmatpush1.bf16.msra.mxu0 %v16452_v38  ;;  %v19005_v35 = vld [vmem:[#allocation23 + $0x60] sm:$0xff]   ;;  %v19007_v56 = vld [vmem:[#allocation23 + $0x68] sm:$0xff]   ;;  %v19010_v24 = vld [vmem:[#allocation23 + $0x30] sm:$0xff]  }
 0xd21   : > { %13837 = vmatprep.subr.bf16.mxu0 %v16455_v52  ;;  %v19006_v38 = vld [vmem:[#allocation23 + $0x20] sm:$0xff]   ;;  %v19008_v55 = vld [vmem:[#allocation23 + $0x28] sm:$0xff]   ;;  %v19009_v52 = vld [vmem:[#allocation23 + $0x70] sm:$0xff]  }
 0xd22   : > { %13604 = vmatprep.mubr.bf16.mxu0 %v13412_v7  ;;  %v19011_v12 = vld [vmem:[#allocation23 + $0x78] sm:$0xff]  }
 0xd23   : > { %13605 = vmatmul.mubr.bf16.gmra.mrb[60].mxu0 %v13411_v34  ;;  %v20868_v34 = vld [vmem:[#allocation20 + $0x30] sm:$0xff] }
 0xd24   : > { %13838 = vmatpush1.bf16.msra.mxu0 %v16454_v51  ;;  %13857 = vmatprep.mubr.bf16.mxu0 %v20802_v46  ;;  %v16499_v7 = vcombine.low %v20866_v3, %v20868_v34  ;;  %v16500_v51 = vcombine.high %v20866_v3, %v20868_v34 }
 0xd25   : > { %13839 = vmatprep.subr.bf16.mxu0 %v16457_v10 }
 0xd28   : > { %13840 = vmatpush1.bf16.msra.mxu0 %v16456_v58 }
 0xd29   : > { %13841 = vmatprep.subr.bf16.mxu0 %v16459_v26 }
 0xd2c   : > { %13842 = vmatpush1.bf16.msra.mxu0 %v16458_v20 }
 0xd2d   : > { %13843 = vmatprep.subr.bf16.mxu0 %v16461_v21 }
 0xd30   : > { %13844 = vmatpush1.bf16.msra.mxu0 %v16460_v0 }
 0xd31   : > { %13845 = vmatprep.subr.bf16.mxu0 %v16463_v25 }
 0xd34   : > { %13846 = vmatpush1.bf16.msra.mxu0 %v16462_v9 }
 0xd35   : > { %13847 = vmatprep.subr.bf16.mxu0 %v16465_v30 }
 0xd38   : > { %13848 = vmatpush1.bf16.msra.mxu0 %v16464_v32 }
 0xd39   : > { %13849 = vmatprep.subr.bf16.mxu0 %v16467_v36 }
 0xd3c   : > { %13850 = vmatpush1.bf16.msra.mxu0 %v16466_v49 }
 0xd3d   : > { %13851 = vmatprep.subr.bf16.mxu0 %v16469_v8 }
 0xd40   : > { %13852 = vmatpush1.bf16.msra.mxu0 %v16468_v19 }
 0xd41   : > { %13853 = vmatprep.subr.bf16.mxu0 %v16471_v37 }
 0xd44   : > { %13854 = vmatpush1.bf16.msra.mxu0 %v16470_v4 }
 0xd45   : > { %13855 = vmatprep.subr.bf16.mxu0 %v16473_v22 }
 0xd48   : > { %13856 = vmatpush1.bf16.msra.mxu0 %v16472_v60  ;;  %v13653_v60 = vld [vmem:[#allocation22] sm:$0x3] }
 0xd49   : > { %16660 = vmatprep.subr.bf16.mxu0 %v18997_v61  ;;  %v20896_v61 = vrot.slane %v13653_v60, %v20210_v47 }
 0xd4b   : > { %13858 = vmatmul.mubr.bf16.vlgmr.msra.gmra.mrb[64].mxu0 %v20800_v39 }
 0xd4c   : > { %13867 = vmatprep.mubr.bf16.mxu0 %v20812_v53  ;;  %16661 = vmatpush3.bf16.msra.mxu0 %v18998_v28  ;;  %v20899_v28 = vrot.slane %v13653_v60, %v20212_v48 }
 0xd4d   : > { %16662 = vmatprep.subr.bf16.mxu0 %v18999_v14 }
 0xd50   : > { %16663 = vmatpush3.bf16.msra.mxu0 %v19000_v42 }
 0xd51   : > { %16664 = vmatprep.subr.bf16.mxu0 %v19001_v41 }
 0xd53   : > { %13868 = vmatmul.mubr.bf16.gmra.mrb[68].mxu0 %v20810_v54 }
 0xd54   : > { %13877 = vmatprep.mubr.bf16.mxu0 %v20822_v27  ;;  %16665 = vmatpush3.bf16.msra.mxu0 %v19002_v2 }
 0xd55   : > { %16666 = vmatprep.subr.bf16.mxu0 %v19003_v57 }
 0xd58   : > { %16667 = vmatpush3.bf16.msra.mxu0 %v19004_v44 }
 0xd59   : > { %16668 = vmatprep.subr.bf16.mxu0 %v19005_v35 }
 0xd5b   : > { %13878 = vmatmul.mubr.bf16.gmra.mrb[72].mxu0 %v20820_v6 }
 0xd5c   : > { %13887 = vmatprep.mubr.bf16.mxu0 %v20832_v33  ;;  %16669 = vmatpush3.bf16.msra.mxu0 %v19006_v38 }
 0xd5d   : > { %16670 = vmatprep.subr.bf16.mxu0 %v19007_v56 }
 0xd60   : > { %16671 = vmatpush3.bf16.msra.mxu0 %v19008_v55 }
 0xd61   : > { %16672 = vmatprep.subr.bf16.mxu0 %v19009_v52 }
 0xd63   : > { %13888 = vmatmul.mubr.bf16.gmra.mrb[76].mxu0 %v20830_v62 }
 0xd64   : > { %16673 = vmatpush3.bf16.msra.mxu0 %v19010_v24 }
 0xd65   : > { %16674 = vmatprep.subr.bf16.mxu0 %v19011_v12  ;;  %v14133_v12 = vld [vmem:[#allocation20 + $0x50] sm:$0xff] }
 0xd68   : > { %16675 = vmatpush3.bf16.msra.mxu0 %v19012_v1  ;;  %v14134_v1 = vld [vmem:[#allocation20 + $0x70] sm:$0xff] }
 0xd69   : > { %14335 = vmatprep.subr.bf16.mxu0 %v16500_v51 }
 0xdde   : > { %v16636_v10 = vpop.f32.mrb[48].mxu0 }
 0xddf   : > { %v16637_v13 = vpop.f32.mrb[49].mxu0 }
 0xde0   : > { %v16638_v58 = vadd.f32 %v16637_v13, %v16636_v10  ;;  %v16639_v26 = vpop.f32.mrb[50].mxu0 }
 0xde1   : > { %v16640_v16 = vpop.f32.mrb[51].mxu0 }
 0xde2   : > { %v13583_v50 = vadd.f32 %v16638_v58, %v20875_v43  ;;  %v16641_v20 = vadd.f32 %v16640_v16, %v16639_v26  ;;  %v16502_v16 = vcombine.high %v14133_v12, %v14134_v1 }
 0xde4   : > { %13613 = vst [vmem:[%s20878_s14] sm:$0xff] %v13583_v50  ;;  %v13586_v21 = vadd.f32 %v16641_v20, %v20875_v43 }
 0xde6   : > { %13614 = vst [vmem:[%s20878_s14 + $0x8] sm:$0xff] %v13586_v21  ;;  %v16642_v29 = vpop.f32.mrb[52].mxu0  ;;  %v14135_v21 = vld [vmem:[#allocation20 + $0x90] sm:$0xff] }
 0xde7   : > { %v16643_v23 = vpop.f32.mrb[53].mxu0 }
 0xde8   : > { %v16644_v0 = vadd.f32 %v16643_v23, %v16642_v29  ;;  %v16645_v25 = vpop.f32.mrb[54].mxu0  ;;  %v14136_v29 = vld [vmem:[#allocation20 + $0xb0] sm:$0xff] }
 0xde9   : > { %v16646_v18 = vpop.f32.mrb[55].mxu0 }
 0xdea   : > { %v13591_v59 = vadd.f32 %v16644_v0, %v20875_v43  ;;  %v16647_v9 = vadd.f32 %v16646_v18, %v16645_v25  ;;  %v16501_v18 = vcombine.low %v14133_v12, %v14134_v1 }
 0xdec   : > { %13615 = vst [vmem:[%s20878_s14 + $0x10] sm:$0xff] %v13591_v59  ;;  %v13594_v30 = vadd.f32 %v16647_v9, %v20875_v43 }
 0xdee   : > { %13616 = vst [vmem:[%s20878_s14 + $0x18] sm:$0xff] %v13594_v30  ;;  %v16648_v31 = vpop.f32.mrb[56].mxu0  ;;  %v16504_v30 = vcombine.high %v14135_v21, %v14136_v29 }
 0xdef   : > { %v16649_v45 = vpop.f32.mrb[57].mxu0 }
 0xdf0   : > { %v16650_v32 = vadd.f32 %v16649_v45, %v16648_v31  ;;  %v16651_v36 = vpop.f32.mrb[58].mxu0 }
 0xdf1   : > { %v16652_v5 = vpop.f32.mrb[59].mxu0 }
 0xdf2   : > { %v13599_v63 = vadd.f32 %v16650_v32, %v20875_v43  ;;  %v16653_v49 = vadd.f32 %v16652_v5, %v16651_v36  ;;  %v14137_v32 = vld [vmem:[#allocation20 + $0xd0] sm:$0xff] }
 0xdf3   : > { %v14138_v36 = vld [vmem:[#allocation20 + $0xf0] sm:$0xff] }
 0xdf4   : > { %13617 = vst [vmem:[%s20878_s14 + $0x20] sm:$0xff] %v13599_v63  ;;  %v13602_v8 = vadd.f32 %v16653_v49, %v20875_v43  ;;  %v16506_v3 = vcombine.high %v14137_v32, %v14138_v36 }
 0xdf6   : > { %13618 = vst [vmem:[%s20878_s14 + $0x28] sm:$0xff] %v13602_v8  ;;  %v16654_v17 = vpop.f32.mrb[60].mxu0  ;;  %v16503_v8 = vcombine.low %v14135_v21, %v14136_v29 }
 0xdf7   : > { %v16655_v15 = vpop.f32.mrb[61].mxu0 }
 0xdf8   : > { %v16656_v19 = vadd.f32 %v16655_v15, %v16654_v17  ;;  %v16657_v37 = vpop.f32.mrb[62].mxu0 }
 0xdf9   : > { %v16658_v11 = vpop.f32.mrb[63].mxu0 }
 0xdfa   : > { %v13607_v40 = vadd.f32 %v16656_v19, %v20875_v43  ;;  %v16659_v4 = vadd.f32 %v16658_v11, %v16657_v37  ;;  %v14139_v19 = vld [vmem:[#allocation20 + $0x110] sm:$0xff] }
 0xdfb   : > { %v14140_v37 = vld [vmem:[#allocation20 + $0x130] sm:$0xff] }
 0xdfc   : > { %13619 = vst [vmem:[%s20878_s14 + $0x30] sm:$0xff] %v13607_v40  ;;  %v13610_v22 = vadd.f32 %v16659_v4, %v20875_v43 }
 0xdfe   : > { %13620 = vst [vmem:[%s20878_s14 + $0x38] sm:$0xff] %v13610_v22  ;;  %v16505_v22 = vcombine.low %v14137_v32, %v14138_v36  ;;  %v14149_v36 = vld [vmem:[#allocation20 + $0x250] sm:$0xff] }
 0xe1e   : > { %v13859_v14 = vpop.f32.mrb[64].mxu0 }
 0xe1f   : > { %v13860_v42 = vadd.f32 %v13859_v14, %v20896_v61  ;;  %v13861_v41 = vpop.f32.mrb[65].mxu0 }
 0xe20   : > { %v13862_v2 = vadd.f32 %v13861_v41, %v20899_v28  ;;  %v13863_v57 = vpop.f32.mrb[66].mxu0 }
 0xe21   : > { %v13864_v44 = vadd.f32 %v13863_v57, %v20896_v61  ;;  %v13865_v35 = vpop.f32.mrb[67].mxu0  ;;  %v13898_v56 = vmax.f32 %v13860_v42, 0.0  ;;  %v16508_v42 = vcombine.high %v14139_v19, %v14140_v37  ;;  %v14141_v57 = vld [vmem:[#allocation20 + $0x150] sm:$0xff] }
 0xe22   : > { %v13866_v38 = vadd.f32 %v13865_v35, %v20899_v28  ;;  %v13899_v52 = vmax.f32 %v13862_v2, 0.0 }
 0xe23   : > { %v13900_v55 = vmax.f32 %v13864_v44, 0.0  ;;  %v14142_v44 = vld [vmem:[#allocation20 + $0x170] sm:$0xff] }
 0xe24   : > { %v13901_v24 = vmax.f32 %v13866_v38, 0.0  ;;  %v16510_v12 = vcombine.high %v14141_v57, %v14142_v44 }
 0xe25   : > { %v13914_v51 = vpack.c.bf16 %v13900_v55, %v13898_v56  ;;  %v16507_v55 = vcombine.low %v14139_v19, %v14140_v37 }
 0xe26   : > { %v13915_v10 = vpack.c.bf16 %v13901_v24, %v13899_v52  ;;  %v13869_v13 = vpop.f32.mrb[68].mxu0 }
 0xe27   : > { %v13870_v58 = vadd.f32 %v13869_v13, %v20896_v61  ;;  %v13871_v26 = vpop.f32.mrb[69].mxu0  ;;  %v14144_v13 = vld [vmem:[#allocation20 + $0x1b0] sm:$0xff] }
 0xe28   : > { %v13872_v50 = vadd.f32 %v13871_v26, %v20899_v28  ;;  %v13873_v20 = vpop.f32.mrb[70].mxu0  ;;  %14089 = vmatprep.mubr.bf16.mxu0 %v13915_v10  ;;  %v14143_v10 = vld [vmem:[#allocation20 + $0x190] sm:$0xff] }
 0xe29   : > { %v13874_v23 = vadd.f32 %v13873_v20, %v20896_v61  ;;  %v13875_v0 = vpop.f32.mrb[71].mxu0  ;;  %14090 = vmatmul.mubr.bf16.vlgmr.msra.gmra.mrb[80].mxu0 %v13914_v51  ;;  %v13902_v59 = vmax.f32 %v13870_v58, 0.0  ;;  %v16512_v29 = vcombine.high %v14143_v10, %v14144_v13 }
 0xe2a   : > { %v13876_v25 = vadd.f32 %v13875_v0, %v20899_v28  ;;  %14336 = vmatpush1.bf16.msra.mxu0 %v16499_v7  ;;  %v13903_v31 = vmax.f32 %v13872_v50, 0.0  ;;  %v16509_v50 = vcombine.low %v14141_v57, %v14142_v44  ;;  %v14160_v57 = vld [vmem:[#allocation20 + $0x3b0] sm:$0xff] }
 0xe2b   : > { %v13904_v9 = vmax.f32 %v13874_v23, 0.0  ;;  %14337 = vmatprep.subr.bf16.mxu0 %v16502_v16 }
 0xe2c   : > { %v13905_v45 = vmax.f32 %v13876_v25, 0.0  ;;  %v14145_v25 = vld [vmem:[#allocation20 + $0x1d0] sm:$0xff] }
 0xe2d   : > { %v13916_v5 = vpack.c.bf16 %v13904_v9, %v13902_v59 }
 0xe2e   : > { %v13917_v63 = vpack.c.bf16 %v13905_v45, %v13903_v31  ;;  %14338 = vmatpush1.bf16.msra.mxu0 %v16501_v18  ;;  %v13879_v49 = vpop.f32.mrb[72].mxu0  ;;  %v14146_v18 = vld [vmem:[#allocation20 + $0x1f0] sm:$0xff] }
 0xe2f   : > { %v13880_v17 = vadd.f32 %v13879_v49, %v20896_v61  ;;  %v13881_v15 = vpop.f32.mrb[73].mxu0  ;;  %14339 = vmatprep.subr.bf16.mxu0 %v16504_v30  ;;  %v16511_v30 = vcombine.low %v14143_v10, %v14144_v13  ;;  %v14147_v31 = vld [vmem:[#allocation20 + $0x210] sm:$0xff] }
 0xe30   : > { %v13882_v34 = vadd.f32 %v13881_v15, %v20899_v28  ;;  %v13883_v7 = vpop.f32.mrb[74].mxu0  ;;  %14097 = vmatprep.mubr.bf16.mxu0 %v13917_v63  ;;  %v14148_v45 = vld [vmem:[#allocation20 + $0x230] sm:$0xff] }
 0xe31   : > { %v13884_v11 = vadd.f32 %v13883_v7, %v20896_v61  ;;  %v13885_v40 = vpop.f32.mrb[75].mxu0  ;;  %14098 = vmatmul.mubr.bf16.gmra.mrb[84].mxu0 %v13916_v5  ;;  %v13906_v60 = vmax.f32 %v13880_v17, 0.0  ;;  %v16516_v32 = vcombine.high %v14147_v31, %v14148_v45  ;;  %v14150_v5 = vld [vmem:[#allocation20 + $0x270] sm:$0xff]  ;;  %v16515_v63 = vcombine.low %v14147_v31, %v14148_v45 }
 0xe32   : > { %v13886_v4 = vadd.f32 %v13885_v40, %v20899_v28  ;;  %14340 = vmatpush1.bf16.msra.mxu0 %v16503_v8  ;;  %v13907_v41 = vmax.f32 %v13882_v34, 0.0  ;;  %v16518_v49 = vcombine.high %v14149_v36, %v14150_v5  ;;  %v14151_v8 = vld [vmem:[#allocation20 + $0x290] sm:$0xff]  ;;  %v16517_v15 = vcombine.low %v14149_v36, %v14150_v5 }
 0xe33   : > { %v13908_v14 = vmax.f32 %v13884_v11, 0.0  ;;  %14341 = vmatprep.subr.bf16.mxu0 %v16506_v3  ;;  %v14152_v17 = vld [vmem:[#allocation20 + $0x2b0] sm:$0xff] }
 0xe34   : > { %v13909_v2 = vmax.f32 %v13886_v4, 0.0  ;;  %v16520_v3 = vcombine.high %v14151_v8, %v14152_v17  ;;  %v14153_v34 = vld [vmem:[#allocation20 + $0x2d0] sm:$0xff]  ;;  %v16519_v19 = vcombine.low %v14151_v8, %v14152_v17 }
 0xe35   : > { %v13918_v35 = vpack.c.bf16 %v13908_v14, %v13906_v60  ;;  %v14154_v7 = vld [vmem:[#allocation20 + $0x2f0] sm:$0xff] }
 0xe36   : > { %v13919_v38 = vpack.c.bf16 %v13909_v2, %v13907_v41  ;;  %14342 = vmatpush1.bf16.msra.mxu0 %v16505_v22  ;;  %v13889_v56 = vpop.f32.mrb[76].mxu0  ;;  %v16522_v37 = vcombine.high %v14153_v34, %v14154_v7  ;;  %v14155_v11 = vld [vmem:[#allocation20 + $0x310] sm:$0xff]  ;;  %v16521_v4 = vcombine.low %v14153_v34, %v14154_v7 }
 0xe37   : > { %v13890_v52 = vadd.f32 %v13889_v56, %v20896_v61  ;;  %v13891_v24 = vpop.f32.mrb[77].mxu0  ;;  %14343 = vmatprep.subr.bf16.mxu0 %v16508_v42  ;;  %v14156_v40 = vld [vmem:[#allocation20 + $0x330] sm:$0xff] }
 0xe38   : > { %v13892_v1 = vadd.f32 %v13891_v24, %v20899_v28  ;;  %v13893_v51 = vpop.f32.mrb[78].mxu0  ;;  %14105 = vmatprep.mubr.bf16.mxu0 %v13919_v38  ;;  %v16524_v22 = vcombine.high %v14155_v11, %v14156_v40  ;;  %v14157_v60 = vld [vmem:[#allocation20 + $0x350] sm:$0xff]  ;;  %v16523_v42 = vcombine.low %v14155_v11, %v14156_v40 }
 0xe39   : > { %v13894_v58 = vadd.f32 %v13893_v51, %v20896_v61  ;;  %v13895_v26 = vpop.f32.mrb[79].mxu0  ;;  %14106 = vmatmul.mubr.bf16.gmra.mrb[88].mxu0 %v13918_v35  ;;  %v13910_v20 = vmax.f32 %v13890_v52, 0.0  ;;  %v16514_v61 = vcombine.high %v14145_v25, %v14146_v18  ;;  %v14158_v14 = vld [vmem:[#allocation20 + $0x370] sm:$0xff] }
 0xe3a   : > { %v13896_v16 = vadd.f32 %v13895_v26, %v20899_v28  ;;  %14344 = vmatpush1.bf16.msra.mxu0 %v16507_v55  ;;  %v13911_v23 = vmax.f32 %v13892_v1, 0.0  ;;  %v16513_v28 = vcombine.low %v14145_v25, %v14146_v18  ;;  %v16526_v41 = vcombine.high %v14157_v60, %v14158_v14  ;;  %v14159_v2 = vld [vmem:[#allocation20 + $0x390] sm:$0xff]  ;;  %v19014_v1 = vld [vmem:[#allocation23] sm:$0xff]   ;;  %v19019_v26 = vld [vmem:[#allocation23 + $0x58] sm:$0xff]  }
 0xe3b   : > { %v13912_v21 = vmax.f32 %v13894_v58, 0.0  ;;  %14345 = vmatprep.subr.bf16.mxu0 %v16510_v12  ;;  %v16525_v44 = vcombine.low %v14157_v60, %v14158_v14  ;;  %v16528_v35 = vcombine.high %v14159_v2, %v14160_v57  ;;  %v14161_v38 = vld [vmem:[#allocation20 + $0x3d0] sm:$0xff]  ;;  %v16527_v55 = vcombine.low %v14159_v2, %v14160_v57  ;;  %v19013_v12 = vld [vmem:[#allocation23 + $0x40] sm:$0xff]   ;;  %v19027_v25 = vld [vmem:[#allocation23 + $0x78] sm:$0xff]  }
 0xe3c   : > { %v13913_v0 = vmax.f32 %v13896_v16, 0.0  ;;  %v14162_v56 = vld [vmem:[#allocation20 + $0x3f0] sm:$0xff]  ;;  %v19020_v16 = vld [vmem:[#allocation23 + $0x18] sm:$0xff]  }
 0xe3d   : > { %v13920_v59 = vpack.c.bf16 %v13912_v21, %v13910_v20  ;;  %v16530_v52 = vcombine.high %v14161_v38, %v14162_v56  ;;  %v16529_v24 = vcombine.low %v14161_v38, %v14162_v56  ;;  %v19015_v51 = vld [vmem:[#allocation23 + $0x48] sm:$0xff]   ;;  %v19017_v13 = vld [vmem:[#allocation23 + $0x50] sm:$0xff]   ;;  %v19022_v20 = vld [vmem:[#allocation23 + $0x20] sm:$0xff]  }
 0xe3e   : > { %v13921_v9 = vpack.c.bf16 %v13913_v0, %v13911_v23  ;;  %14346 = vmatpush1.bf16.msra.mxu0 %v16509_v50  ;;  %v19016_v10 = vld [vmem:[#allocation23 + $0x8] sm:$0xff]   ;;  %v19018_v58 = vld [vmem:[#allocation23 + $0x10] sm:$0xff]   ;;  %v19021_v50 = vld [vmem:[#allocation23 + $0x60] sm:$0xff]  }
 0xe3f   : > { %14347 = vmatprep.subr.bf16.mxu0 %v16512_v29  ;;  %v19023_v21 = vld [vmem:[#allocation23 + $0x68] sm:$0xff]   ;;  %v19025_v23 = vld [vmem:[#allocation23 + $0x70] sm:$0xff]   ;;  %v19028_v18 = vld [vmem:[#allocation23 + $0x38] sm:$0xff]  }
 0xe40   : > { %14113 = vmatprep.mubr.bf16.mxu0 %v13921_v9  ;;  %v19024_v29 = vld [vmem:[#allocation23 + $0x28] sm:$0xff]   ;;  %v19026_v0 = vld [vmem:[#allocation23 + $0x30] sm:$0xff]  }
 0xe41   : > { %14114 = vmatmul.mubr.bf16.gmra.mrb[92].mxu0 %v13920_v59  ;;  %v20928_v59 = vld [vmem:[#allocation20 + $0x18] sm:$0xff] }
 0xe42   : > { %14348 = vmatpush1.bf16.msra.mxu0 %v16511_v30  ;;  %14367 = vmatprep.mubr.bf16.mxu0 %v20802_v46  ;;  %v20930_v9 = vld [vmem:[#allocation20 + $0x38] sm:$0xff] }
 0xe43   : > { %14349 = vmatprep.subr.bf16.mxu0 %v16514_v61  ;;  %v16556_v30 = vcombine.low %v20928_v59, %v20930_v9  ;;  %v16557_v61 = vcombine.high %v20928_v59, %v20930_v9 }
 0xe46   : > { %14350 = vmatpush1.bf16.msra.mxu0 %v16513_v28 }
 0xe47   : > { %14351 = vmatprep.subr.bf16.mxu0 %v16516_v32 }
 0xe4a   : > { %14352 = vmatpush1.bf16.msra.mxu0 %v16515_v63 }
 0xe4b   : > { %14353 = vmatprep.subr.bf16.mxu0 %v16518_v49 }
 0xe4e   : > { %14354 = vmatpush1.bf16.msra.mxu0 %v16517_v15 }
 0xe4f   : > { %14355 = vmatprep.subr.bf16.mxu0 %v16520_v3 }
 0xe52   : > { %14356 = vmatpush1.bf16.msra.mxu0 %v16519_v19 }
 0xe53   : > { %14357 = vmatprep.subr.bf16.mxu0 %v16522_v37 }
 0xe56   : > { %14358 = vmatpush1.bf16.msra.mxu0 %v16521_v4 }
 0xe57   : > { %14359 = vmatprep.subr.bf16.mxu0 %v16524_v22 }
 0xe5a   : > { %14360 = vmatpush1.bf16.msra.mxu0 %v16523_v42 }
 0xe5b   : > { %14361 = vmatprep.subr.bf16.mxu0 %v16526_v41 }
 0xe5e   : > { %14362 = vmatpush1.bf16.msra.mxu0 %v16525_v44 }
 0xe5f   : > { %14363 = vmatprep.subr.bf16.mxu0 %v16528_v35 }
 0xe62   : > { %14364 = vmatpush1.bf16.msra.mxu0 %v16527_v55 }
 0xe63   : > { %14365 = vmatprep.subr.bf16.mxu0 %v16530_v52 }
 0xe66   : > { %14366 = vmatpush1.bf16.msra.mxu0 %v16529_v24  ;;  %v14163_v24 = vld [vmem:[#allocation22] sm:$0x3] }
 0xe67   : > { %16700 = vmatprep.subr.bf16.mxu0 %v19013_v12  ;;  %v20953_v12 = vrot.slane %v14163_v24, %v20210_v47 }
 0xe69   : > { %14368 = vmatmul.mubr.bf16.vlgmr.msra.gmra.mrb[96].mxu0 %v20800_v39 }
 0xe6a   : > { %14377 = vmatprep.mubr.bf16.mxu0 %v20812_v53  ;;  %16701 = vmatpush3.bf16.msra.mxu0 %v19014_v1  ;;  %v20956_v1 = vrot.slane %v14163_v24, %v20212_v48 }
 0xe6b   : > { %16702 = vmatprep.subr.bf16.mxu0 %v19015_v51 }
 0xe6e   : > { %16703 = vmatpush3.bf16.msra.mxu0 %v19016_v10 }
 0xe6f   : > { %16704 = vmatprep.subr.bf16.mxu0 %v19017_v13 }
 0xe71   : > { %14378 = vmatmul.mubr.bf16.gmra.mrb[100].mxu0 %v20810_v54 }
 0xe72   : > { %14387 = vmatprep.mubr.bf16.mxu0 %v20822_v27  ;;  %16705 = vmatpush3.bf16.msra.mxu0 %v19018_v58 }
 0xe73   : > { %16706 = vmatprep.subr.bf16.mxu0 %v19019_v26 }
 0xe76   : > { %16707 = vmatpush3.bf16.msra.mxu0 %v19020_v16 }
 0xe77   : > { %16708 = vmatprep.subr.bf16.mxu0 %v19021_v50 }
 0xe79   : > { %14388 = vmatmul.mubr.bf16.gmra.mrb[104].mxu0 %v20820_v6 }
 0xe7a   : > { %14397 = vmatprep.mubr.bf16.mxu0 %v20832_v33  ;;  %16709 = vmatpush3.bf16.msra.mxu0 %v19022_v20 }
 0xe7b   : > { %16710 = vmatprep.subr.bf16.mxu0 %v19023_v21 }
 0xe7e   : > { %16711 = vmatpush3.bf16.msra.mxu0 %v19024_v29 }
 0xe7f   : > { %16712 = vmatprep.subr.bf16.mxu0 %v19025_v23 }
 0xe81   : > { %14398 = vmatmul.mubr.bf16.gmra.mrb[108].mxu0 %v20830_v62 }
 0xe82   : > { %16713 = vmatpush3.bf16.msra.mxu0 %v19026_v0  ;;  %v14643_v0 = vld [vmem:[#allocation20 + $0x58] sm:$0xff] }
 0xe83   : > { %16714 = vmatprep.subr.bf16.mxu0 %v19027_v25  ;;  %v14644_v25 = vld [vmem:[#allocation20 + $0x78] sm:$0xff] }
 0xe86   : > { %16715 = vmatpush3.bf16.msra.mxu0 %v19028_v18 }
 0xe87   : > { %14845 = vmatprep.subr.bf16.mxu0 %v16557_v61 }
 0xefc   : > { %v16676_v31 = vpop.f32.mrb[80].mxu0 }
 0xefd   : > { %v16677_v45 = vpop.f32.mrb[81].mxu0 }
 0xefe   : > { %v16678_v28 = vadd.f32 %v16677_v45, %v16676_v31  ;;  %v16679_v32 = vpop.f32.mrb[82].mxu0 }
 0xeff   : > { %v16680_v36 = vpop.f32.mrb[83].mxu0 }
 0xf00   : > { %v14092_v5 = vadd.f32 %v16678_v28, %v20875_v43  ;;  %v16681_v63 = vadd.f32 %v16680_v36, %v16679_v32  ;;  %v16559_v32 = vcombine.high %v14643_v0, %v14644_v25 }
 0xf02   : > { %16491 = vst [vmem:[%s20878_s14 + $0x40] sm:$0xff] %v14092_v5  ;;  %v14095_v49 = vadd.f32 %v16681_v63, %v20875_v43  ;;  %v14645_v63 = vld [vmem:[#allocation20 + $0x98] sm:$0xff] }
 0xf04   : > { %16492 = vst [vmem:[%s20878_s14 + $0x48] sm:$0xff] %v14095_v49  ;;  %v16682_v8 = vpop.f32.mrb[84].mxu0  ;;  %v14646_v49 = vld [vmem:[#allocation20 + $0xb8] sm:$0xff] }
 0xf05   : > { %v16683_v17 = vpop.f32.mrb[85].mxu0 }
 0xf06   : > { %v16684_v15 = vadd.f32 %v16683_v17, %v16682_v8  ;;  %v16685_v3 = vpop.f32.mrb[86].mxu0 }
 0xf07   : > { %v16686_v34 = vpop.f32.mrb[87].mxu0 }
 0xf08   : > { %v14100_v7 = vadd.f32 %v16684_v15, %v20875_v43  ;;  %v16687_v19 = vadd.f32 %v16686_v34, %v16685_v3  ;;  %v16558_v3 = vcombine.low %v14643_v0, %v14644_v25 }
 0xf0a   : > { %16493 = vst [vmem:[%s20878_s14 + $0x50] sm:$0xff] %v14100_v7  ;;  %v14103_v37 = vadd.f32 %v16687_v19, %v20875_v43  ;;  %v16561_v19 = vcombine.high %v14645_v63, %v14646_v49 }
 0xf0c   : > { %16494 = vst [vmem:[%s20878_s14 + $0x58] sm:$0xff] %v14103_v37  ;;  %v16688_v11 = vpop.f32.mrb[88].mxu0 }
 0xf0d   : > { %v16689_v40 = vpop.f32.mrb[89].mxu0 }
 0xf0e   : > { %v16690_v4 = vadd.f32 %v16689_v40, %v16688_v11  ;;  %v16691_v22 = vpop.f32.mrb[90].mxu0  ;;  %v14647_v40 = vld [vmem:[#allocation20 + $0xd8] sm:$0xff] }
 0xf0f   : > { %v16692_v60 = vpop.f32.mrb[91].mxu0 }
 0xf10   : > { %v14108_v14 = vadd.f32 %v16690_v4, %v20875_v43  ;;  %v16693_v42 = vadd.f32 %v16692_v60, %v16691_v22  ;;  %v14648_v4 = vld [vmem:[#allocation20 + $0xf8] sm:$0xff] }
 0xf11   : > { %v16563_v59 = vcombine.high %v14647_v40, %v14648_v4 }
 0xf12   : > { %16495 = vst [vmem:[%s20878_s14 + $0x60] sm:$0xff] %v14108_v14  ;;  %v14111_v41 = vadd.f32 %v16693_v42, %v20875_v43  ;;  %v16560_v42 = vcombine.low %v14645_v63, %v14646_v49 }
 0xf14   : > { %16496 = vst [vmem:[%s20878_s14 + $0x68] sm:$0xff] %v14111_v41  ;;  %v16694_v2 = vpop.f32.mrb[92].mxu0 }
 0xf15   : > { %v16695_v57 = vpop.f32.mrb[93].mxu0 }
 0xf16   : > { %v16696_v44 = vadd.f32 %v16695_v57, %v16694_v2  ;;  %v16697_v35 = vpop.f32.mrb[94].mxu0  ;;  %v14649_v57 = vld [vmem:[#allocation20 + $0x118] sm:$0xff] }
 0xf17   : > { %v16698_v38 = vpop.f32.mrb[95].mxu0 }
 0xf18   : > { %v14116_v56 = vadd.f32 %v16696_v44, %v20875_v43  ;;  %v16699_v55 = vadd.f32 %v16698_v38, %v16697_v35  ;;  %v14650_v44 = vld [vmem:[#allocation20 + $0x138] sm:$0xff] }
 0xf1a   : > { %16497 = vst [vmem:[%s20878_s14 + $0x70] sm:$0xff] %v14116_v56  ;;  %v14119_v52 = vadd.f32 %v16699_v55, %v20875_v43  ;;  %v16562_v55 = vcombine.low %v14647_v40, %v14648_v4  ;;  %v14659_v40 = vld [vmem:[#allocation20 + $0x258] sm:$0xff] }
 0xf1b   : > { %v14660_v4 = vld [vmem:[#allocation20 + $0x278] sm:$0xff] }
 0xf1c   : > { %16498 = vst [vmem:[%s20878_s14 + $0x78] sm:$0xff] %v14119_v52 }
 0xf3c   : > { %v14369_v51 = vpop.f32.mrb[96].mxu0 }
 0xf3d   : > { %v14370_v10 = vadd.f32 %v14369_v51, %v20953_v12  ;;  %v14371_v13 = vpop.f32.mrb[97].mxu0  ;;  %v16565_v51 = vcombine.high %v14649_v57, %v14650_v44 }
 0xf3e   : > { %v14372_v58 = vadd.f32 %v14371_v13, %v20956_v1  ;;  %v14373_v26 = vpop.f32.mrb[98].mxu0 }
 0xf3f   : > { %v14374_v16 = vadd.f32 %v14373_v26, %v20953_v12  ;;  %v14375_v50 = vpop.f32.mrb[99].mxu0  ;;  %v14408_v20 = vmax.f32 %v14370_v10, 0.0  ;;  %v14652_v26 = vld [vmem:[#allocation20 + $0x178] sm:$0xff] }
 0xf40   : > { %v14376_v43 = vadd.f32 %v14375_v50, %v20956_v1  ;;  %v14409_v29 = vmax.f32 %v14372_v58, 0.0  ;;  %v14651_v58 = vld [vmem:[#allocation20 + $0x158] sm:$0xff] }
 0xf41   : > { %v14410_v21 = vmax.f32 %v14374_v16, 0.0 }
 0xf42   : > { %v14411_v23 = vmax.f32 %v14376_v43, 0.0 }
 0xf43   : > { %v14424_v18 = vpack.c.bf16 %v14410_v21, %v14408_v20  ;;  %v16564_v20 = vcombine.low %v14649_v57, %v14650_v44  ;;  %v14665_v57 = vld [vmem:[#allocation20 + $0x318] sm:$0xff] }
 0xf44   : > { %v14425_v61 = vpack.c.bf16 %v14411_v23, %v14409_v29  ;;  %v14379_v31 = vpop.f32.mrb[100].mxu0  ;;  %v16567_v23 = vcombine.high %v14651_v58, %v14652_v26  ;;  %v14666_v44 = vld [vmem:[#allocation20 + $0x338] sm:$0xff] }
 0xf45   : > { %v14380_v45 = vadd.f32 %v14379_v31, %v20953_v12  ;;  %v14381_v28 = vpop.f32.mrb[101].mxu0 }
 0xf46   : > { %v14382_v36 = vadd.f32 %v14381_v28, %v20956_v1  ;;  %v14383_v5 = vpop.f32.mrb[102].mxu0  ;;  %14599 = vmatprep.mubr.bf16.mxu0 %v14425_v61  ;;  %v14654_v61 = vld [vmem:[#allocation20 + $0x1b8] sm:$0xff] }
 0xf47   : > { %v14384_v8 = vadd.f32 %v14383_v5, %v20953_v12  ;;  %v14385_v17 = vpop.f32.mrb[103].mxu0  ;;  %14600 = vmatmul.mubr.bf16.vlgmr.msra.gmra.mrb[112].mxu0 %v14424_v18  ;;  %v14412_v34 = vmax.f32 %v14380_v45, 0.0  ;;  %v14653_v18 = vld [vmem:[#allocation20 + $0x198] sm:$0xff] }
 0xf48   : > { %v14386_v15 = vadd.f32 %v14385_v17, %v20956_v1  ;;  %14846 = vmatpush1.bf16.msra.mxu0 %v16556_v30  ;;  %v14413_v37 = vmax.f32 %v14382_v36, 0.0  ;;  %v16569_v63 = vcombine.high %v14653_v18, %v14654_v61  ;;  %v14655_v17 = vld [vmem:[#allocation20 + $0x1d8] sm:$0xff] }
 0xf49   : > { %v14414_v7 = vmax.f32 %v14384_v8, 0.0  ;;  %14847 = vmatprep.subr.bf16.mxu0 %v16559_v32  ;;  %v16566_v32 = vcombine.low %v14651_v58, %v14652_v26  ;;  %v14671_v26 = vld [vmem:[#allocation20 + $0x3d8] sm:$0xff] }
 0xf4a   : > { %v14415_v11 = vmax.f32 %v14386_v15, 0.0  ;;  %v14656_v15 = vld [vmem:[#allocation20 + $0x1f8] sm:$0xff] }
 0xf4b   : > { %v14426_v22 = vpack.c.bf16 %v14414_v7, %v14412_v34  ;;  %v16568_v7 = vcombine.low %v14653_v18, %v14654_v61  ;;  %v19041_v18 = vld [vmem:[#allocation23 + $0x70] sm:$0xff]  }
 0xf4c   : > { %v14427_v60 = vpack.c.bf16 %v14415_v11, %v14413_v37  ;;  %14848 = vmatpush1.bf16.msra.mxu0 %v16558_v3  ;;  %v14389_v14 = vpop.f32.mrb[104].mxu0  ;;  %v14658_v37 = vld [vmem:[#allocation20 + $0x238] sm:$0xff] }
 0xf4d   : > { %v14390_v41 = vadd.f32 %v14389_v14, %v20953_v12  ;;  %v14391_v2 = vpop.f32.mrb[105].mxu0  ;;  %14849 = vmatprep.subr.bf16.mxu0 %v16561_v19  ;;  %v14657_v19 = vld [vmem:[#allocation20 + $0x218] sm:$0xff] }
 0xf4e   : > { %v14392_v9 = vadd.f32 %v14391_v2, %v20956_v1  ;;  %v14393_v30 = vpop.f32.mrb[106].mxu0  ;;  %14607 = vmatprep.mubr.bf16.mxu0 %v14427_v60  ;;  %v16573_v11 = vcombine.high %v14657_v19, %v14658_v37  ;;  %v16575_v60 = vcombine.high %v14659_v40, %v14660_v4  ;;  %v14661_v14 = vld [vmem:[#allocation20 + $0x298] sm:$0xff] }
 0xf4f   : > { %v14394_v35 = vadd.f32 %v14393_v30, %v20953_v12  ;;  %v14395_v38 = vpop.f32.mrb[107].mxu0  ;;  %14608 = vmatmul.mubr.bf16.gmra.mrb[116].mxu0 %v14426_v22  ;;  %v14416_v52 = vmax.f32 %v14390_v41, 0.0  ;;  %v16572_v22 = vcombine.low %v14657_v19, %v14658_v37  ;;  %v16574_v41 = vcombine.low %v14659_v40, %v14660_v4  ;;  %v19042_v61 = vld [vmem:[#allocation23 + $0x30] sm:$0xff]  }
 0xf50   : > { %v14396_v56 = vadd.f32 %v14395_v38, %v20956_v1  ;;  %14850 = vmatpush1.bf16.msra.mxu0 %v16560_v42  ;;  %v14417_v10 = vmax.f32 %v14392_v9, 0.0  ;;  %v14662_v42 = vld [vmem:[#allocation20 + $0x2b8] sm:$0xff]  ;;  %v16581_v38 = vcombine.high %v14665_v57, %v14666_v44 }
 0xf51   : > { %v14418_v24 = vmax.f32 %v14394_v35, 0.0  ;;  %14851 = vmatprep.subr.bf16.mxu0 %v16563_v59  ;;  %v16577_v2 = vcombine.high %v14661_v14, %v14662_v42  ;;  %v14663_v59 = vld [vmem:[#allocation20 + $0x2d8] sm:$0xff]  ;;  %v16576_v30 = vcombine.low %v14661_v14, %v14662_v42 }
 0xf52   : > { %v14419_v13 = vmax.f32 %v14396_v56, 0.0  ;;  %v14664_v9 = vld [vmem:[#allocation20 + $0x2f8] sm:$0xff] }
 0xf53   : > { %v14428_v16 = vpack.c.bf16 %v14418_v24, %v14416_v52  ;;  %v16578_v35 = vcombine.low %v14663_v59, %v14664_v9  ;;  %v14667_v56 = vld [vmem:[#allocation20 + $0x358] sm:$0xff]  ;;  %v16580_v52 = vcombine.low %v14665_v57, %v14666_v44 }
 0xf54   : > { %v14429_v50 = vpack.c.bf16 %v14419_v13, %v14417_v10  ;;  %14852 = vmatpush1.bf16.msra.mxu0 %v16562_v55  ;;  %v14399_v43 = vpop.f32.mrb[108].mxu0  ;;  %v14668_v55 = vld [vmem:[#allocation20 + $0x378] sm:$0xff] }
 0xf55   : > { %v14400_v21 = vadd.f32 %v14399_v43, %v20953_v12  ;;  %v14401_v29 = vpop.f32.mrb[109].mxu0  ;;  %14853 = vmatprep.subr.bf16.mxu0 %v16565_v51  ;;  %v16583_v24 = vcombine.high %v14667_v56, %v14668_v55  ;;  %v14669_v51 = vld [vmem:[#allocation20 + $0x398] sm:$0xff]  ;;  %v16582_v13 = vcombine.low %v14667_v56, %v14668_v55  ;;  %v14673_v56 = vld [vmem:[#allocation22] sm:$0x3] }
 0xf56   : > { %v14402_v0 = vadd.f32 %v14401_v29, %v20956_v1  ;;  %v14403_v25 = vpop.f32.mrb[110].mxu0  ;;  %14615 = vmatprep.mubr.bf16.mxu0 %v14429_v50  ;;  %v14670_v10 = vld [vmem:[#allocation20 + $0x3b8] sm:$0xff]  ;;  %v19030_v29 = vld [vmem:[#allocation23] sm:$0xff]   ;;  %v14678_v55 = vrot.slane %v14673_v56, %v20210_v47 }
 0xf57   : > { %v14404_v31 = vadd.f32 %v14403_v25, %v20953_v12  ;;  %v14405_v45 = vpop.f32.mrb[111].mxu0  ;;  %14616 = vmatmul.mubr.bf16.gmra.mrb[120].mxu0 %v14428_v16  ;;  %v14420_v36 = vmax.f32 %v14400_v21, 0.0  ;;  %v16571_v12 = vcombine.high %v14655_v17, %v14656_v15  ;;  %v16585_v58 = vcombine.high %v14669_v51, %v14670_v10  ;;  %v14672_v16 = vld [vmem:[#allocation20 + $0x3f8] sm:$0xff]  ;;  %v19029_v21 = vld [vmem:[#allocation23 + $0x40] sm:$0xff]   ;;  %v19040_v25 = vld [vmem:[#allocation23 + $0x28] sm:$0xff]  }
 0xf58   : > { %v14406_v28 = vadd.f32 %v14405_v45, %v20956_v1  ;;  %14854 = vmatpush1.bf16.msra.mxu0 %v16564_v20  ;;  %v14421_v49 = vmax.f32 %v14402_v0, 0.0  ;;  %v16570_v1 = vcombine.low %v14655_v17, %v14656_v15  ;;  %v16584_v50 = vcombine.low %v14669_v51, %v14670_v10  ;;  %16740 = vmatprep.subr.bf16.mxu1 %v19029_v21  ;;  %v19032_v0 = vld [vmem:[#allocation23 + $0x8] sm:$0xff]   ;;  %v19044_v45 = vld [vmem:[#allocation23 + $0x38] sm:$0xff]  }
 0xf59   : > { %v14422_v5 = vmax.f32 %v14404_v31, 0.0  ;;  %14855 = vmatprep.subr.bf16.mxu0 %v16567_v23  ;;  %v16587_v43 = vcombine.high %v14671_v26, %v14672_v16  ;;  %v16586_v20 = vcombine.low %v14671_v26, %v14672_v16  ;;  %v19031_v23 = vld [vmem:[#allocation23 + $0x48] sm:$0xff]   ;;  %16741 = vmatpush3.bf16.msra.mxu1 %v19030_v29  ;;  %v19043_v31 = vld [vmem:[#allocation23 + $0x78] sm:$0xff]  }
 0xf5a   : > { %v14423_v8 = vmax.f32 %v14406_v28, 0.0  ;;  %16742 = vmatprep.subr.bf16.mxu1 %v19031_v23 }
 0xf5b   : > { %v14430_v3 = vpack.c.bf16 %v14422_v5, %v14420_v36 }
 0xf5c   : > { %v14431_v34 = vpack.c.bf16 %v14423_v8, %v14421_v49  ;;  %14856 = vmatpush1.bf16.msra.mxu0 %v16566_v32  ;;  %v20985_v32 = vld [vmem:[#allocation25] ss:$0 sm:$0xff] }
 0xf5d   : > { %14857 = vmatprep.subr.bf16.mxu0 %v16569_v63  ;;  %16743 = vmatpush3.bf16.msra.mxu1 %v19032_v0 }
 0xf5e   : > { %14623 = vmatprep.mubr.bf16.mxu0 %v14431_v34 }
 0xf5f   : > { %14624 = vmatmul.mubr.bf16.gmra.mrb[124].mxu0 %v14430_v3 }
 0xf60   : > { %14858 = vmatpush1.bf16.msra.mxu0 %v16568_v7  ;;  %14877 = vmatprep.mubr.bf16.mxu0 %v20802_v46  ;;  %v16579_v46 = vcombine.high %v14663_v59, %v14664_v9 }
 0xf61   : > { %14859 = vmatprep.subr.bf16.mxu0 %v16571_v12 }
 0xf64   : > { %14860 = vmatpush1.bf16.msra.mxu0 %v16570_v1 }
 0xf65   : > { %14861 = vmatprep.subr.bf16.mxu0 %v16573_v11 }
 0xf68   : > { %14862 = vmatpush1.bf16.msra.mxu0 %v16572_v22 }
 0xf69   : > { %14863 = vmatprep.subr.bf16.mxu0 %v16575_v60 }
 0xf6c   : > { %14864 = vmatpush1.bf16.msra.mxu0 %v16574_v41 }
 0xf6d   : > { %14865 = vmatprep.subr.bf16.mxu0 %v16577_v2 }
 0xf70   : > { %14866 = vmatpush1.bf16.msra.mxu0 %v16576_v30 }
 0xf71   : > { %14867 = vmatprep.subr.bf16.mxu0 %v16579_v46 }
 0xf74   : > { %14868 = vmatpush1.bf16.msra.mxu0 %v16578_v35 }
 0xf75   : > { %14869 = vmatprep.subr.bf16.mxu0 %v16581_v38 }
 0xf78   : > { %14870 = vmatpush1.bf16.msra.mxu0 %v16580_v52  ;;  %v14682_v52 = vrot.slane %v14673_v56, %v20212_v48 }
 0xf79   : > { %14871 = vmatprep.subr.bf16.mxu0 %v16583_v24 }
 0xf7c   : > { %14872 = vmatpush1.bf16.msra.mxu0 %v16582_v13 }
 0xf7d   : > { %14873 = vmatprep.subr.bf16.mxu0 %v16585_v58 }
 0xf80   : > { %14874 = vmatpush1.bf16.msra.mxu0 %v16584_v50 }
 0xf81   : > { %14875 = vmatprep.subr.bf16.mxu0 %v16587_v43 }
 0xf84   : > { %14876 = vmatpush1.bf16.msra.mxu0 %v16586_v20 }
 0xf87   : > { %14878 = vmatmul.mubr.bf16.vlgmr.msra.gmra.mrb[128].mxu0 %v20800_v39  ;;  %v19033_v39 = vld [vmem:[#allocation23 + $0x50] sm:$0xff]  }
 0xf88   : > { %14887 = vmatprep.mubr.bf16.mxu0 %v20812_v53  ;;  %v19034_v53 = vld [vmem:[#allocation23 + $0x10] sm:$0xff]   ;;  %16744 = vmatprep.subr.bf16.mxu1 %v19033_v39 }
 0xf89   : > { %16745 = vmatpush3.bf16.msra.mxu1 %v19034_v53 }
 0xf8f   : > { %14888 = vmatmul.mubr.bf16.gmra.mrb[132].mxu0 %v20810_v54  ;;  %v19035_v54 = vld [vmem:[#allocation23 + $0x58] sm:$0xff]  }
 0xf90   : > { %14897 = vmatprep.mubr.bf16.mxu0 %v20822_v27  ;;  %v19036_v27 = vld [vmem:[#allocation23 + $0x18] sm:$0xff]   ;;  %16746 = vmatprep.subr.bf16.mxu1 %v19035_v54 }
 0xf91   : > { %16747 = vmatpush3.bf16.msra.mxu1 %v19036_v27 }
 0xf97   : > { %14898 = vmatmul.mubr.bf16.gmra.mrb[136].mxu0 %v20820_v6  ;;  %v19037_v6 = vld [vmem:[#allocation23 + $0x60] sm:$0xff]  }
 0xf98   : > { %14907 = vmatprep.mubr.bf16.mxu0 %v20832_v33  ;;  %v19038_v33 = vld [vmem:[#allocation23 + $0x20] sm:$0xff]   ;;  %16748 = vmatprep.subr.bf16.mxu1 %v19037_v6 }
 0xf99   : > { %16749 = vmatpush3.bf16.msra.mxu1 %v19038_v33 }
 0xf9f   : > { %14908 = vmatmul.mubr.bf16.gmra.mrb[140].mxu0 %v20830_v62  ;;  %v19039_v62 = vld [vmem:[#allocation23 + $0x68] sm:$0xff]  }
 0xfa0   : > { %16750 = vmatprep.subr.bf16.mxu1 %v19039_v62 }
 0xfa1   : > { %16751 = vmatpush3.bf16.msra.mxu1 %v19040_v25 }
 0xfa2   : > { %16752 = vmatprep.subr.bf16.mxu1 %v19041_v18 }
 0xfa5   : > { %16753 = vmatpush3.bf16.msra.mxu1 %v19042_v61 }
 0xfa6   : > { %16754 = vmatprep.subr.bf16.mxu1 %v19043_v31 }
 0xfa9   : > { %16755 = vmatpush3.bf16.msra.mxu1 %v19044_v45 }
0x101a   : > { %v16716_v28 = vpop.f32.mrb[112].mxu0 }
0x101b   : > { %v16717_v36 = vpop.f32.mrb[113].mxu0 }
0x101c   : > { %v16718_v5 = vadd.f32 %v16717_v36, %v16716_v28  ;;  %v16719_v63 = vpop.f32.mrb[114].mxu0 }
0x101d   : > { %v16720_v49 = vpop.f32.mrb[115].mxu0 }
0x101e   : > { %v14602_v8 = vadd.f32 %v16718_v5, %v20985_v32  ;;  %v16721_v17 = vadd.f32 %v16720_v49, %v16719_v63 }
0x1020   : > { %16548 = vst [vmem:[%s20878_s14 + $0x80] sm:$0xff] %v14602_v8  ;;  %v14605_v15 = vadd.f32 %v16721_v17, %v20985_v32 }
0x1022   : > { %16549 = vst [vmem:[%s20878_s14 + $0x88] sm:$0xff] %v14605_v15  ;;  %v16722_v3 = vpop.f32.mrb[116].mxu0 }
0x1023   : > { %v16723_v34 = vpop.f32.mrb[117].mxu0 }
0x1024   : > { %v16724_v7 = vadd.f32 %v16723_v34, %v16722_v3  ;;  %v16725_v12 = vpop.f32.mrb[118].mxu0 }
0x1025   : > { %v16726_v19 = vpop.f32.mrb[119].mxu0 }
0x1026   : > { %v14610_v37 = vadd.f32 %v16724_v7, %v20985_v32  ;;  %v16727_v1 = vadd.f32 %v16726_v19, %v16725_v12 }
0x1028   : > { %16550 = vst [vmem:[%s20878_s14 + $0x90] sm:$0xff] %v14610_v37  ;;  %v14613_v11 = vadd.f32 %v16727_v1, %v20985_v32 }
0x102a   : > { %16551 = vst [vmem:[%s20878_s14 + $0x98] sm:$0xff] %v14613_v11  ;;  %v16728_v40 = vpop.f32.mrb[120].mxu0 }
0x102b   : > { %v16729_v4 = vpop.f32.mrb[121].mxu0 }
0x102c   : > { %v16730_v22 = vadd.f32 %v16729_v4, %v16728_v40  ;;  %v16731_v60 = vpop.f32.mrb[122].mxu0 }
0x102d   : > { %v16732_v14 = vpop.f32.mrb[123].mxu0 }
0x102e   : > { %v14618_v42 = vadd.f32 %v16730_v22, %v20985_v32  ;;  %v16733_v41 = vadd.f32 %v16732_v14, %v16731_v60 }
0x1030   : > { %16552 = vst [vmem:[%s20878_s14 + $0xa0] sm:$0xff] %v14618_v42  ;;  %v14621_v2 = vadd.f32 %v16733_v41, %v20985_v32 }
0x1032   : > { %16553 = vst [vmem:[%s20878_s14 + $0xa8] sm:$0xff] %v14621_v2  ;;  %v16734_v59 = vpop.f32.mrb[124].mxu0 }
0x1033   : > { %v16735_v9 = vpop.f32.mrb[125].mxu0 }
0x1034   : > { %v16736_v30 = vadd.f32 %v16735_v9, %v16734_v59  ;;  %v16737_v46 = vpop.f32.mrb[126].mxu0 }
0x1035   : > { %v16738_v57 = vpop.f32.mrb[127].mxu0 }
0x1036   : > { %v14626_v44 = vadd.f32 %v16736_v30, %v20985_v32  ;;  %v16739_v35 = vadd.f32 %v16738_v57, %v16737_v46 }
0x1038   : > { %16554 = vst [vmem:[%s20878_s14 + $0xb0] sm:$0xff] %v14626_v44  ;;  %v14629_v38 = vadd.f32 %v16739_v35, %v20985_v32 }
0x103a   : > { %16555 = vst [vmem:[%s20878_s14 + $0xb8] sm:$0xff] %v14629_v38 }
0x105a   : > { %v14879_v24 = vpop.f32.mrb[128].mxu0 }
0x105b   : > { %v14880_v51 = vadd.f32 %v14879_v24, %v14678_v55  ;;  %v14881_v10 = vpop.f32.mrb[129].mxu0 }
0x105c   : > { %v14882_v13 = vadd.f32 %v14881_v10, %v14682_v52  ;;  %v14883_v58 = vpop.f32.mrb[130].mxu0 }
0x105d   : > { %v14884_v26 = vadd.f32 %v14883_v58, %v14678_v55  ;;  %v14885_v16 = vpop.f32.mrb[131].mxu0  ;;  %v14918_v43 = vmax.f32 %v14880_v51, 0.0 }
0x105e   : > { %v14886_v50 = vadd.f32 %v14885_v16, %v14682_v52  ;;  %v14919_v21 = vmax.f32 %v14882_v13, 0.0 }
0x105f   : > { %v14920_v20 = vmax.f32 %v14884_v26, 0.0 }
0x1060   : > { %v14921_v29 = vmax.f32 %v14886_v50, 0.0 }
0x1061   : > { %v14934_v23 = vpack.c.bf16 %v14920_v20, %v14918_v43 }
0x1062   : > { %v14935_v0 = vpack.c.bf16 %v14921_v29, %v14919_v21  ;;  %v14889_v39 = vpop.f32.mrb[132].mxu0 }
0x1063   : > { %v14890_v53 = vadd.f32 %v14889_v39, %v14678_v55  ;;  %v14891_v54 = vpop.f32.mrb[133].mxu0 }
0x1064   : > { %v14892_v47 = vadd.f32 %v14891_v54, %v14682_v52  ;;  %v14893_v27 = vpop.f32.mrb[134].mxu0  ;;  %15109 = vmatprep.mubr.bf16.mxu1 %v14935_v0 }
0x1065   : > { %v14894_v48 = vadd.f32 %v14893_v27, %v14678_v55  ;;  %v14895_v6 = vpop.f32.mrb[135].mxu0  ;;  %15110 = vmatmul.mubr.bf16.vlgmr.msra.gmra.mrb[32].mxu1 %v14934_v23  ;;  %v14922_v62 = vmax.f32 %v14890_v53, 0.0 }
0x1066   : > { %v14896_v33 = vadd.f32 %v14895_v6, %v14682_v52  ;;  %v14923_v18 = vmax.f32 %v14892_v47, 0.0 }
0x1067   : > { %v14924_v25 = vmax.f32 %v14894_v48, 0.0 }
0x1068   : > { %v14925_v61 = vmax.f32 %v14896_v33, 0.0 }
0x1069   : > { %v14936_v31 = vpack.c.bf16 %v14924_v25, %v14922_v62 }
0x106a   : > { %v14937_v45 = vpack.c.bf16 %v14925_v61, %v14923_v18  ;;  %v14899_v28 = vpop.f32.mrb[136].mxu0 }
0x106b   : > { %v14900_v36 = vadd.f32 %v14899_v28, %v14678_v55  ;;  %v14901_v5 = vpop.f32.mrb[137].mxu0 }
0x106c   : > { %v14902_v63 = vadd.f32 %v14901_v5, %v14682_v52  ;;  %v14903_v49 = vpop.f32.mrb[138].mxu0  ;;  %15117 = vmatprep.mubr.bf16.mxu1 %v14937_v45 }
0x106d   : > { %v14904_v8 = vadd.f32 %v14903_v49, %v14678_v55  ;;  %v14905_v17 = vpop.f32.mrb[139].mxu0  ;;  %15118 = vmatmul.mubr.bf16.gmra.mrb[36].mxu1 %v14936_v31  ;;  %v14926_v3 = vmax.f32 %v14900_v36, 0.0 }
0x106e   : > { %v14906_v15 = vadd.f32 %v14905_v17, %v14682_v52  ;;  %v14927_v7 = vmax.f32 %v14902_v63, 0.0 }
0x106f   : > { %v14928_v34 = vmax.f32 %v14904_v8, 0.0 }
0x1070   : > { %v14929_v12 = vmax.f32 %v14906_v15, 0.0 }
0x1071   : > { %v14938_v19 = vpack.c.bf16 %v14928_v34, %v14926_v3 }
0x1072   : > { %v14939_v37 = vpack.c.bf16 %v14929_v12, %v14927_v7  ;;  %v14909_v1 = vpop.f32.mrb[140].mxu0 }
0x1073   : > { %v14910_v11 = vadd.f32 %v14909_v1, %v14678_v55  ;;  %v14911_v40 = vpop.f32.mrb[141].mxu0 }
0x1074   : > { %v14912_v4 = vadd.f32 %v14911_v40, %v14682_v52  ;;  %v14913_v22 = vpop.f32.mrb[142].mxu0  ;;  %15125 = vmatprep.mubr.bf16.mxu1 %v14939_v37 }
0x1075   : > { %v14914_v60 = vadd.f32 %v14913_v22, %v14678_v55  ;;  %v14915_v14 = vpop.f32.mrb[143].mxu0  ;;  %15126 = vmatmul.mubr.bf16.gmra.mrb[40].mxu1 %v14938_v19  ;;  %v14930_v41 = vmax.f32 %v14910_v11, 0.0 }
0x1076   : > { %v14916_v42 = vadd.f32 %v14915_v14, %v14682_v52  ;;  %v14931_v59 = vmax.f32 %v14912_v4, 0.0 }
0x1077   : > { %v14932_v2 = vmax.f32 %v14914_v60, 0.0 }
0x1078   : > { %v14933_v9 = vmax.f32 %v14916_v42, 0.0 }
0x1079   : > { %v14940_v30 = vpack.c.bf16 %v14932_v2, %v14930_v41 }
0x107a   : > { %v14941_v46 = vpack.c.bf16 %v14933_v9, %v14931_v59 }
0x107c   : > { %15133 = vmatprep.mubr.bf16.mxu1 %v14941_v46 }
0x107d   : > { %15134 = vmatmul.mubr.bf16.gmra.mrb[44].mxu1 %v14940_v30 }
0x1138   : > { %v16756_v57 = vpop.f32.mrb[32].mxu1 }
0x1139   : > { %v16757_v44 = vpop.f32.mrb[33].mxu1 }
0x113a   : > { %v16758_v35 = vadd.f32 %v16757_v44, %v16756_v57  ;;  %v16759_v38 = vpop.f32.mrb[34].mxu1 }
0x113b   : > { %v16760_v56 = vpop.f32.mrb[35].mxu1 }
0x113c   : > { %v15112_v55 = vadd.f32 %v16758_v35, %v20985_v32  ;;  %v16761_v52 = vadd.f32 %v16760_v56, %v16759_v38 }
0x113e   : > { %16605 = vst [vmem:[%s20878_s14 + $0xc0] sm:$0xff] %v15112_v55  ;;  %v15115_v24 = vadd.f32 %v16761_v52, %v20985_v32 }
0x1140   : > { %16606 = vst [vmem:[%s20878_s14 + $0xc8] sm:$0xff] %v15115_v24  ;;  %v16762_v51 = vpop.f32.mrb[36].mxu1 }
0x1141   : > { %v16763_v10 = vpop.f32.mrb[37].mxu1 }
0x1142   : > { %v16764_v13 = vadd.f32 %v16763_v10, %v16762_v51  ;;  %v16765_v58 = vpop.f32.mrb[38].mxu1 }
0x1143   : > { %v16766_v26 = vpop.f32.mrb[39].mxu1 }
0x1144   : > { %v15120_v16 = vadd.f32 %v16764_v13, %v20985_v32  ;;  %v16767_v50 = vadd.f32 %v16766_v26, %v16765_v58 }
0x1146   : > { %16607 = vst [vmem:[%s20878_s14 + $0xd0] sm:$0xff] %v15120_v16  ;;  %v15123_v43 = vadd.f32 %v16767_v50, %v20985_v32 }
0x1148   : > { %16608 = vst [vmem:[%s20878_s14 + $0xd8] sm:$0xff] %v15123_v43  ;;  %v16768_v20 = vpop.f32.mrb[40].mxu1 }
0x1149   : > { %v16769_v21 = vpop.f32.mrb[41].mxu1 }
0x114a   : > { %v16770_v29 = vadd.f32 %v16769_v21, %v16768_v20  ;;  %v16771_v23 = vpop.f32.mrb[42].mxu1 }
0x114b   : > { %v16772_v0 = vpop.f32.mrb[43].mxu1 }
0x114c   : > { %v15128_v39 = vadd.f32 %v16770_v29, %v20985_v32  ;;  %v16773_v53 = vadd.f32 %v16772_v0, %v16771_v23 }
0x114e   : > { %16609 = vst [vmem:[%s20878_s14 + $0xe0] sm:$0xff] %v15128_v39  ;;  %v15131_v54 = vadd.f32 %v16773_v53, %v20985_v32 }
0x1150   : > { %16610 = vst [vmem:[%s20878_s14 + $0xe8] sm:$0xff] %v15131_v54  ;;  %v16774_v47 = vpop.f32.mrb[44].mxu1 }
0x1151   : > { %v16775_v27 = vpop.f32.mrb[45].mxu1 }
0x1152   : > { %v16776_v48 = vadd.f32 %v16775_v27, %v16774_v47  ;;  %v16777_v6 = vpop.f32.mrb[46].mxu1 }
0x1153   : > { %v16778_v33 = vpop.f32.mrb[47].mxu1 }
0x1154   : > { %v15136_v62 = vadd.f32 %v16776_v48, %v20985_v32  ;;  %v16779_v25 = vadd.f32 %v16778_v33, %v16777_v6 }
0x1156   : > { %16611 = vst [vmem:[%s20878_s14 + $0xf0] sm:$0xff] %v15136_v62  ;;  %v15139_v18 = vadd.f32 %v16779_v25, %v20985_v32 }
0x1158   : > { %16612 = vst [vmem:[%s20878_s14 + $0xf8] sm:$0xff] %v15139_v18 }
0x1159   : > { %19430 = shalt.err (!%p19427_p7)
}
0x115a   : > { %s19431_s14 = scalar_lea.hbm %s21023_s19, 4096  ;;  %s19435_s15 = scalar_lea.hbm %s21135_s23, 8192 }
0x115b   : > { %p19432_p6 = scmp.ne.s32.totalorder %s21023_s19, %s19431_s14  ;;  %p19436_p1 = scmp.lt.u32.totalorder %s21023_s19, %s21135_s23 }
0x115c   : > { %p19437_p13 = scmp.lt.u32.totalorder %s19435_s15, %s19431_s14  ;;  %p19439_p2 = scmp.lt.u32.totalorder %s19431_s14, %s21023_s19 }
0x115d   : > { %p19433_p9 = pnand %p19432_p6, %p21136_p8 }
0x115e   : > { %p19438_p0 = por %p19437_p13, %p19436_p1 }
0x115f   : > { %p19434_p12 = pneg %p19433_p9 }
0x1160   : > { %p19440_p4 = por %p19439_p2, %p19438_p0 }
0x1162   : > { %p19441_p10 = pnand %p19440_p4, %p19434_p12 }
0x1164   : > { %19444 = shalt.err (!%p19441_p10)
}
0x1165   : > { %s19531_s20 = smov 128   ;;  %s19532_s25 = smov 8  }
0x1166   : > { %s21137_s2 = scalar_lea.sflag [#allocation7], %s20003_s22 }
0x1167   : > { %17342 = dma.vmem_to_hbm [thread:$0]  (%p21136_p8), %s21025_s18, 4096, %s21023_s19, %s21137_s2, %s19531_s20, %s19531_s20, %s19532_s25  }
0x1168 PF: > { %s21138_s0 = sld [smem:[#allocation35_spill]]  ;;  %p21139_p11 = scmp.ne.s32.totalorder %s21115_s17, 0 }
0x1169   : > { %p21140_p3 = scmp.ge.s32.totalorder %s19507_s28, 2 }
0x116b   : > { %p17386_p5 = pnand %p21140_p3, %p21139_p11 }
0x116e   : > { %s15180_s30 = sand.u32 1, %s21138_s0  }
0x116f   : > { %s15181_s14 = scalar_lea.sflag [#allocation7], %s15180_s30 }
0x1170   : > { %19490 = dma.done.wait (!%p17386_p5), %s15181_s14, 4096  }
0x1171   : > { %19492 = vsyncadd (!%p17386_p5), %s15181_s14, 4294963200  ;;  %p32_p7 = scmp.ge.s32.totalorder %s19921_s29, 4   ;;  %s21141_s25 = smov %s19499_s26 }
0x1172   : > { %s21142_s26 = smov %s19503_s27  ;;  %s21143_s27 = smov %s19932_s1 }
0x1173   : > { %s21144_s28 = smov %s19921_s29  ;;  %34 = sbr.rel (!%p32_p7) target bundleno = 16 (0x10), region = 172 }
0x117a   :  { %15186 = vsyncpa [#allocation6], 1 }
0x117b   :  { %15188 = vsyncpa [#allocation6 + $0x1], 1 }
0x117c   :  { %15189 = vsyncpa [#allocation9], 1 }
0x117d   :  { %15190 = vsyncpa [#allocation12], 1 }
0x117e   :  { %15191 = vsyncpa [#allocation15], 1 }
0x117f   :  { %15192 = vsyncpa [#allocation18], 1 }
0x1180   :  { %15193 = vsyncpa [#allocation21], 1 }
0x1181   :  { %15194 = vsyncpa [#allocation24], 1 }
0x1182   :  { %15195 = vsyncpa [#allocation7], 1 }
0x1183   :  { %15197 = vsyncpa [#allocation7 + $0x1], 1 }

</bundles_post_ra>
